<compile_context>
chip_gen: v7x
topology: tpu7x:2x2x1
jax: 0.10.0
libtpu: 0.0.40
codegen_flags: <defaults>
</compile_context>

<pallas_src>
import functools

import jax
import jax.numpy as jnp
from jax import lax
from jax.experimental import pallas as pl
from jax.experimental.pallas import tpu as pltpu

_DOT_DTYPE = jnp.bfloat16    # MXU operand dtype (accumulation stays f32)
_OUT_DTYPE = jnp.bfloat16    # per-timestep output storage dtype (HBM traffic)
_LANE = 128                  # lane width -> hidden/gate padding
_SUBLANE = 16                # batch padding (bf16 tiles want 16 sublanes)


def _round_up(x, m):
    return (x + m - 1) // m * m


def _pick_time_chunk(t, max_chunk):
    tc = max(1, min(t, max_chunk))
    while t % tc:
        tc -= 1
    return tc


def _pick_batch_tile(bp, max_tile):
    bt = max(_SUBLANE, min(bp, max_tile) // _SUBLANE * _SUBLANE)
    while bp % bt:
        bt -= _SUBLANE
    return bt


def _tpu_generation():
    """Coarse TPU generation tag used for tiling / gate-dtype decisions."""
    try:
        kind = jax.devices()[0].device_kind.lower()
    except Exception:
        return "unknown"
    if "v5 lite" in kind or "v5lite" in kind or "v5e" in kind:
        return "v5e"
    if "v7" in kind or "tpu7" in kind or "7x" in kind:
        return "v7"
    if "v6" in kind:
        return "v6"
    return "unknown"


def _gate_dtype(gen):
    # bf16 VPU/EUP exist on v6e/v7x; keep f32 gate math elsewhere (v5e etc.).
    return jnp.bfloat16 if gen in ("v6", "v7") else jnp.float32


def _layer_vmem_bytes(T, tc, bt, d_ins, hp):
    """Rough per-layer VMEM working set for a given tiling choice."""
    g3 = 3 * hp
    b = 0
    b += sum(T * bt * d for d in d_ins) * 2 * 2      # resident x blocks (bf16, 2 bufs across batch tiles)
    b += 2 * tc * bt * hp * 2 * 2                    # out_f / out_b chunk blocks (bf16, double-buffered)
    b += 2 * bt * hp * 4 * 2                         # ht carry block (f32)
    b += 2 * (sum(d_ins) + hp) * g3 * 2              # W_ih + W_hh both dirs (bf16, single-buffered)
    b += 2 * (g3 + hp) * 4                           # biases (f32)
    b += 2 * tc * bt * g3 * 4                        # per-gate gx scratch (f32)
    return b


def _select_tiles(T, bp, d_ins_by_layer, hp, gen, time_chunk, batch_tile):
    """Per-generation tile sizes + VMEM limit (v7x only has 64 MiB of VMEM)."""
    if gen == "v7":
        tc_cap, bt_cap, budget = 32, 128, 48 * 2**20
    elif gen == "v5e":
        tc_cap, bt_cap, budget = 64, 64, 96 * 2**20
    else:                        # v6e / unknown: 128 MiB part, 256-wide MXU
        tc_cap, bt_cap, budget = 64, 128, 96 * 2**20
    tc = time_chunk if time_chunk is not None else _pick_time_chunk(T, tc_cap)
    bt = batch_tile if batch_tile is not None else _pick_batch_tile(bp, bt_cap)

    def need(tc_, bt_):
        return max(_layer_vmem_bytes(T, tc_, bt_, d, hp)
                   for d in d_ins_by_layer)

    while need(tc, bt) > budget and bt > _SUBLANE:
        bt = _pick_batch_tile(bp, bt - _SUBLANE)
    while need(tc, bt) > budget and tc > 1:
        tc = _pick_time_chunk(T, tc - 1)
    # TODO(synk): fall back to a chunk-streamed x pipeline when even the
    # smallest tile does not fit (very long sequences on a 64 MiB v7x part).
    return tc, bt, budget


def _const_spec(shape, index_map):
    """Resident (constant-index) block; single-buffer it where supported."""
    if hasattr(pl, "Buffered"):
        try:
            return pl.BlockSpec(shape, index_map, pipeline_mode=pl.Buffered(1))
        except TypeError:        # older jax without pipeline_mode kwarg
            pass
    return pl.BlockSpec(shape, index_map)


# ----------------------------------------------------------------------------
# Pallas kernel: one fused bidirectional GRU layer, one (batch tile, time
# chunk) grid step.  The time-chunk grid axis is the serial recurrence; the
# hidden state is carried across chunks in the resident ht_ref output block.
# ----------------------------------------------------------------------------
def _bigru_layer_kernel(*refs, hp, tc, nc, n_x, cd, unroll):
    """
    refs layout (n_x = number of time-resident x inputs, 1 or 2):
      x_0..x_{n_x-1}          (T, bt, d_i)  bf16  time-resident inputs
      wih_f, whh_f            bf16 transposed weights, gate blocks [r|z|n]
      wih_b, whh_b
      bgx                     (2, 1, 3*hp)  f32  b_ih + [b_hh_r|b_hh_z|0] per dir
      bhn                     (2, 1, hp)    f32  b_hh_n per dir
      out_f, out_b            (tc, bt, hp)  bf16 per-timestep hidden states
      ht                      (2, bt, hp)   f32  running / final hidden (carry)
      gxr_f,gxz_f,gxn_f,
      gxr_b,gxz_b,gxn_b       (tc, bt, hp)  f32  per-gate hoisted projections
    """
    x_refs = refs[:n_x]
    (wih_f_ref, whh_f_ref, wih_b_ref, whh_b_ref, bgx_ref, bhn_ref,
     outf_ref, outb_ref, ht_ref,
     gxr_f_ref, gxz_f_ref, gxn_f_ref,
     gxr_b_ref, gxz_b_ref, gxn_b_ref) = refs[n_x:]

    c = pl.program_id(1)
    bt = outf_ref.shape[1]
    g3 = 3 * hp
    f32 = jnp.float32

    # Reset the recurrent state at the start of every batch tile's time sweep.
    @pl.when(c == 0)
    def _():
        ht_ref[...] = jnp.zeros_like(ht_ref)

    # ---- Hoisted input projection: one MXU matmul per x input per direction.
    # x is time-resident; slice the fwd chunk (c) and the bwd chunk (nc-1-c)
    # in-kernel instead of streaming the same array through the pipeline twice.
    def project(start, wih_ref, bias, gxr_ref, gxz_ref, gxn_ref):
        acc = None
        row = 0
        for xr in x_refs:
            d = xr.shape[-1]
            xc = xr[pl.ds(start, tc)].reshape(tc * bt, d)
            part = jnp.dot(xc, wih_ref[row:row + d, :],
                           preferred_element_type=f32)
            acc = part if acc is None else acc + part
            row += d
        gx = (acc + bias).reshape(tc, bt, g3)
        # Per-gate scratch: the recurrent loop only ever loads (bt, hp) slabs,
        # keeping the live vreg set small.  Lane slices are 128-aligned.
        gxr_ref[...] = gx[:, :, :hp]
        gxz_ref[...] = gx[:, :, hp:2 * hp]
        gxn_ref[...] = gx[:, :, 2 * hp:]

    c_f = pl.multiple_of(c * tc, tc)
    c_b = pl.multiple_of((nc - 1 - c) * tc, tc)
    project(c_f, wih_f_ref, bgx_ref[0], gxr_f_ref, gxz_f_ref, gxn_f_ref)
    project(c_b, wih_b_ref, bgx_ref[1], gxr_b_ref, gxz_b_ref, gxn_b_ref)

    bhn_f = bhn_ref[0]
    bhn_b = bhn_ref[1]

    # ---- Serial recurrence: fwd and bwd interleaved gate-by-gate.  Per-gate
    # (hp, hp) W_hh slices mean each gate's dot result is consumed immediately
    # (no (bt, 3hp) gh tensors alive), while both directions keep MXU/EUP busy.
    def step(i, carry):
        h_f, h_b = carry
        j = tc - 1 - i
        hfd = h_f.astype(whh_f_ref.dtype)
        hbd = h_b.astype(whh_b_ref.dtype)

        # r gate
        ghr_f = jnp.dot(hfd, whh_f_ref[:, :hp], preferred_element_type=f32)
        ghr_b = jnp.dot(hbd, whh_b_ref[:, :hp], preferred_element_type=f32)
        r_f = jax.nn.sigmoid((gxr_f_ref[i] + ghr_f).astype(cd))
        r_b = jax.nn.sigmoid((gxr_b_ref[j] + ghr_b).astype(cd))

        # z gate
        ghz_f = jnp.dot(hfd, whh_f_ref[:, hp:2 * hp], preferred_element_type=f32)
        ghz_b = jnp.dot(hbd, whh_b_ref[:, hp:2 * hp], preferred_element_type=f32)
        z_f = jax.nn.sigmoid((gxz_f_ref[i] + ghz_f).astype(cd))
        z_b = jax.nn.sigmoid((gxz_b_ref[j] + ghz_b).astype(cd))

        # n gate (b_hh_n must stay inside the r * (...) term)
        ghn_f = jnp.dot(hfd, whh_f_ref[:, 2 * hp:], preferred_element_type=f32)
        ghn_b = jnp.dot(hbd, whh_b_ref[:, 2 * hp:], preferred_element_type=f32)
        n_f = jnp.tanh((gxn_f_ref[i]
                        + r_f.astype(f32) * (ghn_f + bhn_f)).astype(cd))
        n_b = jnp.tanh((gxn_b_ref[j]
                        + r_b.astype(f32) * (ghn_b + bhn_b)).astype(cd))

        # Keep the hidden-state carry in f32 on every generation.
        h_f = (1.0 - z_f).astype(f32) * n_f.astype(f32) + z_f.astype(f32) * h_f
        h_b = (1.0 - z_b).astype(f32) * n_b.astype(f32) + z_b.astype(f32) * h_b

        # bf16 output stores (halves HBM write traffic; next layer wants bf16).
        outf_ref[i] = h_f.astype(outf_ref.dtype)
        outb_ref[j] = h_b.astype(outb_ref.dtype)
        return (h_f, h_b)

    h_f, h_b = lax.fori_loop(0, tc, step, (ht_ref[0], ht_ref[1]),
                             unroll=unroll)
    ht_ref[0] = h_f
    ht_ref[1] = h_b


def _bigru_layer(xs, lp, *, hp, tc, bt, cd, vmem_limit):
    """xs: list of (T, Bp, d_i) bf16 time-major inputs -> (out_f, out_b, h_t)."""
    T, bp = xs[0].shape[0], xs[0].shape[1]
    nc, nb = T // tc, bp // bt
    g3 = 3 * hp
    d_ins = [x.shape[-1] for x in xs]
    d_sum = sum(d_ins)
    # TODO(synk): sweep unroll in {2, 4} per generation on deployment shapes.
    unroll = True if tc <= 8 else 2

    kernel = functools.partial(_bigru_layer_kernel, hp=hp, tc=tc, nc=nc,
                               n_x=len(xs), cd=cd, unroll=unroll)

    # Time-resident x blocks: fetched once per batch tile, sliced per chunk
    # in-kernel (no second "backward view" stream).
    x_specs = [pl.BlockSpec((T, bt, d), lambda b, c: (0, b, 0)) for d in d_ins]
    w_specs = [
        _const_spec((d_sum, g3), lambda b, c: (0, 0)),        # W_ih fwd
        _const_spec((hp, g3), lambda b, c: (0, 0)),           # W_hh fwd
        _const_spec((d_sum, g3), lambda b, c: (0, 0)),        # W_ih bwd
        _const_spec((hp, g3), lambda b, c: (0, 0)),           # W_hh bwd
        _const_spec((2, 1, g3), lambda b, c: (0, 0, 0)),      # gx biases
        _const_spec((2, 1, hp), lambda b, c: (0, 0, 0)),      # b_hh_n
    ]
    out_specs = (
        pl.BlockSpec((tc, bt, hp), lambda b, c: (c, b, 0)),            # out fwd
        pl.BlockSpec((tc, bt, hp), lambda b, c: (nc - 1 - c, b, 0)),   # out bwd
        pl.BlockSpec((2, bt, hp), lambda b, c: (0, b, 0)),             # h_T carry
    )
    out_shape = (
        jax.ShapeDtypeStruct((T, bp, hp), _OUT_DTYPE),
        jax.ShapeDtypeStruct((T, bp, hp), _OUT_DTYPE),
        jax.ShapeDtypeStruct((2, bp, hp), jnp.float32),
    )
    scratch = [pltpu.VMEM((tc, bt, hp), jnp.float32) for _ in range(6)]

    # TODO(synk): when nb == 1 on v7x, de-fuse the directions onto a leading
    # parallel grid axis of size 2 so the second TensorCore is not idle.
    return pl.pallas_call(
        kernel,
        out_shape=out_shape,
        grid_spec=pltpu.PrefetchScalarGridSpec(
            num_scalar_prefetch=0,
            grid=(nb, nc),
            in_specs=x_specs + w_specs,
            out_specs=out_specs,
            scratch_shapes=scratch),
        compiler_params=pltpu.CompilerParams(
            dimension_semantics=("parallel", "arbitrary"),
            vmem_limit_bytes=int(vmem_limit)),
    )(*xs, lp["w_ih_f"], lp["w_hh_f"], lp["w_ih_b"], lp["w_hh_b"],
      lp["bias_gx"], lp["bias_hn"])


# ----------------------------------------------------------------------------
# One-time parameter preparation: pad / transpose / cast (done once, not per call).
# ----------------------------------------------------------------------------
def _pad_wih_t(w_ih, segments, dp, h, hp):
    """(3h, d_in) PyTorch layout -> (dp, 3*hp), gate g at columns [g*hp, g*hp+h)."""
    wt = jnp.transpose(w_ih).astype(jnp.float32)          # (d_in, 3h)
    out = jnp.zeros((dp, 3 * hp), jnp.float32)
    for (src, dst, ln) in segments:
        for g in range(3):
            out = out.at[dst:dst + ln, g * hp:g * hp + h].set(
                wt[src:src + ln, g * h:(g + 1) * h])
    return out.astype(_DOT_DTYPE)


def _pad_whh_t(w_hh, h, hp):
    wt = jnp.transpose(w_hh).astype(jnp.float32)          # (h, 3h)
    out = jnp.zeros((hp, 3 * hp), jnp.float32)
    for g in range(3):
        out = out.at[:h, g * hp:g * hp + h].set(wt[:, g * h:(g + 1) * h])
    return out.astype(_DOT_DTYPE)


def _pad_gate_vec(b, h, hp):
    out = jnp.zeros((3 * hp,), jnp.float32)
    for g in range(3):
        out = out.at[g * hp:g * hp + h].set(b[g * h:(g + 1) * h])
    return out


def prepare_kernel_params(params, embed_dim, hidden_dim, num_layers):
    h = hidden_dim
    hp = _round_up(h, _LANE)
    layers = []
    for layer in range(num_layers):
        if layer == 0:
            dp = _round_up(embed_dim, _LANE)
            segs = [(0, 0, embed_dim)]
        else:
            # Inputs arrive as two separate refs [fwd half | bwd half], each
            # padded to hp lanes; W_ih rows are laid out to match.
            dp = 2 * hp
            segs = [(0, 0, h), (h, hp, h)]
        lp = {}
        bgx, bhn = [], []
        for d, tag in ((0, "f"), (1, "b")):
            p = params[f"l{layer}_d{d}"]
            lp[f"w_ih_{tag}"] = _pad_wih_t(p["w_ih"], segs, dp, h, hp)
            lp[f"w_hh_{tag}"] = _pad_whh_t(p["w_hh"], h, hp)
            b_ih = p["b_ih"].astype(jnp.float32)
            b_hh = p["b_hh"].astype(jnp.float32)
            # Fold b_hh_r / b_hh_z into the hoisted input projection; b_hh_n
            # must stay inside the r * (...) term.
            gx_bias = b_ih + jnp.concatenate(
                [b_hh[:2 * h], jnp.zeros((h,), jnp.float32)])
            bgx.append(_pad_gate_vec(gx_bias, h, hp))
            bhn.append(jnp.zeros((hp,), jnp.float32).at[:h].set(b_hh[2 * h:]))
        lp["bias_gx"] = jnp.stack(bgx)[:, None, :]         # (2, 1, 3*hp)
        lp["bias_hn"] = jnp.stack(bhn)[:, None, :]         # (2, 1, hp)
        layers.append(lp)
    return {"embedding": params["embedding"].astype(jnp.float32),
            "layers": layers}


# ----------------------------------------------------------------------------
# Encoder forward: embedding gather (XLA glue) + stacked bidirectional GRU
# (Pallas), kept time-major across the whole layer stack.
# ----------------------------------------------------------------------------
@functools.partial(jax.jit, static_argnames=("num_layers", "hidden_dim",
                                             "time_chunk", "batch_tile"))
def encoder_forward(source, kparams, *, num_layers, hidden_dim,
                    time_chunk=None, batch_tile=None):
    """source: (B, T) int32 -> enc_h (B, T, 2H) f32, enc_h_t (2L, B, H) f32."""
    # TODO(synk): packed variable-length sequences (src_length path of the
    # PyTorch module) are not implemented; this covers hidden=None, src_length=None.
    B, T = source.shape
    h = hidden_dim
    hp = _round_up(h, _LANE)
    bp = _round_up(B, _SUBLANE)

    emb = kparams["embedding"]
    x = jnp.transpose(emb[source], (1, 0, 2))                  # (T, B, E), once
    e = x.shape[-1]
    dp0 = _round_up(e, _LANE)
    x = jnp.pad(x, ((0, 0), (0, bp - B), (0, dp0 - e))).astype(_DOT_DTYPE)

    gen = _tpu_generation()
    cd = _gate_dtype(gen)
    d_ins_by_layer = [[dp0]] + ([[hp, hp]] if num_layers > 1 else [])
    tc, bt, vmem_limit = _select_tiles(T, bp, d_ins_by_layer, hp, gen,
                                       time_chunk, batch_tile)
    assert T % tc == 0 and bp % bt == 0 and bt % _SUBLANE == 0

    xs = [x]
    h_t_all = []
    out_f = out_b = None
    for layer in range(num_layers):
        out_f, out_b, h_t = _bigru_layer(
            xs, kparams["layers"][layer], hp=hp, tc=tc, bt=bt, cd=cd,
            vmem_limit=vmem_limit)
        h_t_all.append(h_t)
        # Feed both bf16 direction outputs straight into the next layer --
        # no inter-layer concatenate / cast round trip through HBM.
        xs = [out_f, out_b]

    enc_h = jnp.concatenate([out_f[:, :B, :h], out_b[:, :B, :h]], axis=-1)
    enc_h = jnp.transpose(enc_h, (1, 0, 2)).astype(jnp.float32)  # (B, T, 2H)
    enc_h_t = jnp.concatenate(h_t_all, axis=0)[:, :B, :h]        # (2L, B, H)
    return enc_h, enc_h_t


# ----------------------------------------------------------------------------
# Pure-JAX reference (same math, same bf16 matmul-operand rounding).
# ----------------------------------------------------------------------------
def _ref_gru_dir(x, wih, whh, bih, bhh, reverse):
    B, T, _ = x.shape
    H = whh.shape[1]
    wih_t = jnp.transpose(wih).astype(_DOT_DTYPE)
    whh_t = jnp.transpose(whh).astype(_DOT_DTYPE)
    xs = jnp.transpose(x, (1, 0, 2))
    if reverse:
        xs = xs[::-1]

    def step(hh, x_t):
        gx = jnp.dot(x_t.astype(_DOT_DTYPE), wih_t,
                     preferred_element_type=jnp.float32) + bih
        gh = jnp.dot(hh.astype(_DOT_DTYPE), whh_t,
                     preferred_element_type=jnp.float32) + bhh
        r = jax.nn.sigmoid(gx[:, :H] + gh[:, :H])
        z = jax.nn.sigmoid(gx[:, H:2 * H] + gh[:, H:2 * H])
        n = jnp.tanh(gx[:, 2 * H:] + r * gh[:, 2 * H:])
        h_new = (1.0 - z) * n + z * hh
        return h_new, h_new

    h_t, outs = lax.scan(step, jnp.zeros((B, H), jnp.float32), xs)
    if reverse:
        outs = outs[::-1]
    return jnp.transpose(outs, (1, 0, 2)), h_t


def _ref_encoder(source, params, num_layers, hidden_dim):
    x = params["embedding"][source]
    h_n = []
    for layer in range(num_layers):
        outs = []
        for d in range(2):
            p = params[f"l{layer}_d{d}"]
            out, h_t = _ref_gru_dir(x, p["w_ih"], p["w_hh"], p["b_ih"],
                                    p["b_hh"], reverse=(d == 1))
            outs.append(out)
            h_n.append(h_t)
        x = jnp.concatenate(outs, axis=-1)
    return x, jnp.stack(h_n, axis=0)


# ----------------------------------------------------------------------------
# Deterministic parameter init (PyTorch-style uniform(-1/sqrt(H), 1/sqrt(H))).
# ----------------------------------------------------------------------------
def init_params(key, vocab_size, embed_dim, hidden_dim, num_layers):
    params = {}
    key, sub = jax.random.split(key)
    params["embedding"] = jax.random.normal(sub, (vocab_size, embed_dim),
                                            dtype=jnp.float32)
    bound = 1.0 / jnp.sqrt(hidden_dim)
    for layer in range(num_layers):
        in_dim = embed_dim if layer == 0 else 2 * hidden_dim
        for direction in range(2):
            key, k1, k2, k3, k4 = jax.random.split(key, 5)
            params[f"l{layer}_d{direction}"] = {
                "w_ih": jax.random.uniform(k1, (3 * hidden_dim, in_dim),
                                           minval=-bound, maxval=bound),
                "w_hh": jax.random.uniform(k2, (3 * hidden_dim, hidden_dim),
                                           minval=-bound, maxval=bound),
                "b_ih": jax.random.uniform(k3, (3 * hidden_dim,),
                                           minval=-bound, maxval=bound),
                "b_hh": jax.random.uniform(k4, (3 * hidden_dim,),
                                           minval=-bound, maxval=bound),
            }
    return params


if __name__ == "__main__":
    VOCAB, EMBED, HIDDEN, LAYERS = 50, 16, 32, 2
    GEN = _tpu_generation()
    # bf16 gate transcendentals (v6e/v7x) round the pre-activations slightly;
    # widen the check there.  The f32-gate path keeps the tight tolerance.
    TOL = 5e-3 if _gate_dtype(GEN) == jnp.float32 else 2e-2

    def run_case(key, batch, seqlen, time_chunk=None, batch_tile=None):
        k_src, k_par = jax.random.split(key)
        source = jax.random.randint(k_src, (batch, seqlen), 0, VOCAB,
                                    dtype=jnp.int32)
        params = init_params(k_par, VOCAB, EMBED, HIDDEN, LAYERS)
        kparams = prepare_kernel_params(params, EMBED, HIDDEN, LAYERS)

        enc_h, enc_h_t = encoder_forward(
            source, kparams, num_layers=LAYERS, hidden_dim=HIDDEN,
            time_chunk=time_chunk, batch_tile=batch_tile)
        enc_h = jax.block_until_ready(enc_h)
        enc_h_t = jax.block_until_ready(enc_h_t)

        assert enc_h.shape == (batch, seqlen, 2 * HIDDEN)
        assert enc_h_t.shape == (LAYERS * 2, batch, HIDDEN)

        ref_h, ref_h_t = _ref_encoder(source, params, LAYERS, HIDDEN)
        assert jnp.allclose(enc_h, ref_h, atol=TOL, rtol=TOL), \
            float(jnp.max(jnp.abs(enc_h - ref_h)))
        assert jnp.allclose(enc_h_t, ref_h_t, atol=TOL, rtol=TOL), \
            float(jnp.max(jnp.abs(enc_h_t - ref_h_t)))

    key = jax.random.PRNGKey(0)
    k1, k2, k3 = jax.random.split(key, 3)
    # Base config implied by the module: batch=2, seq=8, hidden=32, 2 layers.
    run_case(k1, batch=2, seqlen=8, time_chunk=4, batch_tile=16)
    # Multiple (parallel) batch tiles, non-aligned batch, multiple time chunks.
    run_case(k2, batch=18, seqlen=12, time_chunk=4, batch_tile=16)
    # Auto per-generation tile / VMEM-budget selection (single time chunk).
    run_case(k3, batch=4, seqlen=10)

    print("KERNEL_OK")
</pallas_src>

<mosaic_0001>
module attributes {stable_mosaic.version = 11 : i64} {
  func.func @_bigru_layer_kernel(%arg0: i32, %arg1: i32, %arg2: memref<8x16x128xbf16, #tpu.memory_space<vmem>>, %arg3: memref<8x16x128xbf16, #tpu.memory_space<vmem>>, %arg4: memref<256x384xbf16, #tpu.memory_space<vmem>>, %arg5: memref<128x384xbf16, #tpu.memory_space<vmem>>, %arg6: memref<256x384xbf16, #tpu.memory_space<vmem>>, %arg7: memref<128x384xbf16, #tpu.memory_space<vmem>>, %arg8: memref<2x1x384xf32, #tpu.memory_space<vmem>>, %arg9: memref<2x1x128xf32, #tpu.memory_space<vmem>>, %arg10: memref<4x16x128xbf16, #tpu.memory_space<vmem>>, %arg11: memref<4x16x128xbf16, #tpu.memory_space<vmem>>, %arg12: memref<2x16x128xf32, #tpu.memory_space<vmem>>, %arg13: memref<4x16x128xf32, #tpu.memory_space<vmem>>, %arg14: memref<4x16x128xf32, #tpu.memory_space<vmem>>, %arg15: memref<4x16x128xf32, #tpu.memory_space<vmem>>, %arg16: memref<4x16x128xf32, #tpu.memory_space<vmem>>, %arg17: memref<4x16x128xf32, #tpu.memory_space<vmem>>, %arg18: memref<4x16x128xf32, #tpu.memory_space<vmem>>) attributes {dimension_semantics = [#tpu.dimension_semantics<parallel>, #tpu.dimension_semantics<arbitrary>], iteration_bounds = array<i64: 1, 2>, scalar_prefetch = 0 : i64, scratch_operands = 6 : i64, tpu.core_type = #tpu.core_type<tc>, window_params = [{transform_indices = @transform_0, window_bounds = array<i64: 8, 16, 128>}, {transform_indices = @transform_1, window_bounds = array<i64: 8, 16, 128>}, {pipeline_mode = #tpu.pipeline_mode<synchronous>, transform_indices = @transform_2, window_bounds = array<i64: 256, 384>}, {pipeline_mode = #tpu.pipeline_mode<synchronous>, transform_indices = @transform_3, window_bounds = array<i64: 128, 384>}, {pipeline_mode = #tpu.pipeline_mode<synchronous>, transform_indices = @transform_4, window_bounds = array<i64: 256, 384>}, {pipeline_mode = #tpu.pipeline_mode<synchronous>, transform_indices = @transform_5, window_bounds = array<i64: 128, 384>}, {pipeline_mode = #tpu.pipeline_mode<synchronous>, transform_indices = @transform_6, window_bounds = array<i64: 2, 1, 384>}, {pipeline_mode = #tpu.pipeline_mode<synchronous>, transform_indices = @transform_7, window_bounds = array<i64: 2, 1, 128>}, {transform_indices = @transform_8, window_bounds = array<i64: 4, 16, 128>}, {transform_indices = @transform_9, window_bounds = array<i64: 4, 16, 128>}, {transform_indices = @transform_10, window_bounds = array<i64: 2, 16, 128>}]} {
    %c0_i32 = arith.constant 0 : i32
    %0 = arith.cmpi eq, %arg1, %c0_i32 : i32
    %1 = arith.extui %0 : i1 to i32
    %c0_i32_0 = arith.constant 0 : i32
    %2 = arith.cmpi ne, %1, %c0_i32_0 : i32
    scf.if %2 {
      %cst_226 = arith.constant 0.000000e+00 : f32
      %414 = vector.broadcast %cst_226 : f32 to vector<2x16x128xf32>
      %c0_227 = arith.constant 0 : index
      %c0_228 = arith.constant 0 : index
      %c0_229 = arith.constant 0 : index
      %415 = vector.load %arg12[%c0_227, %c0_228, %c0_229] : memref<2x16x128xf32, #tpu.memory_space<vmem>>, vector<2x16x128xf32>
      tpu.vector_store %arg12[%c0_227, %c0_228, %c0_229], %414 {strides = array<i32>} : memref<2x16x128xf32, #tpu.memory_space<vmem>>, vector<2x16x128xf32>,
    } else {
    }
    %c4_i32 = arith.constant 4 : i32
    %3 = arith.muli %arg1, %c4_i32 : i32
    %4 = tpu.assume_multiple %3, 4 : i32
    %c1_i32 = arith.constant 1 : i32
    %5 = arith.subi %c1_i32, %arg1 : i32
    %c4_i32_1 = arith.constant 4 : i32
    %6 = arith.muli %5, %c4_i32_1 : i32
    %7 = tpu.assume_multiple %6, 4 : i32
    %c0 = arith.constant 0 : index
    %c0_2 = arith.constant 0 : index
    %c0_3 = arith.constant 0 : index
    %8 = vector.load %arg8[%c0, %c0_2, %c0_3] : memref<2x1x384xf32, #tpu.memory_space<vmem>>, vector<1x1x384xf32>
    %9 = vector.shape_cast %8 : vector<1x1x384xf32> to vector<1x384xf32>
    %10 = arith.index_cast %4 : i32 to index
    %c0_4 = arith.constant 0 : index
    %c0_5 = arith.constant 0 : index
    %11 = vector.load %arg2[%10, %c0_4, %c0_5] : memref<8x16x128xbf16, #tpu.memory_space<vmem>>, vector<4x16x128xbf16>
    %12 = vector.shape_cast %11 : vector<4x16x128xbf16> to vector<64x128xbf16>
    %c0_6 = arith.constant 0 : index
    %c0_7 = arith.constant 0 : index
    %13 = vector.load %arg4[%c0_6, %c0_7] : memref<256x384xbf16, #tpu.memory_space<vmem>>, vector<128x384xbf16>
    %cst = arith.constant dense<0.000000e+00> : vector<64x384xf32>
    %14 = tpu.matmul %12, %13, %cst {dimension_numbers = #tpu.dot_dimension_numbers<[1], [0], [0], [1], [0, 0, 1, 1], [], []>} : vector<64x128xbf16>, vector<128x384xbf16>, vector<64x384xf32> -> vector<64x384xf32>
    %15 = arith.index_cast %4 : i32 to index
    %c0_8 = arith.constant 0 : index
    %c0_9 = arith.constant 0 : index
    %16 = vector.load %arg3[%15, %c0_8, %c0_9] : memref<8x16x128xbf16, #tpu.memory_space<vmem>>, vector<4x16x128xbf16>
    %17 = vector.shape_cast %16 : vector<4x16x128xbf16> to vector<64x128xbf16>
    %c128 = arith.constant 128 : index
    %c0_10 = arith.constant 0 : index
    %18 = vector.load %arg4[%c128, %c0_10] : memref<256x384xbf16, #tpu.memory_space<vmem>>, vector<128x384xbf16>
    %cst_11 = arith.constant dense<0.000000e+00> : vector<64x384xf32>
    %19 = tpu.matmul %17, %18, %cst_11 {dimension_numbers = #tpu.dot_dimension_numbers<[1], [0], [0], [1], [0, 0, 1, 1], [], []>} : vector<64x128xbf16>, vector<128x384xbf16>, vector<64x384xf32> -> vector<64x384xf32>
    %20 = arith.addf %14, %19 : vector<64x384xf32>
    %21 = vector.broadcast %9 : vector<1x384xf32> to vector<64x384xf32>
    %22 = arith.addf %20, %21 : vector<64x384xf32>
    %23 = vector.shape_cast %22 : vector<64x384xf32> to vector<4x16x384xf32>
    %24 = vector.extract_strided_slice %23 {offsets = [0, 0, 0], sizes = [4, 16, 128], strides = [1, 1, 1]} : vector<4x16x384xf32> to vector<4x16x128xf32>
    %c0_12 = arith.constant 0 : index
    %c0_13 = arith.constant 0 : index
    %c0_14 = arith.constant 0 : index
    %25 = vector.load %arg13[%c0_12, %c0_13, %c0_14] : memref<4x16x128xf32, #tpu.memory_space<vmem>>, vector<4x16x128xf32>
    tpu.vector_store %arg13[%c0_12, %c0_13, %c0_14], %24 {strides = array<i32>} : memref<4x16x128xf32, #tpu.memory_space<vmem>>, vector<4x16x128xf32>,
    %26 = vector.extract_strided_slice %23 {offsets = [0, 0, 128], sizes = [4, 16, 128], strides = [1, 1, 1]} : vector<4x16x384xf32> to vector<4x16x128xf32>
    %c0_15 = arith.constant 0 : index
    %c0_16 = arith.constant 0 : index
    %c0_17 = arith.constant 0 : index
    %27 = vector.load %arg14[%c0_15, %c0_16, %c0_17] : memref<4x16x128xf32, #tpu.memory_space<vmem>>, vector<4x16x128xf32>
    tpu.vector_store %arg14[%c0_15, %c0_16, %c0_17], %26 {strides = array<i32>} : memref<4x16x128xf32, #tpu.memory_space<vmem>>, vector<4x16x128xf32>,
    %28 = vector.extract_strided_slice %23 {offsets = [0, 0, 256], sizes = [4, 16, 128], strides = [1, 1, 1]} : vector<4x16x384xf32> to vector<4x16x128xf32>
    %c0_18 = arith.constant 0 : index
    %c0_19 = arith.constant 0 : index
    %c0_20 = arith.constant 0 : index
    %29 = vector.load %arg15[%c0_18, %c0_19, %c0_20] : memref<4x16x128xf32, #tpu.memory_space<vmem>>, vector<4x16x128xf32>
    tpu.vector_store %arg15[%c0_18, %c0_19, %c0_20], %28 {strides = array<i32>} : memref<4x16x128xf32, #tpu.memory_space<vmem>>, vector<4x16x128xf32>,
    %c1 = arith.constant 1 : index
    %c0_21 = arith.constant 0 : index
    %c0_22 = arith.constant 0 : index
    %30 = vector.load %arg8[%c1, %c0_21, %c0_22] : memref<2x1x384xf32, #tpu.memory_space<vmem>>, vector<1x1x384xf32>
    %31 = vector.shape_cast %30 : vector<1x1x384xf32> to vector<1x384xf32>
    %32 = arith.index_cast %7 : i32 to index
    %c0_23 = arith.constant 0 : index
    %c0_24 = arith.constant 0 : index
    %33 = vector.load %arg2[%32, %c0_23, %c0_24] : memref<8x16x128xbf16, #tpu.memory_space<vmem>>, vector<4x16x128xbf16>
    %34 = vector.shape_cast %33 : vector<4x16x128xbf16> to vector<64x128xbf16>
    %c0_25 = arith.constant 0 : index
    %c0_26 = arith.constant 0 : index
    %35 = vector.load %arg6[%c0_25, %c0_26] : memref<256x384xbf16, #tpu.memory_space<vmem>>, vector<128x384xbf16>
    %cst_27 = arith.constant dense<0.000000e+00> : vector<64x384xf32>
    %36 = tpu.matmul %34, %35, %cst_27 {dimension_numbers = #tpu.dot_dimension_numbers<[1], [0], [0], [1], [0, 0, 1, 1], [], []>} : vector<64x128xbf16>, vector<128x384xbf16>, vector<64x384xf32> -> vector<64x384xf32>
    %37 = arith.index_cast %7 : i32 to index
    %c0_28 = arith.constant 0 : index
    %c0_29 = arith.constant 0 : index
    %38 = vector.load %arg3[%37, %c0_28, %c0_29] : memref<8x16x128xbf16, #tpu.memory_space<vmem>>, vector<4x16x128xbf16>
    %39 = vector.shape_cast %38 : vector<4x16x128xbf16> to vector<64x128xbf16>
    %c128_30 = arith.constant 128 : index
    %c0_31 = arith.constant 0 : index
    %40 = vector.load %arg6[%c128_30, %c0_31] : memref<256x384xbf16, #tpu.memory_space<vmem>>, vector<128x384xbf16>
    %cst_32 = arith.constant dense<0.000000e+00> : vector<64x384xf32>
    %41 = tpu.matmul %39, %40, %cst_32 {dimension_numbers = #tpu.dot_dimension_numbers<[1], [0], [0], [1], [0, 0, 1, 1], [], []>} : vector<64x128xbf16>, vector<128x384xbf16>, vector<64x384xf32> -> vector<64x384xf32>
    %42 = arith.addf %36, %41 : vector<64x384xf32>
    %43 = vector.broadcast %31 : vector<1x384xf32> to vector<64x384xf32>
    %44 = arith.addf %42, %43 : vector<64x384xf32>
    %45 = vector.shape_cast %44 : vector<64x384xf32> to vector<4x16x384xf32>
    %46 = vector.extract_strided_slice %45 {offsets = [0, 0, 0], sizes = [4, 16, 128], strides = [1, 1, 1]} : vector<4x16x384xf32> to vector<4x16x128xf32>
    %c0_33 = arith.constant 0 : index
    %c0_34 = arith.constant 0 : index
    %c0_35 = arith.constant 0 : index
    %47 = vector.load %arg16[%c0_33, %c0_34, %c0_35] : memref<4x16x128xf32, #tpu.memory_space<vmem>>, vector<4x16x128xf32>
    tpu.vector_store %arg16[%c0_33, %c0_34, %c0_35], %46 {strides = array<i32>} : memref<4x16x128xf32, #tpu.memory_space<vmem>>, vector<4x16x128xf32>,
    %48 = vector.extract_strided_slice %45 {offsets = [0, 0, 128], sizes = [4, 16, 128], strides = [1, 1, 1]} : vector<4x16x384xf32> to vector<4x16x128xf32>
    %c0_36 = arith.constant 0 : index
    %c0_37 = arith.constant 0 : index
    %c0_38 = arith.constant 0 : index
    %49 = vector.load %arg17[%c0_36, %c0_37, %c0_38] : memref<4x16x128xf32, #tpu.memory_space<vmem>>, vector<4x16x128xf32>
    tpu.vector_store %arg17[%c0_36, %c0_37, %c0_38], %48 {strides = array<i32>} : memref<4x16x128xf32, #tpu.memory_space<vmem>>, vector<4x16x128xf32>,
    %50 = vector.extract_strided_slice %45 {offsets = [0, 0, 256], sizes = [4, 16, 128], strides = [1, 1, 1]} : vector<4x16x384xf32> to vector<4x16x128xf32>
    %c0_39 = arith.constant 0 : index
    %c0_40 = arith.constant 0 : index
    %c0_41 = arith.constant 0 : index
    %51 = vector.load %arg18[%c0_39, %c0_40, %c0_41] : memref<4x16x128xf32, #tpu.memory_space<vmem>>, vector<4x16x128xf32>
    tpu.vector_store %arg18[%c0_39, %c0_40, %c0_41], %50 {strides = array<i32>} : memref<4x16x128xf32, #tpu.memory_space<vmem>>, vector<4x16x128xf32>,
    %c0_42 = arith.constant 0 : index
    %c0_43 = arith.constant 0 : index
    %c0_44 = arith.constant 0 : index
    %52 = vector.load %arg9[%c0_42, %c0_43, %c0_44] : memref<2x1x128xf32, #tpu.memory_space<vmem>>, vector<1x1x128xf32>
    %53 = vector.shape_cast %52 : vector<1x1x128xf32> to vector<1x128xf32>
    %c1_45 = arith.constant 1 : index
    %c0_46 = arith.constant 0 : index
    %c0_47 = arith.constant 0 : index
    %54 = vector.load %arg9[%c1_45, %c0_46, %c0_47] : memref<2x1x128xf32, #tpu.memory_space<vmem>>, vector<1x1x128xf32>
    %55 = vector.shape_cast %54 : vector<1x1x128xf32> to vector<1x128xf32>
    %c0_48 = arith.constant 0 : index
    %c0_49 = arith.constant 0 : index
    %c0_50 = arith.constant 0 : index
    %56 = vector.load %arg12[%c0_48, %c0_49, %c0_50] : memref<2x16x128xf32, #tpu.memory_space<vmem>>, vector<1x16x128xf32>
    %57 = vector.shape_cast %56 : vector<1x16x128xf32> to vector<16x128xf32>
    %c1_51 = arith.constant 1 : index
    %c0_52 = arith.constant 0 : index
    %c0_53 = arith.constant 0 : index
    %58 = vector.load %arg12[%c1_51, %c0_52, %c0_53] : memref<2x16x128xf32, #tpu.memory_space<vmem>>, vector<1x16x128xf32>
    %59 = vector.shape_cast %58 : vector<1x16x128xf32> to vector<16x128xf32>
    %c0_i32_54 = arith.constant 0 : i32
    %c3_i32 = arith.constant 3 : i32
    %60 = arith.subi %c3_i32, %c0_i32_54 : i32
    %61 = arith.truncf %57 : vector<16x128xf32> to vector<16x128xbf16>
    %62 = arith.truncf %59 : vector<16x128xf32> to vector<16x128xbf16>
    %c0_55 = arith.constant 0 : index
    %c0_56 = arith.constant 0 : index
    %63 = vector.load %arg5[%c0_55, %c0_56] : memref<128x384xbf16, #tpu.memory_space<vmem>>, vector<128x128xbf16>
    %cst_57 = arith.constant dense<0.000000e+00> : vector<16x128xf32>
    %64 = tpu.matmul %61, %63, %cst_57 {dimension_numbers = #tpu.dot_dimension_numbers<[1], [0], [0], [1], [0, 0, 1, 1], [], []>} : vector<16x128xbf16>, vector<128x128xbf16>, vector<16x128xf32> -> vector<16x128xf32>
    %c0_58 = arith.constant 0 : index
    %c0_59 = arith.constant 0 : index
    %65 = vector.load %arg7[%c0_58, %c0_59] : memref<128x384xbf16, #tpu.memory_space<vmem>>, vector<128x128xbf16>
    %cst_60 = arith.constant dense<0.000000e+00> : vector<16x128xf32>
    %66 = tpu.matmul %62, %65, %cst_60 {dimension_numbers = #tpu.dot_dimension_numbers<[1], [0], [0], [1], [0, 0, 1, 1], [], []>} : vector<16x128xbf16>, vector<128x128xbf16>, vector<16x128xf32> -> vector<16x128xf32>
    %67 = arith.index_cast %c0_i32_54 : i32 to index
    %c0_61 = arith.constant 0 : index
    %c0_62 = arith.constant 0 : index
    %68 = vector.load %arg13[%67, %c0_61, %c0_62] : memref<4x16x128xf32, #tpu.memory_space<vmem>>, vector<1x16x128xf32>
    %69 = vector.shape_cast %68 : vector<1x16x128xf32> to vector<16x128xf32>
    %70 = arith.addf %69, %64 : vector<16x128xf32>
    %71 = arith.negf %70 : vector<16x128xf32>
    %72 = math.exp %71 : vector<16x128xf32>
    %cst_63 = arith.constant 1.000000e+00 : f32
    %73 = vector.broadcast %cst_63 : f32 to vector<16x128xf32>
    %74 = arith.addf %73, %72 : vector<16x128xf32>
    %75 = arith.divf %73, %74 : vector<16x128xf32>
    %76 = arith.index_cast %60 : i32 to index
    %c0_64 = arith.constant 0 : index
    %c0_65 = arith.constant 0 : index
    %77 = vector.load %arg16[%76, %c0_64, %c0_65] : memref<4x16x128xf32, #tpu.memory_space<vmem>>, vector<1x16x128xf32>
    %78 = vector.shape_cast %77 : vector<1x16x128xf32> to vector<16x128xf32>
    %79 = arith.addf %78, %66 : vector<16x128xf32>
    %80 = arith.negf %79 : vector<16x128xf32>
    %81 = math.exp %80 : vector<16x128xf32>
    %cst_66 = arith.constant 1.000000e+00 : f32
    %82 = vector.broadcast %cst_66 : f32 to vector<16x128xf32>
    %83 = arith.addf %82, %81 : vector<16x128xf32>
    %84 = arith.divf %82, %83 : vector<16x128xf32>
    %c0_67 = arith.constant 0 : index
    %c128_68 = arith.constant 128 : index
    %85 = vector.load %arg5[%c0_67, %c128_68] : memref<128x384xbf16, #tpu.memory_space<vmem>>, vector<128x128xbf16>
    %cst_69 = arith.constant dense<0.000000e+00> : vector<16x128xf32>
    %86 = tpu.matmul %61, %85, %cst_69 {dimension_numbers = #tpu.dot_dimension_numbers<[1], [0], [0], [1], [0, 0, 1, 1], [], []>} : vector<16x128xbf16>, vector<128x128xbf16>, vector<16x128xf32> -> vector<16x128xf32>
    %c0_70 = arith.constant 0 : index
    %c128_71 = arith.constant 128 : index
    %87 = vector.load %arg7[%c0_70, %c128_71] : memref<128x384xbf16, #tpu.memory_space<vmem>>, vector<128x128xbf16>
    %cst_72 = arith.constant dense<0.000000e+00> : vector<16x128xf32>
    %88 = tpu.matmul %62, %87, %cst_72 {dimension_numbers = #tpu.dot_dimension_numbers<[1], [0], [0], [1], [0, 0, 1, 1], [], []>} : vector<16x128xbf16>, vector<128x128xbf16>, vector<16x128xf32> -> vector<16x128xf32>
    %89 = arith.index_cast %c0_i32_54 : i32 to index
    %c0_73 = arith.constant 0 : index
    %c0_74 = arith.constant 0 : index
    %90 = vector.load %arg14[%89, %c0_73, %c0_74] : memref<4x16x128xf32, #tpu.memory_space<vmem>>, vector<1x16x128xf32>
    %91 = vector.shape_cast %90 : vector<1x16x128xf32> to vector<16x128xf32>
    %92 = arith.addf %91, %86 : vector<16x128xf32>
    %93 = arith.negf %92 : vector<16x128xf32>
    %94 = math.exp %93 : vector<16x128xf32>
    %cst_75 = arith.constant 1.000000e+00 : f32
    %95 = vector.broadcast %cst_75 : f32 to vector<16x128xf32>
    %96 = arith.addf %95, %94 : vector<16x128xf32>
    %97 = arith.divf %95, %96 : vector<16x128xf32>
    %98 = arith.index_cast %60 : i32 to index
    %c0_76 = arith.constant 0 : index
    %c0_77 = arith.constant 0 : index
    %99 = vector.load %arg17[%98, %c0_76, %c0_77] : memref<4x16x128xf32, #tpu.memory_space<vmem>>, vector<1x16x128xf32>
    %100 = vector.shape_cast %99 : vector<1x16x128xf32> to vector<16x128xf32>
    %101 = arith.addf %100, %88 : vector<16x128xf32>
    %102 = arith.negf %101 : vector<16x128xf32>
    %103 = math.exp %102 : vector<16x128xf32>
    %cst_78 = arith.constant 1.000000e+00 : f32
    %104 = vector.broadcast %cst_78 : f32 to vector<16x128xf32>
    %105 = arith.addf %104, %103 : vector<16x128xf32>
    %106 = arith.divf %104, %105 : vector<16x128xf32>
    %c0_79 = arith.constant 0 : index
    %c256 = arith.constant 256 : index
    %107 = vector.load %arg5[%c0_79, %c256] : memref<128x384xbf16, #tpu.memory_space<vmem>>, vector<128x128xbf16>
    %cst_80 = arith.constant dense<0.000000e+00> : vector<16x128xf32>
    %108 = tpu.matmul %61, %107, %cst_80 {dimension_numbers = #tpu.dot_dimension_numbers<[1], [0], [0], [1], [0, 0, 1, 1], [], []>} : vector<16x128xbf16>, vector<128x128xbf16>, vector<16x128xf32> -> vector<16x128xf32>
    %c0_81 = arith.constant 0 : index
    %c256_82 = arith.constant 256 : index
    %109 = vector.load %arg7[%c0_81, %c256_82] : memref<128x384xbf16, #tpu.memory_space<vmem>>, vector<128x128xbf16>
    %cst_83 = arith.constant dense<0.000000e+00> : vector<16x128xf32>
    %110 = tpu.matmul %62, %109, %cst_83 {dimension_numbers = #tpu.dot_dimension_numbers<[1], [0], [0], [1], [0, 0, 1, 1], [], []>} : vector<16x128xbf16>, vector<128x128xbf16>, vector<16x128xf32> -> vector<16x128xf32>
    %111 = arith.index_cast %c0_i32_54 : i32 to index
    %c0_84 = arith.constant 0 : index
    %c0_85 = arith.constant 0 : index
    %112 = vector.load %arg15[%111, %c0_84, %c0_85] : memref<4x16x128xf32, #tpu.memory_space<vmem>>, vector<1x16x128xf32>
    %113 = vector.shape_cast %112 : vector<1x16x128xf32> to vector<16x128xf32>
    %114 = vector.broadcast %53 : vector<1x128xf32> to vector<16x128xf32>
    %115 = arith.addf %108, %114 : vector<16x128xf32>
    %116 = arith.mulf %75, %115 : vector<16x128xf32>
    %117 = arith.addf %113, %116 : vector<16x128xf32>
    %118 = math.tanh %117 : vector<16x128xf32>
    %119 = arith.index_cast %60 : i32 to index
    %c0_86 = arith.constant 0 : index
    %c0_87 = arith.constant 0 : index
    %120 = vector.load %arg18[%119, %c0_86, %c0_87] : memref<4x16x128xf32, #tpu.memory_space<vmem>>, vector<1x16x128xf32>
    %121 = vector.shape_cast %120 : vector<1x16x128xf32> to vector<16x128xf32>
    %122 = vector.broadcast %55 : vector<1x128xf32> to vector<16x128xf32>
    %123 = arith.addf %110, %122 : vector<16x128xf32>
    %124 = arith.mulf %84, %123 : vector<16x128xf32>
    %125 = arith.addf %121, %124 : vector<16x128xf32>
    %126 = math.tanh %125 : vector<16x128xf32>
    %cst_88 = arith.constant 1.000000e+00 : f32
    %127 = vector.broadcast %cst_88 : f32 to vector<16x128xf32>
    %128 = arith.subf %127, %97 : vector<16x128xf32>
    %129 = arith.mulf %128, %118 : vector<16x128xf32>
    %130 = arith.mulf %97, %57 : vector<16x128xf32>
    %131 = arith.addf %129, %130 : vector<16x128xf32>
    %cst_89 = arith.constant 1.000000e+00 : f32
    %132 = vector.broadcast %cst_89 : f32 to vector<16x128xf32>
    %133 = arith.subf %132, %106 : vector<16x128xf32>
    %134 = arith.mulf %133, %126 : vector<16x128xf32>
    %135 = arith.mulf %106, %59 : vector<16x128xf32>
    %136 = arith.addf %134, %135 : vector<16x128xf32>
    %137 = arith.truncf %131 : vector<16x128xf32> to vector<16x128xbf16>
    %138 = arith.index_cast %c0_i32_54 : i32 to index
    %c0_90 = arith.constant 0 : index
    %c0_91 = arith.constant 0 : index
    %139 = vector.load %arg10[%138, %c0_90, %c0_91] : memref<4x16x128xbf16, #tpu.memory_space<vmem>>, vector<1x16x128xbf16>
    %140 = vector.shape_cast %139 : vector<1x16x128xbf16> to vector<16x128xbf16>
    %141 = vector.shape_cast %137 : vector<16x128xbf16> to vector<1x16x128xbf16>
    tpu.vector_store %arg10[%138, %c0_90, %c0_91], %141 {strides = array<i32>} : memref<4x16x128xbf16, #tpu.memory_space<vmem>>, vector<1x16x128xbf16>,
    %142 = arith.truncf %136 : vector<16x128xf32> to vector<16x128xbf16>
    %143 = arith.index_cast %60 : i32 to index
    %c0_92 = arith.constant 0 : index
    %c0_93 = arith.constant 0 : index
    %144 = vector.load %arg11[%143, %c0_92, %c0_93] : memref<4x16x128xbf16, #tpu.memory_space<vmem>>, vector<1x16x128xbf16>
    %145 = vector.shape_cast %144 : vector<1x16x128xbf16> to vector<16x128xbf16>
    %146 = vector.shape_cast %142 : vector<16x128xbf16> to vector<1x16x128xbf16>
    tpu.vector_store %arg11[%143, %c0_92, %c0_93], %146 {strides = array<i32>} : memref<4x16x128xbf16, #tpu.memory_space<vmem>>, vector<1x16x128xbf16>,
    %c1_i32_94 = arith.constant 1 : i32
    %c3_i32_95 = arith.constant 3 : i32
    %147 = arith.subi %c3_i32_95, %c1_i32_94 : i32
    %148 = arith.truncf %131 : vector<16x128xf32> to vector<16x128xbf16>
    %149 = arith.truncf %136 : vector<16x128xf32> to vector<16x128xbf16>
    %c0_96 = arith.constant 0 : index
    %c0_97 = arith.constant 0 : index
    %150 = vector.load %arg5[%c0_96, %c0_97] : memref<128x384xbf16, #tpu.memory_space<vmem>>, vector<128x128xbf16>
    %cst_98 = arith.constant dense<0.000000e+00> : vector<16x128xf32>
    %151 = tpu.matmul %148, %150, %cst_98 {dimension_numbers = #tpu.dot_dimension_numbers<[1], [0], [0], [1], [0, 0, 1, 1], [], []>} : vector<16x128xbf16>, vector<128x128xbf16>, vector<16x128xf32> -> vector<16x128xf32>
    %c0_99 = arith.constant 0 : index
    %c0_100 = arith.constant 0 : index
    %152 = vector.load %arg7[%c0_99, %c0_100] : memref<128x384xbf16, #tpu.memory_space<vmem>>, vector<128x128xbf16>
    %cst_101 = arith.constant dense<0.000000e+00> : vector<16x128xf32>
    %153 = tpu.matmul %149, %152, %cst_101 {dimension_numbers = #tpu.dot_dimension_numbers<[1], [0], [0], [1], [0, 0, 1, 1], [], []>} : vector<16x128xbf16>, vector<128x128xbf16>, vector<16x128xf32> -> vector<16x128xf32>
    %154 = arith.index_cast %c1_i32_94 : i32 to index
    %c0_102 = arith.constant 0 : index
    %c0_103 = arith.constant 0 : index
    %155 = vector.load %arg13[%154, %c0_102, %c0_103] : memref<4x16x128xf32, #tpu.memory_space<vmem>>, vector<1x16x128xf32>
    %156 = vector.shape_cast %155 : vector<1x16x128xf32> to vector<16x128xf32>
    %157 = arith.addf %156, %151 : vector<16x128xf32>
    %158 = arith.negf %157 : vector<16x128xf32>
    %159 = math.exp %158 : vector<16x128xf32>
    %cst_104 = arith.constant 1.000000e+00 : f32
    %160 = vector.broadcast %cst_104 : f32 to vector<16x128xf32>
    %161 = arith.addf %160, %159 : vector<16x128xf32>
    %162 = arith.divf %160, %161 : vector<16x128xf32>
    %163 = arith.index_cast %147 : i32 to index
    %c0_105 = arith.constant 0 : index
    %c0_106 = arith.constant 0 : index
    %164 = vector.load %arg16[%163, %c0_105, %c0_106] : memref<4x16x128xf32, #tpu.memory_space<vmem>>, vector<1x16x128xf32>
    %165 = vector.shape_cast %164 : vector<1x16x128xf32> to vector<16x128xf32>
    %166 = arith.addf %165, %153 : vector<16x128xf32>
    %167 = arith.negf %166 : vector<16x128xf32>
    %168 = math.exp %167 : vector<16x128xf32>
    %cst_107 = arith.constant 1.000000e+00 : f32
    %169 = vector.broadcast %cst_107 : f32 to vector<16x128xf32>
    %170 = arith.addf %169, %168 : vector<16x128xf32>
    %171 = arith.divf %169, %170 : vector<16x128xf32>
    %c0_108 = arith.constant 0 : index
    %c128_109 = arith.constant 128 : index
    %172 = vector.load %arg5[%c0_108, %c128_109] : memref<128x384xbf16, #tpu.memory_space<vmem>>, vector<128x128xbf16>
    %cst_110 = arith.constant dense<0.000000e+00> : vector<16x128xf32>
    %173 = tpu.matmul %148, %172, %cst_110 {dimension_numbers = #tpu.dot_dimension_numbers<[1], [0], [0], [1], [0, 0, 1, 1], [], []>} : vector<16x128xbf16>, vector<128x128xbf16>, vector<16x128xf32> -> vector<16x128xf32>
    %c0_111 = arith.constant 0 : index
    %c128_112 = arith.constant 128 : index
    %174 = vector.load %arg7[%c0_111, %c128_112] : memref<128x384xbf16, #tpu.memory_space<vmem>>, vector<128x128xbf16>
    %cst_113 = arith.constant dense<0.000000e+00> : vector<16x128xf32>
    %175 = tpu.matmul %149, %174, %cst_113 {dimension_numbers = #tpu.dot_dimension_numbers<[1], [0], [0], [1], [0, 0, 1, 1], [], []>} : vector<16x128xbf16>, vector<128x128xbf16>, vector<16x128xf32> -> vector<16x128xf32>
    %176 = arith.index_cast %c1_i32_94 : i32 to index
    %c0_114 = arith.constant 0 : index
    %c0_115 = arith.constant 0 : index
    %177 = vector.load %arg14[%176, %c0_114, %c0_115] : memref<4x16x128xf32, #tpu.memory_space<vmem>>, vector<1x16x128xf32>
    %178 = vector.shape_cast %177 : vector<1x16x128xf32> to vector<16x128xf32>
    %179 = arith.addf %178, %173 : vector<16x128xf32>
    %180 = arith.negf %179 : vector<16x128xf32>
    %181 = math.exp %180 : vector<16x128xf32>
    %cst_116 = arith.constant 1.000000e+00 : f32
    %182 = vector.broadcast %cst_116 : f32 to vector<16x128xf32>
    %183 = arith.addf %182, %181 : vector<16x128xf32>
    %184 = arith.divf %182, %183 : vector<16x128xf32>
    %185 = arith.index_cast %147 : i32 to index
    %c0_117 = arith.constant 0 : index
    %c0_118 = arith.constant 0 : index
    %186 = vector.load %arg17[%185, %c0_117, %c0_118] : memref<4x16x128xf32, #tpu.memory_space<vmem>>, vector<1x16x128xf32>
    %187 = vector.shape_cast %186 : vector<1x16x128xf32> to vector<16x128xf32>
    %188 = arith.addf %187, %175 : vector<16x128xf32>
    %189 = arith.negf %188 : vector<16x128xf32>
    %190 = math.exp %189 : vector<16x128xf32>
    %cst_119 = arith.constant 1.000000e+00 : f32
    %191 = vector.broadcast %cst_119 : f32 to vector<16x128xf32>
    %192 = arith.addf %191, %190 : vector<16x128xf32>
    %193 = arith.divf %191, %192 : vector<16x128xf32>
    %c0_120 = arith.constant 0 : index
    %c256_121 = arith.constant 256 : index
    %194 = vector.load %arg5[%c0_120, %c256_121] : memref<128x384xbf16, #tpu.memory_space<vmem>>, vector<128x128xbf16>
    %cst_122 = arith.constant dense<0.000000e+00> : vector<16x128xf32>
    %195 = tpu.matmul %148, %194, %cst_122 {dimension_numbers = #tpu.dot_dimension_numbers<[1], [0], [0], [1], [0, 0, 1, 1], [], []>} : vector<16x128xbf16>, vector<128x128xbf16>, vector<16x128xf32> -> vector<16x128xf32>
    %c0_123 = arith.constant 0 : index
    %c256_124 = arith.constant 256 : index
    %196 = vector.load %arg7[%c0_123, %c256_124] : memref<128x384xbf16, #tpu.memory_space<vmem>>, vector<128x128xbf16>
    %cst_125 = arith.constant dense<0.000000e+00> : vector<16x128xf32>
    %197 = tpu.matmul %149, %196, %cst_125 {dimension_numbers = #tpu.dot_dimension_numbers<[1], [0], [0], [1], [0, 0, 1, 1], [], []>} : vector<16x128xbf16>, vector<128x128xbf16>, vector<16x128xf32> -> vector<16x128xf32>
    %198 = arith.index_cast %c1_i32_94 : i32 to index
    %c0_126 = arith.constant 0 : index
    %c0_127 = arith.constant 0 : index
    %199 = vector.load %arg15[%198, %c0_126, %c0_127] : memref<4x16x128xf32, #tpu.memory_space<vmem>>, vector<1x16x128xf32>
    %200 = vector.shape_cast %199 : vector<1x16x128xf32> to vector<16x128xf32>
    %201 = vector.broadcast %53 : vector<1x128xf32> to vector<16x128xf32>
    %202 = arith.addf %195, %201 : vector<16x128xf32>
    %203 = arith.mulf %162, %202 : vector<16x128xf32>
    %204 = arith.addf %200, %203 : vector<16x128xf32>
    %205 = math.tanh %204 : vector<16x128xf32>
    %206 = arith.index_cast %147 : i32 to index
    %c0_128 = arith.constant 0 : index
    %c0_129 = arith.constant 0 : index
    %207 = vector.load %arg18[%206, %c0_128, %c0_129] : memref<4x16x128xf32, #tpu.memory_space<vmem>>, vector<1x16x128xf32>
    %208 = vector.shape_cast %207 : vector<1x16x128xf32> to vector<16x128xf32>
    %209 = vector.broadcast %55 : vector<1x128xf32> to vector<16x128xf32>
    %210 = arith.addf %197, %209 : vector<16x128xf32>
    %211 = arith.mulf %171, %210 : vector<16x128xf32>
    %212 = arith.addf %208, %211 : vector<16x128xf32>
    %213 = math.tanh %212 : vector<16x128xf32>
    %cst_130 = arith.constant 1.000000e+00 : f32
    %214 = vector.broadcast %cst_130 : f32 to vector<16x128xf32>
    %215 = arith.subf %214, %184 : vector<16x128xf32>
    %216 = arith.mulf %215, %205 : vector<16x128xf32>
    %217 = arith.mulf %184, %131 : vector<16x128xf32>
    %218 = arith.addf %216, %217 : vector<16x128xf32>
    %cst_131 = arith.constant 1.000000e+00 : f32
    %219 = vector.broadcast %cst_131 : f32 to vector<16x128xf32>
    %220 = arith.subf %219, %193 : vector<16x128xf32>
    %221 = arith.mulf %220, %213 : vector<16x128xf32>
    %222 = arith.mulf %193, %136 : vector<16x128xf32>
    %223 = arith.addf %221, %222 : vector<16x128xf32>
    %224 = arith.truncf %218 : vector<16x128xf32> to vector<16x128xbf16>
    %225 = arith.index_cast %c1_i32_94 : i32 to index
    %c0_132 = arith.constant 0 : index
    %c0_133 = arith.constant 0 : index
    %226 = vector.load %arg10[%225, %c0_132, %c0_133] : memref<4x16x128xbf16, #tpu.memory_space<vmem>>, vector<1x16x128xbf16>
    %227 = vector.shape_cast %226 : vector<1x16x128xbf16> to vector<16x128xbf16>
    %228 = vector.shape_cast %224 : vector<16x128xbf16> to vector<1x16x128xbf16>
    tpu.vector_store %arg10[%225, %c0_132, %c0_133], %228 {strides = array<i32>} : memref<4x16x128xbf16, #tpu.memory_space<vmem>>, vector<1x16x128xbf16>,
    %229 = arith.truncf %223 : vector<16x128xf32> to vector<16x128xbf16>
    %230 = arith.index_cast %147 : i32 to index
    %c0_134 = arith.constant 0 : index
    %c0_135 = arith.constant 0 : index
    %231 = vector.load %arg11[%230, %c0_134, %c0_135] : memref<4x16x128xbf16, #tpu.memory_space<vmem>>, vector<1x16x128xbf16>
    %232 = vector.shape_cast %231 : vector<1x16x128xbf16> to vector<16x128xbf16>
    %233 = vector.shape_cast %229 : vector<16x128xbf16> to vector<1x16x128xbf16>
    tpu.vector_store %arg11[%230, %c0_134, %c0_135], %233 {strides = array<i32>} : memref<4x16x128xbf16, #tpu.memory_space<vmem>>, vector<1x16x128xbf16>,
    %c2_i32 = arith.constant 2 : i32
    %c3_i32_136 = arith.constant 3 : i32
    %234 = arith.subi %c3_i32_136, %c2_i32 : i32
    %235 = arith.truncf %218 : vector<16x128xf32> to vector<16x128xbf16>
    %236 = arith.truncf %223 : vector<16x128xf32> to vector<16x128xbf16>
    %c0_137 = arith.constant 0 : index
    %c0_138 = arith.constant 0 : index
    %237 = vector.load %arg5[%c0_137, %c0_138] : memref<128x384xbf16, #tpu.memory_space<vmem>>, vector<128x128xbf16>
    %cst_139 = arith.constant dense<0.000000e+00> : vector<16x128xf32>
    %238 = tpu.matmul %235, %237, %cst_139 {dimension_numbers = #tpu.dot_dimension_numbers<[1], [0], [0], [1], [0, 0, 1, 1], [], []>} : vector<16x128xbf16>, vector<128x128xbf16>, vector<16x128xf32> -> vector<16x128xf32>
    %c0_140 = arith.constant 0 : index
    %c0_141 = arith.constant 0 : index
    %239 = vector.load %arg7[%c0_140, %c0_141] : memref<128x384xbf16, #tpu.memory_space<vmem>>, vector<128x128xbf16>
    %cst_142 = arith.constant dense<0.000000e+00> : vector<16x128xf32>
    %240 = tpu.matmul %236, %239, %cst_142 {dimension_numbers = #tpu.dot_dimension_numbers<[1], [0], [0], [1], [0, 0, 1, 1], [], []>} : vector<16x128xbf16>, vector<128x128xbf16>, vector<16x128xf32> -> vector<16x128xf32>
    %241 = arith.index_cast %c2_i32 : i32 to index
    %c0_143 = arith.constant 0 : index
    %c0_144 = arith.constant 0 : index
    %242 = vector.load %arg13[%241, %c0_143, %c0_144] : memref<4x16x128xf32, #tpu.memory_space<vmem>>, vector<1x16x128xf32>
    %243 = vector.shape_cast %242 : vector<1x16x128xf32> to vector<16x128xf32>
    %244 = arith.addf %243, %238 : vector<16x128xf32>
    %245 = arith.negf %244 : vector<16x128xf32>
    %246 = math.exp %245 : vector<16x128xf32>
    %cst_145 = arith.constant 1.000000e+00 : f32
    %247 = vector.broadcast %cst_145 : f32 to vector<16x128xf32>
    %248 = arith.addf %247, %246 : vector<16x128xf32>
    %249 = arith.divf %247, %248 : vector<16x128xf32>
    %250 = arith.index_cast %234 : i32 to index
    %c0_146 = arith.constant 0 : index
    %c0_147 = arith.constant 0 : index
    %251 = vector.load %arg16[%250, %c0_146, %c0_147] : memref<4x16x128xf32, #tpu.memory_space<vmem>>, vector<1x16x128xf32>
    %252 = vector.shape_cast %251 : vector<1x16x128xf32> to vector<16x128xf32>
    %253 = arith.addf %252, %240 : vector<16x128xf32>
    %254 = arith.negf %253 : vector<16x128xf32>
    %255 = math.exp %254 : vector<16x128xf32>
    %cst_148 = arith.constant 1.000000e+00 : f32
    %256 = vector.broadcast %cst_148 : f32 to vector<16x128xf32>
    %257 = arith.addf %256, %255 : vector<16x128xf32>
    %258 = arith.divf %256, %257 : vector<16x128xf32>
    %c0_149 = arith.constant 0 : index
    %c128_150 = arith.constant 128 : index
    %259 = vector.load %arg5[%c0_149, %c128_150] : memref<128x384xbf16, #tpu.memory_space<vmem>>, vector<128x128xbf16>
    %cst_151 = arith.constant dense<0.000000e+00> : vector<16x128xf32>
    %260 = tpu.matmul %235, %259, %cst_151 {dimension_numbers = #tpu.dot_dimension_numbers<[1], [0], [0], [1], [0, 0, 1, 1], [], []>} : vector<16x128xbf16>, vector<128x128xbf16>, vector<16x128xf32> -> vector<16x128xf32>
    %c0_152 = arith.constant 0 : index
    %c128_153 = arith.constant 128 : index
    %261 = vector.load %arg7[%c0_152, %c128_153] : memref<128x384xbf16, #tpu.memory_space<vmem>>, vector<128x128xbf16>
    %cst_154 = arith.constant dense<0.000000e+00> : vector<16x128xf32>
    %262 = tpu.matmul %236, %261, %cst_154 {dimension_numbers = #tpu.dot_dimension_numbers<[1], [0], [0], [1], [0, 0, 1, 1], [], []>} : vector<16x128xbf16>, vector<128x128xbf16>, vector<16x128xf32> -> vector<16x128xf32>
    %263 = arith.index_cast %c2_i32 : i32 to index
    %c0_155 = arith.constant 0 : index
    %c0_156 = arith.constant 0 : index
    %264 = vector.load %arg14[%263, %c0_155, %c0_156] : memref<4x16x128xf32, #tpu.memory_space<vmem>>, vector<1x16x128xf32>
    %265 = vector.shape_cast %264 : vector<1x16x128xf32> to vector<16x128xf32>
    %266 = arith.addf %265, %260 : vector<16x128xf32>
    %267 = arith.negf %266 : vector<16x128xf32>
    %268 = math.exp %267 : vector<16x128xf32>
    %cst_157 = arith.constant 1.000000e+00 : f32
    %269 = vector.broadcast %cst_157 : f32 to vector<16x128xf32>
    %270 = arith.addf %269, %268 : vector<16x128xf32>
    %271 = arith.divf %269, %270 : vector<16x128xf32>
    %272 = arith.index_cast %234 : i32 to index
    %c0_158 = arith.constant 0 : index
    %c0_159 = arith.constant 0 : index
    %273 = vector.load %arg17[%272, %c0_158, %c0_159] : memref<4x16x128xf32, #tpu.memory_space<vmem>>, vector<1x16x128xf32>
    %274 = vector.shape_cast %273 : vector<1x16x128xf32> to vector<16x128xf32>
    %275 = arith.addf %274, %262 : vector<16x128xf32>
    %276 = arith.negf %275 : vector<16x128xf32>
    %277 = math.exp %276 : vector<16x128xf32>
    %cst_160 = arith.constant 1.000000e+00 : f32
    %278 = vector.broadcast %cst_160 : f32 to vector<16x128xf32>
    %279 = arith.addf %278, %277 : vector<16x128xf32>
    %280 = arith.divf %278, %279 : vector<16x128xf32>
    %c0_161 = arith.constant 0 : index
    %c256_162 = arith.constant 256 : index
    %281 = vector.load %arg5[%c0_161, %c256_162] : memref<128x384xbf16, #tpu.memory_space<vmem>>, vector<128x128xbf16>
    %cst_163 = arith.constant dense<0.000000e+00> : vector<16x128xf32>
    %282 = tpu.matmul %235, %281, %cst_163 {dimension_numbers = #tpu.dot_dimension_numbers<[1], [0], [0], [1], [0, 0, 1, 1], [], []>} : vector<16x128xbf16>, vector<128x128xbf16>, vector<16x128xf32> -> vector<16x128xf32>
    %c0_164 = arith.constant 0 : index
    %c256_165 = arith.constant 256 : index
    %283 = vector.load %arg7[%c0_164, %c256_165] : memref<128x384xbf16, #tpu.memory_space<vmem>>, vector<128x128xbf16>
    %cst_166 = arith.constant dense<0.000000e+00> : vector<16x128xf32>
    %284 = tpu.matmul %236, %283, %cst_166 {dimension_numbers = #tpu.dot_dimension_numbers<[1], [0], [0], [1], [0, 0, 1, 1], [], []>} : vector<16x128xbf16>, vector<128x128xbf16>, vector<16x128xf32> -> vector<16x128xf32>
    %285 = arith.index_cast %c2_i32 : i32 to index
    %c0_167 = arith.constant 0 : index
    %c0_168 = arith.constant 0 : index
    %286 = vector.load %arg15[%285, %c0_167, %c0_168] : memref<4x16x128xf32, #tpu.memory_space<vmem>>, vector<1x16x128xf32>
    %287 = vector.shape_cast %286 : vector<1x16x128xf32> to vector<16x128xf32>
    %288 = vector.broadcast %53 : vector<1x128xf32> to vector<16x128xf32>
    %289 = arith.addf %282, %288 : vector<16x128xf32>
    %290 = arith.mulf %249, %289 : vector<16x128xf32>
    %291 = arith.addf %287, %290 : vector<16x128xf32>
    %292 = math.tanh %291 : vector<16x128xf32>
    %293 = arith.index_cast %234 : i32 to index
    %c0_169 = arith.constant 0 : index
    %c0_170 = arith.constant 0 : index
    %294 = vector.load %arg18[%293, %c0_169, %c0_170] : memref<4x16x128xf32, #tpu.memory_space<vmem>>, vector<1x16x128xf32>
    %295 = vector.shape_cast %294 : vector<1x16x128xf32> to vector<16x128xf32>
    %296 = vector.broadcast %55 : vector<1x128xf32> to vector<16x128xf32>
    %297 = arith.addf %284, %296 : vector<16x128xf32>
    %298 = arith.mulf %258, %297 : vector<16x128xf32>
    %299 = arith.addf %295, %298 : vector<16x128xf32>
    %300 = math.tanh %299 : vector<16x128xf32>
    %cst_171 = arith.constant 1.000000e+00 : f32
    %301 = vector.broadcast %cst_171 : f32 to vector<16x128xf32>
    %302 = arith.subf %301, %271 : vector<16x128xf32>
    %303 = arith.mulf %302, %292 : vector<16x128xf32>
    %304 = arith.mulf %271, %218 : vector<16x128xf32>
    %305 = arith.addf %303, %304 : vector<16x128xf32>
    %cst_172 = arith.constant 1.000000e+00 : f32
    %306 = vector.broadcast %cst_172 : f32 to vector<16x128xf32>
    %307 = arith.subf %306, %280 : vector<16x128xf32>
    %308 = arith.mulf %307, %300 : vector<16x128xf32>
    %309 = arith.mulf %280, %223 : vector<16x128xf32>
    %310 = arith.addf %308, %309 : vector<16x128xf32>
    %311 = arith.truncf %305 : vector<16x128xf32> to vector<16x128xbf16>
    %312 = arith.index_cast %c2_i32 : i32 to index
    %c0_173 = arith.constant 0 : index
    %c0_174 = arith.constant 0 : index
    %313 = vector.load %arg10[%312, %c0_173, %c0_174] : memref<4x16x128xbf16, #tpu.memory_space<vmem>>, vector<1x16x128xbf16>
    %314 = vector.shape_cast %313 : vector<1x16x128xbf16> to vector<16x128xbf16>
    %315 = vector.shape_cast %311 : vector<16x128xbf16> to vector<1x16x128xbf16>
    tpu.vector_store %arg10[%312, %c0_173, %c0_174], %315 {strides = array<i32>} : memref<4x16x128xbf16, #tpu.memory_space<vmem>>, vector<1x16x128xbf16>,
    %316 = arith.truncf %310 : vector<16x128xf32> to vector<16x128xbf16>
    %317 = arith.index_cast %234 : i32 to index
    %c0_175 = arith.constant 0 : index
    %c0_176 = arith.constant 0 : index
    %318 = vector.load %arg11[%317, %c0_175, %c0_176] : memref<4x16x128xbf16, #tpu.memory_space<vmem>>, vector<1x16x128xbf16>
    %319 = vector.shape_cast %318 : vector<1x16x128xbf16> to vector<16x128xbf16>
    %320 = vector.shape_cast %316 : vector<16x128xbf16> to vector<1x16x128xbf16>
    tpu.vector_store %arg11[%317, %c0_175, %c0_176], %320 {strides = array<i32>} : memref<4x16x128xbf16, #tpu.memory_space<vmem>>, vector<1x16x128xbf16>,
    %c3_i32_177 = arith.constant 3 : i32
    %c3_i32_178 = arith.constant 3 : i32
    %321 = arith.subi %c3_i32_178, %c3_i32_177 : i32
    %322 = arith.truncf %305 : vector<16x128xf32> to vector<16x128xbf16>
    %323 = arith.truncf %310 : vector<16x128xf32> to vector<16x128xbf16>
    %c0_179 = arith.constant 0 : index
    %c0_180 = arith.constant 0 : index
    %324 = vector.load %arg5[%c0_179, %c0_180] : memref<128x384xbf16, #tpu.memory_space<vmem>>, vector<128x128xbf16>
    %cst_181 = arith.constant dense<0.000000e+00> : vector<16x128xf32>
    %325 = tpu.matmul %322, %324, %cst_181 {dimension_numbers = #tpu.dot_dimension_numbers<[1], [0], [0], [1], [0, 0, 1, 1], [], []>} : vector<16x128xbf16>, vector<128x128xbf16>, vector<16x128xf32> -> vector<16x128xf32>
    %c0_182 = arith.constant 0 : index
    %c0_183 = arith.constant 0 : index
    %326 = vector.load %arg7[%c0_182, %c0_183] : memref<128x384xbf16, #tpu.memory_space<vmem>>, vector<128x128xbf16>
    %cst_184 = arith.constant dense<0.000000e+00> : vector<16x128xf32>
    %327 = tpu.matmul %323, %326, %cst_184 {dimension_numbers = #tpu.dot_dimension_numbers<[1], [0], [0], [1], [0, 0, 1, 1], [], []>} : vector<16x128xbf16>, vector<128x128xbf16>, vector<16x128xf32> -> vector<16x128xf32>
    %328 = arith.index_cast %c3_i32_177 : i32 to index
    %c0_185 = arith.constant 0 : index
    %c0_186 = arith.constant 0 : index
    %329 = vector.load %arg13[%328, %c0_185, %c0_186] : memref<4x16x128xf32, #tpu.memory_space<vmem>>, vector<1x16x128xf32>
    %330 = vector.shape_cast %329 : vector<1x16x128xf32> to vector<16x128xf32>
    %331 = arith.addf %330, %325 : vector<16x128xf32>
    %332 = arith.negf %331 : vector<16x128xf32>
    %333 = math.exp %332 : vector<16x128xf32>
    %cst_187 = arith.constant 1.000000e+00 : f32
    %334 = vector.broadcast %cst_187 : f32 to vector<16x128xf32>
    %335 = arith.addf %334, %333 : vector<16x128xf32>
    %336 = arith.divf %334, %335 : vector<16x128xf32>
    %337 = arith.index_cast %321 : i32 to index
    %c0_188 = arith.constant 0 : index
    %c0_189 = arith.constant 0 : index
    %338 = vector.load %arg16[%337, %c0_188, %c0_189] : memref<4x16x128xf32, #tpu.memory_space<vmem>>, vector<1x16x128xf32>
    %339 = vector.shape_cast %338 : vector<1x16x128xf32> to vector<16x128xf32>
    %340 = arith.addf %339, %327 : vector<16x128xf32>
    %341 = arith.negf %340 : vector<16x128xf32>
    %342 = math.exp %341 : vector<16x128xf32>
    %cst_190 = arith.constant 1.000000e+00 : f32
    %343 = vector.broadcast %cst_190 : f32 to vector<16x128xf32>
    %344 = arith.addf %343, %342 : vector<16x128xf32>
    %345 = arith.divf %343, %344 : vector<16x128xf32>
    %c0_191 = arith.constant 0 : index
    %c128_192 = arith.constant 128 : index
    %346 = vector.load %arg5[%c0_191, %c128_192] : memref<128x384xbf16, #tpu.memory_space<vmem>>, vector<128x128xbf16>
    %cst_193 = arith.constant dense<0.000000e+00> : vector<16x128xf32>
    %347 = tpu.matmul %322, %346, %cst_193 {dimension_numbers = #tpu.dot_dimension_numbers<[1], [0], [0], [1], [0, 0, 1, 1], [], []>} : vector<16x128xbf16>, vector<128x128xbf16>, vector<16x128xf32> -> vector<16x128xf32>
    %c0_194 = arith.constant 0 : index
    %c128_195 = arith.constant 128 : index
    %348 = vector.load %arg7[%c0_194, %c128_195] : memref<128x384xbf16, #tpu.memory_space<vmem>>, vector<128x128xbf16>
    %cst_196 = arith.constant dense<0.000000e+00> : vector<16x128xf32>
    %349 = tpu.matmul %323, %348, %cst_196 {dimension_numbers = #tpu.dot_dimension_numbers<[1], [0], [0], [1], [0, 0, 1, 1], [], []>} : vector<16x128xbf16>, vector<128x128xbf16>, vector<16x128xf32> -> vector<16x128xf32>
    %350 = arith.index_cast %c3_i32_177 : i32 to index
    %c0_197 = arith.constant 0 : index
    %c0_198 = arith.constant 0 : index
    %351 = vector.load %arg14[%350, %c0_197, %c0_198] : memref<4x16x128xf32, #tpu.memory_space<vmem>>, vector<1x16x128xf32>
    %352 = vector.shape_cast %351 : vector<1x16x128xf32> to vector<16x128xf32>
    %353 = arith.addf %352, %347 : vector<16x128xf32>
    %354 = arith.negf %353 : vector<16x128xf32>
    %355 = math.exp %354 : vector<16x128xf32>
    %cst_199 = arith.constant 1.000000e+00 : f32
    %356 = vector.broadcast %cst_199 : f32 to vector<16x128xf32>
    %357 = arith.addf %356, %355 : vector<16x128xf32>
    %358 = arith.divf %356, %357 : vector<16x128xf32>
    %359 = arith.index_cast %321 : i32 to index
    %c0_200 = arith.constant 0 : index
    %c0_201 = arith.constant 0 : index
    %360 = vector.load %arg17[%359, %c0_200, %c0_201] : memref<4x16x128xf32, #tpu.memory_space<vmem>>, vector<1x16x128xf32>
    %361 = vector.shape_cast %360 : vector<1x16x128xf32> to vector<16x128xf32>
    %362 = arith.addf %361, %349 : vector<16x128xf32>
    %363 = arith.negf %362 : vector<16x128xf32>
    %364 = math.exp %363 : vector<16x128xf32>
    %cst_202 = arith.constant 1.000000e+00 : f32
    %365 = vector.broadcast %cst_202 : f32 to vector<16x128xf32>
    %366 = arith.addf %365, %364 : vector<16x128xf32>
    %367 = arith.divf %365, %366 : vector<16x128xf32>
    %c0_203 = arith.constant 0 : index
    %c256_204 = arith.constant 256 : index
    %368 = vector.load %arg5[%c0_203, %c256_204] : memref<128x384xbf16, #tpu.memory_space<vmem>>, vector<128x128xbf16>
    %cst_205 = arith.constant dense<0.000000e+00> : vector<16x128xf32>
    %369 = tpu.matmul %322, %368, %cst_205 {dimension_numbers = #tpu.dot_dimension_numbers<[1], [0], [0], [1], [0, 0, 1, 1], [], []>} : vector<16x128xbf16>, vector<128x128xbf16>, vector<16x128xf32> -> vector<16x128xf32>
    %c0_206 = arith.constant 0 : index
    %c256_207 = arith.constant 256 : index
    %370 = vector.load %arg7[%c0_206, %c256_207] : memref<128x384xbf16, #tpu.memory_space<vmem>>, vector<128x128xbf16>
    %cst_208 = arith.constant dense<0.000000e+00> : vector<16x128xf32>
    %371 = tpu.matmul %323, %370, %cst_208 {dimension_numbers = #tpu.dot_dimension_numbers<[1], [0], [0], [1], [0, 0, 1, 1], [], []>} : vector<16x128xbf16>, vector<128x128xbf16>, vector<16x128xf32> -> vector<16x128xf32>
    %372 = arith.index_cast %c3_i32_177 : i32 to index
    %c0_209 = arith.constant 0 : index
    %c0_210 = arith.constant 0 : index
    %373 = vector.load %arg15[%372, %c0_209, %c0_210] : memref<4x16x128xf32, #tpu.memory_space<vmem>>, vector<1x16x128xf32>
    %374 = vector.shape_cast %373 : vector<1x16x128xf32> to vector<16x128xf32>
    %375 = vector.broadcast %53 : vector<1x128xf32> to vector<16x128xf32>
    %376 = arith.addf %369, %375 : vector<16x128xf32>
    %377 = arith.mulf %336, %376 : vector<16x128xf32>
    %378 = arith.addf %374, %377 : vector<16x128xf32>
    %379 = math.tanh %378 : vector<16x128xf32>
    %380 = arith.index_cast %321 : i32 to index
    %c0_211 = arith.constant 0 : index
    %c0_212 = arith.constant 0 : index
    %381 = vector.load %arg18[%380, %c0_211, %c0_212] : memref<4x16x128xf32, #tpu.memory_space<vmem>>, vector<1x16x128xf32>
    %382 = vector.shape_cast %381 : vector<1x16x128xf32> to vector<16x128xf32>
    %383 = vector.broadcast %55 : vector<1x128xf32> to vector<16x128xf32>
    %384 = arith.addf %371, %383 : vector<16x128xf32>
    %385 = arith.mulf %345, %384 : vector<16x128xf32>
    %386 = arith.addf %382, %385 : vector<16x128xf32>
    %387 = math.tanh %386 : vector<16x128xf32>
    %cst_213 = arith.constant 1.000000e+00 : f32
    %388 = vector.broadcast %cst_213 : f32 to vector<16x128xf32>
    %389 = arith.subf %388, %358 : vector<16x128xf32>
    %390 = arith.mulf %389, %379 : vector<16x128xf32>
    %391 = arith.mulf %358, %305 : vector<16x128xf32>
    %392 = arith.addf %390, %391 : vector<16x128xf32>
    %cst_214 = arith.constant 1.000000e+00 : f32
    %393 = vector.broadcast %cst_214 : f32 to vector<16x128xf32>
    %394 = arith.subf %393, %367 : vector<16x128xf32>
    %395 = arith.mulf %394, %387 : vector<16x128xf32>
    %396 = arith.mulf %367, %310 : vector<16x128xf32>
    %397 = arith.addf %395, %396 : vector<16x128xf32>
    %398 = arith.truncf %392 : vector<16x128xf32> to vector<16x128xbf16>
    %399 = arith.index_cast %c3_i32_177 : i32 to index
    %c0_215 = arith.constant 0 : index
    %c0_216 = arith.constant 0 : index
    %400 = vector.load %arg10[%399, %c0_215, %c0_216] : memref<4x16x128xbf16, #tpu.memory_space<vmem>>, vector<1x16x128xbf16>
    %401 = vector.shape_cast %400 : vector<1x16x128xbf16> to vector<16x128xbf16>
    %402 = vector.shape_cast %398 : vector<16x128xbf16> to vector<1x16x128xbf16>
    tpu.vector_store %arg10[%399, %c0_215, %c0_216], %402 {strides = array<i32>} : memref<4x16x128xbf16, #tpu.memory_space<vmem>>, vector<1x16x128xbf16>,
    %403 = arith.truncf %397 : vector<16x128xf32> to vector<16x128xbf16>
    %404 = arith.index_cast %321 : i32 to index
    %c0_217 = arith.constant 0 : index
    %c0_218 = arith.constant 0 : index
    %405 = vector.load %arg11[%404, %c0_217, %c0_218] : memref<4x16x128xbf16, #tpu.memory_space<vmem>>, vector<1x16x128xbf16>
    %406 = vector.shape_cast %405 : vector<1x16x128xbf16> to vector<16x128xbf16>
    %407 = vector.shape_cast %403 : vector<16x128xbf16> to vector<1x16x128xbf16>
    tpu.vector_store %arg11[%404, %c0_217, %c0_218], %407 {strides = array<i32>} : memref<4x16x128xbf16, #tpu.memory_space<vmem>>, vector<1x16x128xbf16>,
    %c4_i32_219 = arith.constant 4 : i32
    %c0_220 = arith.constant 0 : index
    %c0_221 = arith.constant 0 : index
    %c0_222 = arith.constant 0 : index
    %408 = vector.load %arg12[%c0_220, %c0_221, %c0_222] : memref<2x16x128xf32, #tpu.memory_space<vmem>>, vector<1x16x128xf32>
    %409 = vector.shape_cast %408 : vector<1x16x128xf32> to vector<16x128xf32>
    %410 = vector.shape_cast %392 : vector<16x128xf32> to vector<1x16x128xf32>
    tpu.vector_store %arg12[%c0_220, %c0_221, %c0_222], %410 {strides = array<i32>} : memref<2x16x128xf32, #tpu.memory_space<vmem>>, vector<1x16x128xf32>,
    %c1_223 = arith.constant 1 : index
    %c0_224 = arith.constant 0 : index
    %c0_225 = arith.constant 0 : index
    %411 = vector.load %arg12[%c1_223, %c0_224, %c0_225] : memref<2x16x128xf32, #tpu.memory_space<vmem>>, vector<1x16x128xf32>
    %412 = vector.shape_cast %411 : vector<1x16x128xf32> to vector<16x128xf32>
    %413 = vector.shape_cast %397 : vector<16x128xf32> to vector<1x16x128xf32>
    tpu.vector_store %arg12[%c1_223, %c0_224, %c0_225], %413 {strides = array<i32>} : memref<2x16x128xf32, #tpu.memory_space<vmem>>, vector<1x16x128xf32>,
    return
  }
  func.func @transform_0(%arg0: i32, %arg1: i32) -> (i32, i32, i32) {
    %c0_i32 = arith.constant 0 : i32
    %c0_i32_0 = arith.constant 0 : i32
    %c0_i32_1 = arith.constant 0 : i32
    return %c0_i32, %arg0, %c0_i32_0 : i32, i32, i32
  }
  func.func @transform_1(%arg0: i32, %arg1: i32) -> (i32, i32, i32) {
    %c0_i32 = arith.constant 0 : i32
    %c0_i32_0 = arith.constant 0 : i32
    %c0_i32_1 = arith.constant 0 : i32
    return %c0_i32, %arg0, %c0_i32_0 : i32, i32, i32
  }
  func.func @transform_2(%arg0: i32, %arg1: i32) -> (i32, i32) {
    %c0_i32 = arith.constant 0 : i32
    %c0_i32_0 = arith.constant 0 : i32
    %c0_i32_1 = arith.constant 0 : i32
    return %c0_i32, %c0_i32_0 : i32, i32
  }
  func.func @transform_3(%arg0: i32, %arg1: i32) -> (i32, i32) {
    %c0_i32 = arith.constant 0 : i32
    %c0_i32_0 = arith.constant 0 : i32
    %c0_i32_1 = arith.constant 0 : i32
    return %c0_i32, %c0_i32_0 : i32, i32
  }
  func.func @transform_4(%arg0: i32, %arg1: i32) -> (i32, i32) {
    %c0_i32 = arith.constant 0 : i32
    %c0_i32_0 = arith.constant 0 : i32
    %c0_i32_1 = arith.constant 0 : i32
    return %c0_i32, %c0_i32_0 : i32, i32
  }
  func.func @transform_5(%arg0: i32, %arg1: i32) -> (i32, i32) {
    %c0_i32 = arith.constant 0 : i32
    %c0_i32_0 = arith.constant 0 : i32
    %c0_i32_1 = arith.constant 0 : i32
    return %c0_i32, %c0_i32_0 : i32, i32
  }
  func.func @transform_6(%arg0: i32, %arg1: i32) -> (i32, i32, i32) {
    %c0_i32 = arith.constant 0 : i32
    %c0_i32_0 = arith.constant 0 : i32
    %c0_i32_1 = arith.constant 0 : i32
    %c0_i32_2 = arith.constant 0 : i32
    return %c0_i32, %c0_i32_0, %c0_i32_1 : i32, i32, i32
  }
  func.func @transform_7(%arg0: i32, %arg1: i32) -> (i32, i32, i32) {
    %c0_i32 = arith.constant 0 : i32
    %c0_i32_0 = arith.constant 0 : i32
    %c0_i32_1 = arith.constant 0 : i32
    %c0_i32_2 = arith.constant 0 : i32
    return %c0_i32, %c0_i32_0, %c0_i32_1 : i32, i32, i32
  }
  func.func @transform_8(%arg0: i32, %arg1: i32) -> (i32, i32, i32) {
    %c0_i32 = arith.constant 0 : i32
    %c0_i32_0 = arith.constant 0 : i32
    return %arg1, %arg0, %c0_i32 : i32, i32, i32
  }
  func.func @transform_9(%arg0: i32, %arg1: i32) -> (i32, i32, i32) {
    %c1_i32 = arith.constant 1 : i32
    %0 = arith.subi %c1_i32, %arg1 : i32
    %c0_i32 = arith.constant 0 : i32
    %c0_i32_0 = arith.constant 0 : i32
    return %0, %arg0, %c0_i32 : i32, i32, i32
  }
  func.func @transform_10(%arg0: i32, %arg1: i32) -> (i32, i32, i32) {
    %c0_i32 = arith.constant 0 : i32
    %c0_i32_0 = arith.constant 0 : i32
    %c0_i32_1 = arith.constant 0 : i32
    return %c0_i32, %arg0, %c0_i32_0 : i32, i32, i32
  }
}

module attributes {stable_mosaic.version = 11 : i64} {
  func.func @_bigru_layer_kernel(%arg0: i32, %arg1: i32, %arg2: memref<8x16x128xbf16, #tpu.memory_space<vmem>>, %arg3: memref<128x384xbf16, #tpu.memory_space<vmem>>, %arg4: memref<128x384xbf16, #tpu.memory_space<vmem>>, %arg5: memref<128x384xbf16, #tpu.memory_space<vmem>>, %arg6: memref<128x384xbf16, #tpu.memory_space<vmem>>, %arg7: memref<2x1x384xf32, #tpu.memory_space<vmem>>, %arg8: memref<2x1x128xf32, #tpu.memory_space<vmem>>, %arg9: memref<4x16x128xbf16, #tpu.memory_space<vmem>>, %arg10: memref<4x16x128xbf16, #tpu.memory_space<vmem>>, %arg11: memref<2x16x128xf32, #tpu.memory_space<vmem>>, %arg12: memref<4x16x128xf32, #tpu.memory_space<vmem>>, %arg13: memref<4x16x128xf32, #tpu.memory_space<vmem>>, %arg14: memref<4x16x128xf32, #tpu.memory_space<vmem>>, %arg15: memref<4x16x128xf32, #tpu.memory_space<vmem>>, %arg16: memref<4x16x128xf32, #tpu.memory_space<vmem>>, %arg17: memref<4x16x128xf32, #tpu.memory_space<vmem>>) attributes {dimension_semantics = [#tpu.dimension_semantics<parallel>, #tpu.dimension_semantics<arbitrary>], iteration_bounds = array<i64: 1, 2>, scalar_prefetch = 0 : i64, scratch_operands = 6 : i64, tpu.core_type = #tpu.core_type<tc>, window_params = [{transform_indices = @transform_0, window_bounds = array<i64: 8, 16, 128>}, {pipeline_mode = #tpu.pipeline_mode<synchronous>, transform_indices = @transform_1, window_bounds = array<i64: 128, 384>}, {pipeline_mode = #tpu.pipeline_mode<synchronous>, transform_indices = @transform_2, window_bounds = array<i64: 128, 384>}, {pipeline_mode = #tpu.pipeline_mode<synchronous>, transform_indices = @transform_3, window_bounds = array<i64: 128, 384>}, {pipeline_mode = #tpu.pipeline_mode<synchronous>, transform_indices = @transform_4, window_bounds = array<i64: 128, 384>}, {pipeline_mode = #tpu.pipeline_mode<synchronous>, transform_indices = @transform_5, window_bounds = array<i64: 2, 1, 384>}, {pipeline_mode = #tpu.pipeline_mode<synchronous>, transform_indices = @transform_6, window_bounds = array<i64: 2, 1, 128>}, {transform_indices = @transform_7, window_bounds = array<i64: 4, 16, 128>}, {transform_indices = @transform_8, window_bounds = array<i64: 4, 16, 128>}, {transform_indices = @transform_9, window_bounds = array<i64: 2, 16, 128>}]} {
    %c0_i32 = arith.constant 0 : i32
    %0 = arith.cmpi eq, %arg1, %c0_i32 : i32
    %1 = arith.extui %0 : i1 to i32
    %c0_i32_0 = arith.constant 0 : i32
    %2 = arith.cmpi ne, %1, %c0_i32_0 : i32
    scf.if %2 {
      %cst_216 = arith.constant 0.000000e+00 : f32
      %402 = vector.broadcast %cst_216 : f32 to vector<2x16x128xf32>
      %c0_217 = arith.constant 0 : index
      %c0_218 = arith.constant 0 : index
      %c0_219 = arith.constant 0 : index
      %403 = vector.load %arg11[%c0_217, %c0_218, %c0_219] : memref<2x16x128xf32, #tpu.memory_space<vmem>>, vector<2x16x128xf32>
      tpu.vector_store %arg11[%c0_217, %c0_218, %c0_219], %402 {strides = array<i32>} : memref<2x16x128xf32, #tpu.memory_space<vmem>>, vector<2x16x128xf32>,
    } else {
    }
    %c4_i32 = arith.constant 4 : i32
    %3 = arith.muli %arg1, %c4_i32 : i32
    %4 = tpu.assume_multiple %3, 4 : i32
    %c1_i32 = arith.constant 1 : i32
    %5 = arith.subi %c1_i32, %arg1 : i32
    %c4_i32_1 = arith.constant 4 : i32
    %6 = arith.muli %5, %c4_i32_1 : i32
    %7 = tpu.assume_multiple %6, 4 : i32
    %c0 = arith.constant 0 : index
    %c0_2 = arith.constant 0 : index
    %c0_3 = arith.constant 0 : index
    %8 = vector.load %arg7[%c0, %c0_2, %c0_3] : memref<2x1x384xf32, #tpu.memory_space<vmem>>, vector<1x1x384xf32>
    %9 = vector.shape_cast %8 : vector<1x1x384xf32> to vector<1x384xf32>
    %10 = arith.index_cast %4 : i32 to index
    %c0_4 = arith.constant 0 : index
    %c0_5 = arith.constant 0 : index
    %11 = vector.load %arg2[%10, %c0_4, %c0_5] : memref<8x16x128xbf16, #tpu.memory_space<vmem>>, vector<4x16x128xbf16>
    %12 = vector.shape_cast %11 : vector<4x16x128xbf16> to vector<64x128xbf16>
    %c0_6 = arith.constant 0 : index
    %c0_7 = arith.constant 0 : index
    %13 = vector.load %arg3[%c0_6, %c0_7] : memref<128x384xbf16, #tpu.memory_space<vmem>>, vector<128x384xbf16>
    %cst = arith.constant dense<0.000000e+00> : vector<64x384xf32>
    %14 = tpu.matmul %12, %13, %cst {dimension_numbers = #tpu.dot_dimension_numbers<[1], [0], [0], [1], [0, 0, 1, 1], [], []>} : vector<64x128xbf16>, vector<128x384xbf16>, vector<64x384xf32> -> vector<64x384xf32>
    %15 = vector.broadcast %9 : vector<1x384xf32> to vector<64x384xf32>
    %16 = arith.addf %14, %15 : vector<64x384xf32>
    %17 = vector.shape_cast %16 : vector<64x384xf32> to vector<4x16x384xf32>
    %18 = vector.extract_strided_slice %17 {offsets = [0, 0, 0], sizes = [4, 16, 128], strides = [1, 1, 1]} : vector<4x16x384xf32> to vector<4x16x128xf32>
    %c0_8 = arith.constant 0 : index
    %c0_9 = arith.constant 0 : index
    %c0_10 = arith.constant 0 : index
    %19 = vector.load %arg12[%c0_8, %c0_9, %c0_10] : memref<4x16x128xf32, #tpu.memory_space<vmem>>, vector<4x16x128xf32>
    tpu.vector_store %arg12[%c0_8, %c0_9, %c0_10], %18 {strides = array<i32>} : memref<4x16x128xf32, #tpu.memory_space<vmem>>, vector<4x16x128xf32>,
    %20 = vector.extract_strided_slice %17 {offsets = [0, 0, 128], sizes = [4, 16, 128], strides = [1, 1, 1]} : vector<4x16x384xf32> to vector<4x16x128xf32>
    %c0_11 = arith.constant 0 : index
    %c0_12 = arith.constant 0 : index
    %c0_13 = arith.constant 0 : index
    %21 = vector.load %arg13[%c0_11, %c0_12, %c0_13] : memref<4x16x128xf32, #tpu.memory_space<vmem>>, vector<4x16x128xf32>
    tpu.vector_store %arg13[%c0_11, %c0_12, %c0_13], %20 {strides = array<i32>} : memref<4x16x128xf32, #tpu.memory_space<vmem>>, vector<4x16x128xf32>,
    %22 = vector.extract_strided_slice %17 {offsets = [0, 0, 256], sizes = [4, 16, 128], strides = [1, 1, 1]} : vector<4x16x384xf32> to vector<4x16x128xf32>
    %c0_14 = arith.constant 0 : index
    %c0_15 = arith.constant 0 : index
    %c0_16 = arith.constant 0 : index
    %23 = vector.load %arg14[%c0_14, %c0_15, %c0_16] : memref<4x16x128xf32, #tpu.memory_space<vmem>>, vector<4x16x128xf32>
    tpu.vector_store %arg14[%c0_14, %c0_15, %c0_16], %22 {strides = array<i32>} : memref<4x16x128xf32, #tpu.memory_space<vmem>>, vector<4x16x128xf32>,
    %c1 = arith.constant 1 : index
    %c0_17 = arith.constant 0 : index
    %c0_18 = arith.constant 0 : index
    %24 = vector.load %arg7[%c1, %c0_17, %c0_18] : memref<2x1x384xf32, #tpu.memory_space<vmem>>, vector<1x1x384xf32>
    %25 = vector.shape_cast %24 : vector<1x1x384xf32> to vector<1x384xf32>
    %26 = arith.index_cast %7 : i32 to index
    %c0_19 = arith.constant 0 : index
    %c0_20 = arith.constant 0 : index
    %27 = vector.load %arg2[%26, %c0_19, %c0_20] : memref<8x16x128xbf16, #tpu.memory_space<vmem>>, vector<4x16x128xbf16>
    %28 = vector.shape_cast %27 : vector<4x16x128xbf16> to vector<64x128xbf16>
    %c0_21 = arith.constant 0 : index
    %c0_22 = arith.constant 0 : index
    %29 = vector.load %arg5[%c0_21, %c0_22] : memref<128x384xbf16, #tpu.memory_space<vmem>>, vector<128x384xbf16>
    %cst_23 = arith.constant dense<0.000000e+00> : vector<64x384xf32>
    %30 = tpu.matmul %28, %29, %cst_23 {dimension_numbers = #tpu.dot_dimension_numbers<[1], [0], [0], [1], [0, 0, 1, 1], [], []>} : vector<64x128xbf16>, vector<128x384xbf16>, vector<64x384xf32> -> vector<64x384xf32>
    %31 = vector.broadcast %25 : vector<1x384xf32> to vector<64x384xf32>
    %32 = arith.addf %30, %31 : vector<64x384xf32>
    %33 = vector.shape_cast %32 : vector<64x384xf32> to vector<4x16x384xf32>
    %34 = vector.extract_strided_slice %33 {offsets = [0, 0, 0], sizes = [4, 16, 128], strides = [1, 1, 1]} : vector<4x16x384xf32> to vector<4x16x128xf32>
    %c0_24 = arith.constant 0 : index
    %c0_25 = arith.constant 0 : index
    %c0_26 = arith.constant 0 : index
    %35 = vector.load %arg15[%c0_24, %c0_25, %c0_26] : memref<4x16x128xf32, #tpu.memory_space<vmem>>, vector<4x16x128xf32>
    tpu.vector_store %arg15[%c0_24, %c0_25, %c0_26], %34 {strides = array<i32>} : memref<4x16x128xf32, #tpu.memory_space<vmem>>, vector<4x16x128xf32>,
    %36 = vector.extract_strided_slice %33 {offsets = [0, 0, 128], sizes = [4, 16, 128], strides = [1, 1, 1]} : vector<4x16x384xf32> to vector<4x16x128xf32>
    %c0_27 = arith.constant 0 : index
    %c0_28 = arith.constant 0 : index
    %c0_29 = arith.constant 0 : index
    %37 = vector.load %arg16[%c0_27, %c0_28, %c0_29] : memref<4x16x128xf32, #tpu.memory_space<vmem>>, vector<4x16x128xf32>
    tpu.vector_store %arg16[%c0_27, %c0_28, %c0_29], %36 {strides = array<i32>} : memref<4x16x128xf32, #tpu.memory_space<vmem>>, vector<4x16x128xf32>,
    %38 = vector.extract_strided_slice %33 {offsets = [0, 0, 256], sizes = [4, 16, 128], strides = [1, 1, 1]} : vector<4x16x384xf32> to vector<4x16x128xf32>
    %c0_30 = arith.constant 0 : index
    %c0_31 = arith.constant 0 : index
    %c0_32 = arith.constant 0 : index
    %39 = vector.load %arg17[%c0_30, %c0_31, %c0_32] : memref<4x16x128xf32, #tpu.memory_space<vmem>>, vector<4x16x128xf32>
    tpu.vector_store %arg17[%c0_30, %c0_31, %c0_32], %38 {strides = array<i32>} : memref<4x16x128xf32, #tpu.memory_space<vmem>>, vector<4x16x128xf32>,
    %c0_33 = arith.constant 0 : index
    %c0_34 = arith.constant 0 : index
    %c0_35 = arith.constant 0 : index
    %40 = vector.load %arg8[%c0_33, %c0_34, %c0_35] : memref<2x1x128xf32, #tpu.memory_space<vmem>>, vector<1x1x128xf32>
    %41 = vector.shape_cast %40 : vector<1x1x128xf32> to vector<1x128xf32>
    %c1_36 = arith.constant 1 : index
    %c0_37 = arith.constant 0 : index
    %c0_38 = arith.constant 0 : index
    %42 = vector.load %arg8[%c1_36, %c0_37, %c0_38] : memref<2x1x128xf32, #tpu.memory_space<vmem>>, vector<1x1x128xf32>
    %43 = vector.shape_cast %42 : vector<1x1x128xf32> to vector<1x128xf32>
    %c0_39 = arith.constant 0 : index
    %c0_40 = arith.constant 0 : index
    %c0_41 = arith.constant 0 : index
    %44 = vector.load %arg11[%c0_39, %c0_40, %c0_41] : memref<2x16x128xf32, #tpu.memory_space<vmem>>, vector<1x16x128xf32>
    %45 = vector.shape_cast %44 : vector<1x16x128xf32> to vector<16x128xf32>
    %c1_42 = arith.constant 1 : index
    %c0_43 = arith.constant 0 : index
    %c0_44 = arith.constant 0 : index
    %46 = vector.load %arg11[%c1_42, %c0_43, %c0_44] : memref<2x16x128xf32, #tpu.memory_space<vmem>>, vector<1x16x128xf32>
    %47 = vector.shape_cast %46 : vector<1x16x128xf32> to vector<16x128xf32>
    %c0_i32_45 = arith.constant 0 : i32
    %c3_i32 = arith.constant 3 : i32
    %48 = arith.subi %c3_i32, %c0_i32_45 : i32
    %49 = arith.truncf %45 : vector<16x128xf32> to vector<16x128xbf16>
    %50 = arith.truncf %47 : vector<16x128xf32> to vector<16x128xbf16>
    %c0_46 = arith.constant 0 : index
    %c0_47 = arith.constant 0 : index
    %51 = vector.load %arg4[%c0_46, %c0_47] : memref<128x384xbf16, #tpu.memory_space<vmem>>, vector<128x128xbf16>
    %cst_48 = arith.constant dense<0.000000e+00> : vector<16x128xf32>
    %52 = tpu.matmul %49, %51, %cst_48 {dimension_numbers = #tpu.dot_dimension_numbers<[1], [0], [0], [1], [0, 0, 1, 1], [], []>} : vector<16x128xbf16>, vector<128x128xbf16>, vector<16x128xf32> -> vector<16x128xf32>
    %c0_49 = arith.constant 0 : index
    %c0_50 = arith.constant 0 : index
    %53 = vector.load %arg6[%c0_49, %c0_50] : memref<128x384xbf16, #tpu.memory_space<vmem>>, vector<128x128xbf16>
    %cst_51 = arith.constant dense<0.000000e+00> : vector<16x128xf32>
    %54 = tpu.matmul %50, %53, %cst_51 {dimension_numbers = #tpu.dot_dimension_numbers<[1], [0], [0], [1], [0, 0, 1, 1], [], []>} : vector<16x128xbf16>, vector<128x128xbf16>, vector<16x128xf32> -> vector<16x128xf32>
    %55 = arith.index_cast %c0_i32_45 : i32 to index
    %c0_52 = arith.constant 0 : index
    %c0_53 = arith.constant 0 : index
    %56 = vector.load %arg12[%55, %c0_52, %c0_53] : memref<4x16x128xf32, #tpu.memory_space<vmem>>, vector<1x16x128xf32>
    %57 = vector.shape_cast %56 : vector<1x16x128xf32> to vector<16x128xf32>
    %58 = arith.addf %57, %52 : vector<16x128xf32>
    %59 = arith.negf %58 : vector<16x128xf32>
    %60 = math.exp %59 : vector<16x128xf32>
    %cst_54 = arith.constant 1.000000e+00 : f32
    %61 = vector.broadcast %cst_54 : f32 to vector<16x128xf32>
    %62 = arith.addf %61, %60 : vector<16x128xf32>
    %63 = arith.divf %61, %62 : vector<16x128xf32>
    %64 = arith.index_cast %48 : i32 to index
    %c0_55 = arith.constant 0 : index
    %c0_56 = arith.constant 0 : index
    %65 = vector.load %arg15[%64, %c0_55, %c0_56] : memref<4x16x128xf32, #tpu.memory_space<vmem>>, vector<1x16x128xf32>
    %66 = vector.shape_cast %65 : vector<1x16x128xf32> to vector<16x128xf32>
    %67 = arith.addf %66, %54 : vector<16x128xf32>
    %68 = arith.negf %67 : vector<16x128xf32>
    %69 = math.exp %68 : vector<16x128xf32>
    %cst_57 = arith.constant 1.000000e+00 : f32
    %70 = vector.broadcast %cst_57 : f32 to vector<16x128xf32>
    %71 = arith.addf %70, %69 : vector<16x128xf32>
    %72 = arith.divf %70, %71 : vector<16x128xf32>
    %c0_58 = arith.constant 0 : index
    %c128 = arith.constant 128 : index
    %73 = vector.load %arg4[%c0_58, %c128] : memref<128x384xbf16, #tpu.memory_space<vmem>>, vector<128x128xbf16>
    %cst_59 = arith.constant dense<0.000000e+00> : vector<16x128xf32>
    %74 = tpu.matmul %49, %73, %cst_59 {dimension_numbers = #tpu.dot_dimension_numbers<[1], [0], [0], [1], [0, 0, 1, 1], [], []>} : vector<16x128xbf16>, vector<128x128xbf16>, vector<16x128xf32> -> vector<16x128xf32>
    %c0_60 = arith.constant 0 : index
    %c128_61 = arith.constant 128 : index
    %75 = vector.load %arg6[%c0_60, %c128_61] : memref<128x384xbf16, #tpu.memory_space<vmem>>, vector<128x128xbf16>
    %cst_62 = arith.constant dense<0.000000e+00> : vector<16x128xf32>
    %76 = tpu.matmul %50, %75, %cst_62 {dimension_numbers = #tpu.dot_dimension_numbers<[1], [0], [0], [1], [0, 0, 1, 1], [], []>} : vector<16x128xbf16>, vector<128x128xbf16>, vector<16x128xf32> -> vector<16x128xf32>
    %77 = arith.index_cast %c0_i32_45 : i32 to index
    %c0_63 = arith.constant 0 : index
    %c0_64 = arith.constant 0 : index
    %78 = vector.load %arg13[%77, %c0_63, %c0_64] : memref<4x16x128xf32, #tpu.memory_space<vmem>>, vector<1x16x128xf32>
    %79 = vector.shape_cast %78 : vector<1x16x128xf32> to vector<16x128xf32>
    %80 = arith.addf %79, %74 : vector<16x128xf32>
    %81 = arith.negf %80 : vector<16x128xf32>
    %82 = math.exp %81 : vector<16x128xf32>
    %cst_65 = arith.constant 1.000000e+00 : f32
    %83 = vector.broadcast %cst_65 : f32 to vector<16x128xf32>
    %84 = arith.addf %83, %82 : vector<16x128xf32>
    %85 = arith.divf %83, %84 : vector<16x128xf32>
    %86 = arith.index_cast %48 : i32 to index
    %c0_66 = arith.constant 0 : index
    %c0_67 = arith.constant 0 : index
    %87 = vector.load %arg16[%86, %c0_66, %c0_67] : memref<4x16x128xf32, #tpu.memory_space<vmem>>, vector<1x16x128xf32>
    %88 = vector.shape_cast %87 : vector<1x16x128xf32> to vector<16x128xf32>
    %89 = arith.addf %88, %76 : vector<16x128xf32>
    %90 = arith.negf %89 : vector<16x128xf32>
    %91 = math.exp %90 : vector<16x128xf32>
    %cst_68 = arith.constant 1.000000e+00 : f32
    %92 = vector.broadcast %cst_68 : f32 to vector<16x128xf32>
    %93 = arith.addf %92, %91 : vector<16x128xf32>
    %94 = arith.divf %92, %93 : vector<16x128xf32>
    %c0_69 = arith.constant 0 : index
    %c256 = arith.constant 256 : index
    %95 = vector.load %arg4[%c0_69, %c256] : memref<128x384xbf16, #tpu.memory_space<vmem>>, vector<128x128xbf16>
    %cst_70 = arith.constant dense<0.000000e+00> : vector<16x128xf32>
    %96 = tpu.matmul %49, %95, %cst_70 {dimension_numbers = #tpu.dot_dimension_numbers<[1], [0], [0], [1], [0, 0, 1, 1], [], []>} : vector<16x128xbf16>, vector<128x128xbf16>, vector<16x128xf32> -> vector<16x128xf32>
    %c0_71 = arith.constant 0 : index
    %c256_72 = arith.constant 256 : index
    %97 = vector.load %arg6[%c0_71, %c256_72] : memref<128x384xbf16, #tpu.memory_space<vmem>>, vector<128x128xbf16>
    %cst_73 = arith.constant dense<0.000000e+00> : vector<16x128xf32>
    %98 = tpu.matmul %50, %97, %cst_73 {dimension_numbers = #tpu.dot_dimension_numbers<[1], [0], [0], [1], [0, 0, 1, 1], [], []>} : vector<16x128xbf16>, vector<128x128xbf16>, vector<16x128xf32> -> vector<16x128xf32>
    %99 = arith.index_cast %c0_i32_45 : i32 to index
    %c0_74 = arith.constant 0 : index
    %c0_75 = arith.constant 0 : index
    %100 = vector.load %arg14[%99, %c0_74, %c0_75] : memref<4x16x128xf32, #tpu.memory_space<vmem>>, vector<1x16x128xf32>
    %101 = vector.shape_cast %100 : vector<1x16x128xf32> to vector<16x128xf32>
    %102 = vector.broadcast %41 : vector<1x128xf32> to vector<16x128xf32>
    %103 = arith.addf %96, %102 : vector<16x128xf32>
    %104 = arith.mulf %63, %103 : vector<16x128xf32>
    %105 = arith.addf %101, %104 : vector<16x128xf32>
    %106 = math.tanh %105 : vector<16x128xf32>
    %107 = arith.index_cast %48 : i32 to index
    %c0_76 = arith.constant 0 : index
    %c0_77 = arith.constant 0 : index
    %108 = vector.load %arg17[%107, %c0_76, %c0_77] : memref<4x16x128xf32, #tpu.memory_space<vmem>>, vector<1x16x128xf32>
    %109 = vector.shape_cast %108 : vector<1x16x128xf32> to vector<16x128xf32>
    %110 = vector.broadcast %43 : vector<1x128xf32> to vector<16x128xf32>
    %111 = arith.addf %98, %110 : vector<16x128xf32>
    %112 = arith.mulf %72, %111 : vector<16x128xf32>
    %113 = arith.addf %109, %112 : vector<16x128xf32>
    %114 = math.tanh %113 : vector<16x128xf32>
    %cst_78 = arith.constant 1.000000e+00 : f32
    %115 = vector.broadcast %cst_78 : f32 to vector<16x128xf32>
    %116 = arith.subf %115, %85 : vector<16x128xf32>
    %117 = arith.mulf %116, %106 : vector<16x128xf32>
    %118 = arith.mulf %85, %45 : vector<16x128xf32>
    %119 = arith.addf %117, %118 : vector<16x128xf32>
    %cst_79 = arith.constant 1.000000e+00 : f32
    %120 = vector.broadcast %cst_79 : f32 to vector<16x128xf32>
    %121 = arith.subf %120, %94 : vector<16x128xf32>
    %122 = arith.mulf %121, %114 : vector<16x128xf32>
    %123 = arith.mulf %94, %47 : vector<16x128xf32>
    %124 = arith.addf %122, %123 : vector<16x128xf32>
    %125 = arith.truncf %119 : vector<16x128xf32> to vector<16x128xbf16>
    %126 = arith.index_cast %c0_i32_45 : i32 to index
    %c0_80 = arith.constant 0 : index
    %c0_81 = arith.constant 0 : index
    %127 = vector.load %arg9[%126, %c0_80, %c0_81] : memref<4x16x128xbf16, #tpu.memory_space<vmem>>, vector<1x16x128xbf16>
    %128 = vector.shape_cast %127 : vector<1x16x128xbf16> to vector<16x128xbf16>
    %129 = vector.shape_cast %125 : vector<16x128xbf16> to vector<1x16x128xbf16>
    tpu.vector_store %arg9[%126, %c0_80, %c0_81], %129 {strides = array<i32>} : memref<4x16x128xbf16, #tpu.memory_space<vmem>>, vector<1x16x128xbf16>,
    %130 = arith.truncf %124 : vector<16x128xf32> to vector<16x128xbf16>
    %131 = arith.index_cast %48 : i32 to index
    %c0_82 = arith.constant 0 : index
    %c0_83 = arith.constant 0 : index
    %132 = vector.load %arg10[%131, %c0_82, %c0_83] : memref<4x16x128xbf16, #tpu.memory_space<vmem>>, vector<1x16x128xbf16>
    %133 = vector.shape_cast %132 : vector<1x16x128xbf16> to vector<16x128xbf16>
    %134 = vector.shape_cast %130 : vector<16x128xbf16> to vector<1x16x128xbf16>
    tpu.vector_store %arg10[%131, %c0_82, %c0_83], %134 {strides = array<i32>} : memref<4x16x128xbf16, #tpu.memory_space<vmem>>, vector<1x16x128xbf16>,
    %c1_i32_84 = arith.constant 1 : i32
    %c3_i32_85 = arith.constant 3 : i32
    %135 = arith.subi %c3_i32_85, %c1_i32_84 : i32
    %136 = arith.truncf %119 : vector<16x128xf32> to vector<16x128xbf16>
    %137 = arith.truncf %124 : vector<16x128xf32> to vector<16x128xbf16>
    %c0_86 = arith.constant 0 : index
    %c0_87 = arith.constant 0 : index
    %138 = vector.load %arg4[%c0_86, %c0_87] : memref<128x384xbf16, #tpu.memory_space<vmem>>, vector<128x128xbf16>
    %cst_88 = arith.constant dense<0.000000e+00> : vector<16x128xf32>
    %139 = tpu.matmul %136, %138, %cst_88 {dimension_numbers = #tpu.dot_dimension_numbers<[1], [0], [0], [1], [0, 0, 1, 1], [], []>} : vector<16x128xbf16>, vector<128x128xbf16>, vector<16x128xf32> -> vector<16x128xf32>
    %c0_89 = arith.constant 0 : index
    %c0_90 = arith.constant 0 : index
    %140 = vector.load %arg6[%c0_89, %c0_90] : memref<128x384xbf16, #tpu.memory_space<vmem>>, vector<128x128xbf16>
    %cst_91 = arith.constant dense<0.000000e+00> : vector<16x128xf32>
    %141 = tpu.matmul %137, %140, %cst_91 {dimension_numbers = #tpu.dot_dimension_numbers<[1], [0], [0], [1], [0, 0, 1, 1], [], []>} : vector<16x128xbf16>, vector<128x128xbf16>, vector<16x128xf32> -> vector<16x128xf32>
    %142 = arith.index_cast %c1_i32_84 : i32 to index
    %c0_92 = arith.constant 0 : index
    %c0_93 = arith.constant 0 : index
    %143 = vector.load %arg12[%142, %c0_92, %c0_93] : memref<4x16x128xf32, #tpu.memory_space<vmem>>, vector<1x16x128xf32>
    %144 = vector.shape_cast %143 : vector<1x16x128xf32> to vector<16x128xf32>
    %145 = arith.addf %144, %139 : vector<16x128xf32>
    %146 = arith.negf %145 : vector<16x128xf32>
    %147 = math.exp %146 : vector<16x128xf32>
    %cst_94 = arith.constant 1.000000e+00 : f32
    %148 = vector.broadcast %cst_94 : f32 to vector<16x128xf32>
    %149 = arith.addf %148, %147 : vector<16x128xf32>
    %150 = arith.divf %148, %149 : vector<16x128xf32>
    %151 = arith.index_cast %135 : i32 to index
    %c0_95 = arith.constant 0 : index
    %c0_96 = arith.constant 0 : index
    %152 = vector.load %arg15[%151, %c0_95, %c0_96] : memref<4x16x128xf32, #tpu.memory_space<vmem>>, vector<1x16x128xf32>
    %153 = vector.shape_cast %152 : vector<1x16x128xf32> to vector<16x128xf32>
    %154 = arith.addf %153, %141 : vector<16x128xf32>
    %155 = arith.negf %154 : vector<16x128xf32>
    %156 = math.exp %155 : vector<16x128xf32>
    %cst_97 = arith.constant 1.000000e+00 : f32
    %157 = vector.broadcast %cst_97 : f32 to vector<16x128xf32>
    %158 = arith.addf %157, %156 : vector<16x128xf32>
    %159 = arith.divf %157, %158 : vector<16x128xf32>
    %c0_98 = arith.constant 0 : index
    %c128_99 = arith.constant 128 : index
    %160 = vector.load %arg4[%c0_98, %c128_99] : memref<128x384xbf16, #tpu.memory_space<vmem>>, vector<128x128xbf16>
    %cst_100 = arith.constant dense<0.000000e+00> : vector<16x128xf32>
    %161 = tpu.matmul %136, %160, %cst_100 {dimension_numbers = #tpu.dot_dimension_numbers<[1], [0], [0], [1], [0, 0, 1, 1], [], []>} : vector<16x128xbf16>, vector<128x128xbf16>, vector<16x128xf32> -> vector<16x128xf32>
    %c0_101 = arith.constant 0 : index
    %c128_102 = arith.constant 128 : index
    %162 = vector.load %arg6[%c0_101, %c128_102] : memref<128x384xbf16, #tpu.memory_space<vmem>>, vector<128x128xbf16>
    %cst_103 = arith.constant dense<0.000000e+00> : vector<16x128xf32>
    %163 = tpu.matmul %137, %162, %cst_103 {dimension_numbers = #tpu.dot_dimension_numbers<[1], [0], [0], [1], [0, 0, 1, 1], [], []>} : vector<16x128xbf16>, vector<128x128xbf16>, vector<16x128xf32> -> vector<16x128xf32>
    %164 = arith.index_cast %c1_i32_84 : i32 to index
    %c0_104 = arith.constant 0 : index
    %c0_105 = arith.constant 0 : index
    %165 = vector.load %arg13[%164, %c0_104, %c0_105] : memref<4x16x128xf32, #tpu.memory_space<vmem>>, vector<1x16x128xf32>
    %166 = vector.shape_cast %165 : vector<1x16x128xf32> to vector<16x128xf32>
    %167 = arith.addf %166, %161 : vector<16x128xf32>
    %168 = arith.negf %167 : vector<16x128xf32>
    %169 = math.exp %168 : vector<16x128xf32>
    %cst_106 = arith.constant 1.000000e+00 : f32
    %170 = vector.broadcast %cst_106 : f32 to vector<16x128xf32>
    %171 = arith.addf %170, %169 : vector<16x128xf32>
    %172 = arith.divf %170, %171 : vector<16x128xf32>
    %173 = arith.index_cast %135 : i32 to index
    %c0_107 = arith.constant 0 : index
    %c0_108 = arith.constant 0 : index
    %174 = vector.load %arg16[%173, %c0_107, %c0_108] : memref<4x16x128xf32, #tpu.memory_space<vmem>>, vector<1x16x128xf32>
    %175 = vector.shape_cast %174 : vector<1x16x128xf32> to vector<16x128xf32>
    %176 = arith.addf %175, %163 : vector<16x128xf32>
    %177 = arith.negf %176 : vector<16x128xf32>
    %178 = math.exp %177 : vector<16x128xf32>
    %cst_109 = arith.constant 1.000000e+00 : f32
    %179 = vector.broadcast %cst_109 : f32 to vector<16x128xf32>
    %180 = arith.addf %179, %178 : vector<16x128xf32>
    %181 = arith.divf %179, %180 : vector<16x128xf32>
    %c0_110 = arith.constant 0 : index
    %c256_111 = arith.constant 256 : index
    %182 = vector.load %arg4[%c0_110, %c256_111] : memref<128x384xbf16, #tpu.memory_space<vmem>>, vector<128x128xbf16>
    %cst_112 = arith.constant dense<0.000000e+00> : vector<16x128xf32>
    %183 = tpu.matmul %136, %182, %cst_112 {dimension_numbers = #tpu.dot_dimension_numbers<[1], [0], [0], [1], [0, 0, 1, 1], [], []>} : vector<16x128xbf16>, vector<128x128xbf16>, vector<16x128xf32> -> vector<16x128xf32>
    %c0_113 = arith.constant 0 : index
    %c256_114 = arith.constant 256 : index
    %184 = vector.load %arg6[%c0_113, %c256_114] : memref<128x384xbf16, #tpu.memory_space<vmem>>, vector<128x128xbf16>
    %cst_115 = arith.constant dense<0.000000e+00> : vector<16x128xf32>
    %185 = tpu.matmul %137, %184, %cst_115 {dimension_numbers = #tpu.dot_dimension_numbers<[1], [0], [0], [1], [0, 0, 1, 1], [], []>} : vector<16x128xbf16>, vector<128x128xbf16>, vector<16x128xf32> -> vector<16x128xf32>
    %186 = arith.index_cast %c1_i32_84 : i32 to index
    %c0_116 = arith.constant 0 : index
    %c0_117 = arith.constant 0 : index
    %187 = vector.load %arg14[%186, %c0_116, %c0_117] : memref<4x16x128xf32, #tpu.memory_space<vmem>>, vector<1x16x128xf32>
    %188 = vector.shape_cast %187 : vector<1x16x128xf32> to vector<16x128xf32>
    %189 = vector.broadcast %41 : vector<1x128xf32> to vector<16x128xf32>
    %190 = arith.addf %183, %189 : vector<16x128xf32>
    %191 = arith.mulf %150, %190 : vector<16x128xf32>
    %192 = arith.addf %188, %191 : vector<16x128xf32>
    %193 = math.tanh %192 : vector<16x128xf32>
    %194 = arith.index_cast %135 : i32 to index
    %c0_118 = arith.constant 0 : index
    %c0_119 = arith.constant 0 : index
    %195 = vector.load %arg17[%194, %c0_118, %c0_119] : memref<4x16x128xf32, #tpu.memory_space<vmem>>, vector<1x16x128xf32>
    %196 = vector.shape_cast %195 : vector<1x16x128xf32> to vector<16x128xf32>
    %197 = vector.broadcast %43 : vector<1x128xf32> to vector<16x128xf32>
    %198 = arith.addf %185, %197 : vector<16x128xf32>
    %199 = arith.mulf %159, %198 : vector<16x128xf32>
    %200 = arith.addf %196, %199 : vector<16x128xf32>
    %201 = math.tanh %200 : vector<16x128xf32>
    %cst_120 = arith.constant 1.000000e+00 : f32
    %202 = vector.broadcast %cst_120 : f32 to vector<16x128xf32>
    %203 = arith.subf %202, %172 : vector<16x128xf32>
    %204 = arith.mulf %203, %193 : vector<16x128xf32>
    %205 = arith.mulf %172, %119 : vector<16x128xf32>
    %206 = arith.addf %204, %205 : vector<16x128xf32>
    %cst_121 = arith.constant 1.000000e+00 : f32
    %207 = vector.broadcast %cst_121 : f32 to vector<16x128xf32>
    %208 = arith.subf %207, %181 : vector<16x128xf32>
    %209 = arith.mulf %208, %201 : vector<16x128xf32>
    %210 = arith.mulf %181, %124 : vector<16x128xf32>
    %211 = arith.addf %209, %210 : vector<16x128xf32>
    %212 = arith.truncf %206 : vector<16x128xf32> to vector<16x128xbf16>
    %213 = arith.index_cast %c1_i32_84 : i32 to index
    %c0_122 = arith.constant 0 : index
    %c0_123 = arith.constant 0 : index
    %214 = vector.load %arg9[%213, %c0_122, %c0_123] : memref<4x16x128xbf16, #tpu.memory_space<vmem>>, vector<1x16x128xbf16>
    %215 = vector.shape_cast %214 : vector<1x16x128xbf16> to vector<16x128xbf16>
    %216 = vector.shape_cast %212 : vector<16x128xbf16> to vector<1x16x128xbf16>
    tpu.vector_store %arg9[%213, %c0_122, %c0_123], %216 {strides = array<i32>} : memref<4x16x128xbf16, #tpu.memory_space<vmem>>, vector<1x16x128xbf16>,
    %217 = arith.truncf %211 : vector<16x128xf32> to vector<16x128xbf16>
    %218 = arith.index_cast %135 : i32 to index
    %c0_124 = arith.constant 0 : index
    %c0_125 = arith.constant 0 : index
    %219 = vector.load %arg10[%218, %c0_124, %c0_125] : memref<4x16x128xbf16, #tpu.memory_space<vmem>>, vector<1x16x128xbf16>
    %220 = vector.shape_cast %219 : vector<1x16x128xbf16> to vector<16x128xbf16>
    %221 = vector.shape_cast %217 : vector<16x128xbf16> to vector<1x16x128xbf16>
    tpu.vector_store %arg10[%218, %c0_124, %c0_125], %221 {strides = array<i32>} : memref<4x16x128xbf16, #tpu.memory_space<vmem>>, vector<1x16x128xbf16>,
    %c2_i32 = arith.constant 2 : i32
    %c3_i32_126 = arith.constant 3 : i32
    %222 = arith.subi %c3_i32_126, %c2_i32 : i32
    %223 = arith.truncf %206 : vector<16x128xf32> to vector<16x128xbf16>
    %224 = arith.truncf %211 : vector<16x128xf32> to vector<16x128xbf16>
    %c0_127 = arith.constant 0 : index
    %c0_128 = arith.constant 0 : index
    %225 = vector.load %arg4[%c0_127, %c0_128] : memref<128x384xbf16, #tpu.memory_space<vmem>>, vector<128x128xbf16>
    %cst_129 = arith.constant dense<0.000000e+00> : vector<16x128xf32>
    %226 = tpu.matmul %223, %225, %cst_129 {dimension_numbers = #tpu.dot_dimension_numbers<[1], [0], [0], [1], [0, 0, 1, 1], [], []>} : vector<16x128xbf16>, vector<128x128xbf16>, vector<16x128xf32> -> vector<16x128xf32>
    %c0_130 = arith.constant 0 : index
    %c0_131 = arith.constant 0 : index
    %227 = vector.load %arg6[%c0_130, %c0_131] : memref<128x384xbf16, #tpu.memory_space<vmem>>, vector<128x128xbf16>
    %cst_132 = arith.constant dense<0.000000e+00> : vector<16x128xf32>
    %228 = tpu.matmul %224, %227, %cst_132 {dimension_numbers = #tpu.dot_dimension_numbers<[1], [0], [0], [1], [0, 0, 1, 1], [], []>} : vector<16x128xbf16>, vector<128x128xbf16>, vector<16x128xf32> -> vector<16x128xf32>
    %229 = arith.index_cast %c2_i32 : i32 to index
    %c0_133 = arith.constant 0 : index
    %c0_134 = arith.constant 0 : index
    %230 = vector.load %arg12[%229, %c0_133, %c0_134] : memref<4x16x128xf32, #tpu.memory_space<vmem>>, vector<1x16x128xf32>
    %231 = vector.shape_cast %230 : vector<1x16x128xf32> to vector<16x128xf32>
    %232 = arith.addf %231, %226 : vector<16x128xf32>
    %233 = arith.negf %232 : vector<16x128xf32>
    %234 = math.exp %233 : vector<16x128xf32>
    %cst_135 = arith.constant 1.000000e+00 : f32
    %235 = vector.broadcast %cst_135 : f32 to vector<16x128xf32>
    %236 = arith.addf %235, %234 : vector<16x128xf32>
    %237 = arith.divf %235, %236 : vector<16x128xf32>
    %238 = arith.index_cast %222 : i32 to index
    %c0_136 = arith.constant 0 : index
    %c0_137 = arith.constant 0 : index
    %239 = vector.load %arg15[%238, %c0_136, %c0_137] : memref<4x16x128xf32, #tpu.memory_space<vmem>>, vector<1x16x128xf32>
    %240 = vector.shape_cast %239 : vector<1x16x128xf32> to vector<16x128xf32>
    %241 = arith.addf %240, %228 : vector<16x128xf32>
    %242 = arith.negf %241 : vector<16x128xf32>
    %243 = math.exp %242 : vector<16x128xf32>
    %cst_138 = arith.constant 1.000000e+00 : f32
    %244 = vector.broadcast %cst_138 : f32 to vector<16x128xf32>
    %245 = arith.addf %244, %243 : vector<16x128xf32>
    %246 = arith.divf %244, %245 : vector<16x128xf32>
    %c0_139 = arith.constant 0 : index
    %c128_140 = arith.constant 128 : index
    %247 = vector.load %arg4[%c0_139, %c128_140] : memref<128x384xbf16, #tpu.memory_space<vmem>>, vector<128x128xbf16>
    %cst_141 = arith.constant dense<0.000000e+00> : vector<16x128xf32>
    %248 = tpu.matmul %223, %247, %cst_141 {dimension_numbers = #tpu.dot_dimension_numbers<[1], [0], [0], [1], [0, 0, 1, 1], [], []>} : vector<16x128xbf16>, vector<128x128xbf16>, vector<16x128xf32> -> vector<16x128xf32>
    %c0_142 = arith.constant 0 : index
    %c128_143 = arith.constant 128 : index
    %249 = vector.load %arg6[%c0_142, %c128_143] : memref<128x384xbf16, #tpu.memory_space<vmem>>, vector<128x128xbf16>
    %cst_144 = arith.constant dense<0.000000e+00> : vector<16x128xf32>
    %250 = tpu.matmul %224, %249, %cst_144 {dimension_numbers = #tpu.dot_dimension_numbers<[1], [0], [0], [1], [0, 0, 1, 1], [], []>} : vector<16x128xbf16>, vector<128x128xbf16>, vector<16x128xf32> -> vector<16x128xf32>
    %251 = arith.index_cast %c2_i32 : i32 to index
    %c0_145 = arith.constant 0 : index
    %c0_146 = arith.constant 0 : index
    %252 = vector.load %arg13[%251, %c0_145, %c0_146] : memref<4x16x128xf32, #tpu.memory_space<vmem>>, vector<1x16x128xf32>
    %253 = vector.shape_cast %252 : vector<1x16x128xf32> to vector<16x128xf32>
    %254 = arith.addf %253, %248 : vector<16x128xf32>
    %255 = arith.negf %254 : vector<16x128xf32>
    %256 = math.exp %255 : vector<16x128xf32>
    %cst_147 = arith.constant 1.000000e+00 : f32
    %257 = vector.broadcast %cst_147 : f32 to vector<16x128xf32>
    %258 = arith.addf %257, %256 : vector<16x128xf32>
    %259 = arith.divf %257, %258 : vector<16x128xf32>
    %260 = arith.index_cast %222 : i32 to index
    %c0_148 = arith.constant 0 : index
    %c0_149 = arith.constant 0 : index
    %261 = vector.load %arg16[%260, %c0_148, %c0_149] : memref<4x16x128xf32, #tpu.memory_space<vmem>>, vector<1x16x128xf32>
    %262 = vector.shape_cast %261 : vector<1x16x128xf32> to vector<16x128xf32>
    %263 = arith.addf %262, %250 : vector<16x128xf32>
    %264 = arith.negf %263 : vector<16x128xf32>
    %265 = math.exp %264 : vector<16x128xf32>
    %cst_150 = arith.constant 1.000000e+00 : f32
    %266 = vector.broadcast %cst_150 : f32 to vector<16x128xf32>
    %267 = arith.addf %266, %265 : vector<16x128xf32>
    %268 = arith.divf %266, %267 : vector<16x128xf32>
    %c0_151 = arith.constant 0 : index
    %c256_152 = arith.constant 256 : index
    %269 = vector.load %arg4[%c0_151, %c256_152] : memref<128x384xbf16, #tpu.memory_space<vmem>>, vector<128x128xbf16>
    %cst_153 = arith.constant dense<0.000000e+00> : vector<16x128xf32>
    %270 = tpu.matmul %223, %269, %cst_153 {dimension_numbers = #tpu.dot_dimension_numbers<[1], [0], [0], [1], [0, 0, 1, 1], [], []>} : vector<16x128xbf16>, vector<128x128xbf16>, vector<16x128xf32> -> vector<16x128xf32>
    %c0_154 = arith.constant 0 : index
    %c256_155 = arith.constant 256 : index
    %271 = vector.load %arg6[%c0_154, %c256_155] : memref<128x384xbf16, #tpu.memory_space<vmem>>, vector<128x128xbf16>
    %cst_156 = arith.constant dense<0.000000e+00> : vector<16x128xf32>
    %272 = tpu.matmul %224, %271, %cst_156 {dimension_numbers = #tpu.dot_dimension_numbers<[1], [0], [0], [1], [0, 0, 1, 1], [], []>} : vector<16x128xbf16>, vector<128x128xbf16>, vector<16x128xf32> -> vector<16x128xf32>
    %273 = arith.index_cast %c2_i32 : i32 to index
    %c0_157 = arith.constant 0 : index
    %c0_158 = arith.constant 0 : index
    %274 = vector.load %arg14[%273, %c0_157, %c0_158] : memref<4x16x128xf32, #tpu.memory_space<vmem>>, vector<1x16x128xf32>
    %275 = vector.shape_cast %274 : vector<1x16x128xf32> to vector<16x128xf32>
    %276 = vector.broadcast %41 : vector<1x128xf32> to vector<16x128xf32>
    %277 = arith.addf %270, %276 : vector<16x128xf32>
    %278 = arith.mulf %237, %277 : vector<16x128xf32>
    %279 = arith.addf %275, %278 : vector<16x128xf32>
    %280 = math.tanh %279 : vector<16x128xf32>
    %281 = arith.index_cast %222 : i32 to index
    %c0_159 = arith.constant 0 : index
    %c0_160 = arith.constant 0 : index
    %282 = vector.load %arg17[%281, %c0_159, %c0_160] : memref<4x16x128xf32, #tpu.memory_space<vmem>>, vector<1x16x128xf32>
    %283 = vector.shape_cast %282 : vector<1x16x128xf32> to vector<16x128xf32>
    %284 = vector.broadcast %43 : vector<1x128xf32> to vector<16x128xf32>
    %285 = arith.addf %272, %284 : vector<16x128xf32>
    %286 = arith.mulf %246, %285 : vector<16x128xf32>
    %287 = arith.addf %283, %286 : vector<16x128xf32>
    %288 = math.tanh %287 : vector<16x128xf32>
    %cst_161 = arith.constant 1.000000e+00 : f32
    %289 = vector.broadcast %cst_161 : f32 to vector<16x128xf32>
    %290 = arith.subf %289, %259 : vector<16x128xf32>
    %291 = arith.mulf %290, %280 : vector<16x128xf32>
    %292 = arith.mulf %259, %206 : vector<16x128xf32>
    %293 = arith.addf %291, %292 : vector<16x128xf32>
    %cst_162 = arith.constant 1.000000e+00 : f32
    %294 = vector.broadcast %cst_162 : f32 to vector<16x128xf32>
    %295 = arith.subf %294, %268 : vector<16x128xf32>
    %296 = arith.mulf %295, %288 : vector<16x128xf32>
    %297 = arith.mulf %268, %211 : vector<16x128xf32>
    %298 = arith.addf %296, %297 : vector<16x128xf32>
    %299 = arith.truncf %293 : vector<16x128xf32> to vector<16x128xbf16>
    %300 = arith.index_cast %c2_i32 : i32 to index
    %c0_163 = arith.constant 0 : index
    %c0_164 = arith.constant 0 : index
    %301 = vector.load %arg9[%300, %c0_163, %c0_164] : memref<4x16x128xbf16, #tpu.memory_space<vmem>>, vector<1x16x128xbf16>
    %302 = vector.shape_cast %301 : vector<1x16x128xbf16> to vector<16x128xbf16>
    %303 = vector.shape_cast %299 : vector<16x128xbf16> to vector<1x16x128xbf16>
    tpu.vector_store %arg9[%300, %c0_163, %c0_164], %303 {strides = array<i32>} : memref<4x16x128xbf16, #tpu.memory_space<vmem>>, vector<1x16x128xbf16>,
    %304 = arith.truncf %298 : vector<16x128xf32> to vector<16x128xbf16>
    %305 = arith.index_cast %222 : i32 to index
    %c0_165 = arith.constant 0 : index
    %c0_166 = arith.constant 0 : index
    %306 = vector.load %arg10[%305, %c0_165, %c0_166] : memref<4x16x128xbf16, #tpu.memory_space<vmem>>, vector<1x16x128xbf16>
    %307 = vector.shape_cast %306 : vector<1x16x128xbf16> to vector<16x128xbf16>
    %308 = vector.shape_cast %304 : vector<16x128xbf16> to vector<1x16x128xbf16>
    tpu.vector_store %arg10[%305, %c0_165, %c0_166], %308 {strides = array<i32>} : memref<4x16x128xbf16, #tpu.memory_space<vmem>>, vector<1x16x128xbf16>,
    %c3_i32_167 = arith.constant 3 : i32
    %c3_i32_168 = arith.constant 3 : i32
    %309 = arith.subi %c3_i32_168, %c3_i32_167 : i32
    %310 = arith.truncf %293 : vector<16x128xf32> to vector<16x128xbf16>
    %311 = arith.truncf %298 : vector<16x128xf32> to vector<16x128xbf16>
    %c0_169 = arith.constant 0 : index
    %c0_170 = arith.constant 0 : index
    %312 = vector.load %arg4[%c0_169, %c0_170] : memref<128x384xbf16, #tpu.memory_space<vmem>>, vector<128x128xbf16>
    %cst_171 = arith.constant dense<0.000000e+00> : vector<16x128xf32>
    %313 = tpu.matmul %310, %312, %cst_171 {dimension_numbers = #tpu.dot_dimension_numbers<[1], [0], [0], [1], [0, 0, 1, 1], [], []>} : vector<16x128xbf16>, vector<128x128xbf16>, vector<16x128xf32> -> vector<16x128xf32>
    %c0_172 = arith.constant 0 : index
    %c0_173 = arith.constant 0 : index
    %314 = vector.load %arg6[%c0_172, %c0_173] : memref<128x384xbf16, #tpu.memory_space<vmem>>, vector<128x128xbf16>
    %cst_174 = arith.constant dense<0.000000e+00> : vector<16x128xf32>
    %315 = tpu.matmul %311, %314, %cst_174 {dimension_numbers = #tpu.dot_dimension_numbers<[1], [0], [0], [1], [0, 0, 1, 1], [], []>} : vector<16x128xbf16>, vector<128x128xbf16>, vector<16x128xf32> -> vector<16x128xf32>
    %316 = arith.index_cast %c3_i32_167 : i32 to index
    %c0_175 = arith.constant 0 : index
    %c0_176 = arith.constant 0 : index
    %317 = vector.load %arg12[%316, %c0_175, %c0_176] : memref<4x16x128xf32, #tpu.memory_space<vmem>>, vector<1x16x128xf32>
    %318 = vector.shape_cast %317 : vector<1x16x128xf32> to vector<16x128xf32>
    %319 = arith.addf %318, %313 : vector<16x128xf32>
    %320 = arith.negf %319 : vector<16x128xf32>
    %321 = math.exp %320 : vector<16x128xf32>
    %cst_177 = arith.constant 1.000000e+00 : f32
    %322 = vector.broadcast %cst_177 : f32 to vector<16x128xf32>
    %323 = arith.addf %322, %321 : vector<16x128xf32>
    %324 = arith.divf %322, %323 : vector<16x128xf32>
    %325 = arith.index_cast %309 : i32 to index
    %c0_178 = arith.constant 0 : index
    %c0_179 = arith.constant 0 : index
    %326 = vector.load %arg15[%325, %c0_178, %c0_179] : memref<4x16x128xf32, #tpu.memory_space<vmem>>, vector<1x16x128xf32>
    %327 = vector.shape_cast %326 : vector<1x16x128xf32> to vector<16x128xf32>
    %328 = arith.addf %327, %315 : vector<16x128xf32>
    %329 = arith.negf %328 : vector<16x128xf32>
    %330 = math.exp %329 : vector<16x128xf32>
    %cst_180 = arith.constant 1.000000e+00 : f32
    %331 = vector.broadcast %cst_180 : f32 to vector<16x128xf32>
    %332 = arith.addf %331, %330 : vector<16x128xf32>
    %333 = arith.divf %331, %332 : vector<16x128xf32>
    %c0_181 = arith.constant 0 : index
    %c128_182 = arith.constant 128 : index
    %334 = vector.load %arg4[%c0_181, %c128_182] : memref<128x384xbf16, #tpu.memory_space<vmem>>, vector<128x128xbf16>
    %cst_183 = arith.constant dense<0.000000e+00> : vector<16x128xf32>
    %335 = tpu.matmul %310, %334, %cst_183 {dimension_numbers = #tpu.dot_dimension_numbers<[1], [0], [0], [1], [0, 0, 1, 1], [], []>} : vector<16x128xbf16>, vector<128x128xbf16>, vector<16x128xf32> -> vector<16x128xf32>
    %c0_184 = arith.constant 0 : index
    %c128_185 = arith.constant 128 : index
    %336 = vector.load %arg6[%c0_184, %c128_185] : memref<128x384xbf16, #tpu.memory_space<vmem>>, vector<128x128xbf16>
    %cst_186 = arith.constant dense<0.000000e+00> : vector<16x128xf32>
    %337 = tpu.matmul %311, %336, %cst_186 {dimension_numbers = #tpu.dot_dimension_numbers<[1], [0], [0], [1], [0, 0, 1, 1], [], []>} : vector<16x128xbf16>, vector<128x128xbf16>, vector<16x128xf32> -> vector<16x128xf32>
    %338 = arith.index_cast %c3_i32_167 : i32 to index
    %c0_187 = arith.constant 0 : index
    %c0_188 = arith.constant 0 : index
    %339 = vector.load %arg13[%338, %c0_187, %c0_188] : memref<4x16x128xf32, #tpu.memory_space<vmem>>, vector<1x16x128xf32>
    %340 = vector.shape_cast %339 : vector<1x16x128xf32> to vector<16x128xf32>
    %341 = arith.addf %340, %335 : vector<16x128xf32>
    %342 = arith.negf %341 : vector<16x128xf32>
    %343 = math.exp %342 : vector<16x128xf32>
    %cst_189 = arith.constant 1.000000e+00 : f32
    %344 = vector.broadcast %cst_189 : f32 to vector<16x128xf32>
    %345 = arith.addf %344, %343 : vector<16x128xf32>
    %346 = arith.divf %344, %345 : vector<16x128xf32>
    %347 = arith.index_cast %309 : i32 to index
    %c0_190 = arith.constant 0 : index
    %c0_191 = arith.constant 0 : index
    %348 = vector.load %arg16[%347, %c0_190, %c0_191] : memref<4x16x128xf32, #tpu.memory_space<vmem>>, vector<1x16x128xf32>
    %349 = vector.shape_cast %348 : vector<1x16x128xf32> to vector<16x128xf32>
    %350 = arith.addf %349, %337 : vector<16x128xf32>
    %351 = arith.negf %350 : vector<16x128xf32>
    %352 = math.exp %351 : vector<16x128xf32>
    %cst_192 = arith.constant 1.000000e+00 : f32
    %353 = vector.broadcast %cst_192 : f32 to vector<16x128xf32>
    %354 = arith.addf %353, %352 : vector<16x128xf32>
    %355 = arith.divf %353, %354 : vector<16x128xf32>
    %c0_193 = arith.constant 0 : index
    %c256_194 = arith.constant 256 : index
    %356 = vector.load %arg4[%c0_193, %c256_194] : memref<128x384xbf16, #tpu.memory_space<vmem>>, vector<128x128xbf16>
    %cst_195 = arith.constant dense<0.000000e+00> : vector<16x128xf32>
    %357 = tpu.matmul %310, %356, %cst_195 {dimension_numbers = #tpu.dot_dimension_numbers<[1], [0], [0], [1], [0, 0, 1, 1], [], []>} : vector<16x128xbf16>, vector<128x128xbf16>, vector<16x128xf32> -> vector<16x128xf32>
    %c0_196 = arith.constant 0 : index
    %c256_197 = arith.constant 256 : index
    %358 = vector.load %arg6[%c0_196, %c256_197] : memref<128x384xbf16, #tpu.memory_space<vmem>>, vector<128x128xbf16>
    %cst_198 = arith.constant dense<0.000000e+00> : vector<16x128xf32>
    %359 = tpu.matmul %311, %358, %cst_198 {dimension_numbers = #tpu.dot_dimension_numbers<[1], [0], [0], [1], [0, 0, 1, 1], [], []>} : vector<16x128xbf16>, vector<128x128xbf16>, vector<16x128xf32> -> vector<16x128xf32>
    %360 = arith.index_cast %c3_i32_167 : i32 to index
    %c0_199 = arith.constant 0 : index
    %c0_200 = arith.constant 0 : index
    %361 = vector.load %arg14[%360, %c0_199, %c0_200] : memref<4x16x128xf32, #tpu.memory_space<vmem>>, vector<1x16x128xf32>
    %362 = vector.shape_cast %361 : vector<1x16x128xf32> to vector<16x128xf32>
    %363 = vector.broadcast %41 : vector<1x128xf32> to vector<16x128xf32>
    %364 = arith.addf %357, %363 : vector<16x128xf32>
    %365 = arith.mulf %324, %364 : vector<16x128xf32>
    %366 = arith.addf %362, %365 : vector<16x128xf32>
    %367 = math.tanh %366 : vector<16x128xf32>
    %368 = arith.index_cast %309 : i32 to index
    %c0_201 = arith.constant 0 : index
    %c0_202 = arith.constant 0 : index
    %369 = vector.load %arg17[%368, %c0_201, %c0_202] : memref<4x16x128xf32, #tpu.memory_space<vmem>>, vector<1x16x128xf32>
    %370 = vector.shape_cast %369 : vector<1x16x128xf32> to vector<16x128xf32>
    %371 = vector.broadcast %43 : vector<1x128xf32> to vector<16x128xf32>
    %372 = arith.addf %359, %371 : vector<16x128xf32>
    %373 = arith.mulf %333, %372 : vector<16x128xf32>
    %374 = arith.addf %370, %373 : vector<16x128xf32>
    %375 = math.tanh %374 : vector<16x128xf32>
    %cst_203 = arith.constant 1.000000e+00 : f32
    %376 = vector.broadcast %cst_203 : f32 to vector<16x128xf32>
    %377 = arith.subf %376, %346 : vector<16x128xf32>
    %378 = arith.mulf %377, %367 : vector<16x128xf32>
    %379 = arith.mulf %346, %293 : vector<16x128xf32>
    %380 = arith.addf %378, %379 : vector<16x128xf32>
    %cst_204 = arith.constant 1.000000e+00 : f32
    %381 = vector.broadcast %cst_204 : f32 to vector<16x128xf32>
    %382 = arith.subf %381, %355 : vector<16x128xf32>
    %383 = arith.mulf %382, %375 : vector<16x128xf32>
    %384 = arith.mulf %355, %298 : vector<16x128xf32>
    %385 = arith.addf %383, %384 : vector<16x128xf32>
    %386 = arith.truncf %380 : vector<16x128xf32> to vector<16x128xbf16>
    %387 = arith.index_cast %c3_i32_167 : i32 to index
    %c0_205 = arith.constant 0 : index
    %c0_206 = arith.constant 0 : index
    %388 = vector.load %arg9[%387, %c0_205, %c0_206] : memref<4x16x128xbf16, #tpu.memory_space<vmem>>, vector<1x16x128xbf16>
    %389 = vector.shape_cast %388 : vector<1x16x128xbf16> to vector<16x128xbf16>
    %390 = vector.shape_cast %386 : vector<16x128xbf16> to vector<1x16x128xbf16>
    tpu.vector_store %arg9[%387, %c0_205, %c0_206], %390 {strides = array<i32>} : memref<4x16x128xbf16, #tpu.memory_space<vmem>>, vector<1x16x128xbf16>,
    %391 = arith.truncf %385 : vector<16x128xf32> to vector<16x128xbf16>
    %392 = arith.index_cast %309 : i32 to index
    %c0_207 = arith.constant 0 : index
    %c0_208 = arith.constant 0 : index
    %393 = vector.load %arg10[%392, %c0_207, %c0_208] : memref<4x16x128xbf16, #tpu.memory_space<vmem>>, vector<1x16x128xbf16>
    %394 = vector.shape_cast %393 : vector<1x16x128xbf16> to vector<16x128xbf16>
    %395 = vector.shape_cast %391 : vector<16x128xbf16> to vector<1x16x128xbf16>
    tpu.vector_store %arg10[%392, %c0_207, %c0_208], %395 {strides = array<i32>} : memref<4x16x128xbf16, #tpu.memory_space<vmem>>, vector<1x16x128xbf16>,
    %c4_i32_209 = arith.constant 4 : i32
    %c0_210 = arith.constant 0 : index
    %c0_211 = arith.constant 0 : index
    %c0_212 = arith.constant 0 : index
    %396 = vector.load %arg11[%c0_210, %c0_211, %c0_212] : memref<2x16x128xf32, #tpu.memory_space<vmem>>, vector<1x16x128xf32>
    %397 = vector.shape_cast %396 : vector<1x16x128xf32> to vector<16x128xf32>
    %398 = vector.shape_cast %380 : vector<16x128xf32> to vector<1x16x128xf32>
    tpu.vector_store %arg11[%c0_210, %c0_211, %c0_212], %398 {strides = array<i32>} : memref<2x16x128xf32, #tpu.memory_space<vmem>>, vector<1x16x128xf32>,
    %c1_213 = arith.constant 1 : index
    %c0_214 = arith.constant 0 : index
    %c0_215 = arith.constant 0 : index
    %399 = vector.load %arg11[%c1_213, %c0_214, %c0_215] : memref<2x16x128xf32, #tpu.memory_space<vmem>>, vector<1x16x128xf32>
    %400 = vector.shape_cast %399 : vector<1x16x128xf32> to vector<16x128xf32>
    %401 = vector.shape_cast %385 : vector<16x128xf32> to vector<1x16x128xf32>
    tpu.vector_store %arg11[%c1_213, %c0_214, %c0_215], %401 {strides = array<i32>} : memref<2x16x128xf32, #tpu.memory_space<vmem>>, vector<1x16x128xf32>,
    return
  }
  func.func @transform_0(%arg0: i32, %arg1: i32) -> (i32, i32, i32) {
    %c0_i32 = arith.constant 0 : i32
    %c0_i32_0 = arith.constant 0 : i32
    %c0_i32_1 = arith.constant 0 : i32
    return %c0_i32, %arg0, %c0_i32_0 : i32, i32, i32
  }
  func.func @transform_1(%arg0: i32, %arg1: i32) -> (i32, i32) {
    %c0_i32 = arith.constant 0 : i32
    %c0_i32_0 = arith.constant 0 : i32
    %c0_i32_1 = arith.constant 0 : i32
    return %c0_i32, %c0_i32_0 : i32, i32
  }
  func.func @transform_2(%arg0: i32, %arg1: i32) -> (i32, i32) {
    %c0_i32 = arith.constant 0 : i32
    %c0_i32_0 = arith.constant 0 : i32
    %c0_i32_1 = arith.constant 0 : i32
    return %c0_i32, %c0_i32_0 : i32, i32
  }
  func.func @transform_3(%arg0: i32, %arg1: i32) -> (i32, i32) {
    %c0_i32 = arith.constant 0 : i32
    %c0_i32_0 = arith.constant 0 : i32
    %c0_i32_1 = arith.constant 0 : i32
    return %c0_i32, %c0_i32_0 : i32, i32
  }
  func.func @transform_4(%arg0: i32, %arg1: i32) -> (i32, i32) {
    %c0_i32 = arith.constant 0 : i32
    %c0_i32_0 = arith.constant 0 : i32
    %c0_i32_1 = arith.constant 0 : i32
    return %c0_i32, %c0_i32_0 : i32, i32
  }
  func.func @transform_5(%arg0: i32, %arg1: i32) -> (i32, i32, i32) {
    %c0_i32 = arith.constant 0 : i32
    %c0_i32_0 = arith.constant 0 : i32
    %c0_i32_1 = arith.constant 0 : i32
    %c0_i32_2 = arith.constant 0 : i32
    return %c0_i32, %c0_i32_0, %c0_i32_1 : i32, i32, i32
  }
  func.func @transform_6(%arg0: i32, %arg1: i32) -> (i32, i32, i32) {
    %c0_i32 = arith.constant 0 : i32
    %c0_i32_0 = arith.constant 0 : i32
    %c0_i32_1 = arith.constant 0 : i32
    %c0_i32_2 = arith.constant 0 : i32
    return %c0_i32, %c0_i32_0, %c0_i32_1 : i32, i32, i32
  }
  func.func @transform_7(%arg0: i32, %arg1: i32) -> (i32, i32, i32) {
    %c0_i32 = arith.constant 0 : i32
    %c0_i32_0 = arith.constant 0 : i32
    return %arg1, %arg0, %c0_i32 : i32, i32, i32
  }
  func.func @transform_8(%arg0: i32, %arg1: i32) -> (i32, i32, i32) {
    %c1_i32 = arith.constant 1 : i32
    %0 = arith.subi %c1_i32, %arg1 : i32
    %c0_i32 = arith.constant 0 : i32
    %c0_i32_0 = arith.constant 0 : i32
    return %0, %arg0, %c0_i32 : i32, i32, i32
  }
  func.func @transform_9(%arg0: i32, %arg1: i32) -> (i32, i32, i32) {
    %c0_i32 = arith.constant 0 : i32
    %c0_i32_0 = arith.constant 0 : i32
    %c0_i32_1 = arith.constant 0 : i32
    return %c0_i32, %arg0, %c0_i32_0 : i32, i32, i32
  }
}

</mosaic_0001>

<bundles_post_ra>
// kernel: encoder_forward.2
= control target key start
LH: loop header
LB: loop body
LE: loop exit
PB: predicated region body
PF: predicated region fallthrough
CT: control target
= control target key end

     0   :  { %s7788_s0 = inlined_call_operand.hbm [shape: bf16[8,16,128], index: 0, kind: input, shape index: {}]   ;;  %s7789_s1 = inlined_call_operand.hbm [shape: bf16[128,384], index: 1, kind: input, shape index: {}]   ;;  %s7790_s2 = inlined_call_operand.hbm [shape: bf16[128,384], index: 2, kind: input, shape index: {}]   ;;  %s7791_s3 = inlined_call_operand.hbm [shape: bf16[128,384], index: 3, kind: input, shape index: {}]   ;;  %s7792_s4 = inlined_call_operand.hbm [shape: bf16[128,384], index: 4, kind: input, shape index: {}]   ;;  %s7793_s5 = inlined_call_operand.hbm [shape: f32[2,1,384], index: 5, kind: input, shape index: {}]   ;;  %s7794_s6 = inlined_call_operand.hbm [shape: f32[2,1,128], index: 6, kind: input, shape index: {}]   ;;  %s7795_s7 = inlined_call_operand.hbm [shape: bf16[8,16,128], index: 7, kind: output, shape index: {0}]   ;;  %s7796_s8 = inlined_call_operand.hbm [shape: bf16[8,16,128], index: 8, kind: output, shape index: {1}]   ;;  %s7797_s9 = inlined_call_operand.hbm [shape: f32[2,16,128], index: 9, kind: output, shape index: {2}]  }
   0x1   :  { %7822 = sst [smem:[#allocation50_spill]] %s7797_s9 }
   0x2   :  { %15 = vsyncpa [#allocation9], 0 }
   0x3   :  { %16 = vsyncpa [#allocation12], 0 }
   0x4   :  { %17 = vsyncpa [#allocation15], 0 }
   0x5   :  { %18 = vsyncpa [#allocation18], 0 }
   0x6   :  { %19 = vsyncpa [#allocation10], 0 }
   0x7   :  { %21 = vsyncpa [#allocation10 + $0x1], 0 }
   0x8   :  { %22 = vsyncpa [#allocation22], 0 }
   0x9   :  { %24 = vsyncpa [#allocation22 + $0x1], 0  ;;  %s6744_s30 = smov 0   ;;  %s6746_s10 = smov 0  }
   0xa   :  { %s6748_s11 = smov 0   ;;  %s6750_s12 = smov 0  }
   0xb   :  { %s6752_s13 = smov 0   ;;  %s6754_s14 = smov 0  }
   0xc   :  { %s6756_s15 = smov 0   ;;  %s6758_s16 = smov 0  }
   0xd   :  { %s6760_s17 = smov 0  }
   0xe LB: > { %7823 = sst [smem:[#allocation31_spill]] %s6642_s11  ;;  %s6790_s18 = sadd.s32 4294967295, %s6666_s17   ;;  %s6666_s17 = sphi %s6760_s17, %s30_s17   ;;  %s6662_s16 = sphi %s6758_s16, %s7895_s16   ;;  %s6658_s15 = sphi %s6756_s15, %s7889_s15   ;;  %s6654_s14 = sphi %s6754_s14, %s7888_s14   ;;  %s6650_s13 = sphi %s6752_s13, %s7894_s13   ;;  %s6646_s12 = sphi %s6750_s12, %s7893_s12   ;;  %s6642_s11 = sphi %s6748_s11, %s7886_s11   ;;  %s6638_s10 = sphi %s6746_s10, %s7892_s10   ;;  %s6634_s30 = sphi %s6744_s30, %s7891_s30  }
   0xf   : > { %7824 = sst [smem:[#allocation32_spill]] %s6646_s12  ;;  %s7798_s19 = sadd.s32 4294967294, %s6666_s17  }
  0x10   : > { %7825 = sst [smem:[#allocation33_spill]] %s6654_s14  ;;  %s39_s20 = sadd.s32 1, %s6662_s16 }
  0x11   : > { %7826 = sst [smem:[#allocation34_spill]] %s6662_s16  ;;  %s203_s21 = sadd.s32 1, %s6654_s14 }
  0x12   : > { %7827 = sst [smem:[#allocation35_spill]] %s6666_s17  ;;  %p40_p0 = scmp.ge.s32.totalorder %s39_s20, 2 }
  0x13   : > { %p213_p1 = scmp.ne.s32.totalorder %s6654_s14, %s6650_s13  ;;  %p7805_p2 = scmp.eq.s32.totalorder %s6790_s18, 1 }
  0x14   : > { %p219_p3 = scmp.ne.s32.totalorder %s6650_s13, %s6646_s12  ;;  %s7897_s20 = smov (%p40_p0, %s39_s20), 0 }
  0x15   : > { %7828 = sst [smem:[#allocation36_spill]] %s7897_s20  ;;  %p6804_p4 = por %p7805_p2, %p213_p1 }
  0x16   : > { %p6810_p5 = scmp.eq.s32.totalorder %s7798_s19, 1  ;;  %s198_s24 = ssub.s32 %s6662_s16, %s7897_s20 }
  0x17   : > { %s7829_s22 = scalar_select %p6804_p4, 1, 0 }
  0x18   : > { %s226_s25 = ssub.s32 1, %s6662_s16  ;;  %p201_p6 = scmp.eq.s32.totalorder %s198_s24, 0 }
  0x19   : > { %p6819_p7 = por %p6810_p5, %p219_p3  ;;  %s227_s27 = ssub.s32 1, %s7897_s20 }
  0x1a   : > { %s233_s28 = sadd.s32 1, %s6642_s11  ;;  %s228_s19 = ssub.s32 %s226_s25, %s227_s27 }
  0x1b   : > { %s7831_s26 = scalar_select %p6819_p7, 1, 0 }
  0x1c   : > { %s6826_s29 = scalar_select %p201_p6, %s6654_s14, %s203_s21  }
  0x1d   : > { %7832 = sst [smem:[#allocation37_spill]] %s7831_s26  ;;  %p243_p8 = scmp.ne.s32.totalorder %s6642_s11, %s6638_s10 }
  0x1e   : > { %7833 = sst [smem:[#allocation38_spill]] %s6826_s29  ;;  %p231_p9 = scmp.eq.s32.totalorder %s228_s19, 0 }
  0x1f   : > { %p249_p10 = scmp.ne.s32.totalorder %s6638_s10, %s6634_s30  ;;  %p6834_p11 = por %p243_p8, %p7805_p2 }
  0x20   : > { %p4497_p12 = scmp.ge.s32.totalorder %s6666_s17, 1  ;;  %p283_p0 = scmp.lt.s32.totalorder %s6666_s17, 3 }
  0x21   : > { %s7834_s12 = scalar_select %p6834_p11, 1, 0 }
  0x22   : > { %s6840_s24 = scalar_select %p231_p9, %s6642_s11, %s233_s28  }
  0x23   : > { %7835 = sst [smem:[#allocation39_spill]] %s7834_s12  ;;  %p6844_p13 = por %p249_p10, %p6810_p5 }
  0x24   : > { %7836 = sst [smem:[#allocation40_spill]] %s6840_s24  ;;  %p7806_p1 = scmp.eq.s32.totalorder %s6790_s18, 0 }
  0x25   : > { %s7837_s16 = scalar_select %p6844_p13, 1, 0 }
  0x26   : > { %p6850_p3 = pnand %p4497_p12, %p283_p0  ;;  %s6668_s30 = smov [#allocation11]  }
  0x27   : > { %7838 = sst [smem:[#allocation41_spill]] %s7837_s16  ;;  %s311_s19 = sshll.u32 %s6668_s30, 4  ;;  %s6856_s19 = int_to_ptr.vmem [resolvable:$true] %s311_s19 }
  0x28   : > { %s7839_s21 = scalar_select %p6850_p3, 1, 0 }
  0x29   : > { %p5718_p6 = pneg %p6850_p3  ;;  %s6669_s25 = smov [#allocation14]  }
  0x2a   : > { %s337_s27 = sshll.u32 %s6669_s25, 4  ;;  %s6670_s28 = smov [#allocation17]   ;;  %s6864_s27 = int_to_ptr.vmem [resolvable:$true] %s337_s27 }
  0x2b   : > { %p6860_p8 = pnand %p7806_p1, %p5718_p6  ;;  %s6866_s20 = sshll.u32 %s6670_s28, 4  ;;  %s364_s20 = int_to_ptr.vmem [resolvable:$true] %s6866_s20 }
  0x2c   : > { %s6290_s30 = scalar_lea.hbm %s7789_s1, 3072 }
  0x2d   : > { %p6291_p5 = scmp.ne.s32.totalorder %s7789_s1, %s6290_s30  ;;  %p6876_p9 = pneg %p6860_p8 }
  0x2e   : > { %p6297_p0 = scmp.lt.u32.totalorder %s6290_s30, %s7789_s1 }
  0x2f   : > { %p6293_p10 = pnand %p6876_p9, %p6291_p5 }
  0x31   : > { %p6294_p12 = pneg %p6293_p10 }
  0x33   : > { %p6299_p6 = pnand %p6297_p0, %p6294_p12 }
  0x35   : > { %6302 = shalt.err (!%p6299_p6)
}
  0x36   : > { %s6303_s11 = scalar_lea.vmem %s6856_s19, 3072  ;;  %p6311_p7 = scmp.lt.s32.totalorder %s6856_s19, %s6856_s19 }
  0x37   : > { %p6304_p2 = scmp.ne.s32.totalorder %s6856_s19, %s6303_s11  ;;  %p6312_p11 = scmp.lt.s32.totalorder %s6303_s11, %s6303_s11 }
  0x39   : > { %p6306_p1 = pnand %p6304_p2, %p6876_p9  ;;  %p6313_p5 = por %p6312_p11, %p6311_p7 }
  0x3b   : > { %p6307_p13 = pneg %p6306_p1 }
  0x3d   : > { %p6314_p10 = pnand %p6313_p5, %p6307_p13 }
  0x3f   : > { %6317 = shalt.err (!%p6314_p10)
}
  0x40   : > { %s7816_s14 = smov 192   ;;  %s7818_s29 = smov 12  }
  0x41   : > { %5724 = dma.hbm_to_vmem [thread:$0]  (!%p6860_p8), %s7789_s1, 3072, %s6856_s19, [#allocation12], %s7816_s14, %s7816_s14, %s7818_s29  }
  0x42   : > { %s6318_s11 = scalar_lea.hbm %s7791_s3, 3072 }
  0x43   : > { %p6319_p2 = scmp.ne.s32.totalorder %s7791_s3, %s6318_s11  ;;  %p6325_p13 = scmp.lt.u32.totalorder %s6318_s11, %s7791_s3 }
  0x45   : > { %p6321_p7 = pnand %p6319_p2, %p6876_p9 }
  0x47   : > { %p6322_p11 = pneg %p6321_p7 }
  0x49   : > { %p6327_p1 = pnand %p6325_p13, %p6322_p11 }
  0x4b   : > { %6330 = shalt.err (!%p6327_p1)
}
  0x4c   : > { %s6331_s19 = scalar_lea.vmem %s6864_s27, 3072  ;;  %p6339_p5 = scmp.lt.s32.totalorder %s6864_s27, %s6864_s27 }
  0x4d   : > { %p6332_p12 = scmp.ne.s32.totalorder %s6864_s27, %s6331_s19  ;;  %p6340_p10 = scmp.lt.s32.totalorder %s6331_s19, %s6331_s19 }
  0x4f   : > { %p6334_p0 = pnand %p6332_p12, %p6876_p9  ;;  %p6341_p2 = por %p6340_p10, %p6339_p5 }
  0x51   : > { %p6335_p6 = pneg %p6334_p0 }
  0x53   : > { %p6342_p7 = pnand %p6341_p2, %p6335_p6 }
  0x55   : > { %6345 = shalt.err (!%p6342_p7)
}
  0x56   : > { %5730 = dma.hbm_to_vmem [thread:$0]  (!%p6860_p8), %s7791_s3, 3072, %s6864_s27, [#allocation15], %s7816_s14, %s7816_s14, %s7818_s29  }
  0x57   : > { %s6346_s24 = scalar_lea.hbm %s7793_s5, 96 }
  0x58   : > { %p6347_p11 = scmp.ne.s32.totalorder %s7793_s5, %s6346_s24  ;;  %p6353_p12 = scmp.lt.u32.totalorder %s6346_s24, %s7793_s5 }
  0x5a   : > { %p6349_p13 = pnand %p6347_p11, %p6876_p9 }
  0x5c   : > { %p6350_p1 = pneg %p6349_p13 }
  0x5e   : > { %p6355_p0 = pnand %p6353_p12, %p6350_p1 }
  0x60   : > { %6358 = shalt.err (!%p6355_p0)
}
  0x61   : > { %s6359_s19 = scalar_lea.vmem %s364_s20, 96  ;;  %p6367_p2 = scmp.lt.s32.totalorder %s364_s20, %s364_s20 }
  0x62   : > { %p6360_p6 = scmp.ne.s32.totalorder %s364_s20, %s6359_s19  ;;  %p6368_p7 = scmp.lt.s32.totalorder %s6359_s19, %s6359_s19 }
  0x64   : > { %p6362_p5 = pnand %p6360_p6, %p6876_p9  ;;  %p6369_p4 = por %p6368_p7, %p6367_p2 }
  0x66   : > { %p6363_p10 = pneg %p6362_p5 }
  0x68   : > { %p6370_p3 = pnand %p6369_p4, %p6363_p10 }
  0x6a   : > { %6373 = shalt.err (!%p6370_p3)
}
  0x6b   : > { %s6673_s27 = smov 48   ;;  %s6674_s9 = smov 3  }
  0x6c   : > { %5736 = dma.hbm_to_vmem [thread:$0]  (!%p6860_p8), %s7793_s5, 96, %s364_s20, [#allocation18], %s6673_s27, %s6673_s27, %s6674_s9  }
  0x6d   : > { %s6675_s26 = smov [#allocation8]   ;;  %s6374_s28 = scalar_lea.hbm %s7788_s0, 1024 }
  0x6e   : > { %s298_s24 = sshll.u32 %s6675_s26, 4  ;;  %p6375_p4 = scmp.ne.s32.totalorder %s7788_s0, %s6374_s28  ;;  %s299_s24 = int_to_ptr.vmem [resolvable:$true] %s298_s24 }
  0x6f   : > { %p6381_p13 = scmp.lt.u32.totalorder %s6374_s28, %s7788_s0 }
  0x70   : > { %p6377_p3 = pnand %p6375_p4, %p6876_p9 }
  0x72   : > { %p6378_p11 = pneg %p6377_p3 }
  0x74   : > { %p6383_p1 = pnand %p6381_p13, %p6378_p11 }
  0x76   : > { %6386 = shalt.err (!%p6383_p1)
}
  0x77   : > { %s6387_s20 = scalar_lea.vmem %s299_s24, 1024  ;;  %p6395_p5 = scmp.lt.s32.totalorder %s299_s24, %s299_s24 }
  0x78   : > { %p6388_p12 = scmp.ne.s32.totalorder %s299_s24, %s6387_s20  ;;  %p6396_p10 = scmp.lt.s32.totalorder %s6387_s20, %s6387_s20 }
  0x7a   : > { %p6390_p0 = pnand %p6388_p12, %p6876_p9  ;;  %p6397_p2 = por %p6396_p10, %p6395_p5 }
  0x7c   : > { %p6391_p6 = pneg %p6390_p0 }
  0x7e   : > { %p6398_p7 = pnand %p6397_p2, %p6391_p6 }
  0x80   : > { %6401 = shalt.err (!%p6398_p7)
}
  0x81   : > { %s6676_s27 = smov 64   ;;  %s6677_s9 = smov 4  }
  0x82   : > { %5721 = dma.hbm_to_vmem [thread:$0]  (!%p6860_p8), %s7788_s0, 1024, %s299_s24, [#allocation9], %s6676_s27, %s6676_s27, %s6677_s9  }
  0x83   : > { %s6678_s12 = smov [#allocation13]   ;;  %s6679_s26 = smov [#allocation16]  }
  0x84   : > { %s324_s17 = sshll.u32 %s6678_s12, 4  ;;  %s350_s30 = sshll.u32 %s6679_s26, 4  ;;  %s325_s17 = int_to_ptr.vmem [resolvable:$true] %s324_s17  ;;  %s6963_s30 = int_to_ptr.vmem [resolvable:$true] %s350_s30 }
  0x85   : > { %s6402_s11 = scalar_lea.hbm %s7790_s2, 3072 }
  0x86   : > { %p6403_p4 = scmp.ne.s32.totalorder %s7790_s2, %s6402_s11  ;;  %p6409_p13 = scmp.lt.u32.totalorder %s6402_s11, %s7790_s2 }
  0x88   : > { %p6405_p3 = pnand %p6403_p4, %p6876_p9 }
  0x8a   : > { %p6406_p11 = pneg %p6405_p3 }
  0x8c   : > { %p6411_p1 = pnand %p6409_p13, %p6406_p11 }
  0x8e   : > { %6414 = shalt.err (!%p6411_p1)
}
  0x8f   : > { %s6415_s27 = scalar_lea.vmem %s325_s17, 3072  ;;  %p6423_p5 = scmp.lt.s32.totalorder %s325_s17, %s325_s17 }
  0x90   : > { %p6416_p12 = scmp.ne.s32.totalorder %s325_s17, %s6415_s27  ;;  %p6424_p10 = scmp.lt.s32.totalorder %s6415_s27, %s6415_s27 }
  0x92   : > { %p6418_p0 = pnand %p6416_p12, %p6876_p9  ;;  %p6425_p2 = por %p6424_p10, %p6423_p5 }
  0x94   : > { %p6419_p6 = pneg %p6418_p0 }
  0x96   : > { %p6426_p7 = pnand %p6425_p2, %p6419_p6 }
  0x98   : > { %6429 = shalt.err (!%p6426_p7)
}
  0x99   : > { %s7842_s9 = smov 12   ;;  %s7843_s29 = smov 192  }
  0x9a   : > { %5727 = dma.hbm_to_vmem [thread:$0]  (!%p6860_p8), %s7790_s2, 3072, %s325_s17, [#allocation12], %s7843_s29, %s7843_s29, %s7842_s9  }
  0x9b   : > { %s6430_s11 = scalar_lea.hbm %s7792_s4, 3072 }
  0x9c   : > { %p6431_p4 = scmp.ne.s32.totalorder %s7792_s4, %s6430_s11  ;;  %p6437_p13 = scmp.lt.u32.totalorder %s6430_s11, %s7792_s4 }
  0x9e   : > { %p6433_p3 = pnand %p6431_p4, %p6876_p9 }
  0xa0   : > { %p6434_p11 = pneg %p6433_p3 }
  0xa2   : > { %p6439_p1 = pnand %p6437_p13, %p6434_p11 }
  0xa4   : > { %6442 = shalt.err (!%p6439_p1)
}
  0xa5   : > { %s6443_s17 = scalar_lea.vmem %s6963_s30, 3072  ;;  %p6451_p5 = scmp.lt.s32.totalorder %s6963_s30, %s6963_s30 }
  0xa6   : > { %p6444_p12 = scmp.ne.s32.totalorder %s6963_s30, %s6443_s17  ;;  %p6452_p10 = scmp.lt.s32.totalorder %s6443_s17, %s6443_s17 }
  0xa8   : > { %p6446_p0 = pnand %p6444_p12, %p6876_p9  ;;  %p6453_p2 = por %p6452_p10, %p6451_p5 }
  0xaa   : > { %p6447_p6 = pneg %p6446_p0 }
  0xac   : > { %p6454_p7 = pnand %p6453_p2, %p6447_p6 }
  0xae   : > { %6457 = shalt.err (!%p6454_p7)
}
  0xaf   : > { %5733 = dma.hbm_to_vmem [thread:$0]  (!%p6860_p8), %s7792_s4, 3072, %s6963_s30, [#allocation15], %s7843_s29, %s7843_s29, %s7842_s9  }
  0xb0   : > { %s6680_s26 = smov [#allocation19]   ;;  %s6458_s19 = scalar_lea.hbm %s7794_s6, 32 }
  0xb1   : > { %s376_s25 = sshll.u32 %s6680_s26, 4  ;;  %p6459_p4 = scmp.ne.s32.totalorder %s7794_s6, %s6458_s19  ;;  %s377_s25 = int_to_ptr.vmem [resolvable:$true] %s376_s25 }
  0xb2   : > { %p6465_p13 = scmp.lt.u32.totalorder %s6458_s19, %s7794_s6 }
  0xb3   : > { %p6461_p3 = pnand %p6459_p4, %p6876_p9 }
  0xb5   : > { %p6462_p11 = pneg %p6461_p3 }
  0xb7   : > { %p6467_p1 = pnand %p6465_p13, %p6462_p11 }
  0xb9   : > { %6470 = shalt.err (!%p6467_p1)
}
  0xba   : > { %s6471_s30 = scalar_lea.vmem %s377_s25, 32  ;;  %p6479_p5 = scmp.lt.s32.totalorder %s377_s25, %s377_s25 }
  0xbb   : > { %p6472_p12 = scmp.ne.s32.totalorder %s377_s25, %s6471_s30  ;;  %p6480_p10 = scmp.lt.s32.totalorder %s6471_s30, %s6471_s30 }
  0xbd   : > { %p6474_p0 = pnand %p6472_p12, %p6876_p9  ;;  %p6481_p2 = por %p6480_p10, %p6479_p5 }
  0xbf   : > { %p6475_p6 = pneg %p6474_p0 }
  0xc1   : > { %p6482_p7 = pnand %p6481_p2, %p6475_p6 }
  0xc3   : > { %6485 = shalt.err (!%p6482_p7)
}
  0xc4   : > { %s6681_s9 = smov 16   ;;  %s6682_s29 = smov 1  }
  0xc5   : > { %5739 = dma.hbm_to_vmem [thread:$0]  (!%p6860_p8), %s7794_s6, 32, %s377_s25, [#allocation18], %s6681_s9, %s6681_s9, %s6682_s29  }
  0xc6   : > { %p7844_p4 = scmp.ne.s32.totalorder %s7839_s21, 0 }
  0xc8   : > { %392 = sbr.rel (%p7844_p4) target bundleno = 1606 (0x646), region = 48 }
  0xcf   : > { %p7845_p3 = scmp.eq.s32.totalorder %s6790_s18, 0 }
  0xd1   : > { %6605 = dma.done.wait (%p7845_p3), [#allocation9], 1024   ;;  %p7846_p9 = pmov %p7845_p3 }
  0xd2   : > { %p7847_p11 = pmov %p7845_p3 }
  0xd3   : > { %6607 = vsyncadd (%p7846_p9), [#allocation9], 4294966272 }
  0xd4   : > { %6609 = dma.done.wait (%p7847_p11), [#allocation12], 6144   ;;  %p7848_p13 = pmov %p7845_p3 }
  0xd5   : > { %p7849_p1 = pmov %p7845_p3 }
  0xd6   : > { %6611 = vsyncadd (%p7848_p13), [#allocation12], 4294961152 }
  0xd7   : > { %6613 = dma.done.wait (%p7849_p1), [#allocation15], 6144   ;;  %p7850_p8 = pmov %p7849_p1 }
  0xd8   : > { %p7851_p12 = pmov %p7849_p1 }
  0xd9   : > { %6615 = vsyncadd (%p7850_p8), [#allocation15], 4294961152 }
  0xda   : > { %6617 = dma.done.wait (%p7851_p12), [#allocation18], 128   ;;  %p7852_p0 = pmov %p7849_p1 }
  0xdb   : > { %s440_s16 = sand.u32 1, %s6650_s13   ;;  %s447_s21 = sand.u32 1, %s6638_s10  }
  0xdc   : > { %6619 = vsyncadd (%p7852_p0), [#allocation18], 4294967168  ;;  %s4513_s23 = sshll.u32 %s440_s16, 5  ;;  %s4514_s26 = sshll.u32 %s447_s21, 5 }
  0xdd   : > { %s7052_s25 = scalar_lea.vmem [#allocation20], %s4513_s23  ;;  %s7054_s28 = scalar_lea.vmem [#allocation21], %s4514_s26 }
  0xde   : > { %p4515_p6 = scmp.ne.s32.totalorder %s6658_s15, 0 }
  0xdf   : > { %v6683_v0 = vmov (!%p4515_p6), 0.0  }
  0xe0   : > { %463 = sbr.rel (%p4515_p6) target bundleno = 231 (0xe7), region = 80  ;;  %464 = vst [vmem:[#allocation23] sm:$0xff] (!%p4515_p6), %v6683_v0  ;;  %465 = vst [vmem:[#allocation23 + $0x8] sm:$0xff] (!%p4515_p6), %v6683_v0 }
  0xe1   : > { %466 = vst [vmem:[#allocation23 + $0x10] sm:$0xff] (!%p4515_p6), %v6683_v0  ;;  %467 = vst [vmem:[#allocation23 + $0x18] sm:$0xff] (!%p4515_p6), %v6683_v0 }
  0xe7 PF: > { %v5860_v1 = vld [vmem:[#allocation11 + $0x4] ss:$12 sps:$4 sm:$0xff]   ;;  %v5862_v2 = vld [vmem:[#allocation11 + $0x8] ss:$12 sps:$4 sm:$0xff]   ;;  %v6684_v3 = vmov 0   ;;  %s4845_s11 = sshll.u32 %s6658_s15, 5 }
  0xe8   : > { %715 = vmatprep.mubr.bf16.mxu0 %v6684_v3  ;;  %683 = vmatprep.subr.bf16.mxu0 %v5860_v1  ;;  %v5863_v4 = vld [vmem:[#allocation11] ss:$12 sps:$4 sm:$0xff]   ;;  %v5864_v5 = vld [vmem:[#allocation11 + $0x1c] ss:$12 sps:$4 sm:$0xff]   ;;  %v5867_v7 = vld [vmem:[#allocation11 + $0x18] ss:$12 sps:$4 sm:$0xff]  }
  0xe9   : > { %5154 = vmatprep.subr.bf16.mxu1 %v5862_v2  ;;  %684 = vmatpush1.bf16.msra.mxu0 %v5863_v4  ;;  %v5866_v6 = vld [vmem:[#allocation11 + $0x20] ss:$12 sps:$4 sm:$0xff]   ;;  %v5870_v9 = vld [vmem:[#allocation11 + $0x38] ss:$12 sps:$4 sm:$0xff]   ;;  %v5871_v10 = vld [vmem:[#allocation11 + $0x30] ss:$12 sps:$4 sm:$0xff]  }
  0xea   : > { %5155 = vmatpush3.bf16.msra.mxu1 %v5862_v2  ;;  %685 = vmatprep.subr.bf16.mxu0 %v5864_v5  ;;  %v5868_v8 = vld [vmem:[#allocation11 + $0x34] ss:$12 sps:$4 sm:$0xff]   ;;  %v5872_v11 = vld [vmem:[#allocation11 + $0x4c] ss:$12 sps:$4 sm:$0xff]   ;;  %v5874_v12 = vld [vmem:[#allocation11 + $0x50] ss:$12 sps:$4 sm:$0xff]  }
  0xeb   : > { %5156 = vmatprep.subr.bf16.mxu1 %v5866_v6  ;;  %v5875_v13 = vld [vmem:[#allocation11 + $0x48] ss:$12 sps:$4 sm:$0xff]   ;;  %v5876_v14 = vld [vmem:[#allocation11 + $0x64] ss:$12 sps:$4 sm:$0xff]   ;;  %v5879_v16 = vld [vmem:[#allocation11 + $0x60] ss:$12 sps:$4 sm:$0xff]  }
  0xec   : > { %v5878_v15 = vld [vmem:[#allocation11 + $0x68] ss:$12 sps:$4 sm:$0xff]   ;;  %v5882_v18 = vld [vmem:[#allocation11 + $0x80] ss:$12 sps:$4 sm:$0xff]   ;;  %s7059_s19 = scalar_lea.vmem [#allocation8], %s4845_s11  ;;  %s469_s20 = ssub.s32 1, %s6658_s15 }
  0xed   : > { %686 = vmatpush1.bf16.msra.mxu0 %v5867_v7  ;;  %v5880_v17 = vld [vmem:[#allocation11 + $0x7c] ss:$12 sps:$4 sm:$0xff]   ;;  %v5892_v19 = vld [vmem:[%s7059_s19] sm:$0xff]   ;;  %v5888_v24 = vld [vmem:[#allocation11 + $0xac] ss:$12 sps:$4 sm:$0xff]   ;;  %s4847_s14 = sshll.u32 %s469_s20, 5 }
  0xee   : > { %5157 = vmatpush3.bf16.msra.mxu1 %v5866_v6  ;;  %687 = vmatprep.subr.bf16.mxu0 %v5868_v8  ;;  %v5883_v20 = vld [vmem:[#allocation11 + $0x78] ss:$12 sps:$4 sm:$0xff]   ;;  %v5884_v21 = vld [vmem:[#allocation11 + $0x94] ss:$12 sps:$4 sm:$0xff]   ;;  %v5887_v23 = vld [vmem:[#allocation11 + $0x90] ss:$12 sps:$4 sm:$0xff]  }
  0xef   : > { %5158 = vmatprep.subr.bf16.mxu1 %v5870_v9  ;;  %v5886_v22 = vld [vmem:[#allocation11 + $0x98] ss:$12 sps:$4 sm:$0xff]   ;;  %5170 = vmatprep.mubr.bf16.mxu1 %v5892_v19  ;;  %v5890_v25 = vld [vmem:[#allocation11 + $0xb0] ss:$12 sps:$4 sm:$0xff]   ;;  %v5891_v26 = vld [vmem:[#allocation11 + $0xa8] ss:$12 sps:$4 sm:$0xff]  }
  0xf0   : > { %v5896_v27 = vld [vmem:[#allocation14 + $0x4] ss:$12 sps:$4 sm:$0xff]   ;;  %v5897_v28 = vld [vmem:[#allocation14 + $0x8] ss:$12 sps:$4 sm:$0xff]   ;;  %v5894_v30 = vld [vmem:[#allocation14] ss:$12 sps:$4 sm:$0xff]  }
  0xf1   : > { %688 = vmatpush1.bf16.msra.mxu0 %v5871_v10  ;;  %v5893_v29 = vld [vmem:[%s7059_s19 + $0x8] sm:$0xff]   ;;  %v5898_v33 = vld [vmem:[#allocation14 + $0x18] ss:$12 sps:$4 sm:$0xff]   ;;  %v5910_v34 = vld [vmem:[%s7059_s19 + $0x10] sm:$0xff]   ;;  %s7069_s24 = scalar_lea.vmem [#allocation8], %s4847_s14  ;;  %v7820_v58 = vmov 0.0  }
  0xf2   : > { %5159 = vmatpush3.bf16.msra.mxu1 %v5870_v9  ;;  %689 = vmatprep.subr.bf16.mxu0 %v5872_v11  ;;  %v5900_v31 = vld [vmem:[#allocation14 + $0x1c] ss:$12 sps:$4 sm:$0xff]   ;;  %v5901_v32 = vld [vmem:[#allocation14 + $0x20] ss:$12 sps:$4 sm:$0xff]   ;;  %v5905_v36 = vld [vmem:[#allocation14 + $0x38] ss:$12 sps:$4 sm:$0xff]  }
  0xf3   : > { %5160 = vmatprep.subr.bf16.mxu1 %v5874_v12  ;;  %v5904_v35 = vld [vmem:[#allocation14 + $0x34] ss:$12 sps:$4 sm:$0xff]   ;;  %v5902_v37 = vld [vmem:[#allocation14 + $0x30] ss:$12 sps:$4 sm:$0xff]   ;;  %v5908_v39 = vld [vmem:[#allocation14 + $0x4c] ss:$12 sps:$4 sm:$0xff]  }
  0xf4   : > { %v5919_v38 = vld [vmem:[%s7059_s19 + $0x18] sm:$0xff]   ;;  %v5928_v41 = vld [vmem:[%s7069_s24] sm:$0xff]   ;;  %v5906_v42 = vld [vmem:[#allocation14 + $0x48] ss:$12 sps:$4 sm:$0xff]   ;;  %vm6686_vm0 = vmmov 0   ;;  %s4259_s17 = sand.u32 1, %s6790_s18  }
  0xf5   : > { %690 = vmatpush1.bf16.msra.mxu0 %v5875_v13  ;;  %v5909_v40 = vld [vmem:[#allocation14 + $0x50] ss:$12 sps:$4 sm:$0xff]   ;;  %v5914_v44 = vld [vmem:[#allocation14 + $0x68] ss:$12 sps:$4 sm:$0xff]   ;;  %v5911_v45 = vld [vmem:[#allocation14 + $0x60] ss:$12 sps:$4 sm:$0xff]  }
  0xf6   : > { %5161 = vmatpush3.bf16.msra.mxu1 %v5874_v12  ;;  %691 = vmatprep.subr.bf16.mxu0 %v5876_v14  ;;  %v5913_v43 = vld [vmem:[#allocation14 + $0x64] ss:$12 sps:$4 sm:$0xff]   ;;  %v5917_v46 = vld [vmem:[#allocation14 + $0x7c] ss:$12 sps:$4 sm:$0xff]   ;;  %v5918_v47 = vld [vmem:[#allocation14 + $0x80] ss:$12 sps:$4 sm:$0xff]  }
  0xf7   : > { %5162 = vmatprep.subr.bf16.mxu1 %v5878_v15  ;;  %v5915_v48 = vld [vmem:[#allocation14 + $0x78] ss:$12 sps:$4 sm:$0xff]   ;;  %v5922_v49 = vld [vmem:[#allocation14 + $0x94] ss:$12 sps:$4 sm:$0xff]   ;;  %v5920_v51 = vld [vmem:[#allocation14 + $0x90] ss:$12 sps:$4 sm:$0xff]  }
  0xf8   : > { %v5923_v50 = vld [vmem:[#allocation14 + $0x98] ss:$12 sps:$4 sm:$0xff]   ;;  %v5927_v53 = vld [vmem:[#allocation14 + $0xb0] ss:$12 sps:$4 sm:$0xff]   ;;  %v5924_v54 = vld [vmem:[#allocation14 + $0xa8] ss:$12 sps:$4 sm:$0xff]  }
  0xf9   : > { %692 = vmatpush1.bf16.msra.mxu0 %v5879_v16  ;;  %v5926_v52 = vld [vmem:[#allocation14 + $0xac] ss:$12 sps:$4 sm:$0xff]   ;;  %v5938_v61 = vld [vmem:[%s7069_s24 + $0x10] sm:$0xff]   ;;  %s4867_s30 = sshll.u32 %s469_s20, 9  ;;  %s4865_s9 = sshll.u32 %s6658_s15, 9 }
  0xfa   : > { %5163 = vmatpush3.bf16.msra.mxu1 %v5878_v15  ;;  %693 = vmatprep.subr.bf16.mxu0 %v5880_v17  ;;  %v5929_v55 = vld [vmem:[%s7069_s24 + $0x8] sm:$0xff]   ;;  %v5932_v59 = vld [vmem:[#allocation13 + $0x18] ss:$12 sps:$4 sm:$0xff]   ;;  %v5934_v62 = vld [vmem:[#allocation13 + $0x30] ss:$12 sps:$4 sm:$0xff]   ;;  %s4276_s29 = sshll.u32 %s7052_s25, 4  ;;  %s7652_s21 = scalar_lea.hbm %s7796_s8, %s4867_s30  ;;  %s7660_s29 = int_to_ptr.vmem [resolvable:$true] %s4276_s29 }
  0xfb   : > { %5164 = vmatprep.subr.bf16.mxu1 %v5882_v18  ;;  %v5930_v56 = vld [vmem:[#allocation13] ss:$12 sps:$4 sm:$0xff]   ;;  %v5933_v60 = vld [vmem:[#allocation16 + $0x18] ss:$12 sps:$4 sm:$0xff]   ;;  %v5935_v0 = vld [vmem:[#allocation16 + $0x30] ss:$12 sps:$4 sm:$0xff]   ;;  %s7658_s20 = scalar_lea.hbm %s7795_s7, %s4865_s9 }
  0xfc   : > { %v5931_v57 = vld [vmem:[#allocation16] ss:$12 sps:$4 sm:$0xff]   ;;  %v5943_v63 = vld [vmem:[%s7069_s24 + $0x18] sm:$0xff]   ;;  %v5936_v1 = vld [vmem:[#allocation13 + $0x48] ss:$12 sps:$4 sm:$0xff]   ;;  %s4296_s23 = sshll.u32 %s7054_s28, 4  ;;  %s7662_s23 = int_to_ptr.vmem [resolvable:$true] %s4296_s23 }
  0xfd   : > { %694 = vmatpush1.bf16.msra.mxu0 %v5883_v20  ;;  %v5937_v2 = vld [vmem:[#allocation16 + $0x48] ss:$12 sps:$4 sm:$0xff]   ;;  %v5939_v4 = vld [vmem:[#allocation13 + $0x60] ss:$12 sps:$4 sm:$0xff]   ;;  %v5941_v6 = vld [vmem:[#allocation13 + $0x78] ss:$12 sps:$4 sm:$0xff]  }
  0xfe   : > { %5165 = vmatpush3.bf16.msra.mxu1 %v5882_v18  ;;  %695 = vmatprep.subr.bf16.mxu0 %v5884_v21  ;;  %v5940_v5 = vld [vmem:[#allocation16 + $0x60] ss:$12 sps:$4 sm:$0xff]   ;;  %v5942_v7 = vld [vmem:[#allocation16 + $0x78] ss:$12 sps:$4 sm:$0xff]   ;;  %v5944_v8 = vld [vmem:[#allocation13 + $0x90] ss:$12 sps:$4 sm:$0xff]  }
  0xff   : > { %5166 = vmatprep.subr.bf16.mxu1 %v5886_v22  ;;  %v5945_v9 = vld [vmem:[#allocation16 + $0x90] ss:$12 sps:$4 sm:$0xff]   ;;  %v5946_v10 = vld [vmem:[#allocation13 + $0xa8] ss:$12 sps:$4 sm:$0xff]   ;;  %v1227_v15 = vld [vmem:[#allocation23 + $0x18] sm:$0xff]  ;;  %s6687_s26 = smov [#allocation23]  }
 0x100   : > { %v5947_v11 = vld [vmem:[#allocation16 + $0xa8] ss:$12 sps:$4 sm:$0xff]   ;;  %v1226_v14 = vld [vmem:[#allocation23 + $0x10] sm:$0xff]  ;;  %v5949_v16 = vld [vmem:[#allocation16 + $0x4] ss:$12 sps:$4 sm:$0xff]   ;;  %s4312_s11 = sshll.u32 %s6687_s26, 4  ;;  %s7665_s11 = int_to_ptr.vmem [resolvable:$true] %s4312_s11 }
 0x101   : > { %696 = vmatpush1.bf16.msra.mxu0 %v5887_v23  ;;  %v1223_v12 = vld [vmem:[#allocation23] sm:$0xff]  ;;  %v1224_v13 = vld [vmem:[#allocation23 + $0x8] sm:$0xff]  ;;  %v7103_v18 = vpack.c.bf16 %v1227_v15, %v1226_v14  ;;  %s7670_s14 = scalar_lea.sflag [#allocation10], %s440_s16  ;;  %s6486_s24 = scalar_lea.vmem %s7660_s29, 512 }
 0x102   : > { %5167 = vmatpush3.bf16.msra.mxu1 %v5886_v22  ;;  %697 = vmatprep.subr.bf16.mxu0 %v5888_v24  ;;  %v7101_v17 = vpack.c.bf16 %v1224_v13, %v1223_v12  ;;  %v5951_v20 = vld [vmem:[#allocation16 + $0x1c] ss:$12 sps:$4 sm:$0xff]   ;;  %v5952_v21 = vld [vmem:[#allocation13 + $0x34] ss:$12 sps:$4 sm:$0xff]   ;;  %v5954_v23 = vld [vmem:[#allocation13 + $0x4c] ss:$12 sps:$4 sm:$0xff]   ;;  %p6487_p5 = scmp.ne.s32.totalorder %s7660_s29, %s6486_s24 }
 0x103   : > { %5168 = vmatprep.subr.bf16.mxu1 %v5890_v25  ;;  %v5953_v22 = vld [vmem:[#allocation16 + $0x34] ss:$12 sps:$4 sm:$0xff]   ;;  %v5955_v24 = vld [vmem:[#allocation16 + $0x4c] ss:$12 sps:$4 sm:$0xff]   ;;  %p7870_p10 = scmp.ne.s32.totalorder %s7829_s22, 0  ;;  %s6688_s30 = smov [#allocation20]  }
 0x104   : > { %s6490_s9 = sshll.u32 %s6688_s30, 4  ;;  %s6491_s9 = int_to_ptr.vmem [resolvable:$false] %s6490_s9 }
 0x105   : > { %698 = vmatpush1.bf16.msra.mxu0 %v5891_v26  ;;  %v5957_v26 = vld [vmem:[#allocation16 + $0x64] ss:$12 sps:$4 sm:$0xff]   ;;  %p6488_p2 = pnand %p6487_p5, %p7870_p10  ;;  %s6492_s27 = scalar_lea.vmem %s6491_s9, 1024 }
 0x106   : > { %5169 = vmatpush3.bf16.msra.mxu1 %v5890_v25  ;;  %1058 = vmatprep.subr.bf16.mxu0 %v5896_v27  ;;  %v5956_v25 = vld [vmem:[#allocation13 + $0x64] ss:$12 sps:$4 sm:$0xff]   ;;  %v5958_v27 = vld [vmem:[#allocation13 + $0x7c] ss:$12 sps:$4 sm:$0xff]   ;;  %p6493_p4 = scmp.lt.s32.totalorder %s7660_s29, %s6491_s9  ;;  %p6494_p3 = scmp.lt.s32.totalorder %s6492_s27, %s6486_s24 }
 0x107   : > { %5178 = vmatprep.subr.bf16.mxu1 %v5897_v28  ;;  %p6489_p7 = pneg %p6488_p2 }
 0x108   : > { %716 = vmatmul.mubr.bf16.vlgmr.msra.gmra.mrb[0].mxu0 %v5892_v19  ;;  %v5950_v19 = vld [vmem:[#allocation13 + $0x1c] ss:$12 sps:$4 sm:$0xff]   ;;  %p6495_p9 = por %p6494_p3, %p6493_p4 }
 0x109   : > { %5171 = vmatmul.mubr.bf16.vlgmr.msra.gmra.mrb[0].mxu1 %v5893_v29  ;;  %1059 = vmatpush1.bf16.msra.mxu0 %v5894_v30  ;;  %v5961_v30 = vld [vmem:[#allocation16 + $0x94] ss:$12 sps:$4 sm:$0xff]  }
 0x10a   : > { %5179 = vmatpush3.bf16.msra.mxu1 %v5897_v28  ;;  %1060 = vmatprep.subr.bf16.mxu0 %v5900_v31  ;;  %v5959_v28 = vld [vmem:[#allocation16 + $0x7c] ss:$12 sps:$4 sm:$0xff]   ;;  %v5962_v31 = vld [vmem:[#allocation13 + $0xac] ss:$12 sps:$4 sm:$0xff]   ;;  %p6496_p11 = pnand %p6495_p9, %p6489_p7 }
 0x10b   : > { %5180 = vmatprep.subr.bf16.mxu1 %v5901_v32  ;;  %725 = vmatprep.mubr.bf16.mxu0 %v6684_v3 }
 0x10c   : > { %5174 = vmatprep.mubr.bf16.mxu1 %v5910_v34 }
 0x10d   : > { %1061 = vmatpush1.bf16.msra.mxu0 %v5898_v33  ;;  %v5964_v33 = vld [vmem:[#allocation13 + $0x8] ss:$12 sps:$4 sm:$0xff]  }
 0x10e   : > { %5181 = vmatpush3.bf16.msra.mxu1 %v5901_v32  ;;  %1062 = vmatprep.subr.bf16.mxu0 %v5904_v35  ;;  %v5963_v32 = vld [vmem:[#allocation16 + $0xac] ss:$12 sps:$4 sm:$0xff]  }
 0x10f   : > { %5182 = vmatprep.subr.bf16.mxu1 %v5905_v36  ;;  %v5966_v35 = vld [vmem:[#allocation13 + $0x20] ss:$12 sps:$4 sm:$0xff]  }
 0x110   : > { %726 = vmatmul.mubr.bf16.gmra.mrb[4].mxu0 %v5893_v29  ;;  %v5960_v29 = vld [vmem:[#allocation13 + $0x94] ss:$12 sps:$4 sm:$0xff]  }
 0x111   : > { %5175 = vmatmul.mubr.bf16.gmra.mrb[4].mxu1 %v5919_v38  ;;  %1063 = vmatpush1.bf16.msra.mxu0 %v5902_v37  ;;  %v5968_v37 = vld [vmem:[#allocation13 + $0x38] ss:$12 sps:$4 sm:$0xff]  }
 0x112   : > { %5183 = vmatpush3.bf16.msra.mxu1 %v5905_v36  ;;  %1064 = vmatprep.subr.bf16.mxu0 %v5908_v39  ;;  %v5967_v36 = vld [vmem:[#allocation16 + $0x20] ss:$12 sps:$4 sm:$0xff]   ;;  %v5970_v39 = vld [vmem:[#allocation13 + $0x50] ss:$12 sps:$4 sm:$0xff]  }
 0x113   : > { %5184 = vmatprep.subr.bf16.mxu1 %v5909_v40  ;;  %735 = vmatprep.mubr.bf16.mxu0 %v6684_v3 }
 0x114   : > { %5194 = vmatprep.mubr.bf16.mxu1 %v5928_v41 }
 0x115   : > { %1065 = vmatpush1.bf16.msra.mxu0 %v5906_v42  ;;  %v5973_v42 = vld [vmem:[#allocation16 + $0x68] ss:$12 sps:$4 sm:$0xff]  }
 0x116   : > { %5185 = vmatpush3.bf16.msra.mxu1 %v5909_v40  ;;  %1066 = vmatprep.subr.bf16.mxu0 %v5913_v43  ;;  %v5971_v40 = vld [vmem:[#allocation16 + $0x50] ss:$12 sps:$4 sm:$0xff]   ;;  %v5974_v43 = vld [vmem:[#allocation13 + $0x80] ss:$12 sps:$4 sm:$0xff]  }
 0x117   : > { %5186 = vmatprep.subr.bf16.mxu1 %v5914_v44 }
 0x118   : > { %736 = vmatmul.mubr.bf16.gmra.mrb[8].mxu0 %v5910_v34  ;;  %v5965_v34 = vld [vmem:[#allocation16 + $0x8] ss:$12 sps:$4 sm:$0xff]  }
 0x119   : > { %1067 = vmatpush1.bf16.msra.mxu0 %v5911_v45  ;;  %745 = vmatprep.mubr.bf16.mxu0 %v6684_v3  ;;  %v5976_v45 = vld [vmem:[#allocation13 + $0x98] ss:$12 sps:$4 sm:$0xff]  }
 0x11a   : > { %5187 = vmatpush3.bf16.msra.mxu1 %v5914_v44  ;;  %1068 = vmatprep.subr.bf16.mxu0 %v5917_v46  ;;  %v5975_v44 = vld [vmem:[#allocation16 + $0x80] ss:$12 sps:$4 sm:$0xff]   ;;  %v5977_v46 = vld [vmem:[#allocation16 + $0x98] ss:$12 sps:$4 sm:$0xff]  }
 0x11b   : > { %5188 = vmatprep.subr.bf16.mxu1 %v5918_v47 }
 0x11d   : > { %1069 = vmatpush1.bf16.msra.mxu0 %v5915_v48  ;;  %v5979_v48 = vld [vmem:[#allocation16 + $0xb0] ss:$12 sps:$4 sm:$0xff]  }
 0x11e   : > { %5189 = vmatpush3.bf16.msra.mxu1 %v5918_v47  ;;  %1070 = vmatprep.subr.bf16.mxu0 %v5922_v49  ;;  %v5978_v47 = vld [vmem:[#allocation13 + $0xb0] ss:$12 sps:$4 sm:$0xff]   ;;  %v516_v49 = vlaneseq }
 0x11f   : > { %5190 = vmatprep.subr.bf16.mxu1 %v5923_v50 }
 0x120   : > { %746 = vmatmul.mubr.bf16.gmra.mrb[12].mxu0 %v5919_v38  ;;  %v5969_v38 = vld [vmem:[#allocation16 + $0x38] ss:$12 sps:$4 sm:$0xff]  }
 0x121   : > { %1071 = vmatpush1.bf16.msra.mxu0 %v5920_v51  ;;  %1090 = vmatprep.mubr.bf16.mxu0 %v6684_v3  ;;  %v5980_v51 = vld [vmem:[#allocation13] ss:$12 sps:$4 sm:$0xff]  }
 0x122   : > { %5191 = vmatpush3.bf16.msra.mxu1 %v5923_v50  ;;  %1072 = vmatprep.subr.bf16.mxu0 %v5926_v52  ;;  %v7157_v50 = vshrl.u32 %v516_v49, 7  ;;  %v5981_v52 = vld [vmem:[#allocation16] ss:$12 sps:$4 sm:$0xff]  }
 0x123   : > { %5192 = vmatprep.subr.bf16.mxu1 %v5927_v53 }
 0x125   : > { %1073 = vmatpush1.bf16.msra.mxu0 %v5924_v54  ;;  %v5983_v54 = vld [vmem:[#allocation16 + $0x18] ss:$12 sps:$4 sm:$0xff]  }
 0x126   : > { %5193 = vmatpush3.bf16.msra.mxu1 %v5927_v53  ;;  %5202 = vmatprep.subr.bf16.mxu0 %v7820_v58  ;;  %v5982_v53 = vld [vmem:[#allocation13 + $0x18] ss:$12 sps:$4 sm:$0xff]  }
 0x127   : > { %5222 = vmatprep.subr.bf16.mxu1 %v7820_v58 }
 0x128   : > { %1091 = vmatmul.mubr.bf16.vlgmr.msra.gmra.mrb[16].mxu0 %v5928_v41  ;;  %v5972_v41 = vld [vmem:[#allocation13 + $0x68] ss:$12 sps:$4 sm:$0xff]  }
 0x129   : > { %5195 = vmatmul.mubr.bf16.vlgmr.msra.gmra.mrb[8].mxu1 %v5929_v55  ;;  %5203 = vmatpush3.bf16.msra.mxu0 %v5930_v56  ;;  %v471_v56 = vld [vmem:[#allocation17] sm:$0x7] }
 0x12a   : > { %5223 = vmatpush3.bf16.msra.mxu1 %v5931_v57  ;;  %5204 = vmatprep.subr.bf16.mxu0 %v7820_v58 }
 0x12b   : > { %5224 = vmatprep.subr.bf16.mxu1 %v7820_v58  ;;  %1100 = vmatprep.mubr.bf16.mxu0 %v6684_v3 }
 0x12c   : > { %5198 = vmatprep.mubr.bf16.mxu1 %v5938_v61 }
 0x12d   : > { %5205 = vmatpush3.bf16.msra.mxu0 %v5932_v59 }
 0x12e   : > { %5225 = vmatpush3.bf16.msra.mxu1 %v5933_v60  ;;  %5206 = vmatprep.subr.bf16.mxu0 %v7820_v58 }
 0x12f   : > { %5226 = vmatprep.subr.bf16.mxu1 %v7820_v58 }
 0x130   : > { %1101 = vmatmul.mubr.bf16.gmra.mrb[20].mxu0 %v5929_v55  ;;  %v526_v55 = vsub.s32 2, %v7157_v50 }
 0x131   : > { %5199 = vmatmul.mubr.bf16.gmra.mrb[12].mxu1 %v5943_v63  ;;  %5207 = vmatpush3.bf16.msra.mxu0 %v5934_v62 }
 0x132   : > { %5227 = vmatpush3.bf16.msra.mxu1 %v5935_v0  ;;  %5208 = vmatprep.subr.bf16.mxu0 %v7820_v58  ;;  %v7166_v57 = vrot.slane %v471_v56, %v526_v55  ;;  %v5984_v0 = vld [vmem:[#allocation13 + $0x30] ss:$12 sps:$4 sm:$0xff]  }
 0x133   : > { %5228 = vmatprep.subr.bf16.mxu1 %v7820_v58  ;;  %1110 = vmatprep.mubr.bf16.mxu0 %v6684_v3 }
 0x134   : > { %5238 = vmatprep.mubr.msk.bf16.mxu1 %vm6686_vm0, %v7820_v58 }
 0x135   : > { %5209 = vmatpush3.bf16.msra.mxu0 %v5936_v1 }
 0x136   : > { %5229 = vmatpush3.bf16.msra.mxu1 %v5937_v2  ;;  %5210 = vmatprep.subr.bf16.mxu0 %v7820_v58 }
 0x137   : > { %5230 = vmatprep.subr.bf16.mxu1 %v7820_v58 }
 0x138   : > { %1111 = vmatmul.mubr.bf16.gmra.mrb[24].mxu0 %v5938_v61 }
 0x139   : > { %5211 = vmatpush3.bf16.msra.mxu0 %v5939_v4  ;;  %1120 = vmatprep.mubr.bf16.mxu0 %v6684_v3  ;;  %v5948_v3 = vld [vmem:[#allocation13 + $0x4] ss:$12 sps:$4 sm:$0xff]  }
 0x13a   : > { %5231 = vmatpush3.bf16.msra.mxu1 %v5940_v5  ;;  %5212 = vmatprep.subr.bf16.mxu0 %v7820_v58  ;;  %v5985_v4 = vld [vmem:[#allocation16 + $0x30] ss:$12 sps:$4 sm:$0xff]   ;;  %v518_v5 = vsub.s32 0, %v7157_v50 }
 0x13b   : > { %5232 = vmatprep.subr.bf16.mxu1 %v7820_v58 }
 0x13c   : > { %v7192_v12 = vrot.slane %v471_v56, %v518_v5 }
 0x13d   : > { %5213 = vmatpush3.bf16.msra.mxu0 %v5941_v6 }
 0x13e   : > { %5233 = vmatpush3.bf16.msra.mxu1 %v5942_v7  ;;  %5214 = vmatprep.subr.bf16.mxu0 %v7820_v58 }
 0x13f   : > { %5234 = vmatprep.subr.bf16.mxu1 %v7820_v58 }
 0x140   : > { %1121 = vmatmul.mubr.bf16.gmra.mrb[28].mxu0 %v5943_v63 }
 0x141   : > { %5215 = vmatpush3.bf16.msra.mxu0 %v5944_v8  ;;  %5218 = vmatprep.mubr.msk.bf16.mxu0 %vm6686_vm0, %v7820_v58 }
 0x142   : > { %5235 = vmatpush3.bf16.msra.mxu1 %v5945_v9  ;;  %5216 = vmatprep.subr.bf16.mxu0 %v7820_v58  ;;  %v522_v9 = vsub.s32 1, %v7157_v50 }
 0x143   : > { %5236 = vmatprep.subr.bf16.mxu1 %v7820_v58 }
 0x144   : > { %v7196_v13 = vrot.slane %v471_v56, %v522_v9 }
 0x145   : > { %5217 = vmatpush3.bf16.msra.mxu0 %v5946_v10  ;;  %v5986_v10 = vld [vmem:[#allocation13 + $0x48] ss:$12 sps:$4 sm:$0xff]  }
 0x146   : > { %5237 = vmatpush3.bf16.msra.mxu1 %v5947_v11  ;;  %5242 = vmatprep.subr.bf16.mxu0 %v7820_v58  ;;  %v5987_v11 = vld [vmem:[#allocation16 + $0x48] ss:$12 sps:$4 sm:$0xff]  }
 0x147   : > { %5262 = vmatprep.subr.bf16.mxu1 %v7820_v58 }
 0x148   : > { %5219 = vmatmul.mubr.bf16.vlgmr.msra.gmra.mrb[32].mxu0 %v7101_v17 }
 0x149   : > { %5239 = vmatmul.mubr.bf16.vlgmr.msra.gmra.mrb[16].mxu1 %v7103_v18  ;;  %5243 = vmatpush3.bf16.msra.mxu0 %v5948_v3 }
 0x14a   : > { %5263 = vmatpush3.bf16.msra.mxu1 %v5949_v16  ;;  %5244 = vmatprep.subr.bf16.mxu0 %v7820_v58 }
 0x14b   : > { %5264 = vmatprep.subr.bf16.mxu1 %v7820_v58  ;;  %5258 = vmatprep.mubr.msk.bf16.mxu0 %vm6686_vm0, %v7820_v58 }
 0x14c   : > { %5278 = vmatprep.mubr.msk.bf16.mxu1 %vm6686_vm0, %v7820_v58 }
 0x14d   : > { %5245 = vmatpush3.bf16.msra.mxu0 %v5950_v19  ;;  %v5988_v19 = vld [vmem:[#allocation13 + $0x60] ss:$12 sps:$4 sm:$0xff]  }
 0x14e   : > { %5265 = vmatpush3.bf16.msra.mxu1 %v5951_v20  ;;  %5246 = vmatprep.subr.bf16.mxu0 %v7820_v58  ;;  %v5989_v20 = vld [vmem:[#allocation16 + $0x60] ss:$12 sps:$4 sm:$0xff]  }
 0x14f   : > { %5266 = vmatprep.subr.bf16.mxu1 %v7820_v58 }
 0x151   : > { %5247 = vmatpush3.bf16.msra.mxu0 %v5952_v21 }
 0x152   : > { %5267 = vmatpush3.bf16.msra.mxu1 %v5953_v22  ;;  %5248 = vmatprep.subr.bf16.mxu0 %v7820_v58 }
 0x153   : > { %5268 = vmatprep.subr.bf16.mxu1 %v7820_v58 }
 0x155   : > { %5249 = vmatpush3.bf16.msra.mxu0 %v5954_v23 }
 0x156   : > { %5269 = vmatpush3.bf16.msra.mxu1 %v5955_v24  ;;  %5250 = vmatprep.subr.bf16.mxu0 %v7820_v58 }
 0x157   : > { %5270 = vmatprep.subr.bf16.mxu1 %v7820_v58 }
 0x159   : > { %5251 = vmatpush3.bf16.msra.mxu0 %v5956_v25 }
 0x15a   : > { %5271 = vmatpush3.bf16.msra.mxu1 %v5957_v26  ;;  %5252 = vmatprep.subr.bf16.mxu0 %v7820_v58 }
 0x15b   : > { %5272 = vmatprep.subr.bf16.mxu1 %v7820_v58 }
 0x15d   : > { %5253 = vmatpush3.bf16.msra.mxu0 %v5958_v27 }
 0x15e   : > { %5273 = vmatpush3.bf16.msra.mxu1 %v5959_v28  ;;  %5254 = vmatprep.subr.bf16.mxu0 %v7820_v58 }
 0x15f   : > { %5274 = vmatprep.subr.bf16.mxu1 %v7820_v58 }
 0x161   : > { %5255 = vmatpush3.bf16.msra.mxu0 %v5960_v29  ;;  %v5990_v29 = vld [vmem:[#allocation13 + $0x78] ss:$12 sps:$4 sm:$0xff]  }
 0x162   : > { %5275 = vmatpush3.bf16.msra.mxu1 %v5961_v30  ;;  %5256 = vmatprep.subr.bf16.mxu0 %v7820_v58 }
 0x163   : > { %5276 = vmatprep.subr.bf16.mxu1 %v7820_v58 }
 0x165   : > { %5257 = vmatpush3.bf16.msra.mxu0 %v5962_v31 }
 0x166   : > { %5277 = vmatpush3.bf16.msra.mxu1 %v5963_v32  ;;  %5282 = vmatprep.subr.bf16.mxu0 %v7820_v58  ;;  %v5991_v32 = vld [vmem:[#allocation16 + $0x78] ss:$12 sps:$4 sm:$0xff]  }
 0x167   : > { %5302 = vmatprep.subr.bf16.mxu1 %v7820_v58 }
 0x168   : > { %5259 = vmatmul.mubr.bf16.vlgmr.msra.gmra.mrb[36].mxu0 %v7101_v17 }
 0x169   : > { %5279 = vmatmul.mubr.bf16.vlgmr.msra.gmra.mrb[20].mxu1 %v7103_v18  ;;  %5283 = vmatpush3.bf16.msra.mxu0 %v5964_v33  ;;  %v5992_v33 = vld [vmem:[#allocation13 + $0x90] ss:$12 sps:$4 sm:$0xff]  }
 0x16a   : > { %5303 = vmatpush3.bf16.msra.mxu1 %v5965_v34  ;;  %5284 = vmatprep.subr.bf16.mxu0 %v7820_v58 }
 0x16b   : > { %5304 = vmatprep.subr.bf16.mxu1 %v7820_v58  ;;  %5298 = vmatprep.mubr.msk.bf16.mxu0 %vm6686_vm0, %v7820_v58 }
 0x16c   : > { %5318 = vmatprep.mubr.msk.bf16.mxu1 %vm6686_vm0, %v7820_v58 }
 0x16d   : > { %5285 = vmatpush3.bf16.msra.mxu0 %v5966_v35  ;;  %v5993_v35 = vld [vmem:[#allocation16 + $0x90] ss:$12 sps:$4 sm:$0xff]  }
 0x16e   : > { %5305 = vmatpush3.bf16.msra.mxu1 %v5967_v36  ;;  %5286 = vmatprep.subr.bf16.mxu0 %v7820_v58 }
 0x16f   : > { %5306 = vmatprep.subr.bf16.mxu1 %v7820_v58 }
 0x171   : > { %5287 = vmatpush3.bf16.msra.mxu0 %v5968_v37 }
 0x172   : > { %5307 = vmatpush3.bf16.msra.mxu1 %v5969_v38  ;;  %5288 = vmatprep.subr.bf16.mxu0 %v7820_v58 }
 0x173   : > { %5308 = vmatprep.subr.bf16.mxu1 %v7820_v58 }
 0x175   : > { %5289 = vmatpush3.bf16.msra.mxu0 %v5970_v39 }
 0x176   : > { %5309 = vmatpush3.bf16.msra.mxu1 %v5971_v40  ;;  %5290 = vmatprep.subr.bf16.mxu0 %v7820_v58 }
 0x177   : > { %5310 = vmatprep.subr.bf16.mxu1 %v7820_v58 }
 0x179   : > { %5291 = vmatpush3.bf16.msra.mxu0 %v5972_v41 }
 0x17a   : > { %5311 = vmatpush3.bf16.msra.mxu1 %v5973_v42  ;;  %5292 = vmatprep.subr.bf16.mxu0 %v7820_v58  ;;  %v5994_v42 = vld [vmem:[#allocation13 + $0xa8] ss:$12 sps:$4 sm:$0xff]  }
 0x17b   : > { %5312 = vmatprep.subr.bf16.mxu1 %v7820_v58 }
 0x17d   : > { %5293 = vmatpush3.bf16.msra.mxu0 %v5974_v43 }
 0x17e   : > { %5313 = vmatpush3.bf16.msra.mxu1 %v5975_v44  ;;  %5294 = vmatprep.subr.bf16.mxu0 %v7820_v58  ;;  %v5995_v44 = vld [vmem:[#allocation16 + $0xa8] ss:$12 sps:$4 sm:$0xff]  }
 0x17f   : > { %5314 = vmatprep.subr.bf16.mxu1 %v7820_v58 }
 0x181   : > { %5295 = vmatpush3.bf16.msra.mxu0 %v5976_v45 }
 0x182   : > { %5315 = vmatpush3.bf16.msra.mxu1 %v5977_v46  ;;  %5296 = vmatprep.subr.bf16.mxu0 %v7820_v58 }
 0x183   : > { %5316 = vmatprep.subr.bf16.mxu1 %v7820_v58 }
 0x185   : > { %5297 = vmatpush3.bf16.msra.mxu0 %v5978_v47 }
 0x186   : > { %5317 = vmatpush3.bf16.msra.mxu1 %v5979_v48  ;;  %5322 = vmatprep.subr.bf16.mxu0 %v7820_v58 }
 0x187   : > { %5342 = vmatprep.subr.bf16.mxu1 %v7820_v58 }
 0x188   : > { %5299 = vmatmul.mubr.bf16.vlgmr.msra.gmra.mrb[40].mxu0 %v7101_v17 }
 0x189   : > { %5319 = vmatmul.mubr.bf16.vlgmr.msra.gmra.mrb[24].mxu1 %v7103_v18  ;;  %5338 = vmatprep.mubr.msk.bf16.mxu0 %vm6686_vm0, %v7820_v58 }
 0x18a   : > { %5358 = vmatprep.mubr.msk.bf16.mxu1 %vm6686_vm0, %v7820_v58  ;;  %5323 = vmatpush3.bf16.msra.mxu0 %v5980_v51  ;;  %v846_v51 = vld [vmem:[#allocation17 + $0x3] sm:$0x7] }
 0x18b   : > { %5343 = vmatpush3.bf16.msra.mxu1 %v5981_v52  ;;  %5324 = vmatprep.subr.bf16.mxu0 %v7820_v58  ;;  %v894_v56 = vrot.slane %v846_v51, %v518_v5 }
 0x18c   : > { %5344 = vmatprep.subr.bf16.mxu1 %v7820_v58 }
 0x18e   : > { %5325 = vmatpush3.bf16.msra.mxu0 %v5982_v53 }
 0x18f   : > { %5345 = vmatpush3.bf16.msra.mxu1 %v5983_v54  ;;  %5326 = vmatprep.subr.bf16.mxu0 %v7820_v58 }
 0x190   : > { %5346 = vmatprep.subr.bf16.mxu1 %v7820_v58 }
 0x192   : > { %5327 = vmatpush3.bf16.msra.mxu0 %v5984_v0  ;;  %v7264_v0 = vrot.slane %v846_v51, %v522_v9 }
 0x193   : > { %5347 = vmatpush3.bf16.msra.mxu1 %v5985_v4  ;;  %5328 = vmatprep.subr.bf16.mxu0 %v7820_v58 }
 0x194   : > { %5348 = vmatprep.subr.bf16.mxu1 %v7820_v58 }
 0x196   : > { %5329 = vmatpush3.bf16.msra.mxu0 %v5986_v10 }
 0x197   : > { %5349 = vmatpush3.bf16.msra.mxu1 %v5987_v11  ;;  %5330 = vmatprep.subr.bf16.mxu0 %v7820_v58 }
 0x198   : > { %5350 = vmatprep.subr.bf16.mxu1 %v7820_v58 }
 0x19a   : > { %5331 = vmatpush3.bf16.msra.mxu0 %v5988_v19 }
 0x19b   : > { %5351 = vmatpush3.bf16.msra.mxu1 %v5989_v20  ;;  %5332 = vmatprep.subr.bf16.mxu0 %v7820_v58 }
 0x19c   : > { %5352 = vmatprep.subr.bf16.mxu1 %v7820_v58 }
 0x19e   : > { %5333 = vmatpush3.bf16.msra.mxu0 %v5990_v29 }
 0x19f   : > { %5353 = vmatpush3.bf16.msra.mxu1 %v5991_v32  ;;  %5334 = vmatprep.subr.bf16.mxu0 %v7820_v58 }
 0x1a0   : > { %5354 = vmatprep.subr.bf16.mxu1 %v7820_v58 }
 0x1a2   : > { %5335 = vmatpush3.bf16.msra.mxu0 %v5992_v33 }
 0x1a3   : > { %5355 = vmatpush3.bf16.msra.mxu1 %v5993_v35  ;;  %5336 = vmatprep.subr.bf16.mxu0 %v7820_v58 }
 0x1a4   : > { %5356 = vmatprep.subr.bf16.mxu1 %v7820_v58 }
 0x1a6   : > { %5337 = vmatpush3.bf16.msra.mxu0 %v5994_v42 }
 0x1a7   : > { %5357 = vmatpush3.bf16.msra.mxu1 %v5995_v44  ;;  %5362 = vmatprep.subr.bf16.mxu0 %v7820_v58 }
 0x1a8   : > { %5382 = vmatprep.subr.bf16.mxu1 %v7820_v58 }
 0x1db   : > { %v7168_v59 = vpop.f32.mrb[0].mxu0 }
 0x1dc   : > { %v5172_v60 = vpop.f32.mrb[0].mxu1  ;;  %v7173_v62 = vpop.f32.mrb[1].mxu0 }
 0x1dd   : > { %v7171_v61 = vadd.f32 %v5172_v60, %v7166_v57  ;;  %v7175_v63 = vpop.f32.mrb[1].mxu1  ;;  %v7177_v1 = vpop.f32.mrb[2].mxu0  ;;  %v7260_v60 = vrot.slane %v846_v51, %v526_v55 }
 0x1de   : > { %v5173_v2 = vpop.f32.mrb[2].mxu1  ;;  %v7183_v7 = vpop.f32.mrb[3].mxu0 }
 0x1df   : > { %v7181_v6 = vadd.f32 %v5173_v2, %v7166_v57  ;;  %v7185_v8 = vpop.f32.mrb[3].mxu1 }
 0x1e3   : > { %v727_v14 = vpop.f32.mrb[4].mxu0 }
 0x1e4   : > { %v5176_v15 = vpop.f32.mrb[4].mxu1  ;;  %v7200_v3 = vadd.f32 %v727_v14, %v7192_v12  ;;  %v729_v16 = vpop.f32.mrb[5].mxu0 }
 0x1e5   : > { %v7203_v17 = vadd.f32 %v5176_v15, %v7166_v57  ;;  %v806_v18 = vpop.f32.mrb[5].mxu1  ;;  %v7207_v21 = vadd.f32 %v729_v16, %v7196_v13  ;;  %v731_v22 = vpop.f32.mrb[6].mxu0 }
 0x1e6   : > { %v7210_v23 = vadd.f32 %v806_v18, %v7166_v57  ;;  %v5177_v24 = vpop.f32.mrb[6].mxu1  ;;  %v7213_v25 = vadd.f32 %v731_v22, %v7192_v12  ;;  %v733_v26 = vpop.f32.mrb[7].mxu0 }
 0x1e7   : > { %7853 = vst [vmem:[#allocation42_spill] sm:$0xff] %v7203_v17  ;;  %v7216_v27 = vadd.f32 %v5177_v24, %v7166_v57  ;;  %v809_v28 = vpop.f32.mrb[7].mxu1  ;;  %v7219_v30 = vadd.f32 %v733_v26, %v7196_v13 }
 0x1e8   : > { %v7222_v31 = vadd.f32 %v809_v28, %v7166_v57 }
 0x1e9   : > { %7854 = vst [vmem:[#allocation43_spill] sm:$0xff] %v7216_v27 }
 0x1eb   : > { %v737_v34 = vpop.f32.mrb[8].mxu0 }
 0x1ec   : > { %v7228_v36 = vadd.f32 %v737_v34, %v7192_v12  ;;  %v739_v37 = vpop.f32.mrb[9].mxu0 }
 0x1ed   : > { %v7232_v38 = vadd.f32 %v739_v37, %v7196_v13  ;;  %v741_v39 = vpop.f32.mrb[10].mxu0 }
 0x1ee   : > { %v7235_v40 = vadd.f32 %v741_v39, %v7192_v12  ;;  %v743_v41 = vpop.f32.mrb[11].mxu0 }
 0x1ef   : > { %v7238_v43 = vadd.f32 %v743_v41, %v7196_v13 }
 0x1f3   : > { %v747_v45 = vpop.f32.mrb[12].mxu0 }
 0x1f4   : > { %v7244_v46 = vadd.f32 %v747_v45, %v7192_v12  ;;  %v749_v47 = vpop.f32.mrb[13].mxu0 }
 0x1f5   : > { %v7248_v48 = vadd.f32 %v749_v47, %v7196_v13  ;;  %v751_v49 = vpop.f32.mrb[14].mxu0 }
 0x1f6   : > { %v7251_v52 = vadd.f32 %v751_v49, %v7192_v12  ;;  %v753_v53 = vpop.f32.mrb[15].mxu0 }
 0x1f7   : > { %7855 = vst [vmem:[#allocation44_spill] sm:$0xff] %v7248_v48  ;;  %v7254_v54 = vadd.f32 %v753_v53, %v7196_v13 }
 0x1f9   : > { %7856 = vst [vmem:[#allocation45_spill] sm:$0xff] %v7254_v54 }
 0x1fb   : > { %v1092_v2 = vpop.f32.mrb[16].mxu0 }
 0x1fc   : > { %v5196_v4 = vpop.f32.mrb[8].mxu1  ;;  %v7266_v10 = vadd.f32 %v1092_v2, %v894_v56  ;;  %v1094_v14 = vpop.f32.mrb[17].mxu0 }
 0x1fd   : > { %v7269_v11 = vadd.f32 %v5196_v4, %v7260_v60  ;;  %v1165_v15 = vpop.f32.mrb[9].mxu1  ;;  %v7272_v16 = vadd.f32 %v1094_v14, %v7264_v0  ;;  %v1096_v55 = vpop.f32.mrb[18].mxu0 }
 0x1fe   : > { %v7275_v5 = vadd.f32 %v1165_v15, %v7260_v60  ;;  %v5197_v18 = vpop.f32.mrb[10].mxu1  ;;  %v7277_v50 = vadd.f32 %v1096_v55, %v894_v56  ;;  %v1098_v19 = vpop.f32.mrb[19].mxu0 }
 0x1ff   : > { %7857 = vst [vmem:[#allocation46_spill] sm:$0xff] %v7272_v16  ;;  %v7280_v9 = vadd.f32 %v5197_v18, %v7260_v60  ;;  %v1168_v20 = vpop.f32.mrb[11].mxu1  ;;  %v7283_v22 = vadd.f32 %v1098_v19, %v7264_v0 }
 0x200   : > { %7858 = vst [vmem:[#allocation47_spill] sm:$0xff] %v7275_v5  ;;  %v7286_v24 = vadd.f32 %v1168_v20, %v7260_v60 }
 0x201   : > { %7859 = vst [vmem:[#allocation48_spill] sm:$0xff] %v7283_v22 }
 0x202   : > { %7860 = vst [vmem:[#allocation49_spill] sm:$0xff] %v7286_v24 }
 0x203   : > { %v1102_v26 = vpop.f32.mrb[20].mxu0 }
 0x204   : > { %v7288_v28 = vpop.f32.mrb[12].mxu1  ;;  %v7290_v29 = vadd.f32 %v1102_v26, %v894_v56  ;;  %v1104_v32 = vpop.f32.mrb[21].mxu0 }
 0x205   : > { %v1181_v33 = vpop.f32.mrb[13].mxu1  ;;  %v7293_v34 = vadd.f32 %v1104_v32, %v7264_v0  ;;  %v1106_v35 = vpop.f32.mrb[22].mxu0  ;;  %v718_v32 = vadd.f32 %v7168_v59, %v7192_v12  ;;  %v720_v59 = vadd.f32 %v7173_v62, %v7196_v13 }
 0x206   : > { %v7296_v37 = vadd.f32 %v1181_v33, %v7260_v60  ;;  %v7298_v39 = vpop.f32.mrb[14].mxu1  ;;  %v7300_v41 = vadd.f32 %v1106_v35, %v894_v56  ;;  %v1108_v42 = vpop.f32.mrb[23].mxu0 }
 0x207   : > { %v1184_v44 = vpop.f32.mrb[15].mxu1  ;;  %v7303_v45 = vadd.f32 %v1108_v42, %v7264_v0 }
 0x208   : > { %v7306_v47 = vadd.f32 %v1184_v44, %v7260_v60  ;;  %v722_v44 = vadd.f32 %v7177_v1, %v7192_v12  ;;  %v724_v1 = vadd.f32 %v7183_v7, %v7196_v13 }
 0x20b   : > { %v1112_v49 = vpop.f32.mrb[24].mxu0 }
 0x20c   : > { %v7308_v51 = vadd.f32 %v1112_v49, %v894_v56  ;;  %v1114_v53 = vpop.f32.mrb[25].mxu0 }
 0x20d   : > { %v7311_v2 = vadd.f32 %v1114_v53, %v7264_v0  ;;  %v1116_v4 = vpop.f32.mrb[26].mxu0 }
 0x20e   : > { %v7313_v14 = vadd.f32 %v1116_v4, %v894_v56  ;;  %v1118_v15 = vpop.f32.mrb[27].mxu0 }
 0x20f   : > { %v7316_v55 = vadd.f32 %v1118_v15, %v7264_v0 }
 0x213   : > { %v1122_v18 = vpop.f32.mrb[28].mxu0 }
 0x214   : > { %v1124_v19 = vpop.f32.mrb[29].mxu0  ;;  %v1123_v33 = vadd.f32 %v1122_v18, %v894_v56 }
 0x215   : > { %v1126_v20 = vpop.f32.mrb[30].mxu0  ;;  %v1125_v18 = vadd.f32 %v1124_v19, %v7264_v0 }
 0x216   : > { %v1128_v26 = vpop.f32.mrb[31].mxu0  ;;  %v1127_v49 = vadd.f32 %v1126_v20, %v894_v56 }
 0x217   : > { %v1129_v12 = vadd.f32 %v1128_v26, %v7264_v0 }
 0x21b   : > { %v1328_v35 = vpop.f32.mrb[32].mxu0 }
 0x21c   : > { %v1433_v42 = vpop.f32.mrb[16].mxu1  ;;  %v1442_v53 = vadd.f32 %v1328_v35, %v718_v32  ;;  %v5220_v58 = vpop.f32.mrb[33].mxu0 }
 0x21d   : > { %v1459_v4 = vadd.f32 %v1433_v42, %v1123_v33  ;;  %v5240_v24 = vpop.f32.mrb[17].mxu1  ;;  %v1331_v15 = vpop.f32.mrb[34].mxu0 }
 0x21e   : > { %v1436_v27 = vpop.f32.mrb[18].mxu1  ;;  %v1443_v5 = vadd.f32 %v1331_v15, %v722_v44  ;;  %v5221_v22 = vpop.f32.mrb[35].mxu0  ;;  %v4594_v32 = vmul.f32 -1.442695, %v1442_v53 }
 0x21f   : > { %v1460_v17 = vadd.f32 %v1436_v27, %v1127_v49  ;;  %v5241_v54 = vpop.f32.mrb[19].mxu1 }
 0x220   : > { %v4596_v54 = vmul.f32 -1.442695, %v1459_v4  ;;  %v4595_v19 = vmul.f32 -1.442695, %v1443_v5  ;;  %6124 = vpow2.f32 %v4594_v32 }
 0x221   : > { %v4597_v44 = vmul.f32 -1.442695, %v1460_v17 }
 0x222   : > { %6126 = vpow2.f32 %v4596_v54 }
 0x223   : > { %6128 = vpow2.f32 %v4595_v19 }
 0x224   : > { %6130 = vpow2.f32 %v4597_v44  ;;  %v791_v44 = vadd.f32 %v7175_v63, %v7166_v57  ;;  %v794_v63 = vadd.f32 %v7185_v8, %v7166_v57 }
 0x23b   : > { %v1571_v16 = vpop.f32.mrb[36].mxu0 }
 0x23c   : > { %v1676_v48 = vpop.f32.mrb[20].mxu1  ;;  %v1685_v58 = vadd.f32 %v1571_v16, %v720_v59  ;;  %v5260_v24 = vpop.f32.mrb[37].mxu0 }
 0x23d   : > { %v1702_v56 = vadd.f32 %v1676_v48, %v1125_v18  ;;  %v5280_v20 = vpop.f32.mrb[21].mxu1  ;;  %v1574_v27 = vpop.f32.mrb[38].mxu0  ;;  %v7330_v24 = vld [vmem:[#allocation19 + $0x1] ss:$0 sm:$0xff] }
 0x23e   : > { %v1679_v22 = vpop.f32.mrb[22].mxu1  ;;  %v1686_v33 = vadd.f32 %v1574_v27, %v724_v1  ;;  %v5261_v62 = vpop.f32.mrb[39].mxu0  ;;  %v4614_v7 = vmul.f32 -1.442695, %v1685_v58 }
 0x23f   : > { %v1703_v35 = vadd.f32 %v1679_v22, %v1129_v12  ;;  %v5281_v42 = vpop.f32.mrb[23].mxu1  ;;  %v4616_v13 = vmul.f32 -1.442695, %v1702_v56  ;;  %v6125_v48 = vpop.eup %6124  ;;  %v7328_v56 = vld [vmem:[#allocation19] ss:$0 sm:$0xff] }
 0x240   : > { %v4615_v0 = vmul.f32 -1.442695, %v1686_v33  ;;  %6132 = vpow2.f32 %v4614_v7  ;;  %v6127_v16 = vpop.eup %6126  ;;  %v1450_v4 = vadd.f32 1.0, %v6125_v48  ;;  %v1190_v7 = vadd.f32 %v7288_v28, %v7260_v60 }
 0x241   : > { %6134 = vpow2.f32 %v4616_v13  ;;  %v4617_v26 = vmul.f32 -1.442695, %v1703_v35  ;;  %v6129_v49 = vpop.eup %6128  ;;  %v1467_v15 = vadd.f32 1.0, %v6127_v16  ;;  %v1193_v28 = vadd.f32 %v7298_v39, %v7260_v60 }
 0x242   : > { %v6131_v53 = vpop.eup %6130  ;;  %6136 = vpow2.f32 %v4615_v0  ;;  %v1451_v59 = vadd.f32 1.0, %v6129_v49 }
 0x243   : > { %6138 = vpow2.f32 %v4617_v26  ;;  %v1468_v17 = vadd.f32 1.0, %v6131_v53 }
 0x244   : > { %6140 = vrcp.f32 %v1450_v4 }
 0x245   : > { %6142 = vrcp.f32 %v1467_v15 }
 0x246   : > { %6144 = vrcp.f32 %v1451_v59 }
 0x247   : > { %6146 = vrcp.f32 %v1468_v17 }
 0x24a   : > { %v6133_v5 = vpop.eup %6132 }
 0x24b   : > { %v6135_v18 = vpop.eup %6134  ;;  %v1693_v12 = vadd.f32 1.0, %v6133_v5 }
 0x24c   : > { %v6137_v1 = vpop.eup %6136  ;;  %v1710_v58 = vadd.f32 1.0, %v6135_v18 }
 0x24d   : > { %v6139_v20 = vpop.eup %6138  ;;  %v1694_v32 = vadd.f32 1.0, %v6137_v1  ;;  %6148 = vrcp.f32 %v1693_v12 }
 0x24e   : > { %v6141_v54 = vpop.eup %6140  ;;  %6150 = vrcp.f32 %v1710_v58  ;;  %v1711_v13 = vadd.f32 1.0, %v6139_v20 }
 0x24f   : > { %v6143_v19 = vpop.eup %6142  ;;  %6152 = vrcp.f32 %v1694_v32 }
 0x250   : > { %v6145_v16 = vpop.eup %6144  ;;  %6154 = vrcp.f32 %v1711_v13  ;;  %v6285_v13 = vld [vmem:[#allocation23 + $0x10] sm:$0xff] }
 0x251   : > { %v6147_v17 = vpop.eup %6146 }
 0x25b   : > { %v1838_v27 = vpop.f32.mrb[40].mxu0 }
 0x25c   : > { %v1942_v22 = vpop.f32.mrb[24].mxu1  ;;  %v1839_v33 = vadd.f32 %v7328_v56, %v1838_v27  ;;  %v5300_v62 = vpop.f32.mrb[41].mxu0 }
 0x25d   : > { %v1943_v35 = vadd.f32 %v7330_v24, %v1942_v22  ;;  %v5320_v42 = vpop.f32.mrb[25].mxu1  ;;  %v1841_v0 = vpop.f32.mrb[42].mxu0  ;;  %v6284_v62 = vld [vmem:[#allocation23] sm:$0xff] }
 0x25e   : > { %v1945_v48 = vpop.f32.mrb[26].mxu1  ;;  %v1845_v26 = vmul.f32 %v6141_v54, %v1839_v33  ;;  %v1842_v53 = vadd.f32 %v7328_v56, %v1841_v0  ;;  %v5301_v15 = vpop.f32.mrb[43].mxu0 }
 0x25f   : > { %v1949_v49 = vmul.f32 %v6143_v19, %v1943_v35  ;;  %v1946_v4 = vadd.f32 %v7330_v24, %v1945_v48  ;;  %v5321_v59 = vpop.f32.mrb[27].mxu1  ;;  %v6149_v27 = vpop.eup %6148  ;;  %v6287_v15 = vld [vmem:[#allocation23 + $0x18] sm:$0xff] }
 0x260   : > { %v1847_v5 = vadd.f32 %v1845_v26, %v791_v44  ;;  %v1846_v1 = vmul.f32 %v6145_v16, %v1842_v53  ;;  %v6151_v22 = vpop.eup %6150  ;;  %v1955_v57 = vsub.f32 1.0, %v6149_v27  ;;  %v1959_v42 = vmul.f32 %v6284_v62, %v6149_v27  ;;  %v6286_v26 = vld [vmem:[#allocation23 + $0x8] sm:$0xff]  ;;  %v5999_v27 = vld [vmem:[#allocation16 + $0x1c] ss:$12 sps:$4 sm:$0xff]  }
 0x261   : > { %v1951_v18 = vadd.f32 %v1949_v49, %v1190_v7  ;;  %v1950_v12 = vmul.f32 %v6147_v17, %v1946_v4  ;;  %v6153_v54 = vpop.eup %6152  ;;  %v1963_v35 = vsub.f32 1.0, %v6151_v22  ;;  %v1967_v0 = vmul.f32 %v6285_v13, %v6151_v22  ;;  %v6000_v22 = vld [vmem:[#allocation13 + $0x34] ss:$12 sps:$4 sm:$0xff]  }
 0x262   : > { %6156 = vtanh.f32 %v1847_v5  ;;  %v1848_v58 = vadd.f32 %v1846_v1, %v794_v63  ;;  %v6155_v33 = vpop.eup %6154  ;;  %v1956_v39 = vsub.f32 1.0, %v6153_v54  ;;  %v1960_v49 = vmul.f32 %v6286_v26, %v6153_v54  ;;  %v5996_v5 = vld [vmem:[#allocation13 + $0x4] ss:$12 sps:$4 sm:$0xff]   ;;  %v6001_v54 = vld [vmem:[#allocation16 + $0x34] ss:$12 sps:$4 sm:$0xff]  }
 0x263   : > { %v1952_v20 = vadd.f32 %v1950_v12, %v1193_v28  ;;  %6158 = vtanh.f32 %v1951_v18  ;;  %v1964_v44 = vsub.f32 1.0, %v6155_v33  ;;  %v1968_v59 = vmul.f32 %v6287_v15, %v6155_v33  ;;  %v5997_v1 = vld [vmem:[#allocation16 + $0x4] ss:$12 sps:$4 sm:$0xff]   ;;  %v6002_v33 = vld [vmem:[#allocation13 + $0x4c] ss:$12 sps:$4 sm:$0xff]  }
 0x264   : > { %6160 = vtanh.f32 %v1848_v58  ;;  %v5998_v58 = vld [vmem:[#allocation13 + $0x1c] ss:$12 sps:$4 sm:$0xff]   ;;  %v6009_v62 = vld [vmem:[#allocation16 + $0x94] ss:$12 sps:$4 sm:$0xff]  }
 0x265   : > { %6162 = vtanh.f32 %v1952_v20  ;;  %v7861_v20 = vmov 0.0   ;;  %v6014_v13 = vld [vmem:[#allocation13 + $0x20] ss:$12 sps:$4 sm:$0xff]   ;;  %v6018_v26 = vld [vmem:[#allocation13 + $0x50] ss:$12 sps:$4 sm:$0xff]  }
 0x266   : > { %v6021_v15 = vld [vmem:[#allocation16 + $0x68] ss:$12 sps:$4 sm:$0xff]  }
 0x26c   : > { %v6157_v8 = vpop.eup %6156 }
 0x26d   : > { %v6159_v60 = vpop.eup %6158  ;;  %v1957_v32 = vmul.f32 %v6157_v8, %v1955_v57  ;;  %v6003_v57 = vld [vmem:[#allocation16 + $0x4c] ss:$12 sps:$4 sm:$0xff]   ;;  %v6004_v8 = vld [vmem:[#allocation13 + $0x64] ss:$12 sps:$4 sm:$0xff]  }
 0x26e   : > { %v6161_v19 = vpop.eup %6160  ;;  %v1965_v7 = vmul.f32 %v6159_v60, %v1963_v35  ;;  %v6005_v35 = vld [vmem:[#allocation16 + $0x64] ss:$12 sps:$4 sm:$0xff]   ;;  %v6006_v60 = vld [vmem:[#allocation13 + $0x7c] ss:$12 sps:$4 sm:$0xff]  }
 0x26f   : > { %v6163_v48 = vpop.eup %6162  ;;  %v1958_v16 = vmul.f32 %v6161_v19, %v1956_v39  ;;  %v7344_v53 = vadd.f32 %v1959_v42, %v1957_v32  ;;  %v6007_v39 = vld [vmem:[#allocation16 + $0x7c] ss:$12 sps:$4 sm:$0xff]   ;;  %v6008_v32 = vld [vmem:[#allocation13 + $0x94] ss:$12 sps:$4 sm:$0xff]   ;;  %v6010_v42 = vld [vmem:[#allocation13 + $0xac] ss:$12 sps:$4 sm:$0xff]  }
 0x270   : > { %v1966_v4 = vmul.f32 %v6163_v48, %v1964_v44  ;;  %v7346_v17 = vadd.f32 %v1967_v0, %v1965_v7  ;;  %v6011_v19 = vld [vmem:[#allocation16 + $0xac] ss:$12 sps:$4 sm:$0xff]   ;;  %v6012_v44 = vld [vmem:[#allocation13 + $0x8] ss:$12 sps:$4 sm:$0xff]  }
 0x271   : > { %v7348_v63 = vadd.f32 %v1960_v49, %v1958_v16  ;;  %v6013_v7 = vld [vmem:[#allocation16 + $0x8] ss:$12 sps:$4 sm:$0xff]   ;;  %v6015_v0 = vld [vmem:[#allocation16 + $0x20] ss:$12 sps:$4 sm:$0xff]   ;;  %v6016_v48 = vld [vmem:[#allocation13 + $0x38] ss:$12 sps:$4 sm:$0xff]  }
 0x272   : > { %v7350_v28 = vadd.f32 %v1968_v59, %v1966_v4  ;;  %v6017_v16 = vld [vmem:[#allocation16 + $0x38] ss:$12 sps:$4 sm:$0xff]   ;;  %v6019_v49 = vld [vmem:[#allocation16 + $0x50] ss:$12 sps:$4 sm:$0xff]   ;;  %v6020_v4 = vld [vmem:[#allocation13 + $0x68] ss:$12 sps:$4 sm:$0xff]  }
 0x273   : > { %v7354_v18 = vpack.c.bf16 %v7348_v63, %v7344_v53  ;;  %v6022_v59 = vld [vmem:[#allocation13 + $0x80] ss:$12 sps:$4 sm:$0xff]  }
 0x274   : > { %v7358_v12 = vpack.c.bf16 %v7350_v28, %v7346_v17 }
 0x275   : > { %4872 = vst [vmem:[%s7052_s25] sm:$0xff] %v7354_v18   ;;  %5339 = vmatmul.mubr.bf16.vlgmr.msra.gmra.mrb[44].mxu0 %v7354_v18 }
 0x276   : > { %4908 = vst [vmem:[%s7054_s28 + $0x18] sm:$0xff] %v7358_v12   ;;  %5359 = vmatmul.mubr.bf16.vlgmr.msra.gmra.mrb[28].mxu1 %v7358_v12  ;;  %5363 = vmatpush3.bf16.msra.mxu0 %v5996_v5  ;;  %v6023_v5 = vld [vmem:[#allocation16 + $0x80] ss:$12 sps:$4 sm:$0xff]  }
 0x277   : > { %5383 = vmatpush3.bf16.msra.mxu1 %v5997_v1  ;;  %5364 = vmatprep.subr.bf16.mxu0 %v7861_v20  ;;  %v6024_v1 = vld [vmem:[#allocation13 + $0x98] ss:$12 sps:$4 sm:$0xff]  }
 0x278   : > { %5384 = vmatprep.subr.bf16.mxu1 %v7861_v20  ;;  %5378 = vmatprep.mubr.msk.bf16.mxu0 %vm6686_vm0, %v7861_v20 }
 0x279   : > { %5398 = vmatprep.mubr.msk.bf16.mxu1 %vm6686_vm0, %v7861_v20 }
 0x27a   : > { %5365 = vmatpush3.bf16.msra.mxu0 %v5998_v58  ;;  %v6025_v58 = vld [vmem:[#allocation16 + $0x98] ss:$12 sps:$4 sm:$0xff]  }
 0x27b   : > { %5385 = vmatpush3.bf16.msra.mxu1 %v5999_v27  ;;  %5366 = vmatprep.subr.bf16.mxu0 %v7861_v20  ;;  %v6026_v27 = vld [vmem:[#allocation13 + $0xb0] ss:$12 sps:$4 sm:$0xff]  }
 0x27c   : > { %5386 = vmatprep.subr.bf16.mxu1 %v7861_v20 }
 0x27e   : > { %5367 = vmatpush3.bf16.msra.mxu0 %v6000_v22  ;;  %v6027_v22 = vld [vmem:[#allocation16 + $0xb0] ss:$12 sps:$4 sm:$0xff]  }
 0x27f   : > { %5387 = vmatpush3.bf16.msra.mxu1 %v6001_v54  ;;  %5368 = vmatprep.subr.bf16.mxu0 %v7861_v20  ;;  %v6028_v54 = vld [vmem:[#allocation13] ss:$12 sps:$4 sm:$0xff]  }
 0x280   : > { %5388 = vmatprep.subr.bf16.mxu1 %v7861_v20 }
 0x282   : > { %5369 = vmatpush3.bf16.msra.mxu0 %v6002_v33  ;;  %v6029_v33 = vld [vmem:[#allocation16] ss:$12 sps:$4 sm:$0xff]  }
 0x283   : > { %5389 = vmatpush3.bf16.msra.mxu1 %v6003_v57  ;;  %5370 = vmatprep.subr.bf16.mxu0 %v7861_v20  ;;  %v6030_v57 = vld [vmem:[#allocation13 + $0x18] ss:$12 sps:$4 sm:$0xff]  }
 0x284   : > { %5390 = vmatprep.subr.bf16.mxu1 %v7861_v20 }
 0x286   : > { %5371 = vmatpush3.bf16.msra.mxu0 %v6004_v8  ;;  %v6031_v8 = vld [vmem:[#allocation16 + $0x18] ss:$12 sps:$4 sm:$0xff]  }
 0x287   : > { %5391 = vmatpush3.bf16.msra.mxu1 %v6005_v35  ;;  %5372 = vmatprep.subr.bf16.mxu0 %v7861_v20  ;;  %v6034_v35 = vld [vmem:[#allocation13 + $0x48] ss:$12 sps:$4 sm:$0xff]  }
 0x288   : > { %5392 = vmatprep.subr.bf16.mxu1 %v7861_v20 }
 0x28a   : > { %5373 = vmatpush3.bf16.msra.mxu0 %v6006_v60  ;;  %v6035_v60 = vld [vmem:[#allocation16 + $0x48] ss:$12 sps:$4 sm:$0xff]  }
 0x28b   : > { %5393 = vmatpush3.bf16.msra.mxu1 %v6007_v39  ;;  %5374 = vmatprep.subr.bf16.mxu0 %v7861_v20  ;;  %v6036_v39 = vld [vmem:[#allocation13 + $0x60] ss:$12 sps:$4 sm:$0xff]  }
 0x28c   : > { %5394 = vmatprep.subr.bf16.mxu1 %v7861_v20 }
 0x28e   : > { %5375 = vmatpush3.bf16.msra.mxu0 %v6008_v32  ;;  %v6037_v32 = vld [vmem:[#allocation16 + $0x60] ss:$12 sps:$4 sm:$0xff]  }
 0x28f   : > { %5395 = vmatpush3.bf16.msra.mxu1 %v6009_v62  ;;  %5376 = vmatprep.subr.bf16.mxu0 %v7861_v20  ;;  %v6038_v62 = vld [vmem:[#allocation13 + $0x78] ss:$12 sps:$4 sm:$0xff]  }
 0x290   : > { %5396 = vmatprep.subr.bf16.mxu1 %v7861_v20 }
 0x292   : > { %5377 = vmatpush3.bf16.msra.mxu0 %v6010_v42  ;;  %v6039_v42 = vld [vmem:[#allocation16 + $0x78] ss:$12 sps:$4 sm:$0xff]  }
 0x293   : > { %5397 = vmatpush3.bf16.msra.mxu1 %v6011_v19  ;;  %5402 = vmatprep.subr.bf16.mxu0 %v7861_v20  ;;  %v6040_v19 = vld [vmem:[#allocation13 + $0x90] ss:$12 sps:$4 sm:$0xff]  }
 0x294   : > { %5422 = vmatprep.subr.bf16.mxu1 %v7861_v20 }
 0x295   : > { %5379 = vmatmul.mubr.bf16.vlgmr.msra.gmra.mrb[48].mxu0 %v7354_v18 }
 0x296   : > { %5399 = vmatmul.mubr.bf16.vlgmr.msra.gmra.mrb[32].mxu1 %v7358_v12  ;;  %5403 = vmatpush3.bf16.msra.mxu0 %v6012_v44  ;;  %v6041_v44 = vld [vmem:[#allocation16 + $0x90] ss:$12 sps:$4 sm:$0xff]  }
 0x297   : > { %5423 = vmatpush3.bf16.msra.mxu1 %v6013_v7  ;;  %5404 = vmatprep.subr.bf16.mxu0 %v7861_v20  ;;  %v6042_v7 = vld [vmem:[#allocation13 + $0xa8] ss:$12 sps:$4 sm:$0xff]  }
 0x298   : > { %5424 = vmatprep.subr.bf16.mxu1 %v7861_v20  ;;  %5418 = vmatprep.mubr.msk.bf16.mxu0 %vm6686_vm0, %v7861_v20 }
 0x299   : > { %5438 = vmatprep.mubr.msk.bf16.mxu1 %vm6686_vm0, %v7861_v20 }
 0x29a   : > { %5405 = vmatpush3.bf16.msra.mxu0 %v6014_v13  ;;  %v6043_v13 = vld [vmem:[#allocation16 + $0xa8] ss:$12 sps:$4 sm:$0xff]  }
 0x29b   : > { %5425 = vmatpush3.bf16.msra.mxu1 %v6015_v0  ;;  %5406 = vmatprep.subr.bf16.mxu0 %v7861_v20 }
 0x29c   : > { %5426 = vmatprep.subr.bf16.mxu1 %v7861_v20 }
 0x29e   : > { %5407 = vmatpush3.bf16.msra.mxu0 %v6016_v48 }
 0x29f   : > { %5427 = vmatpush3.bf16.msra.mxu1 %v6017_v16  ;;  %5408 = vmatprep.subr.bf16.mxu0 %v7861_v20 }
 0x2a0   : > { %5428 = vmatprep.subr.bf16.mxu1 %v7861_v20 }
 0x2a2   : > { %5409 = vmatpush3.bf16.msra.mxu0 %v6018_v26 }
 0x2a3   : > { %5429 = vmatpush3.bf16.msra.mxu1 %v6019_v49  ;;  %5410 = vmatprep.subr.bf16.mxu0 %v7861_v20 }
 0x2a4   : > { %5430 = vmatprep.subr.bf16.mxu1 %v7861_v20 }
 0x2a6   : > { %5411 = vmatpush3.bf16.msra.mxu0 %v6020_v4 }
 0x2a7   : > { %5431 = vmatpush3.bf16.msra.mxu1 %v6021_v15  ;;  %5412 = vmatprep.subr.bf16.mxu0 %v7861_v20 }
 0x2a8   : > { %5432 = vmatprep.subr.bf16.mxu1 %v7861_v20 }
 0x2aa   : > { %5413 = vmatpush3.bf16.msra.mxu0 %v6022_v59 }
 0x2ab   : > { %5433 = vmatpush3.bf16.msra.mxu1 %v6023_v5  ;;  %5414 = vmatprep.subr.bf16.mxu0 %v7861_v20 }
 0x2ac   : > { %5434 = vmatprep.subr.bf16.mxu1 %v7861_v20 }
 0x2ae   : > { %5415 = vmatpush3.bf16.msra.mxu0 %v6024_v1 }
 0x2af   : > { %5435 = vmatpush3.bf16.msra.mxu1 %v6025_v58  ;;  %5416 = vmatprep.subr.bf16.mxu0 %v7861_v20 }
 0x2b0   : > { %5436 = vmatprep.subr.bf16.mxu1 %v7861_v20 }
 0x2b2   : > { %5417 = vmatpush3.bf16.msra.mxu0 %v6026_v27 }
 0x2b3   : > { %5437 = vmatpush3.bf16.msra.mxu1 %v6027_v22  ;;  %5442 = vmatprep.subr.bf16.mxu0 %v7861_v20 }
 0x2b4   : > { %5462 = vmatprep.subr.bf16.mxu1 %v7861_v20 }
 0x2b5   : > { %5419 = vmatmul.mubr.bf16.vlgmr.msra.gmra.mrb[52].mxu0 %v7354_v18  ;;  %v6032_v18 = vld [vmem:[#allocation13 + $0x30] ss:$12 sps:$4 sm:$0xff]  }
 0x2b6   : > { %5439 = vmatmul.mubr.bf16.vlgmr.msra.gmra.mrb[36].mxu1 %v7358_v12  ;;  %5458 = vmatprep.mubr.msk.bf16.mxu0 %vm6686_vm0, %v7861_v20  ;;  %v6033_v12 = vld [vmem:[#allocation16 + $0x30] ss:$12 sps:$4 sm:$0xff]  }
 0x2b7   : > { %5478 = vmatprep.mubr.msk.bf16.mxu1 %vm6686_vm0, %v7861_v20  ;;  %5443 = vmatpush3.bf16.msra.mxu0 %v6028_v54 }
 0x2b8   : > { %5463 = vmatpush3.bf16.msra.mxu1 %v6029_v33  ;;  %5444 = vmatprep.subr.bf16.mxu0 %v7861_v20 }
 0x2b9   : > { %5464 = vmatprep.subr.bf16.mxu1 %v7861_v20 }
 0x2bb   : > { %5445 = vmatpush3.bf16.msra.mxu0 %v6030_v57 }
 0x2bc   : > { %5465 = vmatpush3.bf16.msra.mxu1 %v6031_v8  ;;  %5446 = vmatprep.subr.bf16.mxu0 %v7861_v20 }
 0x2bd   : > { %5466 = vmatprep.subr.bf16.mxu1 %v7861_v20 }
 0x2bf   : > { %5447 = vmatpush3.bf16.msra.mxu0 %v6032_v18 }
 0x2c0   : > { %5467 = vmatpush3.bf16.msra.mxu1 %v6033_v12  ;;  %5448 = vmatprep.subr.bf16.mxu0 %v7861_v20 }
 0x2c1   : > { %5468 = vmatprep.subr.bf16.mxu1 %v7861_v20 }
 0x2c3   : > { %5449 = vmatpush3.bf16.msra.mxu0 %v6034_v35 }
 0x2c4   : > { %5469 = vmatpush3.bf16.msra.mxu1 %v6035_v60  ;;  %5450 = vmatprep.subr.bf16.mxu0 %v7861_v20 }
 0x2c5   : > { %5470 = vmatprep.subr.bf16.mxu1 %v7861_v20 }
 0x2c7   : > { %5451 = vmatpush3.bf16.msra.mxu0 %v6036_v39 }
 0x2c8   : > { %5471 = vmatpush3.bf16.msra.mxu1 %v6037_v32  ;;  %5452 = vmatprep.subr.bf16.mxu0 %v7861_v20 }
 0x2c9   : > { %5472 = vmatprep.subr.bf16.mxu1 %v7861_v20 }
 0x2cb   : > { %5453 = vmatpush3.bf16.msra.mxu0 %v6038_v62 }
 0x2cc   : > { %5473 = vmatpush3.bf16.msra.mxu1 %v6039_v42  ;;  %5454 = vmatprep.subr.bf16.mxu0 %v7861_v20 }
 0x2cd   : > { %5474 = vmatprep.subr.bf16.mxu1 %v7861_v20 }
 0x2cf   : > { %5455 = vmatpush3.bf16.msra.mxu0 %v6040_v19 }
 0x2d0   : > { %5475 = vmatpush3.bf16.msra.mxu1 %v6041_v44  ;;  %5456 = vmatprep.subr.bf16.mxu0 %v7861_v20 }
 0x2d1   : > { %5476 = vmatprep.subr.bf16.mxu1 %v7861_v20 }
 0x2d3   : > { %5457 = vmatpush3.bf16.msra.mxu0 %v6042_v7 }
 0x2d4   : > { %5477 = vmatpush3.bf16.msra.mxu1 %v6043_v13  ;;  %5482 = vmatprep.subr.bf16.mxu0 %v7861_v20 }
 0x2d5   : > { %5502 = vmatprep.subr.bf16.mxu1 %v7861_v20 }
 0x348   : > { %v2090_v0 = vpop.f32.mrb[44].mxu0 }
 0x349   : > { %v2205_v48 = vadd.f32 %v2090_v0, %v7200_v3  ;;  %v2195_v16 = vpop.f32.mrb[28].mxu1  ;;  %v5340_v26 = vpop.f32.mrb[45].mxu0 }
 0x34a   : > { %v2222_v49 = vadd.f32 %v2195_v16, %v7308_v51  ;;  %v5360_v4 = vpop.f32.mrb[29].mxu1  ;;  %v2093_v15 = vpop.f32.mrb[46].mxu0 }
 0x34b   : > { %v2206_v59 = vadd.f32 %v2093_v15, %v7213_v25  ;;  %v2198_v5 = vpop.f32.mrb[30].mxu1  ;;  %v5341_v1 = vpop.f32.mrb[47].mxu0  ;;  %v4658_v12 = vmul.f32 -1.442695, %v2205_v48 }
 0x34c   : > { %v2223_v58 = vadd.f32 %v2198_v5, %v7313_v14  ;;  %v5361_v27 = vpop.f32.mrb[31].mxu1  ;;  %v4660_v25 = vmul.f32 -1.442695, %v2222_v49 }
 0x34d   : > { %v4659_v14 = vmul.f32 -1.442695, %v2206_v59  ;;  %6164 = vpow2.f32 %v4658_v12 }
 0x34e   : > { %v4661_v62 = vmul.f32 -1.442695, %v2223_v58  ;;  %6166 = vpow2.f32 %v4660_v25 }
 0x34f   : > { %6168 = vpow2.f32 %v4659_v14 }
 0x350   : > { %6170 = vpow2.f32 %v4661_v62 }
 0x357   : > { %v6165_v19 = vpop.eup %6164 }
 0x358   : > { %v6167_v7 = vpop.eup %6166  ;;  %v2213_v0 = vadd.f32 1.0, %v6165_v19 }
 0x368   : > { %v2334_v22 = vpop.f32.mrb[48].mxu0 }
 0x369   : > { %v2449_v54 = vadd.f32 %v2334_v22, %v7207_v21  ;;  %v2439_v33 = vpop.f32.mrb[32].mxu1  ;;  %v5380_v57 = vpop.f32.mrb[49].mxu0 }
 0x36a   : > { %v2466_v3 = vadd.f32 %v2439_v33, %v7311_v2  ;;  %v5400_v8 = vpop.f32.mrb[33].mxu1  ;;  %v2337_v18 = vpop.f32.mrb[50].mxu0 }
 0x36b   : > { %v2450_v51 = vadd.f32 %v2337_v18, %v7219_v30  ;;  %v2442_v35 = vpop.f32.mrb[34].mxu1  ;;  %v5381_v60 = vpop.f32.mrb[51].mxu0  ;;  %v4678_v21 = vmul.f32 -1.442695, %v2449_v54 }
 0x36c   : > { %v2467_v39 = vadd.f32 %v2442_v35, %v7316_v55  ;;  %v5401_v32 = vpop.f32.mrb[35].mxu1  ;;  %v4680_v42 = vmul.f32 -1.442695, %v2466_v3  ;;  %v6169_v30 = vpop.eup %6168  ;;  %v2230_v55 = vadd.f32 1.0, %v6167_v7 }
 0x36d   : > { %v4679_v2 = vmul.f32 -1.442695, %v2450_v51  ;;  %6172 = vpow2.f32 %v4678_v21  ;;  %v6171_v13 = vpop.eup %6170  ;;  %v2214_v48 = vadd.f32 1.0, %v6169_v30 }
 0x36e   : > { %v4681_v44 = vmul.f32 -1.442695, %v2467_v39  ;;  %6174 = vpow2.f32 %v4680_v42  ;;  %v2231_v16 = vadd.f32 1.0, %v6171_v13 }
 0x36f   : > { %6176 = vpow2.f32 %v4679_v2 }
 0x370   : > { %6178 = vpow2.f32 %v4681_v44 }
 0x371   : > { %6180 = vrcp.f32 %v2213_v0 }
 0x372   : > { %6182 = vrcp.f32 %v2230_v55 }
 0x373   : > { %6184 = vrcp.f32 %v2214_v48 }
 0x374   : > { %6186 = vrcp.f32 %v2231_v16 }
 0x377   : > { %v6173_v26 = vpop.eup %6172 }
 0x378   : > { %v6175_v49 = vpop.eup %6174  ;;  %v2457_v59 = vadd.f32 1.0, %v6173_v26 }
 0x379   : > { %v6177_v4 = vpop.eup %6176  ;;  %v2474_v5 = vadd.f32 1.0, %v6175_v49 }
 0x37a   : > { %v6179_v15 = vpop.eup %6178  ;;  %v2458_v58 = vadd.f32 1.0, %v6177_v4  ;;  %6188 = vrcp.f32 %v2457_v59 }
 0x37b   : > { %v6181_v33 = vpop.eup %6180  ;;  %v2475_v57 = vadd.f32 1.0, %v6179_v15  ;;  %6190 = vrcp.f32 %v2474_v5 }
 0x37c   : > { %v6183_v12 = vpop.eup %6182  ;;  %6192 = vrcp.f32 %v2458_v58 }
 0x37d   : > { %v6185_v39 = vpop.eup %6184  ;;  %6194 = vrcp.f32 %v2475_v57  ;;  %v6044_v57 = vld [vmem:[#allocation13 + $0x4] ss:$12 sps:$4 sm:$0xff]  }
 0x37e   : > { %v6187_v21 = vpop.eup %6186 }
 0x384   : > { %v6189_v30 = vpop.eup %6188 }
 0x385   : > { %v2708_v55 = vsub.f32 1.0, %v6189_v30 }
 0x388   : > { %v2597_v1 = vpop.f32.mrb[52].mxu0 }
 0x389   : > { %v2598_v27 = vadd.f32 %v7328_v56, %v2597_v1  ;;  %v2695_v22 = vpop.f32.mrb[36].mxu1  ;;  %v5420_v54 = vpop.f32.mrb[53].mxu0 }
 0x38a   : > { %v2696_v3 = vadd.f32 %v7330_v24, %v2695_v22  ;;  %v5440_v8 = vpop.f32.mrb[37].mxu1  ;;  %v2600_v18 = vpop.f32.mrb[54].mxu0 }
 0x38b   : > { %v2604_v51 = vmul.f32 %v6181_v33, %v2598_v27  ;;  %v2601_v35 = vadd.f32 %v7328_v56, %v2600_v18  ;;  %v2698_v60 = vpop.f32.mrb[38].mxu1  ;;  %v5421_v25 = vpop.f32.mrb[55].mxu0  ;;  %v6047_v8 = vld [vmem:[#allocation16 + $0x1c] ss:$12 sps:$4 sm:$0xff]   ;;  %v6048_v18 = vld [vmem:[#allocation13 + $0x34] ss:$12 sps:$4 sm:$0xff]  }
 0x38c   : > { %v2702_v32 = vmul.f32 %v6183_v12, %v2696_v3  ;;  %v2699_v14 = vadd.f32 %v7330_v24, %v2698_v60  ;;  %v5441_v62 = vpop.f32.mrb[39].mxu1  ;;  %v6191_v24 = vpop.eup %6190  ;;  %v6045_v3 = vld [vmem:[#allocation16 + $0x4] ss:$12 sps:$4 sm:$0xff]   ;;  %v6049_v12 = vld [vmem:[#allocation16 + $0x34] ss:$12 sps:$4 sm:$0xff]  }
 0x38d   : > { %v2606_v42 = vadd.f32 %v2604_v51, %v7171_v61  ;;  %v2605_v2 = vmul.f32 %v6185_v39, %v2601_v35  ;;  %v6193_v13 = vpop.eup %6192  ;;  %v2716_v61 = vsub.f32 1.0, %v6191_v24  ;;  %v6050_v51 = vld [vmem:[#allocation13 + $0x4c] ss:$12 sps:$4 sm:$0xff]   ;;  %v6052_v60 = vld [vmem:[#allocation13 + $0x64] ss:$12 sps:$4 sm:$0xff]  }
 0x38e   : > { %v2704_v19 = vadd.f32 %v2702_v32, %v7296_v37  ;;  %v2703_v44 = vmul.f32 %v6187_v21, %v2699_v14  ;;  %v6195_v0 = vpop.eup %6194  ;;  %v2709_v26 = vsub.f32 1.0, %v6193_v13  ;;  %v2712_v37 = vmul.f32 %v6189_v30, %v7344_v53  ;;  %v6051_v35 = vld [vmem:[#allocation16 + $0x4c] ss:$12 sps:$4 sm:$0xff]   ;;  %v6053_v25 = vld [vmem:[#allocation16 + $0x64] ss:$12 sps:$4 sm:$0xff]  }
 0x38f   : > { %6196 = vtanh.f32 %v2606_v42  ;;  %v2607_v56 = vadd.f32 %v2605_v2, %v7181_v6  ;;  %v2717_v15 = vsub.f32 1.0, %v6195_v0  ;;  %v2713_v1 = vmul.f32 %v6193_v13, %v7348_v63  ;;  %v6054_v39 = vld [vmem:[#allocation13 + $0x7c] ss:$12 sps:$4 sm:$0xff]   ;;  %v6056_v14 = vld [vmem:[#allocation13 + $0x94] ss:$12 sps:$4 sm:$0xff]  }
 0x390   : > { %6198 = vtanh.f32 %v2704_v19  ;;  %v2705_v7 = vadd.f32 %v2703_v44, %v7306_v47  ;;  %v2720_v47 = vmul.f32 %v6191_v24, %v7346_v17  ;;  %v2721_v22 = vmul.f32 %v6195_v0, %v7350_v28  ;;  %v6046_v28 = vld [vmem:[#allocation13 + $0x1c] ss:$12 sps:$4 sm:$0xff]   ;;  %v6057_v62 = vld [vmem:[#allocation16 + $0x94] ss:$12 sps:$4 sm:$0xff]   ;;  %v6058_v21 = vld [vmem:[#allocation13 + $0xac] ss:$12 sps:$4 sm:$0xff]  }
 0x391   : > { %6200 = vtanh.f32 %v2607_v56  ;;  %v6055_v32 = vld [vmem:[#allocation16 + $0x7c] ss:$12 sps:$4 sm:$0xff]   ;;  %v6059_v42 = vld [vmem:[#allocation16 + $0xac] ss:$12 sps:$4 sm:$0xff]  }
 0x392   : > { %6202 = vtanh.f32 %v2705_v7  ;;  %v6060_v2 = vld [vmem:[#allocation13 + $0x8] ss:$12 sps:$4 sm:$0xff]   ;;  %v6062_v44 = vld [vmem:[#allocation13 + $0x20] ss:$12 sps:$4 sm:$0xff]   ;;  %v6064_v7 = vld [vmem:[#allocation13 + $0x38] ss:$12 sps:$4 sm:$0xff]  }
 0x393   : > { %v6061_v19 = vld [vmem:[#allocation16 + $0x8] ss:$12 sps:$4 sm:$0xff]   ;;  %v6063_v56 = vld [vmem:[#allocation16 + $0x20] ss:$12 sps:$4 sm:$0xff]   ;;  %v6065_v30 = vld [vmem:[#allocation16 + $0x38] ss:$12 sps:$4 sm:$0xff]  }
 0x394   : > { %v6066_v24 = vld [vmem:[#allocation13 + $0x50] ss:$12 sps:$4 sm:$0xff]   ;;  %v6068_v0 = vld [vmem:[#allocation13 + $0x68] ss:$12 sps:$4 sm:$0xff]  }
 0x395   : > { %v6067_v13 = vld [vmem:[#allocation16 + $0x50] ss:$12 sps:$4 sm:$0xff]  }
 0x399   : > { %v6197_v48 = vpop.eup %6196 }
 0x39a   : > { %v6199_v16 = vpop.eup %6198  ;;  %v2710_v49 = vmul.f32 %v6197_v48, %v2708_v55  ;;  %v6069_v55 = vld [vmem:[#allocation16 + $0x68] ss:$12 sps:$4 sm:$0xff]   ;;  %v6070_v48 = vld [vmem:[#allocation13 + $0x80] ss:$12 sps:$4 sm:$0xff]  }
 0x39b   : > { %v6201_v4 = vpop.eup %6200  ;;  %v2718_v6 = vmul.f32 %v6199_v16, %v2716_v61  ;;  %v6071_v61 = vld [vmem:[#allocation16 + $0x80] ss:$12 sps:$4 sm:$0xff]   ;;  %v6072_v16 = vld [vmem:[#allocation13 + $0x98] ss:$12 sps:$4 sm:$0xff]  }
 0x39c   : > { %v6203_v59 = vpop.eup %6202  ;;  %v2711_v5 = vmul.f32 %v6201_v4, %v2709_v26  ;;  %v7449_v58 = vadd.f32 %v2712_v37, %v2710_v49  ;;  %v6073_v26 = vld [vmem:[#allocation16 + $0x98] ss:$12 sps:$4 sm:$0xff]   ;;  %v6074_v49 = vld [vmem:[#allocation13 + $0xb0] ss:$12 sps:$4 sm:$0xff]   ;;  %v6076_v4 = vld [vmem:[#allocation13] ss:$12 sps:$4 sm:$0xff]  }
 0x39d   : > { %v2719_v27 = vmul.f32 %v6203_v59, %v2717_v15  ;;  %v7452_v54 = vadd.f32 %v2720_v47, %v2718_v6  ;;  %v6075_v37 = vld [vmem:[#allocation16 + $0xb0] ss:$12 sps:$4 sm:$0xff]   ;;  %v6077_v15 = vld [vmem:[#allocation16] ss:$12 sps:$4 sm:$0xff]   ;;  %v6078_v6 = vld [vmem:[#allocation13 + $0x18] ss:$12 sps:$4 sm:$0xff]  }
 0x39e   : > { %v7454_v33 = vadd.f32 %v2713_v1, %v2711_v5  ;;  %v6079_v47 = vld [vmem:[#allocation16 + $0x18] ss:$12 sps:$4 sm:$0xff]   ;;  %v6080_v59 = vld [vmem:[#allocation13 + $0x30] ss:$12 sps:$4 sm:$0xff]   ;;  %v6082_v1 = vld [vmem:[#allocation13 + $0x48] ss:$12 sps:$4 sm:$0xff]  }
 0x39f   : > { %v7456_v53 = vadd.f32 %v2721_v22, %v2719_v27  ;;  %v6081_v5 = vld [vmem:[#allocation16 + $0x30] ss:$12 sps:$4 sm:$0xff]   ;;  %v6083_v27 = vld [vmem:[#allocation16 + $0x48] ss:$12 sps:$4 sm:$0xff]   ;;  %v6084_v22 = vld [vmem:[#allocation13 + $0x60] ss:$12 sps:$4 sm:$0xff]  }
 0x3a0   : > { %v7460_v17 = vpack.c.bf16 %v7454_v33, %v7449_v58 }
 0x3a1   : > { %v7464_v63 = vpack.c.bf16 %v7456_v53, %v7452_v54 }
 0x3a2   : > { %4909 = vst [vmem:[%s7052_s25 + $0x8] sm:$0xff] %v7460_v17   ;;  %5459 = vmatmul.mubr.bf16.vlgmr.msra.gmra.mrb[56].mxu0 %v7460_v17 }
 0x3a3   : > { %4910 = vst [vmem:[%s7054_s28 + $0x10] sm:$0xff] %v7464_v63   ;;  %5479 = vmatmul.mubr.bf16.vlgmr.msra.gmra.mrb[40].mxu1 %v7464_v63  ;;  %5483 = vmatpush3.bf16.msra.mxu0 %v6044_v57  ;;  %v6085_v57 = vld [vmem:[#allocation16 + $0x60] ss:$12 sps:$4 sm:$0xff]  }
 0x3a4   : > { %5503 = vmatpush3.bf16.msra.mxu1 %v6045_v3  ;;  %5484 = vmatprep.subr.bf16.mxu0 %v7861_v20  ;;  %v6087_v3 = vld [vmem:[#allocation16 + $0x78] ss:$12 sps:$4 sm:$0xff]  }
 0x3a5   : > { %5504 = vmatprep.subr.bf16.mxu1 %v7861_v20  ;;  %5498 = vmatprep.mubr.msk.bf16.mxu0 %vm6686_vm0, %v7861_v20 }
 0x3a6   : > { %5518 = vmatprep.mubr.msk.bf16.mxu1 %vm6686_vm0, %v7861_v20 }
 0x3a7   : > { %5485 = vmatpush3.bf16.msra.mxu0 %v6046_v28  ;;  %v6089_v28 = vld [vmem:[#allocation16 + $0x90] ss:$12 sps:$4 sm:$0xff]  }
 0x3a8   : > { %5505 = vmatpush3.bf16.msra.mxu1 %v6047_v8  ;;  %5486 = vmatprep.subr.bf16.mxu0 %v7861_v20  ;;  %v6090_v8 = vld [vmem:[#allocation13 + $0xa8] ss:$12 sps:$4 sm:$0xff]  }
 0x3a9   : > { %5506 = vmatprep.subr.bf16.mxu1 %v7861_v20 }
 0x3ab   : > { %5487 = vmatpush3.bf16.msra.mxu0 %v6048_v18  ;;  %v6091_v18 = vld [vmem:[#allocation16 + $0xa8] ss:$12 sps:$4 sm:$0xff]  }
 0x3ac   : > { %5507 = vmatpush3.bf16.msra.mxu1 %v6049_v12  ;;  %5488 = vmatprep.subr.bf16.mxu0 %v7861_v20 }
 0x3ad   : > { %5508 = vmatprep.subr.bf16.mxu1 %v7861_v20 }
 0x3af   : > { %5489 = vmatpush3.bf16.msra.mxu0 %v6050_v51 }
 0x3b0   : > { %5509 = vmatpush3.bf16.msra.mxu1 %v6051_v35  ;;  %5490 = vmatprep.subr.bf16.mxu0 %v7861_v20 }
 0x3b1   : > { %5510 = vmatprep.subr.bf16.mxu1 %v7861_v20 }
 0x3b3   : > { %5491 = vmatpush3.bf16.msra.mxu0 %v6052_v60 }
 0x3b4   : > { %5511 = vmatpush3.bf16.msra.mxu1 %v6053_v25  ;;  %5492 = vmatprep.subr.bf16.mxu0 %v7861_v20 }
 0x3b5   : > { %5512 = vmatprep.subr.bf16.mxu1 %v7861_v20 }
 0x3b7   : > { %5493 = vmatpush3.bf16.msra.mxu0 %v6054_v39 }
 0x3b8   : > { %5513 = vmatpush3.bf16.msra.mxu1 %v6055_v32  ;;  %5494 = vmatprep.subr.bf16.mxu0 %v7861_v20 }
 0x3b9   : > { %5514 = vmatprep.subr.bf16.mxu1 %v7861_v20 }
 0x3bb   : > { %5495 = vmatpush3.bf16.msra.mxu0 %v6056_v14 }
 0x3bc   : > { %5515 = vmatpush3.bf16.msra.mxu1 %v6057_v62  ;;  %5496 = vmatprep.subr.bf16.mxu0 %v7861_v20 }
 0x3bd   : > { %5516 = vmatprep.subr.bf16.mxu1 %v7861_v20 }
 0x3bf   : > { %5497 = vmatpush3.bf16.msra.mxu0 %v6058_v21 }
 0x3c0   : > { %5517 = vmatpush3.bf16.msra.mxu1 %v6059_v42  ;;  %5522 = vmatprep.subr.bf16.mxu0 %v7861_v20 }
 0x3c1   : > { %5542 = vmatprep.subr.bf16.mxu1 %v7861_v20 }
 0x3c2   : > { %5499 = vmatmul.mubr.bf16.vlgmr.msra.gmra.mrb[60].mxu0 %v7460_v17 }
 0x3c3   : > { %5519 = vmatmul.mubr.bf16.vlgmr.msra.gmra.mrb[44].mxu1 %v7464_v63  ;;  %5523 = vmatpush3.bf16.msra.mxu0 %v6060_v2 }
 0x3c4   : > { %5543 = vmatpush3.bf16.msra.mxu1 %v6061_v19  ;;  %5524 = vmatprep.subr.bf16.mxu0 %v7861_v20 }
 0x3c5   : > { %5544 = vmatprep.subr.bf16.mxu1 %v7861_v20  ;;  %5538 = vmatprep.mubr.msk.bf16.mxu0 %vm6686_vm0, %v7861_v20 }
 0x3c6   : > { %5558 = vmatprep.mubr.msk.bf16.mxu1 %vm6686_vm0, %v7861_v20 }
 0x3c7   : > { %5525 = vmatpush3.bf16.msra.mxu0 %v6062_v44 }
 0x3c8   : > { %5545 = vmatpush3.bf16.msra.mxu1 %v6063_v56  ;;  %5526 = vmatprep.subr.bf16.mxu0 %v7861_v20 }
 0x3c9   : > { %5546 = vmatprep.subr.bf16.mxu1 %v7861_v20 }
 0x3cb   : > { %5527 = vmatpush3.bf16.msra.mxu0 %v6064_v7 }
 0x3cc   : > { %5547 = vmatpush3.bf16.msra.mxu1 %v6065_v30  ;;  %5528 = vmatprep.subr.bf16.mxu0 %v7861_v20 }
 0x3cd   : > { %5548 = vmatprep.subr.bf16.mxu1 %v7861_v20 }
 0x3cf   : > { %5529 = vmatpush3.bf16.msra.mxu0 %v6066_v24 }
 0x3d0   : > { %5549 = vmatpush3.bf16.msra.mxu1 %v6067_v13  ;;  %5530 = vmatprep.subr.bf16.mxu0 %v7861_v20 }
 0x3d1   : > { %5550 = vmatprep.subr.bf16.mxu1 %v7861_v20 }
 0x3d3   : > { %5531 = vmatpush3.bf16.msra.mxu0 %v6068_v0 }
 0x3d4   : > { %5551 = vmatpush3.bf16.msra.mxu1 %v6069_v55  ;;  %5532 = vmatprep.subr.bf16.mxu0 %v7861_v20 }
 0x3d5   : > { %5552 = vmatprep.subr.bf16.mxu1 %v7861_v20 }
 0x3d7   : > { %5533 = vmatpush3.bf16.msra.mxu0 %v6070_v48 }
 0x3d8   : > { %5553 = vmatpush3.bf16.msra.mxu1 %v6071_v61  ;;  %5534 = vmatprep.subr.bf16.mxu0 %v7861_v20 }
 0x3d9   : > { %5554 = vmatprep.subr.bf16.mxu1 %v7861_v20 }
 0x3db   : > { %5535 = vmatpush3.bf16.msra.mxu0 %v6072_v16 }
 0x3dc   : > { %5555 = vmatpush3.bf16.msra.mxu1 %v6073_v26  ;;  %5536 = vmatprep.subr.bf16.mxu0 %v7861_v20 }
 0x3dd   : > { %5556 = vmatprep.subr.bf16.mxu1 %v7861_v20 }
 0x3df   : > { %5537 = vmatpush3.bf16.msra.mxu0 %v6074_v49 }
 0x3e0   : > { %5557 = vmatpush3.bf16.msra.mxu1 %v6075_v37  ;;  %5562 = vmatprep.subr.bf16.mxu0 %v7861_v20 }
 0x3e1   : > { %5582 = vmatprep.subr.bf16.mxu1 %v7861_v20 }
 0x3e2   : > { %5539 = vmatmul.mubr.bf16.vlgmr.msra.gmra.mrb[64].mxu0 %v7460_v17  ;;  %v6086_v17 = vld [vmem:[#allocation13 + $0x78] ss:$12 sps:$4 sm:$0xff]  }
 0x3e3   : > { %5559 = vmatmul.mubr.bf16.vlgmr.msra.gmra.mrb[48].mxu1 %v7464_v63  ;;  %5578 = vmatprep.mubr.msk.bf16.mxu0 %vm6686_vm0, %v7861_v20  ;;  %v6088_v63 = vld [vmem:[#allocation13 + $0x90] ss:$12 sps:$4 sm:$0xff]  }
 0x3e4   : > { %5598 = vmatprep.mubr.msk.bf16.mxu1 %vm6686_vm0, %v7861_v20  ;;  %5563 = vmatpush3.bf16.msra.mxu0 %v6076_v4 }
 0x3e5   : > { %5583 = vmatpush3.bf16.msra.mxu1 %v6077_v15  ;;  %5564 = vmatprep.subr.bf16.mxu0 %v7861_v20 }
 0x3e6   : > { %5584 = vmatprep.subr.bf16.mxu1 %v7861_v20 }
 0x3e8   : > { %5565 = vmatpush3.bf16.msra.mxu0 %v6078_v6 }
 0x3e9   : > { %5585 = vmatpush3.bf16.msra.mxu1 %v6079_v47  ;;  %5566 = vmatprep.subr.bf16.mxu0 %v7861_v20 }
 0x3ea   : > { %5586 = vmatprep.subr.bf16.mxu1 %v7861_v20 }
 0x3ec   : > { %5567 = vmatpush3.bf16.msra.mxu0 %v6080_v59 }
 0x3ed   : > { %5587 = vmatpush3.bf16.msra.mxu1 %v6081_v5  ;;  %5568 = vmatprep.subr.bf16.mxu0 %v7861_v20 }
 0x3ee   : > { %5588 = vmatprep.subr.bf16.mxu1 %v7861_v20 }
 0x3f0   : > { %5569 = vmatpush3.bf16.msra.mxu0 %v6082_v1 }
 0x3f1   : > { %5589 = vmatpush3.bf16.msra.mxu1 %v6083_v27  ;;  %5570 = vmatprep.subr.bf16.mxu0 %v7861_v20 }
 0x3f2   : > { %5590 = vmatprep.subr.bf16.mxu1 %v7861_v20 }
 0x3f4   : > { %5571 = vmatpush3.bf16.msra.mxu0 %v6084_v22 }
 0x3f5   : > { %5591 = vmatpush3.bf16.msra.mxu1 %v6085_v57  ;;  %5572 = vmatprep.subr.bf16.mxu0 %v7861_v20 }
 0x3f6   : > { %5592 = vmatprep.subr.bf16.mxu1 %v7861_v20 }
 0x3f8   : > { %5573 = vmatpush3.bf16.msra.mxu0 %v6086_v17 }
 0x3f9   : > { %5593 = vmatpush3.bf16.msra.mxu1 %v6087_v3  ;;  %5574 = vmatprep.subr.bf16.mxu0 %v7861_v20 }
 0x3fa   : > { %5594 = vmatprep.subr.bf16.mxu1 %v7861_v20 }
 0x3fc   : > { %5575 = vmatpush3.bf16.msra.mxu0 %v6088_v63 }
 0x3fd   : > { %5595 = vmatpush3.bf16.msra.mxu1 %v6089_v28  ;;  %5576 = vmatprep.subr.bf16.mxu0 %v7861_v20  ;;  %v7544_v28 = vld [vmem:[#allocation19] ss:$0 sm:$0xff] }
 0x3fe   : > { %5596 = vmatprep.subr.bf16.mxu1 %v7861_v20 }
 0x400   : > { %5577 = vmatpush3.bf16.msra.mxu0 %v6090_v8 }
 0x401   : > { %5597 = vmatpush3.bf16.msra.mxu1 %v6091_v18  ;;  %5602 = vmatprep.subr.bf16.mxu0 %v7861_v20 }
 0x402   : > { %5622 = vmatprep.subr.bf16.mxu1 %v7861_v20 }
 0x475   : > { %v2844_v12 = vpop.f32.mrb[56].mxu0 }
 0x476   : > { %v2959_v51 = vadd.f32 %v2844_v12, %v7228_v36  ;;  %v2949_v35 = vpop.f32.mrb[40].mxu1  ;;  %v5460_v60 = vpop.f32.mrb[57].mxu0 }
 0x477   : > { %v2976_v25 = vadd.f32 %v2949_v35, %v7290_v29  ;;  %v5480_v39 = vpop.f32.mrb[41].mxu1  ;;  %v2847_v32 = vpop.f32.mrb[58].mxu0  ;;  %v7547_v60 = vld [vmem:[#allocation19 + $0x1] ss:$0 sm:$0xff] }
 0x478   : > { %v2960_v14 = vadd.f32 %v2847_v32, %v7235_v40  ;;  %v2952_v62 = vpop.f32.mrb[42].mxu1  ;;  %v5461_v21 = vpop.f32.mrb[59].mxu0  ;;  %v4722_v13 = vmul.f32 -1.442695, %v2959_v51 }
 0x479   : > { %v2977_v42 = vadd.f32 %v2952_v62, %v7300_v41  ;;  %v5481_v2 = vpop.f32.mrb[43].mxu1  ;;  %v4724_v40 = vmul.f32 -1.442695, %v2976_v25 }
 0x47a   : > { %v4723_v41 = vmul.f32 -1.442695, %v2960_v14  ;;  %6204 = vpow2.f32 %v4722_v13 }
 0x47b   : > { %v4725_v16 = vmul.f32 -1.442695, %v2977_v42  ;;  %6206 = vpow2.f32 %v4724_v40 }
 0x47c   : > { %6208 = vpow2.f32 %v4723_v41 }
 0x47d   : > { %6210 = vpow2.f32 %v4725_v16 }
 0x484   : > { %v6205_v49 = vpop.eup %6204 }
 0x485   : > { %v6207_v4 = vpop.eup %6206  ;;  %v2967_v6 = vadd.f32 1.0, %v6205_v49 }
 0x495   : > { %v3088_v19 = vpop.f32.mrb[60].mxu0 }
 0x496   : > { %v3203_v44 = vadd.f32 %v3088_v19, %v7232_v38  ;;  %v3193_v56 = vpop.f32.mrb[44].mxu1  ;;  %v5500_v7 = vpop.f32.mrb[61].mxu0 }
 0x497   : > { %v3220_v36 = vadd.f32 %v3193_v56, %v7293_v34  ;;  %v5520_v30 = vpop.f32.mrb[45].mxu1  ;;  %v3091_v24 = vpop.f32.mrb[62].mxu0 }
 0x498   : > { %v3204_v29 = vadd.f32 %v3091_v24, %v7238_v43  ;;  %v3196_v0 = vpop.f32.mrb[46].mxu1  ;;  %v5501_v55 = vpop.f32.mrb[63].mxu0  ;;  %v4742_v38 = vmul.f32 -1.442695, %v3203_v44 }
 0x499   : > { %v3221_v48 = vadd.f32 %v3196_v0, %v7303_v45  ;;  %v5521_v61 = vpop.f32.mrb[47].mxu1  ;;  %v4744_v26 = vmul.f32 -1.442695, %v3220_v36  ;;  %v6209_v43 = vpop.eup %6208  ;;  %v2984_v45 = vadd.f32 1.0, %v6207_v4 }
 0x49a   : > { %v4743_v34 = vmul.f32 -1.442695, %v3204_v29  ;;  %6212 = vpow2.f32 %v4742_v38  ;;  %v6211_v15 = vpop.eup %6210  ;;  %v2968_v47 = vadd.f32 1.0, %v6209_v43 }
 0x49b   : > { %v4745_v37 = vmul.f32 -1.442695, %v3221_v48  ;;  %6214 = vpow2.f32 %v4744_v26  ;;  %v2985_v59 = vadd.f32 1.0, %v6211_v15 }
 0x49c   : > { %6216 = vpow2.f32 %v4743_v34 }
 0x49d   : > { %6218 = vpow2.f32 %v4745_v37 }
 0x49e   : > { %6220 = vrcp.f32 %v2967_v6 }
 0x49f   : > { %6222 = vrcp.f32 %v2984_v45 }
 0x4a0   : > { %6224 = vrcp.f32 %v2968_v47 }
 0x4a1   : > { %6226 = vrcp.f32 %v2985_v59 }
 0x4a4   : > { %v6213_v5 = vpop.eup %6212 }
 0x4a5   : > { %v6215_v1 = vpop.eup %6214  ;;  %v3211_v57 = vadd.f32 1.0, %v6213_v5 }
 0x4a6   : > { %v6217_v27 = vpop.eup %6216  ;;  %v3228_v17 = vadd.f32 1.0, %v6215_v1 }
 0x4a7   : > { %v6219_v22 = vpop.eup %6218  ;;  %v3212_v63 = vadd.f32 1.0, %v6217_v27  ;;  %6228 = vrcp.f32 %v3211_v57  ;;  %v6092_v27 = vld [vmem:[#allocation13 + $0x4] ss:$12 sps:$4 sm:$0xff]   ;;  %v6095_v57 = vld [vmem:[#allocation16 + $0x1c] ss:$12 sps:$4 sm:$0xff]  }
 0x4a8   : > { %v6221_v51 = vpop.eup %6220  ;;  %v3229_v35 = vadd.f32 1.0, %v6219_v22  ;;  %6230 = vrcp.f32 %v3228_v17  ;;  %v6093_v22 = vld [vmem:[#allocation16 + $0x4] ss:$12 sps:$4 sm:$0xff]   ;;  %v6096_v17 = vld [vmem:[#allocation13 + $0x34] ss:$12 sps:$4 sm:$0xff]  }
 0x4a9   : > { %v6223_v14 = vpop.eup %6222  ;;  %6232 = vrcp.f32 %v3212_v63  ;;  %v6098_v63 = vld [vmem:[#allocation13 + $0x4c] ss:$12 sps:$4 sm:$0xff]  }
 0x4aa   : > { %v6225_v19 = vpop.eup %6224  ;;  %6234 = vrcp.f32 %v3229_v35  ;;  %v6103_v35 = vld [vmem:[#allocation16 + $0x7c] ss:$12 sps:$4 sm:$0xff]  }
 0x4ab   : > { %v6227_v36 = vpop.eup %6226 }
 0x4b1   : > { %v6229_v40 = vpop.eup %6228 }
 0x4b2   : > { %v6231_v48 = vpop.eup %6230  ;;  %v3462_v16 = vsub.f32 1.0, %v6229_v40 }
 0x4b3   : > { %v6233_v61 = vpop.eup %6232 }
 0x4b4   : > { %v6235_v41 = vpop.eup %6234  ;;  %v3463_v34 = vsub.f32 1.0, %v6233_v61  ;;  %v3467_v6 = vmul.f32 %v6233_v61, %v7454_v33 }
 0x4b5   : > { %v3351_v3 = vpop.f32.mrb[64].mxu0  ;;  %v3471_v4 = vsub.f32 1.0, %v6235_v41  ;;  %v3475_v59 = vmul.f32 %v6235_v41, %v7456_v53  ;;  %v6094_v53 = vld [vmem:[#allocation13 + $0x1c] ss:$12 sps:$4 sm:$0xff]  }
 0x4b6   : > { %v3352_v8 = vadd.f32 %v7544_v28, %v3351_v3  ;;  %v3449_v18 = vpop.f32.mrb[48].mxu1  ;;  %v5540_v12 = vpop.f32.mrb[65].mxu0  ;;  %v6097_v3 = vld [vmem:[#allocation16 + $0x34] ss:$12 sps:$4 sm:$0xff]  }
 0x4b7   : > { %v3450_v25 = vadd.f32 %v7547_v60, %v3449_v18  ;;  %v5560_v39 = vpop.f32.mrb[49].mxu1  ;;  %v3354_v32 = vpop.f32.mrb[66].mxu0  ;;  %v6100_v18 = vld [vmem:[#allocation13 + $0x64] ss:$12 sps:$4 sm:$0xff]  }
 0x4b8   : > { %v3358_v62 = vmul.f32 %v6221_v51, %v3352_v8  ;;  %v3355_v21 = vadd.f32 %v7544_v28, %v3354_v32  ;;  %v3452_v42 = vpop.f32.mrb[50].mxu1  ;;  %v5541_v2 = vpop.f32.mrb[67].mxu0  ;;  %v6099_v8 = vld [vmem:[#allocation16 + $0x4c] ss:$12 sps:$4 sm:$0xff]   ;;  %v6101_v12 = vld [vmem:[#allocation16 + $0x64] ss:$12 sps:$4 sm:$0xff]  }
 0x4b9   : > { %v3456_v44 = vmul.f32 %v6223_v14, %v3450_v25  ;;  %v3453_v56 = vadd.f32 %v7547_v60, %v3452_v42  ;;  %v5561_v7 = vpop.f32.mrb[51].mxu1  ;;  %v6102_v51 = vld [vmem:[#allocation13 + $0x7c] ss:$12 sps:$4 sm:$0xff]   ;;  %v6104_v25 = vld [vmem:[#allocation13 + $0x94] ss:$12 sps:$4 sm:$0xff]  }
 0x4ba   : > { %v3360_v30 = vadd.f32 %v3358_v62, %v7210_v23  ;;  %v3359_v24 = vmul.f32 %v6225_v19, %v3355_v21  ;;  %v3470_v23 = vsub.f32 1.0, %v6231_v48  ;;  %v6105_v39 = vld [vmem:[#allocation16 + $0x94] ss:$12 sps:$4 sm:$0xff]   ;;  %v6106_v32 = vld [vmem:[#allocation13 + $0xac] ss:$12 sps:$4 sm:$0xff]  }
 0x4bb   : > { %v3458_v13 = vadd.f32 %v3456_v44, %v7269_v11  ;;  %v3457_v29 = vmul.f32 %v6227_v36, %v3453_v56  ;;  %v3466_v11 = vmul.f32 %v6229_v40, %v7449_v58  ;;  %v6107_v14 = vld [vmem:[#allocation16 + $0xac] ss:$12 sps:$4 sm:$0xff]   ;;  %v6108_v62 = vld [vmem:[#allocation13 + $0x8] ss:$12 sps:$4 sm:$0xff]   ;;  %v6114_v56 = vld [vmem:[#allocation13 + $0x50] ss:$12 sps:$4 sm:$0xff]  }
 0x4bc   : > { %6236 = vtanh.f32 %v3360_v30  ;;  %v3361_v0 = vadd.f32 %v3359_v24, %v7222_v31  ;;  %v6109_v21 = vld [vmem:[#allocation16 + $0x8] ss:$12 sps:$4 sm:$0xff]   ;;  %v6110_v42 = vld [vmem:[#allocation13 + $0x20] ss:$12 sps:$4 sm:$0xff]   ;;  %v6112_v19 = vld [vmem:[#allocation13 + $0x38] ss:$12 sps:$4 sm:$0xff]  }
 0x4bd   : > { %6238 = vtanh.f32 %v3458_v13  ;;  %v3459_v55 = vadd.f32 %v3457_v29, %v7280_v9  ;;  %v3474_v9 = vmul.f32 %v6231_v48, %v7452_v54  ;;  %v6111_v2 = vld [vmem:[#allocation16 + $0x20] ss:$12 sps:$4 sm:$0xff]   ;;  %v6113_v44 = vld [vmem:[#allocation16 + $0x38] ss:$12 sps:$4 sm:$0xff]   ;;  %v6115_v7 = vld [vmem:[#allocation16 + $0x50] ss:$12 sps:$4 sm:$0xff]  }
 0x4be   : > { %6240 = vtanh.f32 %v3361_v0  ;;  %v6116_v36 = vld [vmem:[#allocation13 + $0x68] ss:$12 sps:$4 sm:$0xff]   ;;  %v6118_v24 = vld [vmem:[#allocation13 + $0x80] ss:$12 sps:$4 sm:$0xff]   ;;  %v6120_v29 = vld [vmem:[#allocation13 + $0x98] ss:$12 sps:$4 sm:$0xff]  }
 0x4bf   : > { %6242 = vtanh.f32 %v3459_v55  ;;  %v6117_v30 = vld [vmem:[#allocation16 + $0x68] ss:$12 sps:$4 sm:$0xff]   ;;  %v6119_v13 = vld [vmem:[#allocation16 + $0x80] ss:$12 sps:$4 sm:$0xff]   ;;  %v6121_v0 = vld [vmem:[#allocation16 + $0x98] ss:$12 sps:$4 sm:$0xff]  }
 0x4c0   : > { %v6122_v55 = vld [vmem:[#allocation13 + $0xb0] ss:$12 sps:$4 sm:$0xff]  }
 0x4c1   : > { %v6123_v40 = vld [vmem:[#allocation16 + $0xb0] ss:$12 sps:$4 sm:$0xff]  }
 0x4c6   : > { %v6237_v38 = vpop.eup %6236 }
 0x4c7   : > { %v6239_v26 = vpop.eup %6238  ;;  %v3464_v49 = vmul.f32 %v6237_v38, %v3462_v16 }
 0x4c8   : > { %v6241_v37 = vpop.eup %6240  ;;  %v3472_v31 = vmul.f32 %v6239_v26, %v3470_v23 }
 0x4c9   : > { %v6243_v43 = vpop.eup %6242  ;;  %v3465_v15 = vmul.f32 %v6241_v37, %v3463_v34  ;;  %v7559_v45 = vadd.f32 %v3466_v11, %v3464_v49 }
 0x4ca   : > { %v3473_v47 = vmul.f32 %v6243_v43, %v3471_v4  ;;  %v7562_v5 = vadd.f32 %v3474_v9, %v3472_v31  ;;  %v7862_v31 = vld [vmem:[#allocation44_spill] sm:$0xff] }
 0x4cb   : > { %v7564_v1 = vadd.f32 %v3467_v6, %v3465_v15  ;;  %v7863_v6 = vld [vmem:[#allocation46_spill] sm:$0xff] }
 0x4cc   : > { %v7566_v58 = vadd.f32 %v3475_v59, %v3473_v47 }
 0x4cd   : > { %v7570_v54 = vpack.c.bf16 %v7564_v1, %v7559_v45 }
 0x4ce   : > { %v7574_v33 = vpack.c.bf16 %v7566_v58, %v7562_v5 }
 0x4cf   : > { %4911 = vst [vmem:[%s7052_s25 + $0x10] sm:$0xff] %v7570_v54   ;;  %5579 = vmatmul.mubr.bf16.vlgmr.msra.gmra.mrb[68].mxu0 %v7570_v54 }
 0x4d0   : > { %4912 = vst [vmem:[%s7054_s28 + $0x8] sm:$0xff] %v7574_v33   ;;  %5599 = vmatmul.mubr.bf16.vlgmr.msra.gmra.mrb[52].mxu1 %v7574_v33  ;;  %5603 = vmatpush3.bf16.msra.mxu0 %v6092_v27 }
 0x4d1   : > { %5623 = vmatpush3.bf16.msra.mxu1 %v6093_v22  ;;  %5604 = vmatprep.subr.bf16.mxu0 %v7861_v20 }
 0x4d2   : > { %5624 = vmatprep.subr.bf16.mxu1 %v7861_v20  ;;  %5618 = vmatprep.mubr.msk.bf16.mxu0 %vm6686_vm0, %v7861_v20 }
 0x4d3   : > { %5638 = vmatprep.mubr.msk.bf16.mxu1 %vm6686_vm0, %v7861_v20 }
 0x4d4   : > { %5605 = vmatpush3.bf16.msra.mxu0 %v6094_v53  ;;  %v7865_v53 = vld [vmem:[#allocation48_spill] sm:$0xff] }
 0x4d5   : > { %5625 = vmatpush3.bf16.msra.mxu1 %v6095_v57  ;;  %5606 = vmatprep.subr.bf16.mxu0 %v7861_v20 }
 0x4d6   : > { %5626 = vmatprep.subr.bf16.mxu1 %v7861_v20 }
 0x4d8   : > { %5607 = vmatpush3.bf16.msra.mxu0 %v6096_v17 }
 0x4d9   : > { %5627 = vmatpush3.bf16.msra.mxu1 %v6097_v3  ;;  %5608 = vmatprep.subr.bf16.mxu0 %v7861_v20 }
 0x4da   : > { %5628 = vmatprep.subr.bf16.mxu1 %v7861_v20 }
 0x4dc   : > { %5609 = vmatpush3.bf16.msra.mxu0 %v6098_v63 }
 0x4dd   : > { %5629 = vmatpush3.bf16.msra.mxu1 %v6099_v8  ;;  %5610 = vmatprep.subr.bf16.mxu0 %v7861_v20 }
 0x4de   : > { %5630 = vmatprep.subr.bf16.mxu1 %v7861_v20 }
 0x4e0   : > { %5611 = vmatpush3.bf16.msra.mxu0 %v6100_v18 }
 0x4e1   : > { %5631 = vmatpush3.bf16.msra.mxu1 %v6101_v12  ;;  %5612 = vmatprep.subr.bf16.mxu0 %v7861_v20 }
 0x4e2   : > { %5632 = vmatprep.subr.bf16.mxu1 %v7861_v20 }
 0x4e4   : > { %5613 = vmatpush3.bf16.msra.mxu0 %v6102_v51 }
 0x4e5   : > { %5633 = vmatpush3.bf16.msra.mxu1 %v6103_v35  ;;  %5614 = vmatprep.subr.bf16.mxu0 %v7861_v20 }
 0x4e6   : > { %5634 = vmatprep.subr.bf16.mxu1 %v7861_v20 }
 0x4e8   : > { %5615 = vmatpush3.bf16.msra.mxu0 %v6104_v25 }
 0x4e9   : > { %5635 = vmatpush3.bf16.msra.mxu1 %v6105_v39  ;;  %5616 = vmatprep.subr.bf16.mxu0 %v7861_v20 }
 0x4ea   : > { %5636 = vmatprep.subr.bf16.mxu1 %v7861_v20 }
 0x4ec   : > { %5617 = vmatpush3.bf16.msra.mxu0 %v6106_v32 }
 0x4ed   : > { %5637 = vmatpush3.bf16.msra.mxu1 %v6107_v14  ;;  %5642 = vmatprep.subr.bf16.mxu0 %v7861_v20 }
 0x4ee   : > { %5662 = vmatprep.subr.bf16.mxu1 %v7861_v20 }
 0x4ef   : > { %5619 = vmatmul.mubr.bf16.vlgmr.msra.gmra.mrb[72].mxu0 %v7570_v54 }
 0x4f0   : > { %5639 = vmatmul.mubr.bf16.vlgmr.msra.gmra.mrb[56].mxu1 %v7574_v33  ;;  %5643 = vmatpush3.bf16.msra.mxu0 %v6108_v62 }
 0x4f1   : > { %5663 = vmatpush3.bf16.msra.mxu1 %v6109_v21  ;;  %5644 = vmatprep.subr.bf16.mxu0 %v7861_v20 }
 0x4f2   : > { %5664 = vmatprep.subr.bf16.mxu1 %v7861_v20  ;;  %5658 = vmatprep.mubr.msk.bf16.mxu0 %vm6686_vm0, %v7861_v20 }
 0x4f3   : > { %5678 = vmatprep.mubr.msk.bf16.mxu1 %vm6686_vm0, %v7861_v20 }
 0x4f4   : > { %5645 = vmatpush3.bf16.msra.mxu0 %v6110_v42 }
 0x4f5   : > { %5665 = vmatpush3.bf16.msra.mxu1 %v6111_v2  ;;  %5646 = vmatprep.subr.bf16.mxu0 %v7861_v20 }
 0x4f6   : > { %5666 = vmatprep.subr.bf16.mxu1 %v7861_v20 }
 0x4f8   : > { %5647 = vmatpush3.bf16.msra.mxu0 %v6112_v19 }
 0x4f9   : > { %5667 = vmatpush3.bf16.msra.mxu1 %v6113_v44  ;;  %5648 = vmatprep.subr.bf16.mxu0 %v7861_v20 }
 0x4fa   : > { %5668 = vmatprep.subr.bf16.mxu1 %v7861_v20 }
 0x4fc   : > { %5649 = vmatpush3.bf16.msra.mxu0 %v6114_v56 }
 0x4fd   : > { %5669 = vmatpush3.bf16.msra.mxu1 %v6115_v7  ;;  %5650 = vmatprep.subr.bf16.mxu0 %v7861_v20 }
 0x4fe   : > { %5670 = vmatprep.subr.bf16.mxu1 %v7861_v20 }
 0x500   : > { %5651 = vmatpush3.bf16.msra.mxu0 %v6116_v36 }
 0x501   : > { %5671 = vmatpush3.bf16.msra.mxu1 %v6117_v30  ;;  %5652 = vmatprep.subr.bf16.mxu0 %v7861_v20 }
 0x502   : > { %5672 = vmatprep.subr.bf16.mxu1 %v7861_v20 }
 0x504   : > { %5653 = vmatpush3.bf16.msra.mxu0 %v6118_v24 }
 0x505   : > { %5673 = vmatpush3.bf16.msra.mxu1 %v6119_v13  ;;  %5654 = vmatprep.subr.bf16.mxu0 %v7861_v20 }
 0x506   : > { %5674 = vmatprep.subr.bf16.mxu1 %v7861_v20 }
 0x508   : > { %5655 = vmatpush3.bf16.msra.mxu0 %v6120_v29 }
 0x509   : > { %5675 = vmatpush3.bf16.msra.mxu1 %v6121_v0  ;;  %5656 = vmatprep.subr.bf16.mxu0 %v7861_v20 }
 0x50a   : > { %5676 = vmatprep.subr.bf16.mxu1 %v7861_v20 }
 0x50c   : > { %5657 = vmatpush3.bf16.msra.mxu0 %v6122_v55 }
 0x50d   : > { %5677 = vmatpush3.bf16.msra.mxu1 %v6123_v40 }
 0x50f   : > { %5659 = vmatmul.mubr.bf16.vlgmr.msra.gmra.mrb[76].mxu0 %v7570_v54 }
 0x510   : > { %5679 = vmatmul.mubr.bf16.vlgmr.msra.gmra.mrb[60].mxu1 %v7574_v33 }
 0x5a2   : > { %v3598_v48 = vpop.f32.mrb[68].mxu0 }
 0x5a3   : > { %v3713_v61 = vadd.f32 %v3598_v48, %v7244_v46  ;;  %v3703_v41 = vpop.f32.mrb[52].mxu1  ;;  %v5580_v16 = vpop.f32.mrb[69].mxu0 }
 0x5a4   : > { %v3729_v38 = vadd.f32 %v3703_v41, %v7266_v10  ;;  %v5600_v23 = vpop.f32.mrb[53].mxu1  ;;  %v3601_v26 = vpop.f32.mrb[70].mxu0  ;;  %v7864_v10 = vld [vmem:[#allocation45_spill] sm:$0xff] }
 0x5a5   : > { %v3714_v34 = vadd.f32 %v3601_v26, %v7251_v52  ;;  %v3706_v49 = vpop.f32.mrb[54].mxu1  ;;  %v5581_v11 = vpop.f32.mrb[71].mxu0  ;;  %v4786_v27 = vmul.f32 -1.442695, %v3713_v61 }
 0x5a6   : > { %v3730_v20 = vadd.f32 %v3706_v49, %v7277_v50  ;;  %v5601_v37 = vpop.f32.mrb[55].mxu1  ;;  %v4788_v52 = vmul.f32 -1.442695, %v3729_v38 }
 0x5a7   : > { %v4787_v50 = vmul.f32 -1.442695, %v3714_v34  ;;  %6244 = vpow2.f32 %v4786_v27 }
 0x5a8   : > { %v4789_v3 = vmul.f32 -1.442695, %v3730_v20  ;;  %6246 = vpow2.f32 %v4788_v52 }
 0x5a9   : > { %6248 = vpow2.f32 %v4787_v50 }
 0x5aa   : > { %6250 = vpow2.f32 %v4789_v3 }
 0x5b1   : > { %v6245_v12 = vpop.eup %6244 }
 0x5b2   : > { %v6247_v35 = vpop.eup %6246  ;;  %v3721_v32 = vadd.f32 1.0, %v6245_v12 }
 0x5b3   : > { %v6249_v25 = vpop.eup %6248  ;;  %v3737_v14 = vadd.f32 1.0, %v6247_v35 }
 0x5b4   : > { %v6251_v39 = vpop.eup %6250  ;;  %v3722_v62 = vadd.f32 1.0, %v6249_v25 }
 0x5b5   : > { %v3738_v21 = vadd.f32 1.0, %v6251_v39 }
 0x5c2   : > { %v3841_v4 = vpop.f32.mrb[72].mxu0 }
 0x5c3   : > { %v3956_v9 = vadd.f32 %v3841_v4, %v7862_v31  ;;  %v3946_v43 = vpop.f32.mrb[56].mxu1  ;;  %v5620_v15 = vpop.f32.mrb[73].mxu0  ;;  %v7866_v4 = vld [vmem:[#allocation42_spill] sm:$0xff] }
 0x5c4   : > { %v3972_v46 = vadd.f32 %v3946_v43, %v7863_v6  ;;  %v5640_v47 = vpop.f32.mrb[57].mxu1  ;;  %v3844_v59 = vpop.f32.mrb[74].mxu0  ;;  %v7867_v43 = vld [vmem:[#allocation47_spill] sm:$0xff] }
 0x5c5   : > { %v3957_v54 = vadd.f32 %v3844_v59, %v7864_v10  ;;  %v3949_v22 = vpop.f32.mrb[58].mxu1  ;;  %v5621_v33 = vpop.f32.mrb[75].mxu0  ;;  %v4806_v63 = vmul.f32 -1.442695, %v3956_v9  ;;  %v7869_v47 = vld [vmem:[#allocation49_spill] sm:$0xff] }
 0x5c6   : > { %v3973_v57 = vadd.f32 %v3949_v22, %v7865_v53  ;;  %v5641_v17 = vpop.f32.mrb[59].mxu1  ;;  %v4808_v8 = vmul.f32 -1.442695, %v3972_v46 }
 0x5c7   : > { %v4807_v18 = vmul.f32 -1.442695, %v3957_v54  ;;  %6252 = vpow2.f32 %v4806_v63 }
 0x5c8   : > { %v4809_v51 = vmul.f32 -1.442695, %v3973_v57  ;;  %6254 = vpow2.f32 %v4808_v8 }
 0x5c9   : > { %6256 = vpow2.f32 %v4807_v18 }
 0x5ca   : > { %6258 = vpow2.f32 %v4809_v51 }
 0x5cb   : > { %6260 = vrcp.f32 %v3721_v32 }
 0x5cc   : > { %6262 = vrcp.f32 %v3737_v14 }
 0x5cd   : > { %6264 = vrcp.f32 %v3722_v62 }
 0x5ce   : > { %6266 = vrcp.f32 %v3738_v21 }
 0x5d1   : > { %v6253_v42 = vpop.eup %6252 }
 0x5d2   : > { %v6255_v2 = vpop.eup %6254  ;;  %v3964_v56 = vadd.f32 1.0, %v6253_v42 }
 0x5d3   : > { %v6257_v19 = vpop.eup %6256  ;;  %v3980_v7 = vadd.f32 1.0, %v6255_v2 }
 0x5d4   : > { %v6259_v44 = vpop.eup %6258  ;;  %v3965_v30 = vadd.f32 1.0, %v6257_v19  ;;  %6268 = vrcp.f32 %v3964_v56 }
 0x5d5   : > { %v6261_v0 = vpop.eup %6260  ;;  %v3981_v55 = vadd.f32 1.0, %v6259_v44  ;;  %6270 = vrcp.f32 %v3980_v7 }
 0x5d6   : > { %v6263_v41 = vpop.eup %6262  ;;  %6272 = vrcp.f32 %v3965_v30 }
 0x5d7   : > { %v6265_v34 = vpop.eup %6264  ;;  %6274 = vrcp.f32 %v3981_v55 }
 0x5d8   : > { %v6267_v37 = vpop.eup %6266 }
 0x5e2   : > { %v4103_v36 = vpop.f32.mrb[76].mxu0 }
 0x5e3   : > { %v4104_v24 = vadd.f32 %v7544_v28, %v4103_v36  ;;  %v4200_v13 = vpop.f32.mrb[60].mxu1  ;;  %v5660_v29 = vpop.f32.mrb[77].mxu0 }
 0x5e4   : > { %v4201_v40 = vadd.f32 %v7547_v60, %v4200_v13  ;;  %v5680_v48 = vpop.f32.mrb[61].mxu1  ;;  %v4106_v61 = vpop.f32.mrb[78].mxu0 }
 0x5e5   : > { %v4110_v16 = vmul.f32 %v6261_v0, %v4104_v24  ;;  %v4107_v38 = vadd.f32 %v7544_v28, %v4106_v61  ;;  %v4203_v23 = vpop.f32.mrb[62].mxu1  ;;  %v5661_v26 = vpop.f32.mrb[79].mxu0  ;;  %v7868_v28 = vld [vmem:[#allocation43_spill] sm:$0xff] }
 0x5e6   : > { %v4207_v49 = vmul.f32 %v6263_v41, %v4201_v40  ;;  %v4204_v11 = vadd.f32 %v7547_v60, %v4203_v23  ;;  %v5681_v20 = vpop.f32.mrb[63].mxu1  ;;  %v6269_v60 = vpop.eup %6268 }
 0x5e7   : > { %v4112_v31 = vadd.f32 %v4110_v16, %v7866_v4  ;;  %v4111_v9 = vmul.f32 %v6265_v34, %v4107_v38  ;;  %v6271_v27 = vpop.eup %6270  ;;  %v4213_v22 = vsub.f32 1.0, %v6269_v60  ;;  %v4217_v57 = vmul.f32 %v6269_v60, %v7559_v45 }
 0x5e8   : > { %v4209_v15 = vadd.f32 %v4207_v49, %v7867_v43  ;;  %v4208_v6 = vmul.f32 %v6267_v37, %v4204_v11  ;;  %v6273_v10 = vpop.eup %6272  ;;  %v4221_v52 = vsub.f32 1.0, %v6271_v27  ;;  %v4225_v63 = vmul.f32 %v6271_v27, %v7562_v5 }
 0x5e9   : > { %6276 = vtanh.f32 %v4112_v31  ;;  %v4113_v46 = vadd.f32 %v4111_v9, %v7868_v28  ;;  %v6275_v54 = vpop.eup %6274  ;;  %v4214_v17 = vsub.f32 1.0, %v6273_v10  ;;  %v4218_v51 = vmul.f32 %v6273_v10, %v7564_v1 }
 0x5ea   : > { %6278 = vtanh.f32 %v4209_v15  ;;  %v4210_v59 = vadd.f32 %v4208_v6, %v7869_v47  ;;  %v4222_v8 = vsub.f32 1.0, %v6275_v54  ;;  %v4226_v39 = vmul.f32 %v6275_v54, %v7566_v58 }
 0x5eb   : > { %6280 = vtanh.f32 %v4113_v46 }
 0x5ec   : > { %6282 = vtanh.f32 %v4210_v59 }
 0x5f3   : > { %v6277_v33 = vpop.eup %6276 }
 0x5f4   : > { %v6279_v53 = vpop.eup %6278  ;;  %v4215_v50 = vmul.f32 %v6277_v33, %v4213_v22 }
 0x5f5   : > { %v6281_v3 = vpop.eup %6280  ;;  %v4223_v18 = vmul.f32 %v6279_v53, %v4221_v52 }
 0x5f6   : > { %v6283_v12 = vpop.eup %6282  ;;  %v4219_v35 = vadd.f32 %v4217_v57, %v4215_v50  ;;  %v4216_v25 = vmul.f32 %v6281_v3, %v4214_v17 }
 0x5f7   : > { %v4227_v32 = vadd.f32 %v4225_v63, %v4223_v18  ;;  %v4224_v45 = vmul.f32 %v6283_v12, %v4222_v8 }
 0x5f8   : > { %4250 = vst [vmem:[#allocation23] sm:$0xff] %v4219_v35  ;;  %v4220_v14 = vadd.f32 %v4218_v51, %v4216_v25 }
 0x5f9   : > { %4252 = vst [vmem:[#allocation23 + $0x10] sm:$0xff] %v4227_v32  ;;  %v4228_v5 = vadd.f32 %v4226_v39, %v4224_v45 }
 0x5fa   : > { %v4901_v1 = vpack.c.bf16 %v4220_v14, %v4219_v35  ;;  %4251 = vst [vmem:[#allocation23 + $0x8] sm:$0xff] %v4220_v14 }
 0x5fb   : > { %v4906_v58 = vpack.c.bf16 %v4228_v5, %v4227_v32  ;;  %4253 = vst [vmem:[#allocation23 + $0x18] sm:$0xff] %v4228_v5 }
 0x5fc   : > { %4913 = vst [vmem:[%s7052_s25 + $0x18] sm:$0xff] %v4901_v1  }
 0x5fd   : > { %4907 = vst [vmem:[%s7054_s28] sm:$0xff] %v4906_v58  }
 0x5fe   : > { %6499 = shalt.err (!%p6496_p11)
}
 0x5ff   : > { %s6500_s16 = scalar_lea.hbm %s7658_s20, 512  ;;  %s6504_s12 = scalar_lea.hbm %s7795_s7, 1024 }
 0x600   : > { %p6501_p13 = scmp.ne.s32.totalorder %s7658_s20, %s6500_s16  ;;  %p6505_p12 = scmp.lt.u32.totalorder %s7658_s20, %s7795_s7 }
 0x601   : > { %p6506_p0 = scmp.lt.u32.totalorder %s6504_s12, %s6500_s16  ;;  %p6508_p5 = scmp.lt.u32.totalorder %s6500_s16, %s7658_s20 }
 0x602   : > { %p6502_p1 = pnand %p6501_p13, %p7870_p10 }
 0x603   : > { %p6507_p6 = por %p6506_p0, %p6505_p12 }
 0x604   : > { %p6503_p8 = pneg %p6502_p1 }
 0x605   : > { %p6509_p2 = por %p6508_p5, %p6507_p6 }
 0x607   : > { %p6510_p7 = pnand %p6509_p2, %p6503_p8 }
 0x609   : > { %6513 = shalt.err (!%p6510_p7)
}
 0x60a   : > { %s6689_s19 = smov 64   ;;  %s7871_s24 = sld [smem:[#allocation39_spill]] }
 0x60b   : > { %s6690_s30 = smov 4   ;;  %s7699_s9 = scalar_lea.sflag [#allocation22], %s4259_s17 }
 0x60c   : > { %5710 = dma.vmem_to_hbm [thread:$0]  (%p7870_p10), %s7660_s29, 512, %s7658_s20, %s7670_s14, %s6689_s19, %s6689_s19, %s6690_s30  }
 0x60d   : > { %s6514_s27 = scalar_lea.vmem %s7662_s23, 512  ;;  %s6691_s16 = smov [#allocation21]  }
 0x60e   : > { %p6515_p4 = scmp.ne.s32.totalorder %s7662_s23, %s6514_s27  ;;  %s6518_s25 = sshll.u32 %s6691_s16, 4  ;;  %s6519_s25 = int_to_ptr.vmem [resolvable:$false] %s6518_s25 }
 0x60f   : > { %s6520_s28 = scalar_lea.vmem %s6519_s25, 1024  ;;  %p6521_p13 = scmp.lt.s32.totalorder %s7662_s23, %s6519_s25 }
 0x610   : > { %p7872_p3 = scmp.ne.s32.totalorder %s7871_s24, 0  ;;  %p6522_p1 = scmp.lt.s32.totalorder %s6520_s28, %s6514_s27 }
 0x612   : > { %p6516_p9 = pnand %p6515_p4, %p7872_p3  ;;  %p6523_p8 = por %p6522_p1, %p6521_p13 }
 0x614   : > { %p6517_p11 = pneg %p6516_p9 }
 0x616   : > { %p6524_p12 = pnand %p6523_p8, %p6517_p11 }
 0x618   : > { %6527 = shalt.err (!%p6524_p12)
}
 0x619   : > { %s6528_s22 = scalar_lea.hbm %s7652_s21, 512  ;;  %s6532_s20 = scalar_lea.hbm %s7796_s8, 1024 }
 0x61a   : > { %p6529_p10 = scmp.ne.s32.totalorder %s7652_s21, %s6528_s22  ;;  %p6533_p5 = scmp.lt.u32.totalorder %s7652_s21, %s7796_s8 }
 0x61b   : > { %p6534_p2 = scmp.lt.u32.totalorder %s6532_s20, %s6528_s22  ;;  %p6536_p4 = scmp.lt.u32.totalorder %s6528_s22, %s7652_s21 }
 0x61c   : > { %p6530_p0 = pnand %p6529_p10, %p7872_p3 }
 0x61d   : > { %p6535_p7 = por %p6534_p2, %p6533_p5 }
 0x61e   : > { %p6531_p6 = pneg %p6530_p0 }
 0x61f   : > { %p6537_p9 = por %p6536_p4, %p6535_p7 }
 0x621   : > { %p6538_p11 = pnand %p6537_p9, %p6531_p6 }
 0x623   : > { %6541 = shalt.err (!%p6538_p11)
}
 0x624   : > { %5711 = dma.vmem_to_hbm [thread:$0]  (%p7872_p3), %s7662_s23, 512, %s7652_s21, %s7699_s9, %s6689_s19, %s6689_s19, %s6690_s30  }
 0x625   : > { %s6542_s26 = scalar_lea.vmem %s7665_s11, 512  ;;  %p7873_p1 = scmp.eq.s32.totalorder %s6790_s18, 1 }
 0x626   : > { %p6543_p13 = scmp.ne.s32.totalorder %s7665_s11, %s6542_s26  ;;  %p6549_p10 = scmp.lt.s32.totalorder %s7665_s11, %s7665_s11 }
 0x627   : > { %p6550_p0 = scmp.lt.s32.totalorder %s6542_s26, %s6542_s26 }
 0x628   : > { %p6544_p8 = pnand %p6543_p13, %p7873_p1 }
 0x629   : > { %p6551_p6 = por %p6550_p0, %p6549_p10 }
 0x62a   : > { %p6545_p12 = pneg %p6544_p8 }
 0x62c   : > { %p6552_p5 = pnand %p6551_p6, %p6545_p12 }
 0x62e   : > { %6555 = shalt.err (!%p6552_p5)
}
 0x62f   : > { %s7874_s27 = sld [smem:[#allocation50_spill]]  ;;  %p7875_p2 = pmov %p7873_p1 }
 0x635   : > { %s6556_s16 = scalar_lea.hbm %s7874_s27, 512 }
 0x636   : > { %p6557_p3 = scmp.ne.s32.totalorder %s7874_s27, %s6556_s16  ;;  %p6562_p9 = scmp.lt.u32.totalorder %s6556_s16, %s7874_s27 }
 0x638   : > { %p6558_p7 = pnand %p6557_p3, %p7875_p2 }
 0x63a   : > { %p6559_p4 = pneg %p6558_p7 }
 0x63c   : > { %p6564_p11 = pnand %p6562_p9, %p6559_p4 }
 0x63e   : > { %6567 = shalt.err (!%p6564_p11)
}
 0x63f   : > { %s6692_s19 = smov 128   ;;  %s6693_s30 = smov 8  }
 0x640   : > { %p7876_p13 = pmov %p7873_p1 }
 0x642   : > { %5713 = dma.vmem_to_hbm [thread:$0]  (%p7876_p13), %s7665_s11, 512, %s7874_s27, [#allocation22], %s6692_s19, %s6692_s19, %s6693_s30  }
 0x643   : > { %6621 = dma.done.wait (%p7873_p1), [#allocation22], 512   ;;  %p7877_p8 = pmov %p7873_p1 }
 0x645   : > { %6623 = vsyncadd (%p7877_p8), [#allocation22], 4294966784 }
 0x646 PF: > { %s7878_s17 = sld [smem:[#allocation35_spill]]  ;;  %s7879_s29 = sld [smem:[#allocation32_spill]] }
 0x647   : > { %s7880_s20 = sld [smem:[#allocation37_spill]] }
 0x64c   : > { %p5763_p12 = scmp.ge.s32.totalorder %s7878_s17, 2  ;;  %s4331_s14 = sand.u32 1, %s7879_s29  }
 0x64d   : > { %p7881_p10 = scmp.ne.s32.totalorder %s7880_s20, 0  ;;  %s4332_s12 = scalar_lea.sflag [#allocation10], %s4331_s14 }
 0x64f   : > { %p5741_p0 = pnand %p5763_p12, %p7881_p10 }
 0x651   : > { %6625 = dma.done.wait (!%p5741_p0), %s4332_s12, 512  }
 0x652   : > { %6627 = vsyncadd (!%p5741_p0), %s4332_s12, 4294966784  ;;  %s7882_s26 = sadd.s32 4294967294, %s7878_s17   ;;  %s7883_s15 = sld [smem:[#allocation41_spill]] }
 0x653   : > { %s4340_s11 = sand.u32 1, %s7882_s26  }
 0x654   : > { %s4341_s24 = scalar_lea.sflag [#allocation22], %s4340_s11 }
 0x658   : > { %p7884_p6 = scmp.ne.s32.totalorder %s7883_s15, 0 }
 0x65a   : > { %p5744_p5 = pnand %p5763_p12, %p7884_p6 }
 0x65c   : > { %6629 = dma.done.wait (!%p5744_p5), %s4341_s24, 512  }
 0x65d   : > { %6631 = vsyncadd (!%p5744_p5), %s4341_s24, 4294966784  ;;  %s30_s17 = sadd.s32 1, %s7878_s17   ;;  %s7885_s18 = sld [smem:[#allocation31_spill]] }
 0x65e   : > { %p27_p3 = scmp.ge.s32.totalorder %s30_s17, 4   ;;  %s7886_s11 = sld [smem:[#allocation40_spill]] }
 0x65f   : > { %s7887_s16 = sld [smem:[#allocation33_spill]]  ;;  %s7888_s14 = sld [smem:[#allocation38_spill]] }
 0x660   : > { %s7889_s15 = sld [smem:[#allocation34_spill]]  ;;  %s7890_s25 = sld [smem:[#allocation36_spill]] }
 0x661   : > { %s7891_s30 = smov %s6638_s10  ;;  %s7893_s12 = smov %s6650_s13 }
 0x662   :  { %29 = sbr.rel (!%p27_p3) target bundleno = 14 (0xe), region = 169 }
 0x663   : > { %s7892_s10 = smov %s7885_s18 }
 0x665   : > { %s7894_s13 = smov %s7887_s16 }
 0x666   : > { %s7895_s16 = smov %s7890_s25 }
 0x669   :  { %4346 = vsyncpa [#allocation9], 1 }
 0x66a   :  { %4348 = vsyncpa [#allocation9 + $0x1], 1 }
 0x66b   :  { %4349 = vsyncpa [#allocation12], 1 }
 0x66c   :  { %4350 = vsyncpa [#allocation15], 1 }
 0x66d   :  { %4351 = vsyncpa [#allocation18], 1 }
 0x66e   :  { %4352 = vsyncpa [#allocation10], 1 }
 0x66f   :  { %4354 = vsyncpa [#allocation10 + $0x1], 1 }
 0x670   :  { %4355 = vsyncpa [#allocation22], 1 }
 0x671   :  { %4357 = vsyncpa [#allocation22 + $0x1], 1 }

// kernel: encoder_forward.3
= control target key start
LH: loop header
LB: loop body
LE: loop exit
PB: predicated region body
PF: predicated region fallthrough
CT: control target
= control target key end

     0   :  { %s8901_s0 = inlined_call_operand.hbm [shape: bf16[8,16,128], index: 0, kind: input, shape index: {}]   ;;  %s8902_s1 = inlined_call_operand.hbm [shape: bf16[8,16,128], index: 1, kind: input, shape index: {}]   ;;  %s8903_s2 = inlined_call_operand.hbm [shape: bf16[256,384], index: 2, kind: input, shape index: {}]   ;;  %s8904_s3 = inlined_call_operand.hbm [shape: bf16[128,384], index: 3, kind: input, shape index: {}]   ;;  %s8905_s4 = inlined_call_operand.hbm [shape: bf16[256,384], index: 4, kind: input, shape index: {}]   ;;  %s8906_s5 = inlined_call_operand.hbm [shape: bf16[128,384], index: 5, kind: input, shape index: {}]   ;;  %s8907_s6 = inlined_call_operand.hbm [shape: f32[2,1,384], index: 6, kind: input, shape index: {}]   ;;  %s8908_s7 = inlined_call_operand.hbm [shape: f32[2,1,128], index: 7, kind: input, shape index: {}]   ;;  %s8909_s8 = inlined_call_operand.hbm [shape: bf16[8,16,128], index: 8, kind: output, shape index: {0}]   ;;  %s8910_s9 = inlined_call_operand.hbm [shape: bf16[8,16,128], index: 9, kind: output, shape index: {1}]   ;;  %s8911_s10 = inlined_call_operand.hbm [shape: f32[2,16,128], index: 10, kind: output, shape index: {2}]  }
   0x1   :  { %8937 = sst [smem:[#allocation54_spill]] %s8909_s8 }
   0x2   :  { %8938 = sst [smem:[#allocation55_spill]] %s8911_s10 }
   0x3   :  { %16 = vsyncpa [#allocation9], 0 }
   0x4   :  { %17 = vsyncpa [#allocation12], 0 }
   0x5   :  { %18 = vsyncpa [#allocation15], 0 }
   0x6   :  { %19 = vsyncpa [#allocation18], 0 }
   0x7   :  { %20 = vsyncpa [#allocation21], 0 }
   0x8   :  { %21 = vsyncpa [#allocation10], 0 }
   0x9   :  { %23 = vsyncpa [#allocation10 + $0x1], 0 }
   0xa   :  { %24 = vsyncpa [#allocation24], 0 }
   0xb   :  { %26 = vsyncpa [#allocation24 + $0x1], 0  ;;  %s7825_s13 = smov 0   ;;  %s7827_s14 = smov 0  }
   0xc   :  { %s7829_s15 = smov 0   ;;  %s7831_s16 = smov 0  }
   0xd   :  { %s7833_s17 = smov 0   ;;  %s7835_s18 = smov 0  }
   0xe   :  { %s7837_s19 = smov 0   ;;  %s7839_s20 = smov 0  }
   0xf   :  { %s7841_s21 = smov 0  }
  0x10 LB: > { %8939 = sst [smem:[#allocation34_spill]] %s7717_s15  ;;  %s7871_s22 = sadd.s32 4294967295, %s7741_s21   ;;  %s7741_s21 = sphi %s7841_s21, %s32_s21   ;;  %s7737_s20 = sphi %s7839_s20, %s9012_s20   ;;  %s7733_s19 = sphi %s7837_s19, %s9011_s19   ;;  %s7729_s18 = sphi %s7835_s18, %s9010_s18   ;;  %s7725_s17 = sphi %s7833_s17, %s9016_s17   ;;  %s7721_s16 = sphi %s7831_s16, %s9015_s16   ;;  %s7717_s15 = sphi %s7829_s15, %s9008_s15   ;;  %s7713_s14 = sphi %s7827_s14, %s9014_s14   ;;  %s7709_s13 = sphi %s7825_s13, %s9013_s13  }
  0x11   : > { %8940 = sst [smem:[#allocation35_spill]] %s7721_s16  ;;  %s8913_s23 = sadd.s32 4294967294, %s7741_s21  }
  0x12   : > { %8941 = sst [smem:[#allocation36_spill]] %s7729_s18  ;;  %s41_s24 = sadd.s32 1, %s7737_s20 }
  0x13   : > { %8942 = sst [smem:[#allocation37_spill]] %s7737_s20  ;;  %s231_s25 = sadd.s32 1, %s7729_s18 }
  0x14   : > { %8943 = sst [smem:[#allocation38_spill]] %s7741_s21  ;;  %p42_p0 = scmp.ge.s32.totalorder %s41_s24, 2 }
  0x15   : > { %p241_p1 = scmp.ne.s32.totalorder %s7729_s18, %s7725_s17  ;;  %p8920_p2 = scmp.eq.s32.totalorder %s7871_s22, 1 }
  0x16   : > { %p247_p3 = scmp.ne.s32.totalorder %s7725_s17, %s7721_s16  ;;  %s9018_s24 = smov (%p42_p0, %s41_s24), 0 }
  0x17   : > { %8944 = sst [smem:[#allocation39_spill]] %s9018_s24  ;;  %p7885_p4 = por %p8920_p2, %p241_p1 }
  0x18   : > { %p7891_p5 = scmp.eq.s32.totalorder %s8913_s23, 1  ;;  %s226_s28 = ssub.s32 %s7737_s20, %s9018_s24 }
  0x19   : > { %s8945_s26 = scalar_select %p7885_p4, 1, 0 }
  0x1a   : > { %s254_s29 = ssub.s32 1, %s7737_s20  ;;  %p229_p6 = scmp.eq.s32.totalorder %s226_s28, 0 }
  0x1b   : > { %8946 = sst [smem:[#allocation40_spill]] %s8945_s26  ;;  %p7900_p7 = por %p7891_p5, %p247_p3 }
  0x1c   : > { %s255_s11 = ssub.s32 1, %s9018_s24  ;;  %s261_s12 = sadd.s32 1, %s7717_s15 }
  0x1d   : > { %s8948_s30 = scalar_select %p7900_p7, 1, 0 }
  0x1e   : > { %s7907_s16 = scalar_select %p229_p6, %s7729_s18, %s231_s25  }
  0x1f   : > { %8949 = sst [smem:[#allocation41_spill]] %s8948_s30  ;;  %s256_s23 = ssub.s32 %s254_s29, %s255_s11 }
  0x20   : > { %8950 = sst [smem:[#allocation42_spill]] %s7907_s16  ;;  %p271_p8 = scmp.ne.s32.totalorder %s7717_s15, %s7713_s14 }
  0x21   : > { %p259_p9 = scmp.eq.s32.totalorder %s256_s23, 0  ;;  %p277_p10 = scmp.ne.s32.totalorder %s7713_s14, %s7709_s13 }
  0x22   : > { %p7915_p11 = por %p271_p8, %p8920_p2  ;;  %p5276_p12 = scmp.ge.s32.totalorder %s7741_s21, 1 }
  0x23   : > { %s7921_s28 = scalar_select %p259_p9, %s7717_s15, %s261_s12  }
  0x24   : > { %s8951_s10 = scalar_select %p7915_p11, 1, 0 }
  0x25   : > { %8953 = sst [smem:[#allocation44_spill]] %s7921_s28  ;;  %p7925_p13 = por %p277_p10, %p7891_p5 }
  0x26   : > { %8952 = sst [smem:[#allocation43_spill]] %s8951_s10  ;;  %p311_p0 = scmp.lt.s32.totalorder %s7741_s21, 3 }
  0x27   : > { %s8954_s20 = scalar_select %p7925_p13, 1, 0 }
  0x28   : > { %p8921_p1 = scmp.eq.s32.totalorder %s7871_s22, 0  ;;  %p7931_p3 = pnand %p5276_p12, %p311_p0 }
  0x29   : > { %8955 = sst [smem:[#allocation45_spill]] %s8954_s20  ;;  %s7743_s13 = smov [#allocation11]  }
  0x2a   : > { %s8956_s25 = scalar_select %p7931_p3, 1, 0 }
  0x2b   : > { %p6683_p6 = pneg %p7931_p3  ;;  %s342_s23 = sshll.u32 %s7743_s13, 4  ;;  %s343_s23 = int_to_ptr.vmem [resolvable:$true] %s342_s23 }
  0x2c   : > { %s7744_s27 = smov [#allocation14]   ;;  %s7333_s16 = scalar_lea.hbm %s8902_s1, 1024 }
  0x2d   : > { %p7939_p8 = pnand %p8921_p1, %p6683_p6  ;;  %s368_s11 = sshll.u32 %s7744_s27, 4  ;;  %s369_s11 = int_to_ptr.vmem [resolvable:$true] %s368_s11 }
  0x2e   : > { %p7334_p5 = scmp.ne.s32.totalorder %s8902_s1, %s7333_s16  ;;  %p7340_p0 = scmp.lt.u32.totalorder %s7333_s16, %s8902_s1 }
  0x2f   : > { %p7951_p9 = pneg %p7939_p8 }
  0x31   : > { %p7336_p10 = pnand %p7951_p9, %p7334_p5 }
  0x33   : > { %p7337_p12 = pneg %p7336_p10 }
  0x35   : > { %p7342_p6 = pnand %p7340_p0, %p7337_p12 }
  0x37   : > { %7345 = shalt.err (!%p7342_p6)
}
  0x38   : > { %s7346_s24 = scalar_lea.vmem %s343_s23, 1024  ;;  %p7354_p7 = scmp.lt.s32.totalorder %s343_s23, %s343_s23 }
  0x39   : > { %p7347_p2 = scmp.ne.s32.totalorder %s343_s23, %s7346_s24  ;;  %p7355_p11 = scmp.lt.s32.totalorder %s7346_s24, %s7346_s24 }
  0x3b   : > { %p7349_p1 = pnand %p7347_p2, %p7951_p9  ;;  %p7356_p4 = por %p7355_p11, %p7354_p7 }
  0x3d   : > { %p7350_p13 = pneg %p7349_p1 }
  0x3f   : > { %p7357_p3 = pnand %p7356_p4, %p7350_p13 }
  0x41   : > { %7360 = shalt.err (!%p7357_p3)
}
  0x42   : > { %s8933_s18 = smov 64   ;;  %s8934_s28 = smov 4  }
  0x43   : > { %6689 = dma.hbm_to_vmem [thread:$0]  (!%p7939_p8), %s8902_s1, 1024, %s343_s23, [#allocation12], %s8933_s18, %s8933_s18, %s8934_s28  }
  0x44   : > { %s7747_s20 = smov [#allocation17]   ;;  %s7361_s30 = scalar_lea.hbm %s8904_s3, 3072 }
  0x45   : > { %s394_s27 = sshll.u32 %s7747_s20, 4  ;;  %p7362_p2 = scmp.ne.s32.totalorder %s8904_s3, %s7361_s30  ;;  %s395_s27 = int_to_ptr.vmem [resolvable:$true] %s394_s27 }
  0x46   : > { %p7368_p11 = scmp.lt.u32.totalorder %s7361_s30, %s8904_s3 }
  0x47   : > { %p7364_p4 = pnand %p7362_p2, %p7951_p9 }
  0x49   : > { %p7365_p7 = pneg %p7364_p4 }
  0x4b   : > { %p7370_p13 = pnand %p7368_p11, %p7365_p7 }
  0x4d   : > { %7373 = shalt.err (!%p7370_p13)
}
  0x4e   : > { %s7374_s23 = scalar_lea.vmem %s369_s11, 3072  ;;  %p7382_p10 = scmp.lt.s32.totalorder %s369_s11, %s369_s11 }
  0x4f   : > { %p7375_p1 = scmp.ne.s32.totalorder %s369_s11, %s7374_s23  ;;  %p7383_p12 = scmp.lt.s32.totalorder %s7374_s23, %s7374_s23 }
  0x51   : > { %p7377_p3 = pnand %p7375_p1, %p7951_p9  ;;  %p7384_p0 = por %p7383_p12, %p7382_p10 }
  0x53   : > { %p7378_p5 = pneg %p7377_p3 }
  0x55   : > { %p7385_p6 = pnand %p7384_p0, %p7378_p5 }
  0x57   : > { %7388 = shalt.err (!%p7385_p6)
}
  0x58   : > { %s7748_s10 = smov 192   ;;  %s7749_s21 = smov 12  }
  0x59   : > { %6695 = dma.hbm_to_vmem [thread:$0]  (!%p7939_p8), %s8904_s3, 3072, %s369_s11, [#allocation15], %s7748_s10, %s7748_s10, %s7749_s21  }
  0x5a   : > { %s7389_s16 = scalar_lea.hbm %s8906_s5, 3072 }
  0x5b   : > { %p7390_p2 = scmp.ne.s32.totalorder %s8906_s5, %s7389_s16  ;;  %p7396_p11 = scmp.lt.u32.totalorder %s7389_s16, %s8906_s5 }
  0x5d   : > { %p7392_p4 = pnand %p7390_p2, %p7951_p9 }
  0x5f   : > { %p7393_p7 = pneg %p7392_p4 }
  0x61   : > { %p7398_p13 = pnand %p7396_p11, %p7393_p7 }
  0x63   : > { %7401 = shalt.err (!%p7398_p13)
}
  0x64   : > { %s7402_s8 = scalar_lea.vmem %s395_s27, 3072  ;;  %p7410_p10 = scmp.lt.s32.totalorder %s395_s27, %s395_s27 }
  0x65   : > { %p7403_p1 = scmp.ne.s32.totalorder %s395_s27, %s7402_s8  ;;  %p7411_p12 = scmp.lt.s32.totalorder %s7402_s8, %s7402_s8 }
  0x67   : > { %p7405_p3 = pnand %p7403_p1, %p7951_p9  ;;  %p7412_p0 = por %p7411_p12, %p7410_p10 }
  0x69   : > { %p7406_p5 = pneg %p7405_p3 }
  0x6b   : > { %p7413_p6 = pnand %p7412_p0, %p7406_p5 }
  0x6d   : > { %7416 = shalt.err (!%p7413_p6)
}
  0x6e   : > { %6701 = dma.hbm_to_vmem [thread:$0]  (!%p7939_p8), %s8906_s5, 3072, %s395_s27, [#allocation18], %s7748_s10, %s7748_s10, %s7749_s21  }
  0x6f   : > { %s7750_s30 = smov [#allocation8]   ;;  %s7751_s16 = smov [#allocation13]  }
  0x70   : > { %s326_s15 = sshll.u32 %s7750_s30, 4  ;;  %s355_s20 = sshll.u32 %s7751_s16, 4  ;;  %s327_s15 = int_to_ptr.vmem [resolvable:$true] %s326_s15  ;;  %s356_s20 = int_to_ptr.vmem [resolvable:$true] %s355_s20 }
  0x71   : > { %s7417_s23 = scalar_lea.hbm %s8901_s0, 1024 }
  0x72   : > { %p7418_p2 = scmp.ne.s32.totalorder %s8901_s0, %s7417_s23  ;;  %p7424_p11 = scmp.lt.u32.totalorder %s7417_s23, %s8901_s0 }
  0x74   : > { %p7420_p4 = pnand %p7418_p2, %p7951_p9 }
  0x76   : > { %p7421_p7 = pneg %p7420_p4 }
  0x78   : > { %p7426_p13 = pnand %p7424_p11, %p7421_p7 }
  0x7a   : > { %7429 = shalt.err (!%p7426_p13)
}
  0x7b   : > { %s7430_s27 = scalar_lea.vmem %s327_s15, 1024  ;;  %p7438_p10 = scmp.lt.s32.totalorder %s327_s15, %s327_s15 }
  0x7c   : > { %p7431_p1 = scmp.ne.s32.totalorder %s327_s15, %s7430_s27  ;;  %p7439_p12 = scmp.lt.s32.totalorder %s7430_s27, %s7430_s27 }
  0x7e   : > { %p7433_p3 = pnand %p7431_p1, %p7951_p9  ;;  %p7440_p0 = por %p7439_p12, %p7438_p10 }
  0x80   : > { %p7434_p5 = pneg %p7433_p3 }
  0x82   : > { %p7441_p6 = pnand %p7440_p0, %p7434_p5 }
  0x84   : > { %7444 = shalt.err (!%p7441_p6)
}
  0x85   : > { %s8959_s18 = smov 4   ;;  %s8960_s26 = smov 64  }
  0x86   : > { %6686 = dma.hbm_to_vmem [thread:$0]  (!%p7939_p8), %s8901_s0, 1024, %s327_s15, [#allocation9], %s8960_s26, %s8960_s26, %s8959_s18  }
  0x87   : > { %s7445_s24 = scalar_lea.hbm %s8903_s2, 6144 }
  0x88   : > { %p7446_p2 = scmp.ne.s32.totalorder %s8903_s2, %s7445_s24  ;;  %p7452_p11 = scmp.lt.u32.totalorder %s7445_s24, %s8903_s2 }
  0x8a   : > { %p7448_p4 = pnand %p7446_p2, %p7951_p9 }
  0x8c   : > { %p7449_p7 = pneg %p7448_p4 }
  0x8e   : > { %p7454_p13 = pnand %p7452_p11, %p7449_p7 }
  0x90   : > { %7457 = shalt.err (!%p7454_p13)
}
  0x91   : > { %s7458_s28 = scalar_lea.vmem %s356_s20, 6144  ;;  %p7466_p10 = scmp.lt.s32.totalorder %s356_s20, %s356_s20 }
  0x92   : > { %p7459_p1 = scmp.ne.s32.totalorder %s356_s20, %s7458_s28  ;;  %p7467_p12 = scmp.lt.s32.totalorder %s7458_s28, %s7458_s28 }
  0x94   : > { %p7461_p3 = pnand %p7459_p1, %p7951_p9  ;;  %p7468_p0 = por %p7467_p12, %p7466_p10 }
  0x96   : > { %p7462_p5 = pneg %p7461_p3 }
  0x98   : > { %p7469_p6 = pnand %p7468_p0, %p7462_p5 }
  0x9a   : > { %7472 = shalt.err (!%p7469_p6)
}
  0x9b   : > { %6692 = dma.hbm_to_vmem [thread:$0]  (!%p7939_p8), %s8903_s2, 6144, %s356_s20, [#allocation12], %s7748_s10, %s7748_s10, %s7749_s21  }
  0x9c   : > { %s7752_s26 = smov [#allocation16]   ;;  %s7753_s16 = smov [#allocation19]  }
  0x9d   : > { %s381_s30 = sshll.u32 %s7752_s26, 4  ;;  %s407_s12 = sshll.u32 %s7753_s16, 4  ;;  %s382_s30 = int_to_ptr.vmem [resolvable:$true] %s381_s30  ;;  %s408_s12 = int_to_ptr.vmem [resolvable:$true] %s407_s12 }
  0x9e   : > { %s7473_s8 = scalar_lea.hbm %s8905_s4, 6144 }
  0x9f   : > { %p7474_p2 = scmp.ne.s32.totalorder %s8905_s4, %s7473_s8  ;;  %p7480_p11 = scmp.lt.u32.totalorder %s7473_s8, %s8905_s4 }
  0xa1   : > { %p7476_p4 = pnand %p7474_p2, %p7951_p9 }
  0xa3   : > { %p7477_p7 = pneg %p7476_p4 }
  0xa5   : > { %p7482_p13 = pnand %p7480_p11, %p7477_p7 }
  0xa7   : > { %7485 = shalt.err (!%p7482_p13)
}
  0xa8   : > { %s7486_s20 = scalar_lea.vmem %s382_s30, 6144  ;;  %p7494_p10 = scmp.lt.s32.totalorder %s382_s30, %s382_s30 }
  0xa9   : > { %p7487_p1 = scmp.ne.s32.totalorder %s382_s30, %s7486_s20  ;;  %p7495_p12 = scmp.lt.s32.totalorder %s7486_s20, %s7486_s20 }
  0xab   : > { %p7489_p3 = pnand %p7487_p1, %p7951_p9  ;;  %p7496_p0 = por %p7495_p12, %p7494_p10 }
  0xad   : > { %p7490_p5 = pneg %p7489_p3 }
  0xaf   : > { %p7497_p6 = pnand %p7496_p0, %p7490_p5 }
  0xb1   : > { %7500 = shalt.err (!%p7497_p6)
}
  0xb2   : > { %6698 = dma.hbm_to_vmem [thread:$0]  (!%p7939_p8), %s8905_s4, 6144, %s382_s30, [#allocation15], %s7748_s10, %s7748_s10, %s7749_s21  }
  0xb3   : > { %s7501_s23 = scalar_lea.hbm %s8907_s6, 96 }
  0xb4   : > { %p7502_p2 = scmp.ne.s32.totalorder %s8907_s6, %s7501_s23  ;;  %p7508_p11 = scmp.lt.u32.totalorder %s7501_s23, %s8907_s6 }
  0xb6   : > { %p7504_p4 = pnand %p7502_p2, %p7951_p9 }
  0xb8   : > { %p7505_p7 = pneg %p7504_p4 }
  0xba   : > { %p7510_p13 = pnand %p7508_p11, %p7505_p7 }
  0xbc   : > { %7513 = shalt.err (!%p7510_p13)
}
  0xbd   : > { %s7514_s15 = scalar_lea.vmem %s408_s12, 96  ;;  %p7522_p10 = scmp.lt.s32.totalorder %s408_s12, %s408_s12 }
  0xbe   : > { %p7515_p1 = scmp.ne.s32.totalorder %s408_s12, %s7514_s15  ;;  %p7523_p12 = scmp.lt.s32.totalorder %s7514_s15, %s7514_s15 }
  0xc0   : > { %p7517_p3 = pnand %p7515_p1, %p7951_p9  ;;  %p7524_p0 = por %p7523_p12, %p7522_p10 }
  0xc2   : > { %p7518_p5 = pneg %p7517_p3 }
  0xc4   : > { %p7525_p6 = pnand %p7524_p0, %p7518_p5 }
  0xc6   : > { %7528 = shalt.err (!%p7525_p6)
}
  0xc7   : > { %s7754_s10 = smov 48   ;;  %s7755_s21 = smov 3  }
  0xc8   : > { %6704 = dma.hbm_to_vmem [thread:$0]  (!%p7939_p8), %s8907_s6, 96, %s408_s12, [#allocation18], %s7754_s10, %s7754_s10, %s7755_s21  }
  0xc9   : > { %s7756_s18 = smov [#allocation20]   ;;  %s7529_s23 = scalar_lea.hbm %s8908_s7, 32 }
  0xca   : > { %s420_s26 = sshll.u32 %s7756_s18, 4  ;;  %p7530_p2 = scmp.ne.s32.totalorder %s8908_s7, %s7529_s23  ;;  %s421_s26 = int_to_ptr.vmem [resolvable:$true] %s420_s26 }
  0xcb   : > { %p7536_p11 = scmp.lt.u32.totalorder %s7529_s23, %s8908_s7 }
  0xcc   : > { %p7532_p4 = pnand %p7530_p2, %p7951_p9 }
  0xce   : > { %p7533_p7 = pneg %p7532_p4 }
  0xd0   : > { %p7538_p13 = pnand %p7536_p11, %p7533_p7 }
  0xd2   : > { %7541 = shalt.err (!%p7538_p13)
}
  0xd3   : > { %s7542_s12 = scalar_lea.vmem %s421_s26, 32  ;;  %p7550_p10 = scmp.lt.s32.totalorder %s421_s26, %s421_s26 }
  0xd4   : > { %p7543_p1 = scmp.ne.s32.totalorder %s421_s26, %s7542_s12  ;;  %p7551_p12 = scmp.lt.s32.totalorder %s7542_s12, %s7542_s12 }
  0xd6   : > { %p7545_p3 = pnand %p7543_p1, %p7951_p9  ;;  %p7552_p0 = por %p7551_p12, %p7550_p10 }
  0xd8   : > { %p7546_p5 = pneg %p7545_p3 }
  0xda   : > { %p7553_p6 = pnand %p7552_p0, %p7546_p5 }
  0xdc   : > { %7556 = shalt.err (!%p7553_p6)
}
  0xdd   : > { %s7757_s15 = smov 16   ;;  %s7758_s10 = smov 1  }
  0xde   : > { %6707 = dma.hbm_to_vmem [thread:$0]  (!%p7939_p8), %s8908_s7, 32, %s421_s26, [#allocation21], %s7757_s15, %s7757_s15, %s7758_s10  }
  0xdf   : > { %p8961_p2 = scmp.ne.s32.totalorder %s8956_s25, 0 }
  0xe1   : > { %436 = sbr.rel (%p8961_p2) target bundleno = 1698 (0x6a2), region = 52 }
  0xe8   : > { %p8962_p4 = scmp.eq.s32.totalorder %s7871_s22, 0 }
  0xea   : > { %7676 = dma.done.wait (%p8962_p4), [#allocation9], 1024   ;;  %p8963_p9 = pmov %p8962_p4 }
  0xeb   : > { %p8964_p7 = pmov %p8962_p4 }
  0xec   : > { %7678 = vsyncadd (%p8963_p9), [#allocation9], 4294966272 }
  0xed   : > { %7680 = dma.done.wait (%p8964_p7), [#allocation12], 7168   ;;  %p8965_p11 = pmov %p8962_p4 }
  0xee   : > { %p8966_p13 = pmov %p8962_p4 }
  0xef   : > { %7682 = vsyncadd (%p8965_p11), [#allocation12], 4294960128 }
  0xf0   : > { %7684 = dma.done.wait (%p8966_p13), [#allocation15], 9216   ;;  %p8967_p8 = pmov %p8962_p4 }
  0xf1   : > { %p8968_p1 = pmov %p8962_p4 }
  0xf2   : > { %7686 = vsyncadd (%p8967_p8), [#allocation15], 4294958080 }
  0xf3   : > { %7688 = dma.done.wait (%p8968_p1), [#allocation18], 3168   ;;  %p8969_p3 = pmov %p8968_p1 }
  0xf4   : > { %p8970_p5 = pmov %p8968_p1 }
  0xf5   : > { %7690 = vsyncadd (%p8969_p3), [#allocation18], 4294964128 }
  0xf6   : > { %7692 = dma.done.wait (%p8970_p5), [#allocation21], 32   ;;  %p8971_p10 = pmov %p8968_p1 }
  0xf7   : > { %s490_s25 = sand.u32 1, %s7725_s17   ;;  %s497_s29 = sand.u32 1, %s7713_s14  }
  0xf8   : > { %7694 = vsyncadd (%p8971_p10), [#allocation21], 4294967264  ;;  %s5294_s13 = sshll.u32 %s490_s25, 5  ;;  %s5295_s20 = sshll.u32 %s497_s29, 5 }
  0xf9   : > { %s8137_s18 = scalar_lea.vmem [#allocation22], %s5294_s13  ;;  %s8139_s26 = scalar_lea.vmem [#allocation23], %s5295_s20 }
  0xfa   : > { %p5296_p12 = scmp.ne.s32.totalorder %s7733_s19, 0 }
  0xfb   : > { %v7759_v0 = vmov (!%p5296_p12), 0.0  }
  0xfc   : > { %514 = sbr.rel (%p5296_p12) target bundleno = 259 (0x103), region = 88  ;;  %515 = vst [vmem:[#allocation25] sm:$0xff] (!%p5296_p12), %v7759_v0  ;;  %516 = vst [vmem:[#allocation25 + $0x8] sm:$0xff] (!%p5296_p12), %v7759_v0 }
  0xfd   : > { %517 = vst [vmem:[#allocation25 + $0x10] sm:$0xff] (!%p5296_p12), %v7759_v0  ;;  %518 = vst [vmem:[#allocation25 + $0x18] sm:$0xff] (!%p5296_p12), %v7759_v0 }
 0x103 PF: > { %v6831_v1 = vld [vmem:[#allocation13 + $0xc4] ss:$12 sps:$4 sm:$0xff]   ;;  %v6833_v2 = vld [vmem:[#allocation13 + $0xc8] ss:$12 sps:$4 sm:$0xff]   ;;  %v7760_v3 = vmov 0   ;;  %s5684_s16 = sshll.u32 %s7733_s19, 5 }
 0x104   : > { %792 = vmatprep.mubr.bf16.mxu0 %v7760_v3  ;;  %760 = vmatprep.subr.bf16.mxu0 %v6831_v1  ;;  %v6834_v4 = vld [vmem:[#allocation13 + $0xc0] ss:$12 sps:$4 sm:$0xff]   ;;  %v6835_v5 = vld [vmem:[#allocation13 + $0xdc] ss:$12 sps:$4 sm:$0xff]   ;;  %v6838_v7 = vld [vmem:[#allocation13 + $0xd8] ss:$12 sps:$4 sm:$0xff]  }
 0x105   : > { %6019 = vmatprep.subr.bf16.mxu1 %v6833_v2  ;;  %761 = vmatpush1.bf16.msra.mxu0 %v6834_v4  ;;  %v6837_v6 = vld [vmem:[#allocation13 + $0xe0] ss:$12 sps:$4 sm:$0xff]   ;;  %v6841_v9 = vld [vmem:[#allocation13 + $0xf8] ss:$12 sps:$4 sm:$0xff]   ;;  %v6842_v10 = vld [vmem:[#allocation13 + $0xf0] ss:$12 sps:$4 sm:$0xff]  }
 0x106   : > { %6020 = vmatpush3.bf16.msra.mxu1 %v6833_v2  ;;  %762 = vmatprep.subr.bf16.mxu0 %v6835_v5  ;;  %v6839_v8 = vld [vmem:[#allocation13 + $0xf4] ss:$12 sps:$4 sm:$0xff]   ;;  %v6843_v11 = vld [vmem:[#allocation13 + $0x10c] ss:$12 sps:$4 sm:$0xff]   ;;  %v6845_v12 = vld [vmem:[#allocation13 + $0x110] ss:$12 sps:$4 sm:$0xff]  }
 0x107   : > { %6021 = vmatprep.subr.bf16.mxu1 %v6837_v6  ;;  %v6846_v13 = vld [vmem:[#allocation13 + $0x108] ss:$12 sps:$4 sm:$0xff]   ;;  %v6847_v14 = vld [vmem:[#allocation13 + $0x124] ss:$12 sps:$4 sm:$0xff]   ;;  %v6850_v16 = vld [vmem:[#allocation13 + $0x120] ss:$12 sps:$4 sm:$0xff]  }
 0x108   : > { %v6849_v15 = vld [vmem:[#allocation13 + $0x128] ss:$12 sps:$4 sm:$0xff]   ;;  %v6853_v18 = vld [vmem:[#allocation13 + $0x140] ss:$12 sps:$4 sm:$0xff]   ;;  %s8146_s24 = scalar_lea.vmem [#allocation11], %s5684_s16  ;;  %s8155_s23 = scalar_lea.vmem [#allocation8], %s5684_s16 }
 0x109   : > { %763 = vmatpush1.bf16.msra.mxu0 %v6838_v7  ;;  %v6851_v17 = vld [vmem:[#allocation13 + $0x13c] ss:$12 sps:$4 sm:$0xff]   ;;  %v6863_v19 = vld [vmem:[%s8146_s24] sm:$0xff]   ;;  %v6859_v24 = vld [vmem:[#allocation13 + $0x16c] ss:$12 sps:$4 sm:$0xff]   ;;  %s520_s8 = ssub.s32 1, %s7733_s19 }
 0x10a   : > { %6022 = vmatpush3.bf16.msra.mxu1 %v6837_v6  ;;  %764 = vmatprep.subr.bf16.mxu0 %v6839_v8  ;;  %v6854_v20 = vld [vmem:[#allocation13 + $0x138] ss:$12 sps:$4 sm:$0xff]   ;;  %v6855_v21 = vld [vmem:[#allocation13 + $0x154] ss:$12 sps:$4 sm:$0xff]   ;;  %v6858_v23 = vld [vmem:[#allocation13 + $0x150] ss:$12 sps:$4 sm:$0xff]  }
 0x10b   : > { %6023 = vmatprep.subr.bf16.mxu1 %v6841_v9  ;;  %v6857_v22 = vld [vmem:[#allocation13 + $0x158] ss:$12 sps:$4 sm:$0xff]   ;;  %6035 = vmatprep.mubr.bf16.mxu1 %v6863_v19  ;;  %v6861_v25 = vld [vmem:[#allocation13 + $0x170] ss:$12 sps:$4 sm:$0xff]   ;;  %v6862_v26 = vld [vmem:[#allocation13 + $0x168] ss:$12 sps:$4 sm:$0xff]  }
 0x10c   : > { %v6866_v27 = vld [vmem:[#allocation13 + $0x4] ss:$12 sps:$4 sm:$0xff]   ;;  %v6867_v28 = vld [vmem:[#allocation13 + $0x8] ss:$12 sps:$4 sm:$0xff]   ;;  %v6864_v29 = vld [vmem:[#allocation13] ss:$12 sps:$4 sm:$0xff]  }
 0x10d   : > { %765 = vmatpush1.bf16.msra.mxu0 %v6842_v10  ;;  %v6868_v30 = vld [vmem:[%s8146_s24 + $0x8] sm:$0xff]   ;;  %v6869_v33 = vld [vmem:[#allocation13 + $0x18] ss:$12 sps:$4 sm:$0xff]   ;;  %v6881_v34 = vld [vmem:[%s8146_s24 + $0x10] sm:$0xff]   ;;  %s8163_s11 = sshll.u32 %s520_s8, 5  ;;  %vm7762_vm0 = vmmov 0  }
 0x10e   : > { %6024 = vmatpush3.bf16.msra.mxu1 %v6841_v9  ;;  %766 = vmatprep.subr.bf16.mxu0 %v6843_v11  ;;  %v6871_v31 = vld [vmem:[#allocation13 + $0x1c] ss:$12 sps:$4 sm:$0xff]   ;;  %v6872_v32 = vld [vmem:[#allocation13 + $0x20] ss:$12 sps:$4 sm:$0xff]   ;;  %v6876_v36 = vld [vmem:[#allocation13 + $0x38] ss:$12 sps:$4 sm:$0xff]  }
 0x10f   : > { %6025 = vmatprep.subr.bf16.mxu1 %v6845_v12  ;;  %v6875_v35 = vld [vmem:[#allocation13 + $0x34] ss:$12 sps:$4 sm:$0xff]   ;;  %v6873_v37 = vld [vmem:[#allocation13 + $0x30] ss:$12 sps:$4 sm:$0xff]   ;;  %v6879_v39 = vld [vmem:[#allocation13 + $0x4c] ss:$12 sps:$4 sm:$0xff]  }
 0x110   : > { %v6890_v38 = vld [vmem:[%s8146_s24 + $0x18] sm:$0xff]   ;;  %v6899_v41 = vld [vmem:[%s8155_s23] sm:$0xff]   ;;  %v6877_v42 = vld [vmem:[#allocation13 + $0x48] ss:$12 sps:$4 sm:$0xff]   ;;  %s8168_s27 = scalar_lea.vmem [#allocation11], %s8163_s11  ;;  %s8177_s28 = scalar_lea.vmem [#allocation8], %s8163_s11 }
 0x111   : > { %767 = vmatpush1.bf16.msra.mxu0 %v6846_v13  ;;  %v6880_v40 = vld [vmem:[#allocation13 + $0x50] ss:$12 sps:$4 sm:$0xff]   ;;  %v6885_v44 = vld [vmem:[#allocation13 + $0x68] ss:$12 sps:$4 sm:$0xff]   ;;  %v6882_v45 = vld [vmem:[#allocation13 + $0x60] ss:$12 sps:$4 sm:$0xff]  }
 0x112   : > { %6026 = vmatpush3.bf16.msra.mxu1 %v6845_v12  ;;  %768 = vmatprep.subr.bf16.mxu0 %v6847_v14  ;;  %v6884_v43 = vld [vmem:[#allocation13 + $0x64] ss:$12 sps:$4 sm:$0xff]   ;;  %v6888_v46 = vld [vmem:[#allocation13 + $0x7c] ss:$12 sps:$4 sm:$0xff]   ;;  %v6889_v47 = vld [vmem:[#allocation13 + $0x80] ss:$12 sps:$4 sm:$0xff]  }
 0x113   : > { %6027 = vmatprep.subr.bf16.mxu1 %v6849_v15  ;;  %v6886_v48 = vld [vmem:[#allocation13 + $0x78] ss:$12 sps:$4 sm:$0xff]   ;;  %v6893_v49 = vld [vmem:[#allocation13 + $0x94] ss:$12 sps:$4 sm:$0xff]   ;;  %v6891_v51 = vld [vmem:[#allocation13 + $0x90] ss:$12 sps:$4 sm:$0xff]  }
 0x114   : > { %v6894_v50 = vld [vmem:[#allocation13 + $0x98] ss:$12 sps:$4 sm:$0xff]   ;;  %v6898_v53 = vld [vmem:[#allocation13 + $0xb0] ss:$12 sps:$4 sm:$0xff]   ;;  %v6895_v54 = vld [vmem:[#allocation13 + $0xa8] ss:$12 sps:$4 sm:$0xff]  }
 0x115   : > { %769 = vmatpush1.bf16.msra.mxu0 %v6850_v16  ;;  %v6897_v52 = vld [vmem:[#allocation13 + $0xac] ss:$12 sps:$4 sm:$0xff]   ;;  %v6903_v55 = vld [vmem:[#allocation16 + $0xc4] ss:$12 sps:$4 sm:$0xff]   ;;  %v6904_v56 = vld [vmem:[#allocation16 + $0xc8] ss:$12 sps:$4 sm:$0xff]  }
 0x116   : > { %6028 = vmatpush3.bf16.msra.mxu1 %v6849_v15  ;;  %770 = vmatprep.subr.bf16.mxu0 %v6851_v17  ;;  %v6900_v57 = vld [vmem:[%s8155_s23 + $0x8] sm:$0xff]   ;;  %v6909_v61 = vld [vmem:[%s8155_s23 + $0x10] sm:$0xff]   ;;  %v6905_v62 = vld [vmem:[#allocation16 + $0xd8] ss:$12 sps:$4 sm:$0xff]   ;;  %s5022_s12 = sand.u32 1, %s7871_s22   ;;  %s5708_s15 = sshll.u32 %s520_s8, 9 }
 0x117   : > { %6029 = vmatprep.subr.bf16.mxu1 %v6853_v18  ;;  %v6901_v58 = vld [vmem:[#allocation16 + $0xc0] ss:$12 sps:$4 sm:$0xff]   ;;  %v6907_v59 = vld [vmem:[#allocation16 + $0xdc] ss:$12 sps:$4 sm:$0xff]   ;;  %v6914_v0 = vld [vmem:[#allocation16 + $0xf8] ss:$12 sps:$4 sm:$0xff]   ;;  %s8765_s13 = scalar_lea.hbm %s8910_s9, %s5708_s15 }
 0x118   : > { %v6908_v60 = vld [vmem:[#allocation16 + $0xe0] ss:$12 sps:$4 sm:$0xff]   ;;  %v6910_v1 = vld [vmem:[%s8155_s23 + $0x18] sm:$0xff]   ;;  %v6915_v7 = vld [vmem:[#allocation16 + $0x108] ss:$12 sps:$4 sm:$0xff]   ;;  %s5706_s10 = sshll.u32 %s7733_s19, 9 }
 0x119   : > { %771 = vmatpush1.bf16.msra.mxu0 %v6854_v20  ;;  %v6913_v63 = vld [vmem:[#allocation16 + $0xf4] ss:$12 sps:$4 sm:$0xff]   ;;  %v6911_v2 = vld [vmem:[#allocation16 + $0xf0] ss:$12 sps:$4 sm:$0xff]   ;;  %v6917_v4 = vld [vmem:[#allocation16 + $0x10c] ss:$12 sps:$4 sm:$0xff]  }
 0x11a   : > { %6030 = vmatpush3.bf16.msra.mxu1 %v6853_v18  ;;  %772 = vmatprep.subr.bf16.mxu0 %v6855_v21  ;;  %v6918_v5 = vld [vmem:[#allocation16 + $0x110] ss:$12 sps:$4 sm:$0xff]   ;;  %v6935_v6 = vld [vmem:[%s8168_s27] sm:$0xff]   ;;  %v6922_v9 = vld [vmem:[#allocation16 + $0x128] ss:$12 sps:$4 sm:$0xff]   ;;  %s5039_s21 = sshll.u32 %s8137_s18, 4  ;;  %s8773_s21 = int_to_ptr.vmem [resolvable:$true] %s5039_s21 }
 0x11b   : > { %6031 = vmatprep.subr.bf16.mxu1 %v6857_v22  ;;  %v6921_v8 = vld [vmem:[#allocation16 + $0x124] ss:$12 sps:$4 sm:$0xff]   ;;  %v6919_v10 = vld [vmem:[#allocation16 + $0x120] ss:$12 sps:$4 sm:$0xff]   ;;  %v6925_v11 = vld [vmem:[#allocation16 + $0x13c] ss:$12 sps:$4 sm:$0xff]  }
 0x11c   : > { %v6926_v12 = vld [vmem:[#allocation16 + $0x140] ss:$12 sps:$4 sm:$0xff]   ;;  %v6923_v13 = vld [vmem:[#allocation16 + $0x138] ss:$12 sps:$4 sm:$0xff]   ;;  %v6927_v16 = vld [vmem:[#allocation16 + $0x150] ss:$12 sps:$4 sm:$0xff]  }
 0x11d   : > { %773 = vmatpush1.bf16.msra.mxu0 %v6858_v23  ;;  %v6929_v14 = vld [vmem:[#allocation16 + $0x154] ss:$12 sps:$4 sm:$0xff]   ;;  %v6930_v15 = vld [vmem:[#allocation16 + $0x158] ss:$12 sps:$4 sm:$0xff]   ;;  %v6934_v18 = vld [vmem:[#allocation16 + $0x170] ss:$12 sps:$4 sm:$0xff]  }
 0x11e   : > { %6032 = vmatpush3.bf16.msra.mxu1 %v6857_v22  ;;  %774 = vmatprep.subr.bf16.mxu0 %v6859_v24  ;;  %v6933_v17 = vld [vmem:[#allocation16 + $0x16c] ss:$12 sps:$4 sm:$0xff]   ;;  %v6938_v20 = vld [vmem:[#allocation16 + $0x4] ss:$12 sps:$4 sm:$0xff]   ;;  %v6939_v21 = vld [vmem:[#allocation16 + $0x8] ss:$12 sps:$4 sm:$0xff]  }
 0x11f   : > { %6033 = vmatprep.subr.bf16.mxu1 %v6861_v25  ;;  %v6936_v22 = vld [vmem:[#allocation16] ss:$12 sps:$4 sm:$0xff]   ;;  %v6943_v24 = vld [vmem:[#allocation16 + $0x1c] ss:$12 sps:$4 sm:$0xff]   ;;  %s5059_s20 = sshll.u32 %s8139_s26, 4  ;;  %s8989_s16 = sld [smem:[#allocation40_spill]]  ;;  %s8775_s20 = int_to_ptr.vmem [resolvable:$true] %s5059_s20 }
 0x120   : > { %v6940_v23 = vld [vmem:[%s8168_s27 + $0x8] sm:$0xff]   ;;  %s7763_s24 = smov [#allocation25]   ;;  %s8990_s11 = sld [smem:[#allocation54_spill]] }
 0x121   : > { %775 = vmatpush1.bf16.msra.mxu0 %v6862_v26  ;;  %v6941_v26 = vld [vmem:[#allocation16 + $0x18] ss:$12 sps:$4 sm:$0xff]   ;;  %s5075_s23 = sshll.u32 %s7763_s24, 4  ;;  %s7557_s15 = scalar_lea.vmem %s8773_s21, 512  ;;  %s8778_s23 = int_to_ptr.vmem [resolvable:$true] %s5075_s23 }
 0x122   : > { %6034 = vmatpush3.bf16.msra.mxu1 %v6861_v25  ;;  %1050 = vmatprep.subr.bf16.mxu0 %v6866_v27  ;;  %v6944_v25 = vld [vmem:[#allocation16 + $0x20] ss:$12 sps:$4 sm:$0xff]   ;;  %p7558_p0 = scmp.ne.s32.totalorder %s8773_s21, %s7557_s15 }
 0x123   : > { %6043 = vmatprep.subr.bf16.mxu1 %v6867_v28  ;;  %v6947_v27 = vld [vmem:[#allocation16 + $0x34] ss:$12 sps:$4 sm:$0xff]  }
 0x124   : > { %793 = vmatmul.mubr.bf16.vlgmr.msra.gmra.mrb[0].mxu0 %v6863_v19  ;;  %v6931_v19 = vld [vmem:[#allocation16 + $0x168] ss:$12 sps:$4 sm:$0xff]  }
 0x125   : > { %6036 = vmatmul.mubr.bf16.vlgmr.msra.gmra.mrb[0].mxu1 %v6868_v30  ;;  %1051 = vmatpush1.bf16.msra.mxu0 %v6864_v29  ;;  %v6948_v29 = vld [vmem:[#allocation16 + $0x38] ss:$12 sps:$4 sm:$0xff]   ;;  %p8991_p6 = scmp.ne.s32.totalorder %s8989_s16, 0 }
 0x126   : > { %6044 = vmatpush3.bf16.msra.mxu1 %v6867_v28  ;;  %1052 = vmatprep.subr.bf16.mxu0 %v6871_v31  ;;  %v6953_v28 = vld [vmem:[%s8168_s27 + $0x10] sm:$0xff]   ;;  %v6962_v31 = vld [vmem:[%s8168_s27 + $0x18] sm:$0xff]   ;;  %s8771_s27 = scalar_lea.hbm %s8990_s11, %s5706_s10  ;;  %s7764_s10 = smov [#allocation22]  }
 0x127   : > { %6045 = vmatprep.subr.bf16.mxu1 %v6872_v32  ;;  %802 = vmatprep.mubr.bf16.mxu0 %v7760_v3  ;;  %p7559_p2 = pnand %p7558_p0, %p8991_p6  ;;  %s7561_s30 = sshll.u32 %s7764_s10, 4  ;;  %s7562_s30 = int_to_ptr.vmem [resolvable:$false] %s7561_s30 }
 0x128   : > { %6039 = vmatprep.mubr.bf16.mxu1 %v6881_v34  ;;  %s7563_s29 = scalar_lea.vmem %s7562_s30, 1024  ;;  %p7564_p9 = scmp.lt.s32.totalorder %s8773_s21, %s7562_s30 }
 0x129   : > { %1053 = vmatpush1.bf16.msra.mxu0 %v6869_v33  ;;  %v6952_v33 = vld [vmem:[#allocation16 + $0x50] ss:$12 sps:$4 sm:$0xff]   ;;  %p7560_p4 = pneg %p7559_p2  ;;  %p7565_p7 = scmp.lt.s32.totalorder %s7563_s29, %s7557_s15 }
 0x12a   : > { %6046 = vmatpush3.bf16.msra.mxu1 %v6872_v32  ;;  %1054 = vmatprep.subr.bf16.mxu0 %v6875_v35  ;;  %v6951_v32 = vld [vmem:[#allocation16 + $0x4c] ss:$12 sps:$4 sm:$0xff]   ;;  %v6949_v35 = vld [vmem:[#allocation16 + $0x48] ss:$12 sps:$4 sm:$0xff]  }
 0x12b   : > { %6047 = vmatprep.subr.bf16.mxu1 %v6876_v36  ;;  %p7566_p11 = por %p7565_p7, %p7564_p9 }
 0x12c   : > { %803 = vmatmul.mubr.bf16.gmra.mrb[4].mxu0 %v6868_v30  ;;  %v6945_v30 = vld [vmem:[#allocation16 + $0x30] ss:$12 sps:$4 sm:$0xff]  }
 0x12d   : > { %6040 = vmatmul.mubr.bf16.gmra.mrb[4].mxu1 %v6890_v38  ;;  %1055 = vmatpush1.bf16.msra.mxu0 %v6873_v37  ;;  %v6957_v37 = vld [vmem:[#allocation16 + $0x68] ss:$12 sps:$4 sm:$0xff]   ;;  %p7567_p13 = pnand %p7566_p11, %p7560_p4 }
 0x12e   : > { %6048 = vmatpush3.bf16.msra.mxu1 %v6876_v36  ;;  %1056 = vmatprep.subr.bf16.mxu0 %v6879_v39  ;;  %v6956_v36 = vld [vmem:[#allocation16 + $0x64] ss:$12 sps:$4 sm:$0xff]   ;;  %v6960_v39 = vld [vmem:[#allocation16 + $0x7c] ss:$12 sps:$4 sm:$0xff]  }
 0x12f   : > { %6049 = vmatprep.subr.bf16.mxu1 %v6880_v40  ;;  %812 = vmatprep.mubr.bf16.mxu0 %v7760_v3 }
 0x130   : > { %6059 = vmatprep.mubr.bf16.mxu1 %v6899_v41 }
 0x131   : > { %1057 = vmatpush1.bf16.msra.mxu0 %v6877_v42  ;;  %v6965_v42 = vld [vmem:[#allocation16 + $0x94] ss:$12 sps:$4 sm:$0xff]  }
 0x132   : > { %6050 = vmatpush3.bf16.msra.mxu1 %v6880_v40  ;;  %1058 = vmatprep.subr.bf16.mxu0 %v6884_v43  ;;  %v6961_v40 = vld [vmem:[#allocation16 + $0x80] ss:$12 sps:$4 sm:$0xff]   ;;  %v6966_v43 = vld [vmem:[#allocation16 + $0x98] ss:$12 sps:$4 sm:$0xff]  }
 0x133   : > { %6051 = vmatprep.subr.bf16.mxu1 %v6885_v44 }
 0x134   : > { %813 = vmatmul.mubr.bf16.gmra.mrb[8].mxu0 %v6881_v34  ;;  %v6971_v34 = vld [vmem:[%s8177_s28] sm:$0xff]  }
 0x135   : > { %1059 = vmatpush1.bf16.msra.mxu0 %v6882_v45  ;;  %822 = vmatprep.mubr.bf16.mxu0 %v7760_v3  ;;  %v6969_v45 = vld [vmem:[#allocation16 + $0xac] ss:$12 sps:$4 sm:$0xff]  }
 0x136   : > { %6052 = vmatpush3.bf16.msra.mxu1 %v6885_v44  ;;  %1060 = vmatprep.subr.bf16.mxu0 %v6888_v46  ;;  %v6963_v44 = vld [vmem:[#allocation16 + $0x90] ss:$12 sps:$4 sm:$0xff]  }
 0x137   : > { %6053 = vmatprep.subr.bf16.mxu1 %v6889_v47  ;;  %v6970_v46 = vld [vmem:[#allocation16 + $0xb0] ss:$12 sps:$4 sm:$0xff]  }
 0x139   : > { %1061 = vmatpush1.bf16.msra.mxu0 %v6886_v48  ;;  %v6972_v48 = vld [vmem:[%s8177_s28 + $0x8] sm:$0xff]  }
 0x13a   : > { %6054 = vmatpush3.bf16.msra.mxu1 %v6889_v47  ;;  %1062 = vmatprep.subr.bf16.mxu0 %v6893_v49  ;;  %v6967_v47 = vld [vmem:[#allocation16 + $0xa8] ss:$12 sps:$4 sm:$0xff]   ;;  %v6973_v49 = vld [vmem:[#allocation14] ss:$12 sps:$4 sm:$0xff]  }
 0x13b   : > { %6055 = vmatprep.subr.bf16.mxu1 %v6894_v50 }
 0x13c   : > { %823 = vmatmul.mubr.bf16.gmra.mrb[12].mxu0 %v6890_v38  ;;  %v6954_v38 = vld [vmem:[#allocation16 + $0x60] ss:$12 sps:$4 sm:$0xff]  }
 0x13d   : > { %1063 = vmatpush1.bf16.msra.mxu0 %v6891_v51  ;;  %1082 = vmatprep.mubr.bf16.mxu0 %v7760_v3  ;;  %v8935_v51 = vmov 0.0  }
 0x13e   : > { %6056 = vmatpush3.bf16.msra.mxu1 %v6894_v50  ;;  %1064 = vmatprep.subr.bf16.mxu0 %v6897_v52  ;;  %v6974_v50 = vld [vmem:[#allocation17] ss:$12 sps:$4 sm:$0xff]   ;;  %v6977_v52 = vld [vmem:[%s8177_s28 + $0x10] sm:$0xff]  }
 0x13f   : > { %6057 = vmatprep.subr.bf16.mxu1 %v6898_v53 }
 0x141   : > { %1065 = vmatpush1.bf16.msra.mxu0 %v6895_v54  ;;  %v6976_v54 = vld [vmem:[#allocation17 + $0x18] ss:$12 sps:$4 sm:$0xff]  }
 0x142   : > { %6058 = vmatpush3.bf16.msra.mxu1 %v6898_v53  ;;  %1491 = vmatprep.subr.bf16.mxu0 %v6903_v55  ;;  %v6975_v53 = vld [vmem:[#allocation14 + $0x18] ss:$12 sps:$4 sm:$0xff]  }
 0x143   : > { %6067 = vmatprep.subr.bf16.mxu1 %v6904_v56  ;;  %v6978_v55 = vld [vmem:[%s8177_s28 + $0x18] sm:$0xff]   ;;  %s8783_s28 = scalar_lea.sflag [#allocation10], %s490_s25 }
 0x144   : > { %1083 = vmatmul.mubr.bf16.vlgmr.msra.gmra.mrb[0].mxu0 %v6899_v41  ;;  %v6958_v41 = vld [vmem:[#allocation16 + $0x78] ss:$12 sps:$4 sm:$0xff]  }
 0x145   : > { %6060 = vmatmul.mubr.bf16.vlgmr.msra.gmra.mrb[0].mxu1 %v6900_v57  ;;  %1492 = vmatpush1.bf16.msra.mxu0 %v6901_v58  ;;  %v6981_v58 = vld [vmem:[#allocation14 + $0x48] ss:$12 sps:$4 sm:$0xff]  }
 0x146   : > { %6068 = vmatpush3.bf16.msra.mxu1 %v6904_v56  ;;  %1493 = vmatprep.subr.bf16.mxu0 %v6907_v59  ;;  %v6979_v56 = vld [vmem:[#allocation14 + $0x30] ss:$12 sps:$4 sm:$0xff]   ;;  %v6982_v59 = vld [vmem:[#allocation17 + $0x48] ss:$12 sps:$4 sm:$0xff]  }
 0x147   : > { %6069 = vmatprep.subr.bf16.mxu1 %v6908_v60  ;;  %1092 = vmatprep.mubr.bf16.mxu0 %v7760_v3 }
 0x148   : > { %6063 = vmatprep.mubr.bf16.mxu1 %v6909_v61 }
 0x149   : > { %1494 = vmatpush1.bf16.msra.mxu0 %v6905_v62  ;;  %v6985_v62 = vld [vmem:[#allocation14 + $0x78] ss:$12 sps:$4 sm:$0xff]  }
 0x14a   : > { %6070 = vmatpush3.bf16.msra.mxu1 %v6908_v60  ;;  %1495 = vmatprep.subr.bf16.mxu0 %v6913_v63  ;;  %v6983_v60 = vld [vmem:[#allocation14 + $0x60] ss:$12 sps:$4 sm:$0xff]   ;;  %v6986_v63 = vld [vmem:[#allocation17 + $0x78] ss:$12 sps:$4 sm:$0xff]  }
 0x14b   : > { %6071 = vmatprep.subr.bf16.mxu1 %v6914_v0 }
 0x14c   : > { %1093 = vmatmul.mubr.bf16.gmra.mrb[4].mxu0 %v6900_v57  ;;  %v6980_v57 = vld [vmem:[#allocation17 + $0x30] ss:$12 sps:$4 sm:$0xff]  }
 0x14d   : > { %6064 = vmatmul.mubr.bf16.gmra.mrb[4].mxu1 %v6910_v1  ;;  %1496 = vmatpush1.bf16.msra.mxu0 %v6911_v2  ;;  %v6989_v2 = vld [vmem:[#allocation14 + $0xa8] ss:$12 sps:$4 sm:$0xff]  }
 0x14e   : > { %6072 = vmatpush3.bf16.msra.mxu1 %v6914_v0  ;;  %1497 = vmatprep.subr.bf16.mxu0 %v6917_v4  ;;  %v6987_v0 = vld [vmem:[#allocation14 + $0x90] ss:$12 sps:$4 sm:$0xff]   ;;  %v6990_v4 = vld [vmem:[#allocation17 + $0xa8] ss:$12 sps:$4 sm:$0xff]  }
 0x14f   : > { %6073 = vmatprep.subr.bf16.mxu1 %v6918_v5  ;;  %1102 = vmatprep.mubr.bf16.mxu0 %v7760_v3 }
 0x150   : > { %6083 = vmatprep.mubr.bf16.mxu1 %v6935_v6 }
 0x151   : > { %1498 = vmatpush1.bf16.msra.mxu0 %v6915_v7  ;;  %v1989_v7 = vld [vmem:[#allocation25 + $0x10] sm:$0xff] }
 0x152   : > { %6074 = vmatpush3.bf16.msra.mxu1 %v6918_v5  ;;  %1499 = vmatprep.subr.bf16.mxu0 %v6921_v8  ;;  %v1986_v5 = vld [vmem:[#allocation25] sm:$0xff]  ;;  %v1990_v8 = vld [vmem:[#allocation25 + $0x18] sm:$0xff] }
 0x153   : > { %6075 = vmatprep.subr.bf16.mxu1 %v6922_v9 }
 0x154   : > { %1103 = vmatmul.mubr.bf16.gmra.mrb[8].mxu0 %v6909_v61  ;;  %v6984_v61 = vld [vmem:[#allocation17 + $0x60] ss:$12 sps:$4 sm:$0xff]  }
 0x155   : > { %1500 = vmatpush1.bf16.msra.mxu0 %v6919_v10  ;;  %1112 = vmatprep.mubr.bf16.mxu0 %v7760_v3 }
 0x156   : > { %6076 = vmatpush3.bf16.msra.mxu1 %v6922_v9  ;;  %1501 = vmatprep.subr.bf16.mxu0 %v6925_v11  ;;  %v6992_v9 = vld [vmem:[#allocation17 + $0x4] ss:$12 sps:$4 sm:$0xff]   ;;  %v8216_v11 = vpack.c.bf16 %v1990_v8, %v1989_v7 }
 0x157   : > { %6077 = vmatprep.subr.bf16.mxu1 %v6926_v12 }
 0x159   : > { %1502 = vmatpush1.bf16.msra.mxu0 %v6923_v13  ;;  %v6994_v13 = vld [vmem:[#allocation17 + $0x1c] ss:$12 sps:$4 sm:$0xff]  }
 0x15a   : > { %6078 = vmatpush3.bf16.msra.mxu1 %v6926_v12  ;;  %1503 = vmatprep.subr.bf16.mxu0 %v6929_v14  ;;  %v6993_v12 = vld [vmem:[#allocation14 + $0x1c] ss:$12 sps:$4 sm:$0xff]   ;;  %v6995_v14 = vld [vmem:[#allocation14 + $0x34] ss:$12 sps:$4 sm:$0xff]  }
 0x15b   : > { %6079 = vmatprep.subr.bf16.mxu1 %v6930_v15 }
 0x15c   : > { %1113 = vmatmul.mubr.bf16.gmra.mrb[12].mxu0 %v6910_v1  ;;  %v6988_v1 = vld [vmem:[#allocation17 + $0x90] ss:$12 sps:$4 sm:$0xff]  }
 0x15d   : > { %1504 = vmatpush1.bf16.msra.mxu0 %v6927_v16  ;;  %1523 = vmatprep.mubr.bf16.mxu0 %v7760_v3  ;;  %v6997_v16 = vld [vmem:[#allocation14 + $0x4c] ss:$12 sps:$4 sm:$0xff]  }
 0x15e   : > { %6080 = vmatpush3.bf16.msra.mxu1 %v6930_v15  ;;  %1505 = vmatprep.subr.bf16.mxu0 %v6933_v17  ;;  %v6996_v15 = vld [vmem:[#allocation17 + $0x34] ss:$12 sps:$4 sm:$0xff]   ;;  %v6998_v17 = vld [vmem:[#allocation17 + $0x4c] ss:$12 sps:$4 sm:$0xff]  }
 0x15f   : > { %6081 = vmatprep.subr.bf16.mxu1 %v6934_v18 }
 0x161   : > { %1506 = vmatpush1.bf16.msra.mxu0 %v6931_v19  ;;  %v7000_v19 = vld [vmem:[#allocation17 + $0x64] ss:$12 sps:$4 sm:$0xff]  }
 0x162   : > { %6082 = vmatpush3.bf16.msra.mxu1 %v6934_v18  ;;  %1781 = vmatprep.subr.bf16.mxu0 %v6938_v20  ;;  %v6999_v18 = vld [vmem:[#allocation14 + $0x64] ss:$12 sps:$4 sm:$0xff]   ;;  %v7001_v20 = vld [vmem:[#allocation14 + $0x7c] ss:$12 sps:$4 sm:$0xff]  }
 0x163   : > { %6091 = vmatprep.subr.bf16.mxu1 %v6939_v21 }
 0x164   : > { %1524 = vmatmul.mubr.bf16.vlgmr.msra.gmra.mrb[16].mxu0 %v6935_v6  ;;  %v1987_v6 = vld [vmem:[#allocation25 + $0x8] sm:$0xff] }
 0x165   : > { %6084 = vmatmul.mubr.bf16.vlgmr.msra.gmra.mrb[8].mxu1 %v6940_v23  ;;  %1782 = vmatpush1.bf16.msra.mxu0 %v6936_v22  ;;  %v8214_v10 = vpack.c.bf16 %v1987_v6, %v1986_v5  ;;  %v7003_v22 = vld [vmem:[#allocation14 + $0x94] ss:$12 sps:$4 sm:$0xff]  }
 0x166   : > { %6092 = vmatpush3.bf16.msra.mxu1 %v6939_v21  ;;  %1783 = vmatprep.subr.bf16.mxu0 %v6943_v24  ;;  %v7002_v21 = vld [vmem:[#allocation17 + $0x7c] ss:$12 sps:$4 sm:$0xff]   ;;  %v7005_v24 = vld [vmem:[#allocation14 + $0xac] ss:$12 sps:$4 sm:$0xff]  }
 0x167   : > { %6093 = vmatprep.subr.bf16.mxu1 %v6944_v25  ;;  %1533 = vmatprep.mubr.bf16.mxu0 %v7760_v3 }
 0x168   : > { %6087 = vmatprep.mubr.bf16.mxu1 %v6953_v28 }
 0x169   : > { %1784 = vmatpush1.bf16.msra.mxu0 %v6941_v26  ;;  %v7007_v26 = vld [vmem:[#allocation14 + $0x8] ss:$12 sps:$4 sm:$0xff]  }
 0x16a   : > { %6094 = vmatpush3.bf16.msra.mxu1 %v6944_v25  ;;  %1785 = vmatprep.subr.bf16.mxu0 %v6947_v27  ;;  %v7006_v25 = vld [vmem:[#allocation17 + $0xac] ss:$12 sps:$4 sm:$0xff]   ;;  %v7008_v27 = vld [vmem:[#allocation17 + $0x8] ss:$12 sps:$4 sm:$0xff]  }
 0x16b   : > { %6095 = vmatprep.subr.bf16.mxu1 %v6948_v29 }
 0x16c   : > { %1534 = vmatmul.mubr.bf16.gmra.mrb[20].mxu0 %v6940_v23  ;;  %v7004_v23 = vld [vmem:[#allocation17 + $0x94] ss:$12 sps:$4 sm:$0xff]  }
 0x16d   : > { %6088 = vmatmul.mubr.bf16.gmra.mrb[12].mxu1 %v6962_v31  ;;  %1786 = vmatpush1.bf16.msra.mxu0 %v6945_v30  ;;  %v7011_v30 = vld [vmem:[#allocation14 + $0x38] ss:$12 sps:$4 sm:$0xff]  }
 0x16e   : > { %6096 = vmatpush3.bf16.msra.mxu1 %v6948_v29  ;;  %1787 = vmatprep.subr.bf16.mxu0 %v6951_v32  ;;  %v7010_v29 = vld [vmem:[#allocation17 + $0x20] ss:$12 sps:$4 sm:$0xff]   ;;  %v7013_v32 = vld [vmem:[#allocation14 + $0x50] ss:$12 sps:$4 sm:$0xff]  }
 0x16f   : > { %6097 = vmatprep.subr.bf16.mxu1 %v6952_v33  ;;  %1543 = vmatprep.mubr.bf16.mxu0 %v7760_v3 }
 0x170   : > { %6107 = vmatprep.mubr.bf16.mxu1 %v6971_v34 }
 0x171   : > { %1788 = vmatpush1.bf16.msra.mxu0 %v6949_v35  ;;  %v7016_v35 = vld [vmem:[#allocation17 + $0x68] ss:$12 sps:$4 sm:$0xff]  }
 0x172   : > { %6098 = vmatpush3.bf16.msra.mxu1 %v6952_v33  ;;  %1789 = vmatprep.subr.bf16.mxu0 %v6956_v36  ;;  %v7014_v33 = vld [vmem:[#allocation17 + $0x50] ss:$12 sps:$4 sm:$0xff]   ;;  %v7017_v36 = vld [vmem:[#allocation14 + $0x80] ss:$12 sps:$4 sm:$0xff]  }
 0x173   : > { %6099 = vmatprep.subr.bf16.mxu1 %v6957_v37 }
 0x174   : > { %1544 = vmatmul.mubr.bf16.gmra.mrb[24].mxu0 %v6953_v28  ;;  %v7009_v28 = vld [vmem:[#allocation14 + $0x20] ss:$12 sps:$4 sm:$0xff]  }
 0x175   : > { %1790 = vmatpush1.bf16.msra.mxu0 %v6954_v38  ;;  %1553 = vmatprep.mubr.bf16.mxu0 %v7760_v3  ;;  %v7019_v38 = vld [vmem:[#allocation14 + $0x98] ss:$12 sps:$4 sm:$0xff]  }
 0x176   : > { %6100 = vmatpush3.bf16.msra.mxu1 %v6957_v37  ;;  %1791 = vmatprep.subr.bf16.mxu0 %v6960_v39  ;;  %v7018_v37 = vld [vmem:[#allocation17 + $0x80] ss:$12 sps:$4 sm:$0xff]   ;;  %v7020_v39 = vld [vmem:[#allocation17 + $0x98] ss:$12 sps:$4 sm:$0xff]  }
 0x177   : > { %6101 = vmatprep.subr.bf16.mxu1 %v6961_v40 }
 0x179   : > { %1792 = vmatpush1.bf16.msra.mxu0 %v6958_v41  ;;  %v7022_v41 = vld [vmem:[#allocation17 + $0xb0] ss:$12 sps:$4 sm:$0xff]  }
 0x17a   : > { %6102 = vmatpush3.bf16.msra.mxu1 %v6961_v40  ;;  %1793 = vmatprep.subr.bf16.mxu0 %v6965_v42  ;;  %v7021_v40 = vld [vmem:[#allocation14 + $0xb0] ss:$12 sps:$4 sm:$0xff]   ;;  %v1189_v42 = vlaneseq }
 0x17b   : > { %6103 = vmatprep.subr.bf16.mxu1 %v6966_v43 }
 0x17c   : > { %1554 = vmatmul.mubr.bf16.gmra.mrb[28].mxu0 %v6962_v31  ;;  %v7012_v31 = vld [vmem:[#allocation17 + $0x38] ss:$12 sps:$4 sm:$0xff]  }
 0x17d   : > { %1794 = vmatpush1.bf16.msra.mxu0 %v6963_v44  ;;  %1813 = vmatprep.mubr.bf16.mxu0 %v7760_v3 }
 0x17e   : > { %6104 = vmatpush3.bf16.msra.mxu1 %v6966_v43  ;;  %1795 = vmatprep.subr.bf16.mxu0 %v6969_v45  ;;  %v8270_v43 = vshrl.u32 %v1189_v42, 7  ;;  %v522_v45 = vld [vmem:[#allocation19] sm:$0x7]  ;;  %v7035_v42 = vld [vmem:[#allocation14 + $0x90] ss:$12 sps:$4 sm:$0xff]  }
 0x17f   : > { %6105 = vmatprep.subr.bf16.mxu1 %v6970_v46 }
 0x180   : > { %v1199_v44 = vsub.s32 2, %v8270_v43 }
 0x181   : > { %1796 = vmatpush1.bf16.msra.mxu0 %v6967_v47 }
 0x182   : > { %6106 = vmatpush3.bf16.msra.mxu1 %v6970_v46  ;;  %6115 = vmatprep.subr.bf16.mxu0 %v8935_v51  ;;  %v8275_v46 = vrot.slane %v522_v45, %v1199_v44 }
 0x183   : > { %6135 = vmatprep.subr.bf16.mxu1 %v8935_v51 }
 0x184   : > { %1814 = vmatmul.mubr.bf16.vlgmr.msra.gmra.mrb[16].mxu0 %v6971_v34  ;;  %v7015_v34 = vld [vmem:[#allocation14 + $0x68] ss:$12 sps:$4 sm:$0xff]  }
 0x185   : > { %6108 = vmatmul.mubr.bf16.vlgmr.msra.gmra.mrb[8].mxu1 %v6972_v48  ;;  %6116 = vmatpush3.bf16.msra.mxu0 %v6973_v49 }
 0x186   : > { %6136 = vmatpush3.bf16.msra.mxu1 %v6974_v50  ;;  %6117 = vmatprep.subr.bf16.mxu0 %v8935_v51 }
 0x187   : > { %6137 = vmatprep.subr.bf16.mxu1 %v8935_v51  ;;  %1823 = vmatprep.mubr.bf16.mxu0 %v7760_v3 }
 0x188   : > { %6111 = vmatprep.mubr.bf16.mxu1 %v6977_v52 }
 0x189   : > { %6118 = vmatpush3.bf16.msra.mxu0 %v6975_v53 }
 0x18a   : > { %6138 = vmatpush3.bf16.msra.mxu1 %v6976_v54  ;;  %6119 = vmatprep.subr.bf16.mxu0 %v8935_v51 }
 0x18b   : > { %6139 = vmatprep.subr.bf16.mxu1 %v8935_v51 }
 0x18c   : > { %1824 = vmatmul.mubr.bf16.gmra.mrb[20].mxu0 %v6972_v48 }
 0x18d   : > { %6112 = vmatmul.mubr.bf16.gmra.mrb[12].mxu1 %v6978_v55  ;;  %6120 = vmatpush3.bf16.msra.mxu0 %v6979_v56 }
 0x18e   : > { %6140 = vmatpush3.bf16.msra.mxu1 %v6980_v57  ;;  %6121 = vmatprep.subr.bf16.mxu0 %v8935_v51 }
 0x18f   : > { %6141 = vmatprep.subr.bf16.mxu1 %v8935_v51  ;;  %1833 = vmatprep.mubr.bf16.mxu0 %v7760_v3 }
 0x190   : > { %6151 = vmatprep.mubr.msk.bf16.mxu1 %vm7762_vm0, %v8935_v51 }
 0x191   : > { %6122 = vmatpush3.bf16.msra.mxu0 %v6981_v58 }
 0x192   : > { %6142 = vmatpush3.bf16.msra.mxu1 %v6982_v59  ;;  %6123 = vmatprep.subr.bf16.mxu0 %v8935_v51  ;;  %v1195_v59 = vsub.s32 1, %v8270_v43 }
 0x193   : > { %6143 = vmatprep.subr.bf16.mxu1 %v8935_v51 }
 0x194   : > { %1834 = vmatmul.mubr.bf16.gmra.mrb[24].mxu0 %v6977_v52 }
 0x195   : > { %6124 = vmatpush3.bf16.msra.mxu0 %v6983_v60  ;;  %1843 = vmatprep.mubr.bf16.mxu0 %v7760_v3  ;;  %v6991_v3 = vld [vmem:[#allocation14 + $0x4] ss:$12 sps:$4 sm:$0xff]  }
 0x196   : > { %6144 = vmatpush3.bf16.msra.mxu1 %v6984_v61  ;;  %6125 = vmatprep.subr.bf16.mxu0 %v8935_v51  ;;  %v8303_v61 = vrot.slane %v522_v45, %v1195_v59 }
 0x197   : > { %6145 = vmatprep.subr.bf16.mxu1 %v8935_v51 }
 0x199   : > { %6126 = vmatpush3.bf16.msra.mxu0 %v6985_v62 }
 0x19a   : > { %6146 = vmatpush3.bf16.msra.mxu1 %v6986_v63  ;;  %6127 = vmatprep.subr.bf16.mxu0 %v8935_v51 }
 0x19b   : > { %6147 = vmatprep.subr.bf16.mxu1 %v8935_v51 }
 0x19c   : > { %1844 = vmatmul.mubr.bf16.gmra.mrb[28].mxu0 %v6978_v55  ;;  %v1191_v55 = vsub.s32 0, %v8270_v43 }
 0x19d   : > { %6128 = vmatpush3.bf16.msra.mxu0 %v6987_v0  ;;  %6131 = vmatprep.mubr.msk.bf16.mxu0 %vm7762_vm0, %v8935_v51 }
 0x19e   : > { %6148 = vmatpush3.bf16.msra.mxu1 %v6988_v1  ;;  %6129 = vmatprep.subr.bf16.mxu0 %v8935_v51  ;;  %v8299_v60 = vrot.slane %v522_v45, %v1191_v55  ;;  %v7036_v45 = vld [vmem:[#allocation17 + $0x90] ss:$12 sps:$4 sm:$0xff]  }
 0x19f   : > { %6149 = vmatprep.subr.bf16.mxu1 %v8935_v51 }
 0x1a1   : > { %6130 = vmatpush3.bf16.msra.mxu0 %v6989_v2 }
 0x1a2   : > { %6150 = vmatpush3.bf16.msra.mxu1 %v6990_v4  ;;  %6155 = vmatprep.subr.bf16.mxu0 %v8935_v51 }
 0x1a3   : > { %6175 = vmatprep.subr.bf16.mxu1 %v8935_v51 }
 0x1a4   : > { %6132 = vmatmul.mubr.bf16.vlgmr.msra.gmra.mrb[32].mxu0 %v8214_v10 }
 0x1a5   : > { %6152 = vmatmul.mubr.bf16.vlgmr.msra.gmra.mrb[16].mxu1 %v8216_v11  ;;  %6156 = vmatpush3.bf16.msra.mxu0 %v6991_v3 }
 0x1a6   : > { %6176 = vmatpush3.bf16.msra.mxu1 %v6992_v9  ;;  %6157 = vmatprep.subr.bf16.mxu0 %v8935_v51 }
 0x1a7   : > { %6177 = vmatprep.subr.bf16.mxu1 %v8935_v51  ;;  %6171 = vmatprep.mubr.msk.bf16.mxu0 %vm7762_vm0, %v8935_v51 }
 0x1a8   : > { %6191 = vmatprep.mubr.msk.bf16.mxu1 %vm7762_vm0, %v8935_v51 }
 0x1a9   : > { %6158 = vmatpush3.bf16.msra.mxu0 %v6993_v12 }
 0x1aa   : > { %6178 = vmatpush3.bf16.msra.mxu1 %v6994_v13  ;;  %6159 = vmatprep.subr.bf16.mxu0 %v8935_v51 }
 0x1ab   : > { %6179 = vmatprep.subr.bf16.mxu1 %v8935_v51 }
 0x1ad   : > { %6160 = vmatpush3.bf16.msra.mxu0 %v6995_v14 }
 0x1ae   : > { %6180 = vmatpush3.bf16.msra.mxu1 %v6996_v15  ;;  %6161 = vmatprep.subr.bf16.mxu0 %v8935_v51 }
 0x1af   : > { %6181 = vmatprep.subr.bf16.mxu1 %v8935_v51 }
 0x1b1   : > { %6162 = vmatpush3.bf16.msra.mxu0 %v6997_v16 }
 0x1b2   : > { %6182 = vmatpush3.bf16.msra.mxu1 %v6998_v17  ;;  %6163 = vmatprep.subr.bf16.mxu0 %v8935_v51 }
 0x1b3   : > { %6183 = vmatprep.subr.bf16.mxu1 %v8935_v51 }
 0x1b5   : > { %6164 = vmatpush3.bf16.msra.mxu0 %v6999_v18 }
 0x1b6   : > { %6184 = vmatpush3.bf16.msra.mxu1 %v7000_v19  ;;  %6165 = vmatprep.subr.bf16.mxu0 %v8935_v51 }
 0x1b7   : > { %6185 = vmatprep.subr.bf16.mxu1 %v8935_v51 }
 0x1b9   : > { %6166 = vmatpush3.bf16.msra.mxu0 %v7001_v20 }
 0x1ba   : > { %6186 = vmatpush3.bf16.msra.mxu1 %v7002_v21  ;;  %6167 = vmatprep.subr.bf16.mxu0 %v8935_v51 }
 0x1bb   : > { %6187 = vmatprep.subr.bf16.mxu1 %v8935_v51 }
 0x1bd   : > { %6168 = vmatpush3.bf16.msra.mxu0 %v7003_v22  ;;  %v7023_v22 = vld [vmem:[#allocation14] ss:$12 sps:$4 sm:$0xff]  }
 0x1be   : > { %6188 = vmatpush3.bf16.msra.mxu1 %v7004_v23  ;;  %6169 = vmatprep.subr.bf16.mxu0 %v8935_v51  ;;  %v7024_v23 = vld [vmem:[#allocation17] ss:$12 sps:$4 sm:$0xff]  }
 0x1bf   : > { %6189 = vmatprep.subr.bf16.mxu1 %v8935_v51 }
 0x1c1   : > { %6170 = vmatpush3.bf16.msra.mxu0 %v7005_v24  ;;  %v7025_v24 = vld [vmem:[#allocation14 + $0x18] ss:$12 sps:$4 sm:$0xff]  }
 0x1c2   : > { %6190 = vmatpush3.bf16.msra.mxu1 %v7006_v25  ;;  %6195 = vmatprep.subr.bf16.mxu0 %v8935_v51  ;;  %v7026_v25 = vld [vmem:[#allocation17 + $0x18] ss:$12 sps:$4 sm:$0xff]  }
 0x1c3   : > { %6215 = vmatprep.subr.bf16.mxu1 %v8935_v51 }
 0x1c4   : > { %6172 = vmatmul.mubr.bf16.vlgmr.msra.gmra.mrb[36].mxu0 %v8214_v10 }
 0x1c5   : > { %6192 = vmatmul.mubr.bf16.vlgmr.msra.gmra.mrb[20].mxu1 %v8216_v11  ;;  %6196 = vmatpush3.bf16.msra.mxu0 %v7007_v26 }
 0x1c6   : > { %6216 = vmatpush3.bf16.msra.mxu1 %v7008_v27  ;;  %6197 = vmatprep.subr.bf16.mxu0 %v8935_v51 }
 0x1c7   : > { %6217 = vmatprep.subr.bf16.mxu1 %v8935_v51  ;;  %6211 = vmatprep.mubr.msk.bf16.mxu0 %vm7762_vm0, %v8935_v51 }
 0x1c8   : > { %6231 = vmatprep.mubr.msk.bf16.mxu1 %vm7762_vm0, %v8935_v51 }
 0x1c9   : > { %6198 = vmatpush3.bf16.msra.mxu0 %v7009_v28 }
 0x1ca   : > { %6218 = vmatpush3.bf16.msra.mxu1 %v7010_v29  ;;  %6199 = vmatprep.subr.bf16.mxu0 %v8935_v51 }
 0x1cb   : > { %6219 = vmatprep.subr.bf16.mxu1 %v8935_v51 }
 0x1cd   : > { %6200 = vmatpush3.bf16.msra.mxu0 %v7011_v30 }
 0x1ce   : > { %6220 = vmatpush3.bf16.msra.mxu1 %v7012_v31  ;;  %6201 = vmatprep.subr.bf16.mxu0 %v8935_v51 }
 0x1cf   : > { %6221 = vmatprep.subr.bf16.mxu1 %v8935_v51 }
 0x1d1   : > { %6202 = vmatpush3.bf16.msra.mxu0 %v7013_v32 }
 0x1d2   : > { %6222 = vmatpush3.bf16.msra.mxu1 %v7014_v33  ;;  %6203 = vmatprep.subr.bf16.mxu0 %v8935_v51 }
 0x1d3   : > { %6223 = vmatprep.subr.bf16.mxu1 %v8935_v51 }
 0x1d5   : > { %6204 = vmatpush3.bf16.msra.mxu0 %v7015_v34  ;;  %v7027_v34 = vld [vmem:[#allocation14 + $0x30] ss:$12 sps:$4 sm:$0xff]  }
 0x1d6   : > { %6224 = vmatpush3.bf16.msra.mxu1 %v7016_v35  ;;  %6205 = vmatprep.subr.bf16.mxu0 %v8935_v51  ;;  %v7028_v35 = vld [vmem:[#allocation17 + $0x30] ss:$12 sps:$4 sm:$0xff]  }
 0x1d7   : > { %6225 = vmatprep.subr.bf16.mxu1 %v8935_v51 }
 0x1d9   : > { %6206 = vmatpush3.bf16.msra.mxu0 %v7017_v36  ;;  %v7029_v36 = vld [vmem:[#allocation14 + $0x48] ss:$12 sps:$4 sm:$0xff]  }
 0x1da   : > { %6226 = vmatpush3.bf16.msra.mxu1 %v7018_v37  ;;  %6207 = vmatprep.subr.bf16.mxu0 %v8935_v51  ;;  %v7030_v37 = vld [vmem:[#allocation17 + $0x48] ss:$12 sps:$4 sm:$0xff]  }
 0x1db   : > { %6227 = vmatprep.subr.bf16.mxu1 %v8935_v51 }
 0x1dd   : > { %6208 = vmatpush3.bf16.msra.mxu0 %v7019_v38  ;;  %v7031_v38 = vld [vmem:[#allocation14 + $0x60] ss:$12 sps:$4 sm:$0xff]  }
 0x1de   : > { %6228 = vmatpush3.bf16.msra.mxu1 %v7020_v39  ;;  %6209 = vmatprep.subr.bf16.mxu0 %v8935_v51  ;;  %v7032_v39 = vld [vmem:[#allocation17 + $0x60] ss:$12 sps:$4 sm:$0xff]  }
 0x1df   : > { %6229 = vmatprep.subr.bf16.mxu1 %v8935_v51 }
 0x1e1   : > { %6210 = vmatpush3.bf16.msra.mxu0 %v7021_v40  ;;  %v7033_v40 = vld [vmem:[#allocation14 + $0x78] ss:$12 sps:$4 sm:$0xff]  }
 0x1e2   : > { %6230 = vmatpush3.bf16.msra.mxu1 %v7022_v41  ;;  %6235 = vmatprep.subr.bf16.mxu0 %v8935_v51  ;;  %v7034_v41 = vld [vmem:[#allocation17 + $0x78] ss:$12 sps:$4 sm:$0xff]  }
 0x1e3   : > { %6255 = vmatprep.subr.bf16.mxu1 %v8935_v51 }
 0x1e4   : > { %6212 = vmatmul.mubr.bf16.vlgmr.msra.gmra.mrb[40].mxu0 %v8214_v10 }
 0x1e5   : > { %6232 = vmatmul.mubr.bf16.vlgmr.msra.gmra.mrb[24].mxu1 %v8216_v11  ;;  %6251 = vmatprep.mubr.msk.bf16.mxu0 %vm7762_vm0, %v8935_v51 }
 0x1e6   : > { %6271 = vmatprep.mubr.msk.bf16.mxu1 %vm7762_vm0, %v8935_v51  ;;  %6236 = vmatpush3.bf16.msra.mxu0 %v7023_v22 }
 0x1e7   : > { %6256 = vmatpush3.bf16.msra.mxu1 %v7024_v23  ;;  %6237 = vmatprep.subr.bf16.mxu0 %v8935_v51 }
 0x1e8   : > { %6257 = vmatprep.subr.bf16.mxu1 %v8935_v51 }
 0x1ea   : > { %6238 = vmatpush3.bf16.msra.mxu0 %v7025_v24 }
 0x1eb   : > { %6258 = vmatpush3.bf16.msra.mxu1 %v7026_v25  ;;  %6239 = vmatprep.subr.bf16.mxu0 %v8935_v51 }
 0x1ec   : > { %6259 = vmatprep.subr.bf16.mxu1 %v8935_v51 }
 0x1ee   : > { %6240 = vmatpush3.bf16.msra.mxu0 %v7027_v34 }
 0x1ef   : > { %6260 = vmatpush3.bf16.msra.mxu1 %v7028_v35  ;;  %6241 = vmatprep.subr.bf16.mxu0 %v8935_v51 }
 0x1f0   : > { %6261 = vmatprep.subr.bf16.mxu1 %v8935_v51 }
 0x1f2   : > { %6242 = vmatpush3.bf16.msra.mxu0 %v7029_v36 }
 0x1f3   : > { %6262 = vmatpush3.bf16.msra.mxu1 %v7030_v37  ;;  %6243 = vmatprep.subr.bf16.mxu0 %v8935_v51 }
 0x1f4   : > { %6263 = vmatprep.subr.bf16.mxu1 %v8935_v51 }
 0x1f6   : > { %6244 = vmatpush3.bf16.msra.mxu0 %v7031_v38 }
 0x1f7   : > { %6264 = vmatpush3.bf16.msra.mxu1 %v7032_v39  ;;  %6245 = vmatprep.subr.bf16.mxu0 %v8935_v51 }
 0x1f8   : > { %6265 = vmatprep.subr.bf16.mxu1 %v8935_v51 }
 0x1fa   : > { %6246 = vmatpush3.bf16.msra.mxu0 %v7033_v40 }
 0x1fb   : > { %6266 = vmatpush3.bf16.msra.mxu1 %v7034_v41  ;;  %6247 = vmatprep.subr.bf16.mxu0 %v8935_v51 }
 0x1fc   : > { %6267 = vmatprep.subr.bf16.mxu1 %v8935_v51 }
 0x1fe   : > { %6248 = vmatpush3.bf16.msra.mxu0 %v7035_v42 }
 0x1ff   : > { %6268 = vmatpush3.bf16.msra.mxu1 %v7036_v45  ;;  %6249 = vmatprep.subr.bf16.mxu0 %v8935_v51 }
 0x200   : > { %6269 = vmatprep.subr.bf16.mxu1 %v8935_v51 }
 0x217   : > { %v8277_v47 = vpop.f32.mrb[0].mxu0 }
 0x218   : > { %v6061_v48 = vpop.f32.mrb[0].mxu1  ;;  %v8282_v50 = vpop.f32.mrb[1].mxu0 }
 0x219   : > { %v8280_v49 = vadd.f32 %v6061_v48, %v8275_v46  ;;  %v8284_v52 = vpop.f32.mrb[1].mxu1  ;;  %v8286_v53 = vpop.f32.mrb[2].mxu0  ;;  %v7037_v48 = vld [vmem:[#allocation14 + $0xa8] ss:$12 sps:$4 sm:$0xff]  }
 0x21a   : > { %v6062_v54 = vpop.f32.mrb[2].mxu1  ;;  %v8292_v57 = vpop.f32.mrb[3].mxu0  ;;  %6250 = vmatpush3.bf16.msra.mxu0 %v7037_v48 }
 0x21b   : > { %v8290_v56 = vadd.f32 %v6062_v54, %v8275_v46  ;;  %v8294_v58 = vpop.f32.mrb[3].mxu1  ;;  %v7038_v54 = vld [vmem:[#allocation17 + $0xa8] ss:$12 sps:$4 sm:$0xff]   ;;  %6275 = vmatprep.subr.bf16.mxu0 %v8935_v51 }
 0x21c   : > { %6270 = vmatpush3.bf16.msra.mxu1 %v7038_v54 }
 0x21d   : > { %6295 = vmatprep.subr.bf16.mxu1 %v8935_v51 }
 0x21f   : > { %v1094_v62 = vpop.f32.mrb[4].mxu0 }
 0x220   : > { %v6065_v63 = vpop.f32.mrb[4].mxu1  ;;  %v8306_v0 = vadd.f32 %v8299_v60, %v1094_v62  ;;  %v1096_v2 = vpop.f32.mrb[5].mxu0  ;;  %v1253_v62 = vld [vmem:[#allocation19 + $0x3] sm:$0x7] }
 0x221   : > { %v8309_v1 = vadd.f32 %v6065_v63, %v8275_v46  ;;  %v1173_v4 = vpop.f32.mrb[5].mxu1  ;;  %v8312_v5 = vadd.f32 %v8303_v61, %v1096_v2  ;;  %v1098_v7 = vpop.f32.mrb[6].mxu0  ;;  %v1923_v63 = vrot.slane %v1253_v62, %v1191_v55  ;;  %v8373_v2 = vrot.slane %v1253_v62, %v1199_v44 }
 0x222   : > { %v8315_v6 = vadd.f32 %v8275_v46, %v1173_v4  ;;  %v6066_v8 = vpop.f32.mrb[6].mxu1  ;;  %v8318_v3 = vadd.f32 %v8299_v60, %v1098_v7  ;;  %v1100_v10 = vpop.f32.mrb[7].mxu0  ;;  %v8377_v4 = vrot.slane %v1253_v62, %v1195_v59 }
 0x223   : > { %8972 = vst [vmem:[#allocation46_spill] sm:$0xff] %v8309_v1  ;;  %v8321_v9 = vadd.f32 %v6066_v8, %v8275_v46  ;;  %v1176_v11 = vpop.f32.mrb[7].mxu1  ;;  %v8324_v12 = vadd.f32 %v8303_v61, %v1100_v10 }
 0x224   : > { %v8327_v13 = vadd.f32 %v8275_v46, %v1176_v11 }
 0x225   : > { %8973 = vst [vmem:[#allocation47_spill] sm:$0xff] %v8321_v9 }
 0x227   : > { %v1104_v14 = vpop.f32.mrb[8].mxu0 }
 0x228   : > { %v8330_v15 = vadd.f32 %v8299_v60, %v1104_v14  ;;  %v1106_v16 = vpop.f32.mrb[9].mxu0 }
 0x229   : > { %v8333_v17 = vadd.f32 %v8303_v61, %v1106_v16  ;;  %v1108_v18 = vpop.f32.mrb[10].mxu0 }
 0x22a   : > { %v8336_v19 = vadd.f32 %v8299_v60, %v1108_v18  ;;  %v1110_v20 = vpop.f32.mrb[11].mxu0 }
 0x22b   : > { %v8339_v21 = vadd.f32 %v8303_v61, %v1110_v20 }
 0x22f   : > { %v1114_v26 = vpop.f32.mrb[12].mxu0 }
 0x230   : > { %v8344_v27 = vadd.f32 %v8299_v60, %v1114_v26  ;;  %v1116_v28 = vpop.f32.mrb[13].mxu0 }
 0x231   : > { %v8347_v29 = vadd.f32 %v8303_v61, %v1116_v28  ;;  %v1118_v30 = vpop.f32.mrb[14].mxu0 }
 0x232   : > { %v8350_v31 = vadd.f32 %v8299_v60, %v1118_v30  ;;  %v1120_v32 = vpop.f32.mrb[15].mxu0 }
 0x233   : > { %8974 = vst [vmem:[#allocation48_spill] sm:$0xff] %v8347_v29  ;;  %v8353_v33 = vadd.f32 %v8303_v61, %v1120_v32 }
 0x235   : > { %8975 = vst [vmem:[#allocation49_spill] sm:$0xff] %v8353_v33 }
 0x257   : > { %v1815_v7 = vpop.f32.mrb[16].mxu0 }
 0x258   : > { %v6109_v8 = vpop.f32.mrb[8].mxu1  ;;  %v8379_v10 = vadd.f32 %v1923_v63, %v1815_v7  ;;  %v1817_v14 = vpop.f32.mrb[17].mxu0 }
 0x259   : > { %v8382_v11 = vadd.f32 %v6109_v8, %v8373_v2  ;;  %v1888_v16 = vpop.f32.mrb[9].mxu1  ;;  %v8385_v18 = vadd.f32 %v8377_v4, %v1817_v14  ;;  %v1819_v44 = vpop.f32.mrb[18].mxu0 }
 0x25a   : > { %v8388_v55 = vadd.f32 %v8373_v2, %v1888_v16  ;;  %v6110_v20 = vpop.f32.mrb[10].mxu1  ;;  %v8390_v43 = vadd.f32 %v1923_v63, %v1819_v44  ;;  %v1821_v22 = vpop.f32.mrb[19].mxu0 }
 0x25b   : > { %8976 = vst [vmem:[#allocation50_spill] sm:$0xff] %v8385_v18  ;;  %v8393_v59 = vadd.f32 %v6110_v20, %v8373_v2  ;;  %v1891_v23 = vpop.f32.mrb[11].mxu1  ;;  %v8396_v24 = vadd.f32 %v8377_v4, %v1821_v22 }
 0x25c   : > { %8977 = vst [vmem:[#allocation51_spill] sm:$0xff] %v8388_v55  ;;  %v8399_v25 = vadd.f32 %v8373_v2, %v1891_v23 }
 0x25d   : > { %8978 = vst [vmem:[#allocation52_spill] sm:$0xff] %v8396_v24 }
 0x25e   : > { %8979 = vst [vmem:[#allocation53_spill] sm:$0xff] %v8399_v25 }
 0x25f   : > { %v1825_v26 = vpop.f32.mrb[20].mxu0 }
 0x260   : > { %v8401_v28 = vpop.f32.mrb[12].mxu1  ;;  %v8403_v30 = vadd.f32 %v1923_v63, %v1825_v26  ;;  %v1827_v32 = vpop.f32.mrb[21].mxu0 }
 0x261   : > { %v1904_v34 = vpop.f32.mrb[13].mxu1  ;;  %v8406_v35 = vadd.f32 %v8377_v4, %v1827_v32  ;;  %v1829_v37 = vpop.f32.mrb[22].mxu0  ;;  %v1204_v32 = vadd.f32 %v8299_v60, %v8277_v47  ;;  %v1205_v47 = vadd.f32 %v8303_v61, %v8282_v50 }
 0x262   : > { %v8409_v36 = vadd.f32 %v8373_v2, %v1904_v34  ;;  %v8411_v38 = vpop.f32.mrb[14].mxu1  ;;  %v8413_v39 = vadd.f32 %v1923_v63, %v1829_v37  ;;  %v1831_v40 = vpop.f32.mrb[23].mxu0 }
 0x263   : > { %v1907_v41 = vpop.f32.mrb[15].mxu1  ;;  %v8416_v42 = vadd.f32 %v8377_v4, %v1831_v40 }
 0x264   : > { %v8419_v45 = vadd.f32 %v8373_v2, %v1907_v41  ;;  %v1207_v41 = vadd.f32 %v8299_v60, %v8286_v53  ;;  %v1208_v53 = vadd.f32 %v8303_v61, %v8292_v57 }
 0x267   : > { %v1835_v48 = vpop.f32.mrb[24].mxu0 }
 0x268   : > { %v8421_v54 = vadd.f32 %v1923_v63, %v1835_v48  ;;  %v1837_v62 = vpop.f32.mrb[25].mxu0 }
 0x269   : > { %v8424_v7 = vadd.f32 %v8377_v4, %v1837_v62  ;;  %v1839_v8 = vpop.f32.mrb[26].mxu0 }
 0x26a   : > { %v8426_v14 = vadd.f32 %v1923_v63, %v1839_v8  ;;  %v1841_v16 = vpop.f32.mrb[27].mxu0 }
 0x26b   : > { %v8429_v44 = vadd.f32 %v8377_v4, %v1841_v16 }
 0x26f   : > { %v1845_v20 = vpop.f32.mrb[28].mxu0 }
 0x270   : > { %v1847_v22 = vpop.f32.mrb[29].mxu0  ;;  %v1953_v34 = vadd.f32 %v1923_v63, %v1845_v20 }
 0x271   : > { %v1849_v23 = vpop.f32.mrb[30].mxu0  ;;  %v1954_v20 = vadd.f32 %v8377_v4, %v1847_v22 }
 0x272   : > { %v1851_v26 = vpop.f32.mrb[31].mxu0  ;;  %v1956_v48 = vadd.f32 %v1923_v63, %v1849_v23 }
 0x273   : > { %v1957_v60 = vadd.f32 %v8377_v4, %v1851_v26 }
 0x277   : > { %v2091_v37 = vpop.f32.mrb[32].mxu0 }
 0x278   : > { %v2196_v40 = vpop.f32.mrb[16].mxu1  ;;  %v2205_v62 = vadd.f32 %v2091_v37, %v1204_v32  ;;  %v6133_v51 = vpop.f32.mrb[33].mxu0 }
 0x279   : > { %v2222_v8 = vadd.f32 %v2196_v40, %v1953_v34  ;;  %v6153_v25 = vpop.f32.mrb[17].mxu1  ;;  %v2094_v16 = vpop.f32.mrb[34].mxu0 }
 0x27a   : > { %v2199_v9 = vpop.f32.mrb[18].mxu1  ;;  %v2206_v55 = vadd.f32 %v2094_v16, %v1207_v41  ;;  %v6134_v24 = vpop.f32.mrb[35].mxu0  ;;  %v5433_v32 = vmul.f32 -1.442695, %v2205_v62 }
 0x27b   : > { %v2223_v1 = vadd.f32 %v2199_v9, %v1956_v48  ;;  %v6154_v33 = vpop.f32.mrb[19].mxu1 }
 0x27c   : > { %v5435_v33 = vmul.f32 -1.442695, %v2222_v8  ;;  %v5434_v22 = vmul.f32 -1.442695, %v2206_v55  ;;  %7167 = vpow2.f32 %v5433_v32 }
 0x27d   : > { %v5436_v41 = vmul.f32 -1.442695, %v2223_v1 }
 0x27e   : > { %7169 = vpow2.f32 %v5435_v33 }
 0x27f   : > { %7171 = vpow2.f32 %v5434_v22 }
 0x280   : > { %7173 = vpow2.f32 %v5436_v41  ;;  %v1206_v41 = vadd.f32 %v8275_v46, %v8284_v52  ;;  %v1209_v52 = vadd.f32 %v8275_v46, %v8294_v58 }
 0x297   : > { %v2334_v18 = vpop.f32.mrb[36].mxu0 }
 0x298   : > { %v2439_v29 = vpop.f32.mrb[20].mxu1  ;;  %v2448_v51 = vadd.f32 %v2334_v18, %v1205_v47  ;;  %v6173_v25 = vpop.f32.mrb[37].mxu0 }
 0x299   : > { %v2465_v63 = vadd.f32 %v2439_v29, %v1954_v20  ;;  %v6193_v23 = vpop.f32.mrb[21].mxu1  ;;  %v2337_v9 = vpop.f32.mrb[38].mxu0  ;;  %v8443_v25 = vld [vmem:[#allocation20 + $0x1] ss:$0 sm:$0xff] }
 0x29a   : > { %v2442_v24 = vpop.f32.mrb[22].mxu1  ;;  %v2449_v34 = vadd.f32 %v2337_v9, %v1208_v53  ;;  %v6174_v50 = vpop.f32.mrb[39].mxu0  ;;  %v5453_v57 = vmul.f32 -1.442695, %v2448_v51 }
 0x29b   : > { %v2466_v37 = vadd.f32 %v2442_v24, %v1957_v60  ;;  %v6194_v40 = vpop.f32.mrb[23].mxu1  ;;  %v5455_v61 = vmul.f32 -1.442695, %v2465_v63  ;;  %v7168_v29 = vpop.eup %7167  ;;  %v8441_v63 = vld [vmem:[#allocation20] ss:$0 sm:$0xff] }
 0x29c   : > { %v5454_v4 = vmul.f32 -1.442695, %v2449_v34  ;;  %7175 = vpow2.f32 %v5453_v57  ;;  %v7170_v18 = vpop.eup %7169  ;;  %v2213_v8 = vadd.f32 1.0, %v7168_v29  ;;  %v1955_v57 = vadd.f32 %v8401_v28, %v8373_v2 }
 0x29d   : > { %7177 = vpow2.f32 %v5455_v61  ;;  %v5456_v26 = vmul.f32 -1.442695, %v2466_v37  ;;  %v7172_v48 = vpop.eup %7171  ;;  %v2230_v16 = vadd.f32 1.0, %v7170_v18  ;;  %v1958_v28 = vadd.f32 %v8411_v38, %v8373_v2 }
 0x29e   : > { %v7174_v62 = vpop.eup %7173  ;;  %7179 = vpow2.f32 %v5454_v4  ;;  %v2214_v47 = vadd.f32 1.0, %v7172_v48 }
 0x29f   : > { %7181 = vpow2.f32 %v5456_v26  ;;  %v2231_v1 = vadd.f32 1.0, %v7174_v62 }
 0x2a0   : > { %7183 = vrcp.f32 %v2213_v8 }
 0x2a1   : > { %7185 = vrcp.f32 %v2230_v16 }
 0x2a2   : > { %7187 = vrcp.f32 %v2214_v47 }
 0x2a3   : > { %7189 = vrcp.f32 %v2231_v1 }
 0x2a6   : > { %v7176_v55 = vpop.eup %7175 }
 0x2a7   : > { %v7178_v20 = vpop.eup %7177  ;;  %v2456_v60 = vadd.f32 1.0, %v7176_v55 }
 0x2a8   : > { %v7180_v53 = vpop.eup %7179  ;;  %v2473_v51 = vadd.f32 1.0, %v7178_v20 }
 0x2a9   : > { %v7182_v23 = vpop.eup %7181  ;;  %v2457_v32 = vadd.f32 1.0, %v7180_v53  ;;  %7191 = vrcp.f32 %v2456_v60 }
 0x2aa   : > { %v7184_v33 = vpop.eup %7183  ;;  %7193 = vrcp.f32 %v2473_v51  ;;  %v2474_v61 = vadd.f32 1.0, %v7182_v23 }
 0x2ab   : > { %v7186_v22 = vpop.eup %7185  ;;  %7195 = vrcp.f32 %v2457_v32 }
 0x2ac   : > { %v7188_v18 = vpop.eup %7187  ;;  %7197 = vrcp.f32 %v2474_v61  ;;  %v7328_v61 = vld [vmem:[#allocation25 + $0x10] sm:$0xff] }
 0x2ad   : > { %v7190_v1 = vpop.eup %7189 }
 0x2b7   : > { %v2601_v9 = vpop.f32.mrb[40].mxu0 }
 0x2b8   : > { %v2705_v24 = vpop.f32.mrb[24].mxu1  ;;  %v2602_v34 = vadd.f32 %v8441_v63, %v2601_v9  ;;  %v6213_v50 = vpop.f32.mrb[41].mxu0 }
 0x2b9   : > { %v2706_v37 = vadd.f32 %v8443_v25, %v2705_v24  ;;  %v6233_v40 = vpop.f32.mrb[25].mxu1  ;;  %v2604_v4 = vpop.f32.mrb[42].mxu0  ;;  %v7327_v50 = vld [vmem:[#allocation25] sm:$0xff] }
 0x2ba   : > { %v2708_v29 = vpop.f32.mrb[26].mxu1  ;;  %v2608_v26 = vmul.f32 %v7184_v33, %v2602_v34  ;;  %v2605_v62 = vadd.f32 %v8441_v63, %v2604_v4  ;;  %v6214_v16 = vpop.f32.mrb[43].mxu0 }
 0x2bb   : > { %v2712_v48 = vmul.f32 %v7186_v22, %v2706_v37  ;;  %v2709_v8 = vadd.f32 %v8443_v25, %v2708_v29  ;;  %v6234_v47 = vpop.f32.mrb[27].mxu1  ;;  %v7192_v9 = vpop.eup %7191  ;;  %v7330_v16 = vld [vmem:[#allocation25 + $0x18] sm:$0xff] }
 0x2bc   : > { %v2610_v55 = vadd.f32 %v2608_v26, %v1206_v41  ;;  %v2609_v53 = vmul.f32 %v7188_v18, %v2605_v62  ;;  %v7194_v24 = vpop.eup %7193  ;;  %v2718_v46 = vsub.f32 1.0, %v7192_v9  ;;  %v2722_v40 = vmul.f32 %v7327_v50, %v7192_v9  ;;  %v7329_v26 = vld [vmem:[#allocation25 + $0x8] sm:$0xff]  ;;  %v7042_v9 = vld [vmem:[#allocation17 + $0x1c] ss:$12 sps:$4 sm:$0xff]  }
 0x2bd   : > { %v2714_v20 = vadd.f32 %v2712_v48, %v1955_v57  ;;  %v2713_v60 = vmul.f32 %v7190_v1, %v2709_v8  ;;  %v7196_v33 = vpop.eup %7195  ;;  %v2726_v37 = vsub.f32 1.0, %v7194_v24  ;;  %v2730_v4 = vmul.f32 %v7328_v61, %v7194_v24  ;;  %v7043_v24 = vld [vmem:[#allocation14 + $0x34] ss:$12 sps:$4 sm:$0xff]  }
 0x2be   : > { %7199 = vtanh.f32 %v2610_v55  ;;  %v2611_v51 = vadd.f32 %v2609_v53, %v1209_v52  ;;  %v7198_v34 = vpop.eup %7197  ;;  %v2719_v38 = vsub.f32 1.0, %v7196_v33  ;;  %v2723_v48 = vmul.f32 %v7329_v26, %v7196_v33  ;;  %v7039_v55 = vld [vmem:[#allocation14 + $0x4] ss:$12 sps:$4 sm:$0xff]   ;;  %v7044_v33 = vld [vmem:[#allocation17 + $0x34] ss:$12 sps:$4 sm:$0xff]  }
 0x2bf   : > { %v2715_v23 = vadd.f32 %v2713_v60, %v1958_v28  ;;  %7201 = vtanh.f32 %v2714_v20  ;;  %v2727_v41 = vsub.f32 1.0, %v7198_v34  ;;  %v2731_v47 = vmul.f32 %v7330_v16, %v7198_v34  ;;  %v7040_v53 = vld [vmem:[#allocation17 + $0x4] ss:$12 sps:$4 sm:$0xff]   ;;  %v7045_v34 = vld [vmem:[#allocation14 + $0x4c] ss:$12 sps:$4 sm:$0xff]  }
 0x2c0   : > { %7203 = vtanh.f32 %v2611_v51  ;;  %v7041_v51 = vld [vmem:[#allocation14 + $0x1c] ss:$12 sps:$4 sm:$0xff]   ;;  %v7052_v50 = vld [vmem:[#allocation17 + $0x94] ss:$12 sps:$4 sm:$0xff]  }
 0x2c1   : > { %7205 = vtanh.f32 %v2715_v23  ;;  %v8980_v23 = vmov 0.0   ;;  %v7057_v61 = vld [vmem:[#allocation14 + $0x20] ss:$12 sps:$4 sm:$0xff]   ;;  %v7061_v26 = vld [vmem:[#allocation14 + $0x50] ss:$12 sps:$4 sm:$0xff]  }
 0x2c2   : > { %v7064_v16 = vld [vmem:[#allocation17 + $0x68] ss:$12 sps:$4 sm:$0xff]  }
 0x2c8   : > { %v7200_v58 = vpop.eup %7199 }
 0x2c9   : > { %v7202_v2 = vpop.eup %7201  ;;  %v2720_v32 = vmul.f32 %v7200_v58, %v2718_v46  ;;  %v7046_v46 = vld [vmem:[#allocation17 + $0x4c] ss:$12 sps:$4 sm:$0xff]   ;;  %v7047_v58 = vld [vmem:[#allocation14 + $0x64] ss:$12 sps:$4 sm:$0xff]  }
 0x2ca   : > { %v7204_v22 = vpop.eup %7203  ;;  %v2728_v57 = vmul.f32 %v7202_v2, %v2726_v37  ;;  %v7048_v37 = vld [vmem:[#allocation17 + $0x64] ss:$12 sps:$4 sm:$0xff]   ;;  %v7049_v2 = vld [vmem:[#allocation14 + $0x7c] ss:$12 sps:$4 sm:$0xff]  }
 0x2cb   : > { %v7206_v29 = vpop.eup %7205  ;;  %v2721_v18 = vmul.f32 %v7204_v22, %v2719_v38  ;;  %v8457_v62 = vadd.f32 %v2722_v40, %v2720_v32  ;;  %v7050_v38 = vld [vmem:[#allocation17 + $0x7c] ss:$12 sps:$4 sm:$0xff]   ;;  %v7051_v32 = vld [vmem:[#allocation14 + $0x94] ss:$12 sps:$4 sm:$0xff]   ;;  %v7053_v40 = vld [vmem:[#allocation14 + $0xac] ss:$12 sps:$4 sm:$0xff]  }
 0x2cc   : > { %v2729_v8 = vmul.f32 %v7206_v29, %v2727_v41  ;;  %v8459_v1 = vadd.f32 %v2730_v4, %v2728_v57  ;;  %v7054_v22 = vld [vmem:[#allocation17 + $0xac] ss:$12 sps:$4 sm:$0xff]   ;;  %v7055_v41 = vld [vmem:[#allocation14 + $0x8] ss:$12 sps:$4 sm:$0xff]  }
 0x2cd   : > { %v8461_v52 = vadd.f32 %v2723_v48, %v2721_v18  ;;  %v7056_v57 = vld [vmem:[#allocation17 + $0x8] ss:$12 sps:$4 sm:$0xff]   ;;  %v7058_v4 = vld [vmem:[#allocation17 + $0x20] ss:$12 sps:$4 sm:$0xff]   ;;  %v7059_v29 = vld [vmem:[#allocation14 + $0x38] ss:$12 sps:$4 sm:$0xff]  }
 0x2ce   : > { %v8463_v28 = vadd.f32 %v2731_v47, %v2729_v8  ;;  %v7060_v18 = vld [vmem:[#allocation17 + $0x38] ss:$12 sps:$4 sm:$0xff]   ;;  %v7062_v48 = vld [vmem:[#allocation17 + $0x50] ss:$12 sps:$4 sm:$0xff]   ;;  %v7063_v8 = vld [vmem:[#allocation14 + $0x68] ss:$12 sps:$4 sm:$0xff]  }
 0x2cf   : > { %v8467_v20 = vpack.c.bf16 %v8461_v52, %v8457_v62  ;;  %v7065_v47 = vld [vmem:[#allocation14 + $0x80] ss:$12 sps:$4 sm:$0xff]  }
 0x2d0   : > { %v8471_v60 = vpack.c.bf16 %v8463_v28, %v8459_v1 }
 0x2d1   : > { %5713 = vst [vmem:[%s8137_s18] sm:$0xff] %v8467_v20   ;;  %6252 = vmatmul.mubr.bf16.vlgmr.msra.gmra.mrb[44].mxu0 %v8467_v20 }
 0x2d2   : > { %5749 = vst [vmem:[%s8139_s26 + $0x18] sm:$0xff] %v8471_v60   ;;  %6272 = vmatmul.mubr.bf16.vlgmr.msra.gmra.mrb[28].mxu1 %v8471_v60  ;;  %6276 = vmatpush3.bf16.msra.mxu0 %v7039_v55  ;;  %v7066_v55 = vld [vmem:[#allocation17 + $0x80] ss:$12 sps:$4 sm:$0xff]  }
 0x2d3   : > { %6296 = vmatpush3.bf16.msra.mxu1 %v7040_v53  ;;  %6277 = vmatprep.subr.bf16.mxu0 %v8980_v23  ;;  %v7067_v53 = vld [vmem:[#allocation14 + $0x98] ss:$12 sps:$4 sm:$0xff]  }
 0x2d4   : > { %6297 = vmatprep.subr.bf16.mxu1 %v8980_v23  ;;  %6291 = vmatprep.mubr.msk.bf16.mxu0 %vm7762_vm0, %v8980_v23 }
 0x2d5   : > { %6311 = vmatprep.mubr.msk.bf16.mxu1 %vm7762_vm0, %v8980_v23 }
 0x2d6   : > { %6278 = vmatpush3.bf16.msra.mxu0 %v7041_v51  ;;  %v7068_v51 = vld [vmem:[#allocation17 + $0x98] ss:$12 sps:$4 sm:$0xff]  }
 0x2d7   : > { %6298 = vmatpush3.bf16.msra.mxu1 %v7042_v9  ;;  %6279 = vmatprep.subr.bf16.mxu0 %v8980_v23  ;;  %v7069_v9 = vld [vmem:[#allocation14 + $0xb0] ss:$12 sps:$4 sm:$0xff]  }
 0x2d8   : > { %6299 = vmatprep.subr.bf16.mxu1 %v8980_v23 }
 0x2da   : > { %6280 = vmatpush3.bf16.msra.mxu0 %v7043_v24  ;;  %v7070_v24 = vld [vmem:[#allocation17 + $0xb0] ss:$12 sps:$4 sm:$0xff]  }
 0x2db   : > { %6300 = vmatpush3.bf16.msra.mxu1 %v7044_v33  ;;  %6281 = vmatprep.subr.bf16.mxu0 %v8980_v23  ;;  %v7071_v33 = vld [vmem:[#allocation14] ss:$12 sps:$4 sm:$0xff]  }
 0x2dc   : > { %6301 = vmatprep.subr.bf16.mxu1 %v8980_v23 }
 0x2de   : > { %6282 = vmatpush3.bf16.msra.mxu0 %v7045_v34  ;;  %v7072_v34 = vld [vmem:[#allocation17] ss:$12 sps:$4 sm:$0xff]  }
 0x2df   : > { %6302 = vmatpush3.bf16.msra.mxu1 %v7046_v46  ;;  %6283 = vmatprep.subr.bf16.mxu0 %v8980_v23  ;;  %v7073_v46 = vld [vmem:[#allocation14 + $0x18] ss:$12 sps:$4 sm:$0xff]  }
 0x2e0   : > { %6303 = vmatprep.subr.bf16.mxu1 %v8980_v23 }
 0x2e2   : > { %6284 = vmatpush3.bf16.msra.mxu0 %v7047_v58  ;;  %v7074_v58 = vld [vmem:[#allocation17 + $0x18] ss:$12 sps:$4 sm:$0xff]  }
 0x2e3   : > { %6304 = vmatpush3.bf16.msra.mxu1 %v7048_v37  ;;  %6285 = vmatprep.subr.bf16.mxu0 %v8980_v23  ;;  %v7077_v37 = vld [vmem:[#allocation14 + $0x48] ss:$12 sps:$4 sm:$0xff]  }
 0x2e4   : > { %6305 = vmatprep.subr.bf16.mxu1 %v8980_v23 }
 0x2e6   : > { %6286 = vmatpush3.bf16.msra.mxu0 %v7049_v2  ;;  %v7078_v2 = vld [vmem:[#allocation17 + $0x48] ss:$12 sps:$4 sm:$0xff]  }
 0x2e7   : > { %6306 = vmatpush3.bf16.msra.mxu1 %v7050_v38  ;;  %6287 = vmatprep.subr.bf16.mxu0 %v8980_v23  ;;  %v7079_v38 = vld [vmem:[#allocation14 + $0x60] ss:$12 sps:$4 sm:$0xff]  }
 0x2e8   : > { %6307 = vmatprep.subr.bf16.mxu1 %v8980_v23 }
 0x2ea   : > { %6288 = vmatpush3.bf16.msra.mxu0 %v7051_v32  ;;  %v7080_v32 = vld [vmem:[#allocation17 + $0x60] ss:$12 sps:$4 sm:$0xff]  }
 0x2eb   : > { %6308 = vmatpush3.bf16.msra.mxu1 %v7052_v50  ;;  %6289 = vmatprep.subr.bf16.mxu0 %v8980_v23  ;;  %v7081_v50 = vld [vmem:[#allocation14 + $0x78] ss:$12 sps:$4 sm:$0xff]  }
 0x2ec   : > { %6309 = vmatprep.subr.bf16.mxu1 %v8980_v23 }
 0x2ee   : > { %6290 = vmatpush3.bf16.msra.mxu0 %v7053_v40  ;;  %v7082_v40 = vld [vmem:[#allocation17 + $0x78] ss:$12 sps:$4 sm:$0xff]  }
 0x2ef   : > { %6310 = vmatpush3.bf16.msra.mxu1 %v7054_v22  ;;  %6315 = vmatprep.subr.bf16.mxu0 %v8980_v23  ;;  %v7083_v22 = vld [vmem:[#allocation14 + $0x90] ss:$12 sps:$4 sm:$0xff]  }
 0x2f0   : > { %6335 = vmatprep.subr.bf16.mxu1 %v8980_v23 }
 0x2f1   : > { %6292 = vmatmul.mubr.bf16.vlgmr.msra.gmra.mrb[48].mxu0 %v8467_v20 }
 0x2f2   : > { %6312 = vmatmul.mubr.bf16.vlgmr.msra.gmra.mrb[32].mxu1 %v8471_v60  ;;  %6316 = vmatpush3.bf16.msra.mxu0 %v7055_v41  ;;  %v7084_v41 = vld [vmem:[#allocation17 + $0x90] ss:$12 sps:$4 sm:$0xff]  }
 0x2f3   : > { %6336 = vmatpush3.bf16.msra.mxu1 %v7056_v57  ;;  %6317 = vmatprep.subr.bf16.mxu0 %v8980_v23  ;;  %v7085_v57 = vld [vmem:[#allocation14 + $0xa8] ss:$12 sps:$4 sm:$0xff]  }
 0x2f4   : > { %6337 = vmatprep.subr.bf16.mxu1 %v8980_v23  ;;  %6331 = vmatprep.mubr.msk.bf16.mxu0 %vm7762_vm0, %v8980_v23 }
 0x2f5   : > { %6351 = vmatprep.mubr.msk.bf16.mxu1 %vm7762_vm0, %v8980_v23 }
 0x2f6   : > { %6318 = vmatpush3.bf16.msra.mxu0 %v7057_v61  ;;  %v7086_v61 = vld [vmem:[#allocation17 + $0xa8] ss:$12 sps:$4 sm:$0xff]  }
 0x2f7   : > { %6338 = vmatpush3.bf16.msra.mxu1 %v7058_v4  ;;  %6319 = vmatprep.subr.bf16.mxu0 %v8980_v23 }
 0x2f8   : > { %6339 = vmatprep.subr.bf16.mxu1 %v8980_v23 }
 0x2fa   : > { %6320 = vmatpush3.bf16.msra.mxu0 %v7059_v29 }
 0x2fb   : > { %6340 = vmatpush3.bf16.msra.mxu1 %v7060_v18  ;;  %6321 = vmatprep.subr.bf16.mxu0 %v8980_v23 }
 0x2fc   : > { %6341 = vmatprep.subr.bf16.mxu1 %v8980_v23 }
 0x2fe   : > { %6322 = vmatpush3.bf16.msra.mxu0 %v7061_v26 }
 0x2ff   : > { %6342 = vmatpush3.bf16.msra.mxu1 %v7062_v48  ;;  %6323 = vmatprep.subr.bf16.mxu0 %v8980_v23 }
 0x300   : > { %6343 = vmatprep.subr.bf16.mxu1 %v8980_v23 }
 0x302   : > { %6324 = vmatpush3.bf16.msra.mxu0 %v7063_v8 }
 0x303   : > { %6344 = vmatpush3.bf16.msra.mxu1 %v7064_v16  ;;  %6325 = vmatprep.subr.bf16.mxu0 %v8980_v23 }
 0x304   : > { %6345 = vmatprep.subr.bf16.mxu1 %v8980_v23 }
 0x306   : > { %6326 = vmatpush3.bf16.msra.mxu0 %v7065_v47 }
 0x307   : > { %6346 = vmatpush3.bf16.msra.mxu1 %v7066_v55  ;;  %6327 = vmatprep.subr.bf16.mxu0 %v8980_v23 }
 0x308   : > { %6347 = vmatprep.subr.bf16.mxu1 %v8980_v23 }
 0x30a   : > { %6328 = vmatpush3.bf16.msra.mxu0 %v7067_v53 }
 0x30b   : > { %6348 = vmatpush3.bf16.msra.mxu1 %v7068_v51  ;;  %6329 = vmatprep.subr.bf16.mxu0 %v8980_v23 }
 0x30c   : > { %6349 = vmatprep.subr.bf16.mxu1 %v8980_v23 }
 0x30e   : > { %6330 = vmatpush3.bf16.msra.mxu0 %v7069_v9 }
 0x30f   : > { %6350 = vmatpush3.bf16.msra.mxu1 %v7070_v24  ;;  %6355 = vmatprep.subr.bf16.mxu0 %v8980_v23 }
 0x310   : > { %6375 = vmatprep.subr.bf16.mxu1 %v8980_v23 }
 0x311   : > { %6332 = vmatmul.mubr.bf16.vlgmr.msra.gmra.mrb[52].mxu0 %v8467_v20  ;;  %v7075_v20 = vld [vmem:[#allocation14 + $0x30] ss:$12 sps:$4 sm:$0xff]  }
 0x312   : > { %6352 = vmatmul.mubr.bf16.vlgmr.msra.gmra.mrb[36].mxu1 %v8471_v60  ;;  %6371 = vmatprep.mubr.msk.bf16.mxu0 %vm7762_vm0, %v8980_v23  ;;  %v7076_v60 = vld [vmem:[#allocation17 + $0x30] ss:$12 sps:$4 sm:$0xff]  }
 0x313   : > { %6391 = vmatprep.mubr.msk.bf16.mxu1 %vm7762_vm0, %v8980_v23  ;;  %6356 = vmatpush3.bf16.msra.mxu0 %v7071_v33 }
 0x314   : > { %6376 = vmatpush3.bf16.msra.mxu1 %v7072_v34  ;;  %6357 = vmatprep.subr.bf16.mxu0 %v8980_v23 }
 0x315   : > { %6377 = vmatprep.subr.bf16.mxu1 %v8980_v23 }
 0x317   : > { %6358 = vmatpush3.bf16.msra.mxu0 %v7073_v46 }
 0x318   : > { %6378 = vmatpush3.bf16.msra.mxu1 %v7074_v58  ;;  %6359 = vmatprep.subr.bf16.mxu0 %v8980_v23 }
 0x319   : > { %6379 = vmatprep.subr.bf16.mxu1 %v8980_v23 }
 0x31b   : > { %6360 = vmatpush3.bf16.msra.mxu0 %v7075_v20 }
 0x31c   : > { %6380 = vmatpush3.bf16.msra.mxu1 %v7076_v60  ;;  %6361 = vmatprep.subr.bf16.mxu0 %v8980_v23 }
 0x31d   : > { %6381 = vmatprep.subr.bf16.mxu1 %v8980_v23 }
 0x31f   : > { %6362 = vmatpush3.bf16.msra.mxu0 %v7077_v37 }
 0x320   : > { %6382 = vmatpush3.bf16.msra.mxu1 %v7078_v2  ;;  %6363 = vmatprep.subr.bf16.mxu0 %v8980_v23 }
 0x321   : > { %6383 = vmatprep.subr.bf16.mxu1 %v8980_v23 }
 0x323   : > { %6364 = vmatpush3.bf16.msra.mxu0 %v7079_v38 }
 0x324   : > { %6384 = vmatpush3.bf16.msra.mxu1 %v7080_v32  ;;  %6365 = vmatprep.subr.bf16.mxu0 %v8980_v23 }
 0x325   : > { %6385 = vmatprep.subr.bf16.mxu1 %v8980_v23 }
 0x327   : > { %6366 = vmatpush3.bf16.msra.mxu0 %v7081_v50 }
 0x328   : > { %6386 = vmatpush3.bf16.msra.mxu1 %v7082_v40  ;;  %6367 = vmatprep.subr.bf16.mxu0 %v8980_v23 }
 0x329   : > { %6387 = vmatprep.subr.bf16.mxu1 %v8980_v23 }
 0x32b   : > { %6368 = vmatpush3.bf16.msra.mxu0 %v7083_v22 }
 0x32c   : > { %6388 = vmatpush3.bf16.msra.mxu1 %v7084_v41  ;;  %6369 = vmatprep.subr.bf16.mxu0 %v8980_v23 }
 0x32d   : > { %6389 = vmatprep.subr.bf16.mxu1 %v8980_v23 }
 0x32f   : > { %6370 = vmatpush3.bf16.msra.mxu0 %v7085_v57 }
 0x330   : > { %6390 = vmatpush3.bf16.msra.mxu1 %v7086_v61  ;;  %6395 = vmatprep.subr.bf16.mxu0 %v8980_v23 }
 0x331   : > { %6415 = vmatprep.subr.bf16.mxu1 %v8980_v23 }
 0x3a4   : > { %v2853_v4 = vpop.f32.mrb[44].mxu0 }
 0x3a5   : > { %v2968_v29 = vadd.f32 %v2853_v4, %v8306_v0  ;;  %v2958_v18 = vpop.f32.mrb[28].mxu1  ;;  %v6253_v26 = vpop.f32.mrb[45].mxu0 }
 0x3a6   : > { %v2985_v48 = vadd.f32 %v2958_v18, %v8421_v54  ;;  %v6273_v8 = vpop.f32.mrb[29].mxu1  ;;  %v2856_v16 = vpop.f32.mrb[46].mxu0 }
 0x3a7   : > { %v2969_v47 = vadd.f32 %v2856_v16, %v8318_v3  ;;  %v2961_v55 = vpop.f32.mrb[30].mxu1  ;;  %v6254_v53 = vpop.f32.mrb[47].mxu0  ;;  %v5497_v60 = vmul.f32 -1.442695, %v2968_v29 }
 0x3a8   : > { %v2986_v51 = vadd.f32 %v2961_v55, %v8426_v14  ;;  %v6274_v9 = vpop.f32.mrb[31].mxu1  ;;  %v5499_v3 = vmul.f32 -1.442695, %v2985_v48 }
 0x3a9   : > { %v5498_v14 = vmul.f32 -1.442695, %v2969_v47  ;;  %7207 = vpow2.f32 %v5497_v60 }
 0x3aa   : > { %v5500_v50 = vmul.f32 -1.442695, %v2986_v51  ;;  %7209 = vpow2.f32 %v5499_v3 }
 0x3ab   : > { %7211 = vpow2.f32 %v5498_v14 }
 0x3ac   : > { %7213 = vpow2.f32 %v5500_v50 }
 0x3b3   : > { %v7208_v22 = vpop.eup %7207 }
 0x3b4   : > { %v7210_v57 = vpop.eup %7209  ;;  %v2976_v4 = vadd.f32 1.0, %v7208_v22 }
 0x3c4   : > { %v3097_v24 = vpop.f32.mrb[48].mxu0 }
 0x3c5   : > { %v3212_v33 = vadd.f32 %v3097_v24, %v8312_v5  ;;  %v3202_v34 = vpop.f32.mrb[32].mxu1  ;;  %v6293_v46 = vpop.f32.mrb[49].mxu0 }
 0x3c6   : > { %v3229_v0 = vadd.f32 %v3202_v34, %v8424_v7  ;;  %v6313_v58 = vpop.f32.mrb[33].mxu1  ;;  %v3100_v20 = vpop.f32.mrb[50].mxu0 }
 0x3c7   : > { %v3213_v54 = vadd.f32 %v3100_v20, %v8324_v12  ;;  %v3205_v37 = vpop.f32.mrb[34].mxu1  ;;  %v6294_v2 = vpop.f32.mrb[51].mxu0  ;;  %v5517_v5 = vmul.f32 -1.442695, %v3212_v33 }
 0x3c8   : > { %v3230_v38 = vadd.f32 %v3205_v37, %v8429_v44  ;;  %v6314_v32 = vpop.f32.mrb[35].mxu1  ;;  %v5519_v40 = vmul.f32 -1.442695, %v3229_v0  ;;  %v7212_v12 = vpop.eup %7211  ;;  %v2993_v44 = vadd.f32 1.0, %v7210_v57 }
 0x3c9   : > { %v5518_v7 = vmul.f32 -1.442695, %v3213_v54  ;;  %7215 = vpow2.f32 %v5517_v5  ;;  %v7214_v61 = vpop.eup %7213  ;;  %v2977_v29 = vadd.f32 1.0, %v7212_v12 }
 0x3ca   : > { %v5520_v41 = vmul.f32 -1.442695, %v3230_v38  ;;  %7217 = vpow2.f32 %v5519_v40  ;;  %v2994_v18 = vadd.f32 1.0, %v7214_v61 }
 0x3cb   : > { %7219 = vpow2.f32 %v5518_v7 }
 0x3cc   : > { %7221 = vpow2.f32 %v5520_v41 }
 0x3cd   : > { %7223 = vrcp.f32 %v2976_v4 }
 0x3ce   : > { %7225 = vrcp.f32 %v2993_v44 }
 0x3cf   : > { %7227 = vrcp.f32 %v2977_v29 }
 0x3d0   : > { %7229 = vrcp.f32 %v2994_v18 }
 0x3d3   : > { %v7216_v26 = vpop.eup %7215 }
 0x3d4   : > { %v7218_v48 = vpop.eup %7217  ;;  %v3220_v47 = vadd.f32 1.0, %v7216_v26 }
 0x3d5   : > { %v7220_v8 = vpop.eup %7219  ;;  %v3237_v55 = vadd.f32 1.0, %v7218_v48 }
 0x3d6   : > { %v7222_v16 = vpop.eup %7221  ;;  %v3221_v51 = vadd.f32 1.0, %v7220_v8  ;;  %7231 = vrcp.f32 %v3220_v47 }
 0x3d7   : > { %v7224_v34 = vpop.eup %7223  ;;  %v3238_v46 = vadd.f32 1.0, %v7222_v16  ;;  %7233 = vrcp.f32 %v3237_v55 }
 0x3d8   : > { %v7226_v60 = vpop.eup %7225  ;;  %7235 = vrcp.f32 %v3221_v51 }
 0x3d9   : > { %v7228_v38 = vpop.eup %7227  ;;  %7237 = vrcp.f32 %v3238_v46  ;;  %v7087_v46 = vld [vmem:[#allocation14 + $0x4] ss:$12 sps:$4 sm:$0xff]  }
 0x3da   : > { %v7230_v5 = vpop.eup %7229 }
 0x3e0   : > { %v7232_v12 = vpop.eup %7231 }
 0x3e1   : > { %v3471_v44 = vsub.f32 1.0, %v7232_v12 }
 0x3e4   : > { %v3360_v53 = vpop.f32.mrb[52].mxu0 }
 0x3e5   : > { %v3361_v9 = vadd.f32 %v8441_v63, %v3360_v53  ;;  %v3458_v24 = vpop.f32.mrb[36].mxu1  ;;  %v6333_v33 = vpop.f32.mrb[53].mxu0 }
 0x3e6   : > { %v3459_v0 = vadd.f32 %v8443_v25, %v3458_v24  ;;  %v6353_v58 = vpop.f32.mrb[37].mxu1  ;;  %v3363_v20 = vpop.f32.mrb[54].mxu0 }
 0x3e7   : > { %v3367_v54 = vmul.f32 %v7224_v34, %v3361_v9  ;;  %v3364_v37 = vadd.f32 %v8441_v63, %v3363_v20  ;;  %v3461_v2 = vpop.f32.mrb[38].mxu1  ;;  %v6334_v3 = vpop.f32.mrb[55].mxu0  ;;  %v7090_v58 = vld [vmem:[#allocation17 + $0x1c] ss:$12 sps:$4 sm:$0xff]   ;;  %v7091_v20 = vld [vmem:[#allocation14 + $0x34] ss:$12 sps:$4 sm:$0xff]  }
 0x3e8   : > { %v3465_v32 = vmul.f32 %v7226_v60, %v3459_v0  ;;  %v3462_v14 = vadd.f32 %v8443_v25, %v3461_v2  ;;  %v6354_v50 = vpop.f32.mrb[39].mxu1  ;;  %v7234_v25 = vpop.eup %7233  ;;  %v7088_v0 = vld [vmem:[#allocation17 + $0x4] ss:$12 sps:$4 sm:$0xff]   ;;  %v7092_v60 = vld [vmem:[#allocation17 + $0x34] ss:$12 sps:$4 sm:$0xff]  }
 0x3e9   : > { %v3369_v40 = vadd.f32 %v3367_v54, %v8280_v49  ;;  %v3368_v7 = vmul.f32 %v7228_v38, %v3364_v37  ;;  %v7236_v61 = vpop.eup %7235  ;;  %v3479_v49 = vsub.f32 1.0, %v7234_v25  ;;  %v7093_v54 = vld [vmem:[#allocation14 + $0x4c] ss:$12 sps:$4 sm:$0xff]   ;;  %v7095_v2 = vld [vmem:[#allocation14 + $0x64] ss:$12 sps:$4 sm:$0xff]  }
 0x3ea   : > { %v3467_v22 = vadd.f32 %v3465_v32, %v8409_v36  ;;  %v3466_v41 = vmul.f32 %v7230_v5, %v3462_v14  ;;  %v7238_v4 = vpop.eup %7237  ;;  %v3472_v26 = vsub.f32 1.0, %v7236_v61  ;;  %v3475_v36 = vmul.f32 %v7232_v12, %v8457_v62  ;;  %v7094_v37 = vld [vmem:[#allocation17 + $0x4c] ss:$12 sps:$4 sm:$0xff]   ;;  %v7096_v3 = vld [vmem:[#allocation17 + $0x64] ss:$12 sps:$4 sm:$0xff]  }
 0x3eb   : > { %7239 = vtanh.f32 %v3369_v40  ;;  %v3370_v63 = vadd.f32 %v3368_v7, %v8290_v56  ;;  %v3480_v16 = vsub.f32 1.0, %v7238_v4  ;;  %v3476_v53 = vmul.f32 %v7236_v61, %v8461_v52  ;;  %v7097_v38 = vld [vmem:[#allocation14 + $0x7c] ss:$12 sps:$4 sm:$0xff]   ;;  %v7099_v14 = vld [vmem:[#allocation14 + $0x94] ss:$12 sps:$4 sm:$0xff]  }
 0x3ec   : > { %7241 = vtanh.f32 %v3467_v22  ;;  %v3468_v57 = vadd.f32 %v3466_v41, %v8419_v45  ;;  %v3483_v45 = vmul.f32 %v7234_v25, %v8459_v1  ;;  %v3484_v24 = vmul.f32 %v7238_v4, %v8463_v28  ;;  %v7089_v28 = vld [vmem:[#allocation14 + $0x1c] ss:$12 sps:$4 sm:$0xff]   ;;  %v7100_v50 = vld [vmem:[#allocation17 + $0x94] ss:$12 sps:$4 sm:$0xff]   ;;  %v7101_v5 = vld [vmem:[#allocation14 + $0xac] ss:$12 sps:$4 sm:$0xff]  }
 0x3ed   : > { %7243 = vtanh.f32 %v3370_v63  ;;  %v7098_v32 = vld [vmem:[#allocation17 + $0x7c] ss:$12 sps:$4 sm:$0xff]   ;;  %v7102_v40 = vld [vmem:[#allocation17 + $0xac] ss:$12 sps:$4 sm:$0xff]  }
 0x3ee   : > { %7245 = vtanh.f32 %v3468_v57  ;;  %v7103_v7 = vld [vmem:[#allocation14 + $0x8] ss:$12 sps:$4 sm:$0xff]   ;;  %v7105_v41 = vld [vmem:[#allocation14 + $0x20] ss:$12 sps:$4 sm:$0xff]   ;;  %v7107_v57 = vld [vmem:[#allocation14 + $0x38] ss:$12 sps:$4 sm:$0xff]  }
 0x3ef   : > { %v7104_v22 = vld [vmem:[#allocation17 + $0x8] ss:$12 sps:$4 sm:$0xff]   ;;  %v7106_v63 = vld [vmem:[#allocation17 + $0x20] ss:$12 sps:$4 sm:$0xff]   ;;  %v7108_v12 = vld [vmem:[#allocation17 + $0x38] ss:$12 sps:$4 sm:$0xff]  }
 0x3f0   : > { %v7109_v25 = vld [vmem:[#allocation14 + $0x50] ss:$12 sps:$4 sm:$0xff]   ;;  %v7111_v4 = vld [vmem:[#allocation14 + $0x68] ss:$12 sps:$4 sm:$0xff]  }
 0x3f1   : > { %v7110_v61 = vld [vmem:[#allocation17 + $0x50] ss:$12 sps:$4 sm:$0xff]  }
 0x3f5   : > { %v7240_v29 = vpop.eup %7239 }
 0x3f6   : > { %v7242_v18 = vpop.eup %7241  ;;  %v3473_v48 = vmul.f32 %v7240_v29, %v3471_v44  ;;  %v7112_v44 = vld [vmem:[#allocation17 + $0x68] ss:$12 sps:$4 sm:$0xff]   ;;  %v7113_v29 = vld [vmem:[#allocation14 + $0x80] ss:$12 sps:$4 sm:$0xff]  }
 0x3f7   : > { %v7244_v8 = vpop.eup %7243  ;;  %v3481_v56 = vmul.f32 %v7242_v18, %v3479_v49  ;;  %v7114_v49 = vld [vmem:[#allocation17 + $0x80] ss:$12 sps:$4 sm:$0xff]   ;;  %v7115_v18 = vld [vmem:[#allocation14 + $0x98] ss:$12 sps:$4 sm:$0xff]  }
 0x3f8   : > { %v7246_v47 = vpop.eup %7245  ;;  %v3474_v55 = vmul.f32 %v7244_v8, %v3472_v26  ;;  %v8562_v51 = vadd.f32 %v3475_v36, %v3473_v48  ;;  %v7116_v26 = vld [vmem:[#allocation17 + $0x98] ss:$12 sps:$4 sm:$0xff]   ;;  %v7117_v48 = vld [vmem:[#allocation14 + $0xb0] ss:$12 sps:$4 sm:$0xff]   ;;  %v7119_v8 = vld [vmem:[#allocation14] ss:$12 sps:$4 sm:$0xff]  }
 0x3f9   : > { %v3482_v9 = vmul.f32 %v7246_v47, %v3480_v16  ;;  %v8565_v33 = vadd.f32 %v3483_v45, %v3481_v56  ;;  %v7118_v36 = vld [vmem:[#allocation17 + $0xb0] ss:$12 sps:$4 sm:$0xff]   ;;  %v7120_v16 = vld [vmem:[#allocation17] ss:$12 sps:$4 sm:$0xff]   ;;  %v7121_v56 = vld [vmem:[#allocation14 + $0x18] ss:$12 sps:$4 sm:$0xff]  }
 0x3fa   : > { %v8567_v34 = vadd.f32 %v3476_v53, %v3474_v55  ;;  %v7122_v45 = vld [vmem:[#allocation17 + $0x18] ss:$12 sps:$4 sm:$0xff]   ;;  %v7123_v47 = vld [vmem:[#allocation14 + $0x30] ss:$12 sps:$4 sm:$0xff]   ;;  %v7125_v53 = vld [vmem:[#allocation14 + $0x48] ss:$12 sps:$4 sm:$0xff]  }
 0x3fb   : > { %v8569_v62 = vadd.f32 %v3484_v24, %v3482_v9  ;;  %v7124_v55 = vld [vmem:[#allocation17 + $0x30] ss:$12 sps:$4 sm:$0xff]   ;;  %v7126_v9 = vld [vmem:[#allocation17 + $0x48] ss:$12 sps:$4 sm:$0xff]   ;;  %v7127_v24 = vld [vmem:[#allocation14 + $0x60] ss:$12 sps:$4 sm:$0xff]  }
 0x3fc   : > { %v8573_v1 = vpack.c.bf16 %v8567_v34, %v8562_v51 }
 0x3fd   : > { %v8577_v52 = vpack.c.bf16 %v8569_v62, %v8565_v33 }
 0x3fe   : > { %5750 = vst [vmem:[%s8137_s18 + $0x8] sm:$0xff] %v8573_v1   ;;  %6372 = vmatmul.mubr.bf16.vlgmr.msra.gmra.mrb[56].mxu0 %v8573_v1 }
 0x3ff   : > { %5751 = vst [vmem:[%s8139_s26 + $0x10] sm:$0xff] %v8577_v52   ;;  %6392 = vmatmul.mubr.bf16.vlgmr.msra.gmra.mrb[40].mxu1 %v8577_v52  ;;  %6396 = vmatpush3.bf16.msra.mxu0 %v7087_v46  ;;  %v7128_v46 = vld [vmem:[#allocation17 + $0x60] ss:$12 sps:$4 sm:$0xff]  }
 0x400   : > { %6416 = vmatpush3.bf16.msra.mxu1 %v7088_v0  ;;  %6397 = vmatprep.subr.bf16.mxu0 %v8980_v23  ;;  %v7130_v0 = vld [vmem:[#allocation17 + $0x78] ss:$12 sps:$4 sm:$0xff]  }
 0x401   : > { %6417 = vmatprep.subr.bf16.mxu1 %v8980_v23  ;;  %6411 = vmatprep.mubr.msk.bf16.mxu0 %vm7762_vm0, %v8980_v23 }
 0x402   : > { %6431 = vmatprep.mubr.msk.bf16.mxu1 %vm7762_vm0, %v8980_v23 }
 0x403   : > { %6398 = vmatpush3.bf16.msra.mxu0 %v7089_v28  ;;  %v7132_v28 = vld [vmem:[#allocation17 + $0x90] ss:$12 sps:$4 sm:$0xff]  }
 0x404   : > { %6418 = vmatpush3.bf16.msra.mxu1 %v7090_v58  ;;  %6399 = vmatprep.subr.bf16.mxu0 %v8980_v23  ;;  %v7133_v58 = vld [vmem:[#allocation14 + $0xa8] ss:$12 sps:$4 sm:$0xff]  }
 0x405   : > { %6419 = vmatprep.subr.bf16.mxu1 %v8980_v23 }
 0x407   : > { %6400 = vmatpush3.bf16.msra.mxu0 %v7091_v20  ;;  %v7134_v20 = vld [vmem:[#allocation17 + $0xa8] ss:$12 sps:$4 sm:$0xff]  }
 0x408   : > { %6420 = vmatpush3.bf16.msra.mxu1 %v7092_v60  ;;  %6401 = vmatprep.subr.bf16.mxu0 %v8980_v23 }
 0x409   : > { %6421 = vmatprep.subr.bf16.mxu1 %v8980_v23 }
 0x40b   : > { %6402 = vmatpush3.bf16.msra.mxu0 %v7093_v54 }
 0x40c   : > { %6422 = vmatpush3.bf16.msra.mxu1 %v7094_v37  ;;  %6403 = vmatprep.subr.bf16.mxu0 %v8980_v23 }
 0x40d   : > { %6423 = vmatprep.subr.bf16.mxu1 %v8980_v23 }
 0x40f   : > { %6404 = vmatpush3.bf16.msra.mxu0 %v7095_v2 }
 0x410   : > { %6424 = vmatpush3.bf16.msra.mxu1 %v7096_v3  ;;  %6405 = vmatprep.subr.bf16.mxu0 %v8980_v23 }
 0x411   : > { %6425 = vmatprep.subr.bf16.mxu1 %v8980_v23 }
 0x413   : > { %6406 = vmatpush3.bf16.msra.mxu0 %v7097_v38 }
 0x414   : > { %6426 = vmatpush3.bf16.msra.mxu1 %v7098_v32  ;;  %6407 = vmatprep.subr.bf16.mxu0 %v8980_v23 }
 0x415   : > { %6427 = vmatprep.subr.bf16.mxu1 %v8980_v23 }
 0x417   : > { %6408 = vmatpush3.bf16.msra.mxu0 %v7099_v14 }
 0x418   : > { %6428 = vmatpush3.bf16.msra.mxu1 %v7100_v50  ;;  %6409 = vmatprep.subr.bf16.mxu0 %v8980_v23 }
 0x419   : > { %6429 = vmatprep.subr.bf16.mxu1 %v8980_v23 }
 0x41b   : > { %6410 = vmatpush3.bf16.msra.mxu0 %v7101_v5 }
 0x41c   : > { %6430 = vmatpush3.bf16.msra.mxu1 %v7102_v40  ;;  %6435 = vmatprep.subr.bf16.mxu0 %v8980_v23 }
 0x41d   : > { %6455 = vmatprep.subr.bf16.mxu1 %v8980_v23 }
 0x41e   : > { %6412 = vmatmul.mubr.bf16.vlgmr.msra.gmra.mrb[60].mxu0 %v8573_v1 }
 0x41f   : > { %6432 = vmatmul.mubr.bf16.vlgmr.msra.gmra.mrb[44].mxu1 %v8577_v52  ;;  %6436 = vmatpush3.bf16.msra.mxu0 %v7103_v7 }
 0x420   : > { %6456 = vmatpush3.bf16.msra.mxu1 %v7104_v22  ;;  %6437 = vmatprep.subr.bf16.mxu0 %v8980_v23 }
 0x421   : > { %6457 = vmatprep.subr.bf16.mxu1 %v8980_v23  ;;  %6451 = vmatprep.mubr.msk.bf16.mxu0 %vm7762_vm0, %v8980_v23 }
 0x422   : > { %6471 = vmatprep.mubr.msk.bf16.mxu1 %vm7762_vm0, %v8980_v23 }
 0x423   : > { %6438 = vmatpush3.bf16.msra.mxu0 %v7105_v41 }
 0x424   : > { %6458 = vmatpush3.bf16.msra.mxu1 %v7106_v63  ;;  %6439 = vmatprep.subr.bf16.mxu0 %v8980_v23 }
 0x425   : > { %6459 = vmatprep.subr.bf16.mxu1 %v8980_v23 }
 0x427   : > { %6440 = vmatpush3.bf16.msra.mxu0 %v7107_v57 }
 0x428   : > { %6460 = vmatpush3.bf16.msra.mxu1 %v7108_v12  ;;  %6441 = vmatprep.subr.bf16.mxu0 %v8980_v23 }
 0x429   : > { %6461 = vmatprep.subr.bf16.mxu1 %v8980_v23 }
 0x42b   : > { %6442 = vmatpush3.bf16.msra.mxu0 %v7109_v25 }
 0x42c   : > { %6462 = vmatpush3.bf16.msra.mxu1 %v7110_v61  ;;  %6443 = vmatprep.subr.bf16.mxu0 %v8980_v23 }
 0x42d   : > { %6463 = vmatprep.subr.bf16.mxu1 %v8980_v23 }
 0x42f   : > { %6444 = vmatpush3.bf16.msra.mxu0 %v7111_v4 }
 0x430   : > { %6464 = vmatpush3.bf16.msra.mxu1 %v7112_v44  ;;  %6445 = vmatprep.subr.bf16.mxu0 %v8980_v23 }
 0x431   : > { %6465 = vmatprep.subr.bf16.mxu1 %v8980_v23 }
 0x433   : > { %6446 = vmatpush3.bf16.msra.mxu0 %v7113_v29 }
 0x434   : > { %6466 = vmatpush3.bf16.msra.mxu1 %v7114_v49  ;;  %6447 = vmatprep.subr.bf16.mxu0 %v8980_v23 }
 0x435   : > { %6467 = vmatprep.subr.bf16.mxu1 %v8980_v23 }
 0x437   : > { %6448 = vmatpush3.bf16.msra.mxu0 %v7115_v18 }
 0x438   : > { %6468 = vmatpush3.bf16.msra.mxu1 %v7116_v26  ;;  %6449 = vmatprep.subr.bf16.mxu0 %v8980_v23 }
 0x439   : > { %6469 = vmatprep.subr.bf16.mxu1 %v8980_v23 }
 0x43b   : > { %6450 = vmatpush3.bf16.msra.mxu0 %v7117_v48 }
 0x43c   : > { %6470 = vmatpush3.bf16.msra.mxu1 %v7118_v36  ;;  %6475 = vmatprep.subr.bf16.mxu0 %v8980_v23 }
 0x43d   : > { %6495 = vmatprep.subr.bf16.mxu1 %v8980_v23 }
 0x43e   : > { %6452 = vmatmul.mubr.bf16.vlgmr.msra.gmra.mrb[64].mxu0 %v8573_v1  ;;  %v7129_v1 = vld [vmem:[#allocation14 + $0x78] ss:$12 sps:$4 sm:$0xff]  }
 0x43f   : > { %6472 = vmatmul.mubr.bf16.vlgmr.msra.gmra.mrb[48].mxu1 %v8577_v52  ;;  %6491 = vmatprep.mubr.msk.bf16.mxu0 %vm7762_vm0, %v8980_v23  ;;  %v7131_v52 = vld [vmem:[#allocation14 + $0x90] ss:$12 sps:$4 sm:$0xff]  }
 0x440   : > { %6511 = vmatprep.mubr.msk.bf16.mxu1 %vm7762_vm0, %v8980_v23  ;;  %6476 = vmatpush3.bf16.msra.mxu0 %v7119_v8 }
 0x441   : > { %6496 = vmatpush3.bf16.msra.mxu1 %v7120_v16  ;;  %6477 = vmatprep.subr.bf16.mxu0 %v8980_v23 }
 0x442   : > { %6497 = vmatprep.subr.bf16.mxu1 %v8980_v23 }
 0x444   : > { %6478 = vmatpush3.bf16.msra.mxu0 %v7121_v56 }
 0x445   : > { %6498 = vmatpush3.bf16.msra.mxu1 %v7122_v45  ;;  %6479 = vmatprep.subr.bf16.mxu0 %v8980_v23 }
 0x446   : > { %6499 = vmatprep.subr.bf16.mxu1 %v8980_v23 }
 0x448   : > { %6480 = vmatpush3.bf16.msra.mxu0 %v7123_v47 }
 0x449   : > { %6500 = vmatpush3.bf16.msra.mxu1 %v7124_v55  ;;  %6481 = vmatprep.subr.bf16.mxu0 %v8980_v23 }
 0x44a   : > { %6501 = vmatprep.subr.bf16.mxu1 %v8980_v23 }
 0x44c   : > { %6482 = vmatpush3.bf16.msra.mxu0 %v7125_v53 }
 0x44d   : > { %6502 = vmatpush3.bf16.msra.mxu1 %v7126_v9  ;;  %6483 = vmatprep.subr.bf16.mxu0 %v8980_v23 }
 0x44e   : > { %6503 = vmatprep.subr.bf16.mxu1 %v8980_v23 }
 0x450   : > { %6484 = vmatpush3.bf16.msra.mxu0 %v7127_v24 }
 0x451   : > { %6504 = vmatpush3.bf16.msra.mxu1 %v7128_v46  ;;  %6485 = vmatprep.subr.bf16.mxu0 %v8980_v23 }
 0x452   : > { %6505 = vmatprep.subr.bf16.mxu1 %v8980_v23 }
 0x454   : > { %6486 = vmatpush3.bf16.msra.mxu0 %v7129_v1 }
 0x455   : > { %6506 = vmatpush3.bf16.msra.mxu1 %v7130_v0  ;;  %6487 = vmatprep.subr.bf16.mxu0 %v8980_v23 }
 0x456   : > { %6507 = vmatprep.subr.bf16.mxu1 %v8980_v23 }
 0x458   : > { %6488 = vmatpush3.bf16.msra.mxu0 %v7131_v52 }
 0x459   : > { %6508 = vmatpush3.bf16.msra.mxu1 %v7132_v28  ;;  %6489 = vmatprep.subr.bf16.mxu0 %v8980_v23  ;;  %v8657_v28 = vld [vmem:[#allocation20] ss:$0 sm:$0xff] }
 0x45a   : > { %6509 = vmatprep.subr.bf16.mxu1 %v8980_v23 }
 0x45c   : > { %6490 = vmatpush3.bf16.msra.mxu0 %v7133_v58 }
 0x45d   : > { %6510 = vmatpush3.bf16.msra.mxu1 %v7134_v20  ;;  %6515 = vmatprep.subr.bf16.mxu0 %v8980_v23 }
 0x45e   : > { %6535 = vmatprep.subr.bf16.mxu1 %v8980_v23 }
 0x4d1   : > { %v3607_v60 = vpop.f32.mrb[56].mxu0 }
 0x4d2   : > { %v3722_v54 = vadd.f32 %v3607_v60, %v8330_v15  ;;  %v3712_v37 = vpop.f32.mrb[40].mxu1  ;;  %v6373_v2 = vpop.f32.mrb[57].mxu0 }
 0x4d3   : > { %v3739_v3 = vadd.f32 %v3712_v37, %v8403_v30  ;;  %v6393_v38 = vpop.f32.mrb[41].mxu1  ;;  %v3610_v32 = vpop.f32.mrb[58].mxu0  ;;  %v8660_v2 = vld [vmem:[#allocation20 + $0x1] ss:$0 sm:$0xff] }
 0x4d4   : > { %v3723_v14 = vadd.f32 %v3610_v32, %v8336_v19  ;;  %v3715_v50 = vpop.f32.mrb[42].mxu1  ;;  %v6374_v5 = vpop.f32.mrb[59].mxu0  ;;  %v5561_v61 = vmul.f32 -1.442695, %v3722_v54 }
 0x4d5   : > { %v3740_v40 = vadd.f32 %v3715_v50, %v8413_v39  ;;  %v6394_v7 = vpop.f32.mrb[43].mxu1  ;;  %v5563_v19 = vmul.f32 -1.442695, %v3739_v3 }
 0x4d6   : > { %v5562_v39 = vmul.f32 -1.442695, %v3723_v14  ;;  %7247 = vpow2.f32 %v5561_v61 }
 0x4d7   : > { %v5564_v18 = vmul.f32 -1.442695, %v3740_v40  ;;  %7249 = vpow2.f32 %v5563_v19 }
 0x4d8   : > { %7251 = vpow2.f32 %v5562_v39 }
 0x4d9   : > { %7253 = vpow2.f32 %v5564_v18 }
 0x4e0   : > { %v7248_v48 = vpop.eup %7247 }
 0x4e1   : > { %v7250_v8 = vpop.eup %7249  ;;  %v3730_v56 = vadd.f32 1.0, %v7248_v48 }
 0x4f1   : > { %v3851_v22 = vpop.f32.mrb[60].mxu0 }
 0x4f2   : > { %v3966_v41 = vadd.f32 %v3851_v22, %v8333_v17  ;;  %v3956_v63 = vpop.f32.mrb[44].mxu1  ;;  %v6413_v57 = vpop.f32.mrb[61].mxu0 }
 0x4f3   : > { %v3983_v15 = vadd.f32 %v3956_v63, %v8406_v35  ;;  %v6433_v12 = vpop.f32.mrb[45].mxu1  ;;  %v3854_v25 = vpop.f32.mrb[62].mxu0 }
 0x4f4   : > { %v3967_v30 = vadd.f32 %v3854_v25, %v8339_v21  ;;  %v3959_v4 = vpop.f32.mrb[46].mxu1  ;;  %v6414_v44 = vpop.f32.mrb[63].mxu0  ;;  %v5581_v17 = vmul.f32 -1.442695, %v3966_v41 }
 0x4f5   : > { %v3984_v29 = vadd.f32 %v3959_v4, %v8416_v42  ;;  %v6434_v49 = vpop.f32.mrb[47].mxu1  ;;  %v5583_v26 = vmul.f32 -1.442695, %v3983_v15  ;;  %v7252_v21 = vpop.eup %7251  ;;  %v3747_v42 = vadd.f32 1.0, %v7250_v8 }
 0x4f6   : > { %v5582_v35 = vmul.f32 -1.442695, %v3967_v30  ;;  %7255 = vpow2.f32 %v5581_v17  ;;  %v7254_v16 = vpop.eup %7253  ;;  %v3731_v45 = vadd.f32 1.0, %v7252_v21 }
 0x4f7   : > { %v5584_v36 = vmul.f32 -1.442695, %v3984_v29  ;;  %7257 = vpow2.f32 %v5583_v26  ;;  %v3748_v47 = vadd.f32 1.0, %v7254_v16 }
 0x4f8   : > { %7259 = vpow2.f32 %v5582_v35 }
 0x4f9   : > { %7261 = vpow2.f32 %v5584_v36 }
 0x4fa   : > { %7263 = vrcp.f32 %v3730_v56 }
 0x4fb   : > { %7265 = vrcp.f32 %v3747_v42 }
 0x4fc   : > { %7267 = vrcp.f32 %v3731_v45 }
 0x4fd   : > { %7269 = vrcp.f32 %v3748_v47 }
 0x500   : > { %v7256_v55 = vpop.eup %7255 }
 0x501   : > { %v7258_v53 = vpop.eup %7257  ;;  %v3974_v46 = vadd.f32 1.0, %v7256_v55 }
 0x502   : > { %v7260_v9 = vpop.eup %7259  ;;  %v3991_v1 = vadd.f32 1.0, %v7258_v53 }
 0x503   : > { %v7262_v24 = vpop.eup %7261  ;;  %v3975_v52 = vadd.f32 1.0, %v7260_v9  ;;  %7271 = vrcp.f32 %v3974_v46  ;;  %v7135_v9 = vld [vmem:[#allocation14 + $0x4] ss:$12 sps:$4 sm:$0xff]   ;;  %v7138_v46 = vld [vmem:[#allocation17 + $0x1c] ss:$12 sps:$4 sm:$0xff]  }
 0x504   : > { %v7264_v54 = vpop.eup %7263  ;;  %v3992_v37 = vadd.f32 1.0, %v7262_v24  ;;  %7273 = vrcp.f32 %v3991_v1  ;;  %v7136_v24 = vld [vmem:[#allocation17 + $0x4] ss:$12 sps:$4 sm:$0xff]   ;;  %v7139_v1 = vld [vmem:[#allocation14 + $0x34] ss:$12 sps:$4 sm:$0xff]  }
 0x505   : > { %v7266_v14 = vpop.eup %7265  ;;  %7275 = vrcp.f32 %v3975_v52  ;;  %v7141_v52 = vld [vmem:[#allocation14 + $0x4c] ss:$12 sps:$4 sm:$0xff]  }
 0x506   : > { %v7268_v22 = vpop.eup %7267  ;;  %7277 = vrcp.f32 %v3992_v37  ;;  %v7146_v37 = vld [vmem:[#allocation17 + $0x7c] ss:$12 sps:$4 sm:$0xff]  }
 0x507   : > { %v7270_v15 = vpop.eup %7269 }
 0x50d   : > { %v7272_v19 = vpop.eup %7271 }
 0x50e   : > { %v7274_v29 = vpop.eup %7273  ;;  %v4225_v18 = vsub.f32 1.0, %v7272_v19 }
 0x50f   : > { %v7276_v49 = vpop.eup %7275 }
 0x510   : > { %v7278_v39 = vpop.eup %7277  ;;  %v4226_v35 = vsub.f32 1.0, %v7276_v49  ;;  %v4230_v56 = vmul.f32 %v7276_v49, %v8567_v34 }
 0x511   : > { %v4114_v0 = vpop.f32.mrb[64].mxu0  ;;  %v4234_v8 = vsub.f32 1.0, %v7278_v39  ;;  %v4238_v47 = vmul.f32 %v7278_v39, %v8569_v62  ;;  %v7137_v62 = vld [vmem:[#allocation14 + $0x1c] ss:$12 sps:$4 sm:$0xff]  }
 0x512   : > { %v4115_v58 = vadd.f32 %v8657_v28, %v4114_v0  ;;  %v4212_v20 = vpop.f32.mrb[48].mxu1  ;;  %v6453_v60 = vpop.f32.mrb[65].mxu0  ;;  %v7140_v0 = vld [vmem:[#allocation17 + $0x34] ss:$12 sps:$4 sm:$0xff]  }
 0x513   : > { %v4213_v3 = vadd.f32 %v8660_v2, %v4212_v20  ;;  %v6473_v38 = vpop.f32.mrb[49].mxu1  ;;  %v4117_v32 = vpop.f32.mrb[66].mxu0  ;;  %v7143_v20 = vld [vmem:[#allocation14 + $0x64] ss:$12 sps:$4 sm:$0xff]  }
 0x514   : > { %v4121_v50 = vmul.f32 %v7264_v54, %v4115_v58  ;;  %v4118_v5 = vadd.f32 %v8657_v28, %v4117_v32  ;;  %v4215_v40 = vpop.f32.mrb[50].mxu1  ;;  %v6454_v7 = vpop.f32.mrb[67].mxu0  ;;  %v7142_v58 = vld [vmem:[#allocation17 + $0x4c] ss:$12 sps:$4 sm:$0xff]   ;;  %v7144_v60 = vld [vmem:[#allocation17 + $0x64] ss:$12 sps:$4 sm:$0xff]  }
 0x515   : > { %v4219_v41 = vmul.f32 %v7266_v14, %v4213_v3  ;;  %v4216_v63 = vadd.f32 %v8660_v2, %v4215_v40  ;;  %v6474_v57 = vpop.f32.mrb[51].mxu1  ;;  %v7145_v54 = vld [vmem:[#allocation14 + $0x7c] ss:$12 sps:$4 sm:$0xff]   ;;  %v7147_v3 = vld [vmem:[#allocation14 + $0x94] ss:$12 sps:$4 sm:$0xff]  }
 0x516   : > { %v4123_v12 = vadd.f32 %v4121_v50, %v8315_v6  ;;  %v4122_v25 = vmul.f32 %v7268_v22, %v4118_v5  ;;  %v4233_v6 = vsub.f32 1.0, %v7274_v29  ;;  %v7148_v38 = vld [vmem:[#allocation17 + $0x94] ss:$12 sps:$4 sm:$0xff]   ;;  %v7149_v32 = vld [vmem:[#allocation14 + $0xac] ss:$12 sps:$4 sm:$0xff]  }
 0x517   : > { %v4221_v61 = vadd.f32 %v4219_v41, %v8382_v11  ;;  %v4220_v30 = vmul.f32 %v7270_v15, %v4216_v63  ;;  %v4229_v11 = vmul.f32 %v7272_v19, %v8562_v51  ;;  %v7150_v14 = vld [vmem:[#allocation17 + $0xac] ss:$12 sps:$4 sm:$0xff]   ;;  %v7151_v50 = vld [vmem:[#allocation14 + $0x8] ss:$12 sps:$4 sm:$0xff]   ;;  %v7157_v63 = vld [vmem:[#allocation14 + $0x50] ss:$12 sps:$4 sm:$0xff]  }
 0x518   : > { %7279 = vtanh.f32 %v4123_v12  ;;  %v4124_v4 = vadd.f32 %v4122_v25, %v8327_v13  ;;  %v7152_v5 = vld [vmem:[#allocation17 + $0x8] ss:$12 sps:$4 sm:$0xff]   ;;  %v7153_v40 = vld [vmem:[#allocation14 + $0x20] ss:$12 sps:$4 sm:$0xff]   ;;  %v7155_v22 = vld [vmem:[#allocation14 + $0x38] ss:$12 sps:$4 sm:$0xff]  }
 0x519   : > { %7281 = vtanh.f32 %v4221_v61  ;;  %v4222_v44 = vadd.f32 %v4220_v30, %v8393_v59  ;;  %v4237_v59 = vmul.f32 %v7274_v29, %v8565_v33  ;;  %v7154_v7 = vld [vmem:[#allocation17 + $0x20] ss:$12 sps:$4 sm:$0xff]   ;;  %v7156_v41 = vld [vmem:[#allocation17 + $0x38] ss:$12 sps:$4 sm:$0xff]   ;;  %v7158_v57 = vld [vmem:[#allocation17 + $0x50] ss:$12 sps:$4 sm:$0xff]  }
 0x51a   : > { %7283 = vtanh.f32 %v4124_v4  ;;  %v7159_v15 = vld [vmem:[#allocation14 + $0x68] ss:$12 sps:$4 sm:$0xff]   ;;  %v7161_v25 = vld [vmem:[#allocation14 + $0x80] ss:$12 sps:$4 sm:$0xff]   ;;  %v7163_v30 = vld [vmem:[#allocation14 + $0x98] ss:$12 sps:$4 sm:$0xff]  }
 0x51b   : > { %7285 = vtanh.f32 %v4222_v44  ;;  %v7160_v12 = vld [vmem:[#allocation17 + $0x68] ss:$12 sps:$4 sm:$0xff]   ;;  %v7162_v61 = vld [vmem:[#allocation17 + $0x80] ss:$12 sps:$4 sm:$0xff]   ;;  %v7164_v4 = vld [vmem:[#allocation17 + $0x98] ss:$12 sps:$4 sm:$0xff]  }
 0x51c   : > { %v7165_v44 = vld [vmem:[#allocation14 + $0xb0] ss:$12 sps:$4 sm:$0xff]  }
 0x51d   : > { %v7166_v19 = vld [vmem:[#allocation17 + $0xb0] ss:$12 sps:$4 sm:$0xff]  }
 0x522   : > { %v7280_v17 = vpop.eup %7279 }
 0x523   : > { %v7282_v26 = vpop.eup %7281  ;;  %v4227_v48 = vmul.f32 %v7280_v17, %v4225_v18 }
 0x524   : > { %v7284_v36 = vpop.eup %7283  ;;  %v4235_v13 = vmul.f32 %v7282_v26, %v4233_v6 }
 0x525   : > { %v7286_v21 = vpop.eup %7285  ;;  %v4228_v16 = vmul.f32 %v7284_v36, %v4226_v35  ;;  %v8672_v42 = vadd.f32 %v4229_v11, %v4227_v48 }
 0x526   : > { %v4236_v45 = vmul.f32 %v7286_v21, %v4234_v8  ;;  %v8675_v55 = vadd.f32 %v4237_v59, %v4235_v13  ;;  %v8981_v13 = vld [vmem:[#allocation48_spill] sm:$0xff] }
 0x527   : > { %v8677_v53 = vadd.f32 %v4230_v56, %v4228_v16  ;;  %v8982_v56 = vld [vmem:[#allocation50_spill] sm:$0xff] }
 0x528   : > { %v8679_v51 = vadd.f32 %v4238_v47, %v4236_v45 }
 0x529   : > { %v8683_v33 = vpack.c.bf16 %v8677_v53, %v8672_v42 }
 0x52a   : > { %v8687_v34 = vpack.c.bf16 %v8679_v51, %v8675_v55 }
 0x52b   : > { %5752 = vst [vmem:[%s8137_s18 + $0x10] sm:$0xff] %v8683_v33   ;;  %6492 = vmatmul.mubr.bf16.vlgmr.msra.gmra.mrb[68].mxu0 %v8683_v33 }
 0x52c   : > { %5753 = vst [vmem:[%s8139_s26 + $0x8] sm:$0xff] %v8687_v34   ;;  %6512 = vmatmul.mubr.bf16.vlgmr.msra.gmra.mrb[52].mxu1 %v8687_v34  ;;  %6516 = vmatpush3.bf16.msra.mxu0 %v7135_v9 }
 0x52d   : > { %6536 = vmatpush3.bf16.msra.mxu1 %v7136_v24  ;;  %6517 = vmatprep.subr.bf16.mxu0 %v8980_v23 }
 0x52e   : > { %6537 = vmatprep.subr.bf16.mxu1 %v8980_v23  ;;  %6531 = vmatprep.mubr.msk.bf16.mxu0 %vm7762_vm0, %v8980_v23 }
 0x52f   : > { %6551 = vmatprep.mubr.msk.bf16.mxu1 %vm7762_vm0, %v8980_v23 }
 0x530   : > { %6518 = vmatpush3.bf16.msra.mxu0 %v7137_v62  ;;  %v8984_v62 = vld [vmem:[#allocation52_spill] sm:$0xff] }
 0x531   : > { %6538 = vmatpush3.bf16.msra.mxu1 %v7138_v46  ;;  %6519 = vmatprep.subr.bf16.mxu0 %v8980_v23 }
 0x532   : > { %6539 = vmatprep.subr.bf16.mxu1 %v8980_v23 }
 0x534   : > { %6520 = vmatpush3.bf16.msra.mxu0 %v7139_v1 }
 0x535   : > { %6540 = vmatpush3.bf16.msra.mxu1 %v7140_v0  ;;  %6521 = vmatprep.subr.bf16.mxu0 %v8980_v23 }
 0x536   : > { %6541 = vmatprep.subr.bf16.mxu1 %v8980_v23 }
 0x538   : > { %6522 = vmatpush3.bf16.msra.mxu0 %v7141_v52 }
 0x539   : > { %6542 = vmatpush3.bf16.msra.mxu1 %v7142_v58  ;;  %6523 = vmatprep.subr.bf16.mxu0 %v8980_v23 }
 0x53a   : > { %6543 = vmatprep.subr.bf16.mxu1 %v8980_v23 }
 0x53c   : > { %6524 = vmatpush3.bf16.msra.mxu0 %v7143_v20 }
 0x53d   : > { %6544 = vmatpush3.bf16.msra.mxu1 %v7144_v60  ;;  %6525 = vmatprep.subr.bf16.mxu0 %v8980_v23 }
 0x53e   : > { %6545 = vmatprep.subr.bf16.mxu1 %v8980_v23 }
 0x540   : > { %6526 = vmatpush3.bf16.msra.mxu0 %v7145_v54 }
 0x541   : > { %6546 = vmatpush3.bf16.msra.mxu1 %v7146_v37  ;;  %6527 = vmatprep.subr.bf16.mxu0 %v8980_v23 }
 0x542   : > { %6547 = vmatprep.subr.bf16.mxu1 %v8980_v23 }
 0x544   : > { %6528 = vmatpush3.bf16.msra.mxu0 %v7147_v3 }
 0x545   : > { %6548 = vmatpush3.bf16.msra.mxu1 %v7148_v38  ;;  %6529 = vmatprep.subr.bf16.mxu0 %v8980_v23 }
 0x546   : > { %6549 = vmatprep.subr.bf16.mxu1 %v8980_v23 }
 0x548   : > { %6530 = vmatpush3.bf16.msra.mxu0 %v7149_v32 }
 0x549   : > { %6550 = vmatpush3.bf16.msra.mxu1 %v7150_v14  ;;  %6555 = vmatprep.subr.bf16.mxu0 %v8980_v23 }
 0x54a   : > { %6575 = vmatprep.subr.bf16.mxu1 %v8980_v23 }
 0x54b   : > { %6532 = vmatmul.mubr.bf16.vlgmr.msra.gmra.mrb[72].mxu0 %v8683_v33 }
 0x54c   : > { %6552 = vmatmul.mubr.bf16.vlgmr.msra.gmra.mrb[56].mxu1 %v8687_v34  ;;  %6556 = vmatpush3.bf16.msra.mxu0 %v7151_v50 }
 0x54d   : > { %6576 = vmatpush3.bf16.msra.mxu1 %v7152_v5  ;;  %6557 = vmatprep.subr.bf16.mxu0 %v8980_v23 }
 0x54e   : > { %6577 = vmatprep.subr.bf16.mxu1 %v8980_v23  ;;  %6571 = vmatprep.mubr.msk.bf16.mxu0 %vm7762_vm0, %v8980_v23 }
 0x54f   : > { %6591 = vmatprep.mubr.msk.bf16.mxu1 %vm7762_vm0, %v8980_v23 }
 0x550   : > { %6558 = vmatpush3.bf16.msra.mxu0 %v7153_v40 }
 0x551   : > { %6578 = vmatpush3.bf16.msra.mxu1 %v7154_v7  ;;  %6559 = vmatprep.subr.bf16.mxu0 %v8980_v23 }
 0x552   : > { %6579 = vmatprep.subr.bf16.mxu1 %v8980_v23 }
 0x554   : > { %6560 = vmatpush3.bf16.msra.mxu0 %v7155_v22 }
 0x555   : > { %6580 = vmatpush3.bf16.msra.mxu1 %v7156_v41  ;;  %6561 = vmatprep.subr.bf16.mxu0 %v8980_v23 }
 0x556   : > { %6581 = vmatprep.subr.bf16.mxu1 %v8980_v23 }
 0x558   : > { %6562 = vmatpush3.bf16.msra.mxu0 %v7157_v63 }
 0x559   : > { %6582 = vmatpush3.bf16.msra.mxu1 %v7158_v57  ;;  %6563 = vmatprep.subr.bf16.mxu0 %v8980_v23 }
 0x55a   : > { %6583 = vmatprep.subr.bf16.mxu1 %v8980_v23 }
 0x55c   : > { %6564 = vmatpush3.bf16.msra.mxu0 %v7159_v15 }
 0x55d   : > { %6584 = vmatpush3.bf16.msra.mxu1 %v7160_v12  ;;  %6565 = vmatprep.subr.bf16.mxu0 %v8980_v23 }
 0x55e   : > { %6585 = vmatprep.subr.bf16.mxu1 %v8980_v23 }
 0x560   : > { %6566 = vmatpush3.bf16.msra.mxu0 %v7161_v25 }
 0x561   : > { %6586 = vmatpush3.bf16.msra.mxu1 %v7162_v61  ;;  %6567 = vmatprep.subr.bf16.mxu0 %v8980_v23 }
 0x562   : > { %6587 = vmatprep.subr.bf16.mxu1 %v8980_v23 }
 0x564   : > { %6568 = vmatpush3.bf16.msra.mxu0 %v7163_v30 }
 0x565   : > { %6588 = vmatpush3.bf16.msra.mxu1 %v7164_v4  ;;  %6569 = vmatprep.subr.bf16.mxu0 %v8980_v23 }
 0x566   : > { %6589 = vmatprep.subr.bf16.mxu1 %v8980_v23 }
 0x568   : > { %6570 = vmatpush3.bf16.msra.mxu0 %v7165_v44 }
 0x569   : > { %6590 = vmatpush3.bf16.msra.mxu1 %v7166_v19 }
 0x56b   : > { %6572 = vmatmul.mubr.bf16.vlgmr.msra.gmra.mrb[76].mxu0 %v8683_v33 }
 0x56c   : > { %6592 = vmatmul.mubr.bf16.vlgmr.msra.gmra.mrb[60].mxu1 %v8687_v34 }
 0x5fe   : > { %v4361_v29 = vpop.f32.mrb[68].mxu0 }
 0x5ff   : > { %v4476_v49 = vadd.f32 %v4361_v29, %v8344_v27  ;;  %v4466_v39 = vpop.f32.mrb[52].mxu1  ;;  %v6493_v18 = vpop.f32.mrb[69].mxu0 }
 0x600   : > { %v4492_v17 = vadd.f32 %v4466_v39, %v8379_v10  ;;  %v6513_v6 = vpop.f32.mrb[53].mxu1  ;;  %v4364_v26 = vpop.f32.mrb[70].mxu0  ;;  %v8983_v10 = vld [vmem:[#allocation49_spill] sm:$0xff] }
 0x601   : > { %v4477_v35 = vadd.f32 %v4364_v26, %v8350_v31  ;;  %v4469_v48 = vpop.f32.mrb[54].mxu1  ;;  %v6494_v11 = vpop.f32.mrb[71].mxu0  ;;  %v5625_v9 = vmul.f32 -1.442695, %v4476_v49 }
 0x602   : > { %v4493_v23 = vadd.f32 %v4469_v48, %v8390_v43  ;;  %v6514_v36 = vpop.f32.mrb[55].mxu1  ;;  %v5627_v31 = vmul.f32 -1.442695, %v4492_v17 }
 0x603   : > { %v5626_v43 = vmul.f32 -1.442695, %v4477_v35  ;;  %7287 = vpow2.f32 %v5625_v9 }
 0x604   : > { %v5628_v0 = vmul.f32 -1.442695, %v4493_v23  ;;  %7289 = vpow2.f32 %v5627_v31 }
 0x605   : > { %7291 = vpow2.f32 %v5626_v43 }
 0x606   : > { %7293 = vpow2.f32 %v5628_v0 }
 0x60d   : > { %v7288_v60 = vpop.eup %7287 }
 0x60e   : > { %v7290_v37 = vpop.eup %7289  ;;  %v4484_v32 = vadd.f32 1.0, %v7288_v60 }
 0x60f   : > { %v7292_v3 = vpop.eup %7291  ;;  %v4500_v14 = vadd.f32 1.0, %v7290_v37 }
 0x610   : > { %v7294_v38 = vpop.eup %7293  ;;  %v4485_v50 = vadd.f32 1.0, %v7292_v3 }
 0x611   : > { %v4501_v5 = vadd.f32 1.0, %v7294_v38 }
 0x61e   : > { %v4604_v8 = vpop.f32.mrb[72].mxu0 }
 0x61f   : > { %v4719_v59 = vadd.f32 %v4604_v8, %v8981_v13  ;;  %v4709_v21 = vpop.f32.mrb[56].mxu1  ;;  %v6533_v16 = vpop.f32.mrb[73].mxu0  ;;  %v8985_v8 = vld [vmem:[#allocation46_spill] sm:$0xff] }
 0x620   : > { %v4735_v27 = vadd.f32 %v4709_v21, %v8982_v56  ;;  %v6553_v45 = vpop.f32.mrb[57].mxu1  ;;  %v4607_v47 = vpop.f32.mrb[74].mxu0  ;;  %v8986_v21 = vld [vmem:[#allocation51_spill] sm:$0xff] }
 0x621   : > { %v4720_v33 = vadd.f32 %v4607_v47, %v8983_v10  ;;  %v4712_v24 = vpop.f32.mrb[58].mxu1  ;;  %v6534_v34 = vpop.f32.mrb[75].mxu0  ;;  %v5645_v52 = vmul.f32 -1.442695, %v4719_v59  ;;  %v8988_v45 = vld [vmem:[#allocation53_spill] sm:$0xff] }
 0x622   : > { %v4736_v46 = vadd.f32 %v4712_v24, %v8984_v62  ;;  %v6554_v1 = vpop.f32.mrb[59].mxu1  ;;  %v5647_v58 = vmul.f32 -1.442695, %v4735_v27 }
 0x623   : > { %v5646_v20 = vmul.f32 -1.442695, %v4720_v33  ;;  %7295 = vpow2.f32 %v5645_v52 }
 0x624   : > { %v5648_v54 = vmul.f32 -1.442695, %v4736_v46  ;;  %7297 = vpow2.f32 %v5647_v58 }
 0x625   : > { %7299 = vpow2.f32 %v5646_v20 }
 0x626   : > { %7301 = vpow2.f32 %v5648_v54 }
 0x627   : > { %7303 = vrcp.f32 %v4484_v32 }
 0x628   : > { %7305 = vrcp.f32 %v4500_v14 }
 0x629   : > { %7307 = vrcp.f32 %v4485_v50 }
 0x62a   : > { %7309 = vrcp.f32 %v4501_v5 }
 0x62d   : > { %v7296_v40 = vpop.eup %7295 }
 0x62e   : > { %v7298_v7 = vpop.eup %7297  ;;  %v4727_v63 = vadd.f32 1.0, %v7296_v40 }
 0x62f   : > { %v7300_v22 = vpop.eup %7299  ;;  %v4743_v57 = vadd.f32 1.0, %v7298_v7 }
 0x630   : > { %v7302_v41 = vpop.eup %7301  ;;  %v4728_v12 = vadd.f32 1.0, %v7300_v22  ;;  %7311 = vrcp.f32 %v4727_v63 }
 0x631   : > { %v7304_v4 = vpop.eup %7303  ;;  %v4744_v44 = vadd.f32 1.0, %v7302_v41  ;;  %7313 = vrcp.f32 %v4743_v57 }
 0x632   : > { %v7306_v39 = vpop.eup %7305  ;;  %7315 = vrcp.f32 %v4728_v12 }
 0x633   : > { %v7308_v35 = vpop.eup %7307  ;;  %7317 = vrcp.f32 %v4744_v44 }
 0x634   : > { %v7310_v36 = vpop.eup %7309 }
 0x63e   : > { %v4866_v15 = vpop.f32.mrb[76].mxu0 }
 0x63f   : > { %v4867_v25 = vadd.f32 %v8657_v28, %v4866_v15  ;;  %v4963_v61 = vpop.f32.mrb[60].mxu1  ;;  %v6573_v30 = vpop.f32.mrb[77].mxu0 }
 0x640   : > { %v4964_v19 = vadd.f32 %v8660_v2, %v4963_v61  ;;  %v6593_v29 = vpop.f32.mrb[61].mxu1  ;;  %v4869_v49 = vpop.f32.mrb[78].mxu0 }
 0x641   : > { %v4873_v18 = vmul.f32 %v7304_v4, %v4867_v25  ;;  %v4870_v17 = vadd.f32 %v8657_v28, %v4869_v49  ;;  %v4966_v6 = vpop.f32.mrb[62].mxu1  ;;  %v6574_v26 = vpop.f32.mrb[79].mxu0  ;;  %v8987_v28 = vld [vmem:[#allocation47_spill] sm:$0xff] }
 0x642   : > { %v4970_v48 = vmul.f32 %v7306_v39, %v4964_v19  ;;  %v4967_v11 = vadd.f32 %v8660_v2, %v4966_v6  ;;  %v6594_v23 = vpop.f32.mrb[63].mxu1  ;;  %v7312_v2 = vpop.eup %7311 }
 0x643   : > { %v4875_v13 = vadd.f32 %v4873_v18, %v8985_v8  ;;  %v4874_v59 = vmul.f32 %v7308_v35, %v4870_v17  ;;  %v7314_v9 = vpop.eup %7313  ;;  %v4976_v24 = vsub.f32 1.0, %v7312_v2  ;;  %v4980_v46 = vmul.f32 %v7312_v2, %v8672_v42 }
 0x644   : > { %v4972_v16 = vadd.f32 %v4970_v48, %v8986_v21  ;;  %v4971_v56 = vmul.f32 %v7310_v36, %v4967_v11  ;;  %v7316_v10 = vpop.eup %7315  ;;  %v4984_v31 = vsub.f32 1.0, %v7314_v9  ;;  %v4988_v52 = vmul.f32 %v7314_v9, %v8675_v55 }
 0x645   : > { %7319 = vtanh.f32 %v4875_v13  ;;  %v4876_v27 = vadd.f32 %v4874_v59, %v8987_v28  ;;  %v7318_v33 = vpop.eup %7317  ;;  %v4977_v1 = vsub.f32 1.0, %v7316_v10  ;;  %v4981_v54 = vmul.f32 %v7316_v10, %v8677_v53 }
 0x646   : > { %7321 = vtanh.f32 %v4972_v16  ;;  %v4973_v47 = vadd.f32 %v4971_v56, %v8988_v45  ;;  %v4985_v58 = vsub.f32 1.0, %v7318_v33  ;;  %v4989_v38 = vmul.f32 %v7318_v33, %v8679_v51 }
 0x647   : > { %7323 = vtanh.f32 %v4876_v27 }
 0x648   : > { %7325 = vtanh.f32 %v4973_v47 }
 0x64f   : > { %v7320_v34 = vpop.eup %7319 }
 0x650   : > { %v7322_v62 = vpop.eup %7321  ;;  %v4978_v43 = vmul.f32 %v7320_v34, %v4976_v24 }
 0x651   : > { %v7324_v0 = vpop.eup %7323  ;;  %v4986_v20 = vmul.f32 %v7322_v62, %v4984_v31 }
 0x652   : > { %v7326_v60 = vpop.eup %7325  ;;  %v4982_v37 = vadd.f32 %v4980_v46, %v4978_v43  ;;  %v4979_v3 = vmul.f32 %v7324_v0, %v4977_v1 }
 0x653   : > { %v4990_v32 = vadd.f32 %v4988_v52, %v4986_v20  ;;  %v4987_v42 = vmul.f32 %v7326_v60, %v4985_v58 }
 0x654   : > { %5013 = vst [vmem:[#allocation25] sm:$0xff] %v4982_v37  ;;  %v4983_v14 = vadd.f32 %v4981_v54, %v4979_v3 }
 0x655   : > { %5015 = vst [vmem:[#allocation25 + $0x10] sm:$0xff] %v4990_v32  ;;  %v4991_v55 = vadd.f32 %v4989_v38, %v4987_v42 }
 0x656   : > { %v5742_v53 = vpack.c.bf16 %v4983_v14, %v4982_v37  ;;  %5014 = vst [vmem:[#allocation25 + $0x8] sm:$0xff] %v4983_v14 }
 0x657   : > { %v5747_v51 = vpack.c.bf16 %v4991_v55, %v4990_v32  ;;  %5016 = vst [vmem:[#allocation25 + $0x18] sm:$0xff] %v4991_v55 }
 0x658   : > { %5754 = vst [vmem:[%s8137_s18 + $0x18] sm:$0xff] %v5742_v53  }
 0x659   : > { %5748 = vst [vmem:[%s8139_s26] sm:$0xff] %v5747_v51  }
 0x65a   : > { %7570 = shalt.err (!%p7567_p13)
}
 0x65b   : > { %s7571_s25 = scalar_lea.hbm %s8771_s27, 512  ;;  %s7575_s24 = scalar_lea.hbm %s8990_s11, 1024 }
 0x65c   : > { %p7572_p8 = scmp.ne.s32.totalorder %s8771_s27, %s7571_s25  ;;  %p7576_p5 = scmp.lt.u32.totalorder %s8771_s27, %s8990_s11 }
 0x65d   : > { %p7577_p10 = scmp.lt.u32.totalorder %s7575_s24, %s7571_s25  ;;  %p7579_p0 = scmp.lt.u32.totalorder %s7571_s25, %s8771_s27 }
 0x65e   : > { %p7573_p1 = pnand %p7572_p8, %p8991_p6 }
 0x65f   : > { %p7578_p12 = por %p7577_p10, %p7576_p5 }
 0x660   : > { %p7574_p3 = pneg %p7573_p1 }
 0x661   : > { %p7580_p2 = por %p7579_p0, %p7578_p12 }
 0x663   : > { %p7581_p4 = pnand %p7580_p2, %p7574_p3 }
 0x665   : > { %7584 = shalt.err (!%p7581_p4)
}
 0x666   : > { %s7765_s15 = smov 64   ;;  %s8992_s10 = sld [smem:[#allocation43_spill]] }
 0x667   : > { %s7766_s30 = smov 4   ;;  %s8812_s29 = scalar_lea.sflag [#allocation24], %s5022_s12 }
 0x668   : > { %6675 = dma.vmem_to_hbm [thread:$0]  (%p8991_p6), %s8773_s21, 512, %s8771_s27, %s8783_s28, %s7765_s15, %s7765_s15, %s7766_s30  }
 0x669   : > { %s7585_s25 = scalar_lea.vmem %s8775_s20, 512  ;;  %s7767_s18 = smov [#allocation23]  }
 0x66a   : > { %p7586_p9 = scmp.ne.s32.totalorder %s8775_s20, %s7585_s25  ;;  %s7589_s26 = sshll.u32 %s7767_s18, 4  ;;  %s7590_s26 = int_to_ptr.vmem [resolvable:$false] %s7589_s26 }
 0x66b   : > { %s7591_s24 = scalar_lea.vmem %s7590_s26, 1024  ;;  %p7592_p8 = scmp.lt.s32.totalorder %s8775_s20, %s7590_s26 }
 0x66c   : > { %p8993_p7 = scmp.ne.s32.totalorder %s8992_s10, 0  ;;  %p7593_p1 = scmp.lt.s32.totalorder %s7591_s24, %s7585_s25 }
 0x66e   : > { %p7587_p11 = pnand %p7586_p9, %p8993_p7  ;;  %p7594_p3 = por %p7593_p1, %p7592_p8 }
 0x670   : > { %p7588_p13 = pneg %p7587_p11 }
 0x672   : > { %p7595_p5 = pnand %p7594_p3, %p7588_p13 }
 0x674   : > { %7598 = shalt.err (!%p7595_p5)
}
 0x675   : > { %s7599_s12 = scalar_lea.hbm %s8765_s13, 512  ;;  %s7603_s27 = scalar_lea.hbm %s8910_s9, 1024 }
 0x676   : > { %p7600_p6 = scmp.ne.s32.totalorder %s8765_s13, %s7599_s12  ;;  %p7604_p0 = scmp.lt.u32.totalorder %s8765_s13, %s8910_s9 }
 0x677   : > { %p7605_p2 = scmp.lt.u32.totalorder %s7603_s27, %s7599_s12  ;;  %p7607_p9 = scmp.lt.u32.totalorder %s7599_s12, %s8765_s13 }
 0x678   : > { %p7601_p10 = pnand %p7600_p6, %p8993_p7 }
 0x679   : > { %p7606_p4 = por %p7605_p2, %p7604_p0 }
 0x67a   : > { %p7602_p12 = pneg %p7601_p10 }
 0x67b   : > { %p7608_p11 = por %p7607_p9, %p7606_p4 }
 0x67d   : > { %p7609_p13 = pnand %p7608_p11, %p7602_p12 }
 0x67f   : > { %7612 = shalt.err (!%p7609_p13)
}
 0x680   : > { %6676 = dma.vmem_to_hbm [thread:$0]  (%p8993_p7), %s8775_s20, 512, %s8765_s13, %s8812_s29, %s7765_s15, %s7765_s15, %s7766_s30  }
 0x681   : > { %s7613_s8 = scalar_lea.vmem %s8778_s23, 512  ;;  %p8994_p1 = scmp.eq.s32.totalorder %s7871_s22, 1 }
 0x682   : > { %p7614_p8 = scmp.ne.s32.totalorder %s8778_s23, %s7613_s8  ;;  %p7620_p6 = scmp.lt.s32.totalorder %s8778_s23, %s8778_s23 }
 0x683   : > { %p7621_p10 = scmp.lt.s32.totalorder %s7613_s8, %s7613_s8 }
 0x684   : > { %p7615_p3 = pnand %p7614_p8, %p8994_p1 }
 0x685   : > { %p7622_p12 = por %p7621_p10, %p7620_p6 }
 0x686   : > { %p7616_p5 = pneg %p7615_p3 }
 0x688   : > { %p7623_p0 = pnand %p7622_p12, %p7616_p5 }
 0x68a   : > { %7626 = shalt.err (!%p7623_p0)
}
 0x68b   : > { %s8995_s18 = sld [smem:[#allocation55_spill]]  ;;  %p8997_p2 = pmov %p8994_p1 }
 0x691   : > { %s8996_s26 = smov %s8995_s18  ;;  %s7627_s24 = scalar_lea.hbm %s8995_s18, 512 }
 0x692   : > { %p7628_p7 = scmp.ne.s32.totalorder %s8996_s26, %s7627_s24  ;;  %p7633_p11 = scmp.lt.u32.totalorder %s7627_s24, %s8996_s26 }
 0x694   : > { %p7629_p4 = pnand %p7628_p7, %p8997_p2 }
 0x696   : > { %p7630_p9 = pneg %p7629_p4 }
 0x698   : > { %p7635_p13 = pnand %p7633_p11, %p7630_p9 }
 0x69a   : > { %7638 = shalt.err (!%p7635_p13)
}
 0x69b   : > { %s7768_s15 = smov 128   ;;  %s7769_s30 = smov 8  }
 0x69c   : > { %p8998_p8 = pmov %p8994_p1 }
 0x69e   : > { %6678 = dma.vmem_to_hbm [thread:$0]  (%p8998_p8), %s8778_s23, 512, %s8996_s26, [#allocation24], %s7768_s15, %s7768_s15, %s7769_s30  }
 0x69f   : > { %7696 = dma.done.wait (%p8994_p1), [#allocation24], 512   ;;  %p8999_p3 = pmov %p8994_p1 }
 0x6a1   : > { %7698 = vsyncadd (%p8999_p3), [#allocation24], 4294966784 }
 0x6a2 PF: > { %s9000_s27 = sld [smem:[#allocation38_spill]]  ;;  %s9001_s28 = sld [smem:[#allocation35_spill]] }
 0x6a3   : > { %s9002_s19 = sld [smem:[#allocation41_spill]] }
 0x6a8   : > { %p6733_p5 = scmp.ge.s32.totalorder %s9000_s27, 2  ;;  %s5094_s8 = sand.u32 1, %s9001_s28  }
 0x6a9   : > { %p9003_p6 = scmp.ne.s32.totalorder %s9002_s19, 0  ;;  %s5095_s10 = scalar_lea.sflag [#allocation10], %s5094_s8 }
 0x6ab   : > { %p6709_p10 = pnand %p6733_p5, %p9003_p6 }
 0x6ad   : > { %7700 = dma.done.wait (!%p6709_p10), %s5095_s10, 512  }
 0x6ae   : > { %7702 = vsyncadd (!%p6709_p10), %s5095_s10, 4294966784  ;;  %s9004_s25 = sadd.s32 4294967294, %s9000_s27   ;;  %s9005_s18 = sld [smem:[#allocation45_spill]] }
 0x6af   : > { %s5103_s23 = sand.u32 1, %s9004_s25  }
 0x6b0   : > { %s5104_s24 = scalar_lea.sflag [#allocation24], %s5103_s23 }
 0x6b4   : > { %p9006_p12 = scmp.ne.s32.totalorder %s9005_s18, 0 }
 0x6b6   : > { %p6712_p0 = pnand %p6733_p5, %p9006_p12 }
 0x6b8   : > { %7704 = dma.done.wait (!%p6712_p0), %s5104_s24, 512  }
 0x6b9   : > { %7706 = vsyncadd (!%p6712_p0), %s5104_s24, 4294966784  ;;  %s32_s21 = sadd.s32 1, %s9000_s27   ;;  %s9007_s22 = sld [smem:[#allocation34_spill]] }
 0x6ba   : > { %p29_p7 = scmp.ge.s32.totalorder %s32_s21, 4   ;;  %s9008_s15 = sld [smem:[#allocation44_spill]] }
 0x6bb   : > { %s9009_s12 = sld [smem:[#allocation36_spill]]  ;;  %s9010_s18 = sld [smem:[#allocation42_spill]] }
 0x6bc   : > { %s9011_s19 = sld [smem:[#allocation37_spill]]  ;;  %s9012_s20 = sld [smem:[#allocation39_spill]] }
 0x6bd   : > { %s9013_s13 = smov %s7713_s14  ;;  %s9015_s16 = smov %s7725_s17 }
 0x6be   :  { %31 = sbr.rel (!%p29_p7) target bundleno = 16 (0x10), region = 180 }
 0x6bf   : > { %s9014_s14 = smov %s9007_s22 }
 0x6c1   : > { %s9016_s17 = smov %s9009_s12 }
 0x6c5   :  { %5109 = vsyncpa [#allocation9], 1 }
 0x6c6   :  { %5111 = vsyncpa [#allocation9 + $0x1], 1 }
 0x6c7   :  { %5112 = vsyncpa [#allocation12], 1 }
 0x6c8   :  { %5113 = vsyncpa [#allocation15], 1 }
 0x6c9   :  { %5114 = vsyncpa [#allocation18], 1 }
 0x6ca   :  { %5115 = vsyncpa [#allocation21], 1 }
 0x6cb   :  { %5116 = vsyncpa [#allocation10], 1 }
 0x6cc   :  { %5118 = vsyncpa [#allocation10 + $0x1], 1 }
 0x6cd   :  { %5119 = vsyncpa [#allocation24], 1 }
 0x6ce   :  { %5121 = vsyncpa [#allocation24 + $0x1], 1 }

</bundles_post_ra>
